<compile_context>
chip_gen: v5e
topology: v5e:2x2
jax: 0.10.0
libtpu: 0.0.40
codegen_flags: <defaults>
</compile_context>

<pallas_src>
import functools

import jax
import jax.numpy as jnp
import numpy as np
from jax.experimental import pallas as pl
from jax.experimental.pallas import tpu as pltpu


def _round_up(x, m):
    return (x + m - 1) // m * m


def _smb_kernel(x_ref, w1_ref, w2_ref, w3_ref, w4_ref, wc_ref, bc_ref,
                o_ref, fbuf, *, H, W, P):
    """Per-image SMB forward on a zero-padded, flattened NHWC layout.

    x_ref : ((H+4)*P, Cin)  padded input (image at rows 2..H+1, cols 1..W)
    wK_ref: (9*CinK, Co)    3x3 weights, rows ordered (kw, kh, cin)
    wc_ref: (4*Co, Co)      1x1 collect weight (layer-major rows)
    bc_ref: (1, Co)         collect bias (f32)
    o_ref : (H*P, Co)       interior-row output slab (f32); the wrapper keeps
                            columns 1..W only.
    fbuf  : ((H+4)*P, Co)   persistent VMEM scratch holding the current
                            padded feature map between layers.
    """
    HPW = H * P                 # interior-rows slab length
    L3 = HPW + 2                # im2col length (+/-1 column guard)
    qa = 2 * P - 1              # first padded index covered by the im2col
    co = o_ref.shape[-1]

    # Pad-column mask for the interior slab, shape (HPW, 1); broadcast happens
    # inside the multiply (no materialized (HPW, Co) mask).
    col = jax.lax.broadcasted_iota(jnp.int32, (HPW, 1), 0) % P
    colmask = jnp.logical_and(col >= 1, col <= W)

    # Re-zero the pad-row blocks of the feature scratch every grid step (they
    # are tiny, and this stays correct when the batch axis is megacore-split).
    # The interior slab is fully overwritten every layer.
    zeros_pad = jnp.zeros((2 * P, co), fbuf.dtype)
    fbuf[pl.ds(0, 2 * P), :] = zeros_pad
    fbuf[pl.ds(2 * P + HPW, 2 * P), :] = zeros_pad

    def conv3x3(src_ref, w_ref):
        """3x3 conv over the padded map -> f32 (HPW, Co) interior slab."""
        c = src_ref.shape[-1]
        # Vertical (kh) im2col: lane-concat of the 3 row-shifted maps.
        # Row shifts are +/-P (sublane aligned since P % 8 == 0).
        x3 = jnp.concatenate(
            [src_ref[pl.ds(qa - P, L3), :],
             src_ref[pl.ds(qa, L3), :],
             src_ref[pl.ds(qa + P, L3), :]], axis=-1)            # (L3, 3c)
        # One matmul per kernel column (kw), K = 3c, accumulated in f32.
        acc = jnp.dot(x3[0:HPW], w_ref[pl.ds(0, 3 * c), :],
                      preferred_element_type=jnp.float32)
        acc = acc + jnp.dot(x3[1:1 + HPW], w_ref[pl.ds(3 * c, 3 * c), :],
                            preferred_element_type=jnp.float32)
        acc = acc + jnp.dot(x3[2:2 + HPW], w_ref[pl.ds(6 * c, 3 * c), :],
                            preferred_element_type=jnp.float32)
        return acc

    w_refs = (w1_ref, w2_ref, w3_ref, w4_ref)
    n_layers = len(w_refs)
    out_acc = jnp.zeros((HPW, co), jnp.float32)

    src = x_ref
    for i in range(n_layers):
        fea = jnp.maximum(conv3x3(src, w_refs[i]), 0.0)          # ReLU (f32)
        fea_c = fea.astype(wc_ref.dtype)                         # cast once
        # Incremental 1x1 collect: out += f_i @ wc_i  (no channel concat).
        out_acc = out_acc + jnp.dot(
            fea_c, wc_ref[pl.ds(i * co, co), :],
            preferred_element_type=jnp.float32)
        if i + 1 < n_layers:
            # Zero pad columns and store for the next layer (mask is 0/1, so
            # applying it in compute dtype is exact).
            fbuf[pl.ds(2 * P, HPW), :] = (
                fea_c * colmask.astype(fea_c.dtype)).astype(fbuf.dtype)
            src = fbuf

    o_ref[...] = (out_acc + bc_ref[...]).astype(o_ref.dtype)


def smb_forward(x_nchw, w_hwio_list, wc, bc, *, compute_dtype=jnp.bfloat16):
    """SMB forward.

    x_nchw: (N, Cin, H, W); w_hwio_list: 4 HWIO 3x3 weights;
    wc: (4*Co, Co); bc: (Co,).  Returns (N, Co, H, W) float32.
    """
    assert len(w_hwio_list) == 4
    N, Cin, H, W = x_nchw.shape
    Co = wc.shape[1]
    P = _round_up(W + 2, 8)      # padded width (keeps row shifts sublane-aligned)
    Hp = H + 4                   # 2 zero pad rows top and bottom
    Lp = Hp * P
    HPW = H * P

    # NCHW -> padded flattened NHWC: image at rows 2..H+1, cols 1..W.
    x = jnp.transpose(x_nchw, (0, 2, 3, 1)).astype(compute_dtype)
    x = jnp.pad(x, ((0, 0), (2, 2), (1, P - W - 1), (0, 0)))
    x = x.reshape(N, Lp, Cin)

    # 3x3 weights: HWIO -> rows ordered (kw, kh, cin); each kernel-column
    # block w[kw*3c:(kw+1)*3c] is the fused K=3c tap weight.
    w_flat = [jnp.transpose(w, (1, 0, 2, 3)).reshape(-1, Co).astype(compute_dtype)
              for w in w_hwio_list]
    wc_c = wc.astype(compute_dtype)
    bc2d = bc.reshape(1, Co).astype(jnp.float32)

    kernel = functools.partial(_smb_kernel, H=H, W=W, P=P)

    def full_spec(shape):
        return pl.BlockSpec(shape, lambda n: (0,) * len(shape))

    itemsize = jnp.dtype(compute_dtype).itemsize
    flops = 2 * N * H * W * Co * (9 * Cin + 9 * Co * 3 + 4 * Co)
    bytes_accessed = int(
        N * Lp * Cin * itemsize + N * HPW * Co * 4 +
        sum(int(np.prod(w.shape)) for w in w_flat) * itemsize +
        int(np.prod(wc_c.shape)) * itemsize + Co * 4)

    # TODO(synk): for large images, tile H into row strips (2-row halo per
    # side) on a second grid axis so VMEM stays bounded and DMA overlaps
    # compute; at these test sizes a whole image fits comfortably in VMEM.
    out = pl.pallas_call(
        kernel,
        out_shape=jax.ShapeDtypeStruct((N, HPW, Co), jnp.float32),
        grid=(N,),
        in_specs=[
            pl.BlockSpec((None, Lp, Cin), lambda n: (n, 0, 0)),
            full_spec(w_flat[0].shape),
            full_spec(w_flat[1].shape),
            full_spec(w_flat[2].shape),
            full_spec(w_flat[3].shape),
            full_spec(wc_c.shape),
            full_spec(bc2d.shape),
        ],
        out_specs=pl.BlockSpec((None, HPW, Co), lambda n: (n, 0, 0)),
        scratch_shapes=[pltpu.VMEM((Lp, Co), compute_dtype)],
        compiler_params=pltpu.CompilerParams(
            dimension_semantics=("parallel",),
            vmem_limit_bytes=32 * 1024 * 1024),
        cost_estimate=pl.CostEstimate(flops=flops, transcendentals=0,
                                      bytes_accessed=bytes_accessed),
    )(x, w_flat[0], w_flat[1], w_flat[2], w_flat[3], wc_c, bc2d)

    # (N, H*P, Co) -> (N, H, P, Co) -> drop pad columns -> NCHW.
    out = out.reshape(N, H, P, Co)[:, :, 1:W + 1, :]
    return jnp.transpose(out, (0, 3, 1, 2))


def smb_reference(x_nchw, w_hwio_list, wc, bc):
    """Pure-JAX reference mirroring the PyTorch module (for verification)."""
    x = jnp.transpose(x_nchw, (0, 2, 3, 1))
    feats = []
    fea = x
    for w in w_hwio_list:
        fea = jax.lax.conv_general_dilated(
            fea, w, window_strides=(1, 1), padding="SAME",
            dimension_numbers=("NHWC", "HWIO", "NHWC"))
        fea = jnp.maximum(fea, 0.0)
        feats.append(fea)
    cat = jnp.concatenate(feats, axis=-1)
    out = jnp.einsum("nhwc,cd->nhwd", cat, wc) + bc
    return jnp.transpose(out, (0, 3, 1, 2))


if __name__ == "__main__":
    N, Cin, Co, H, Wd = 2, 4, 8, 16, 16
    n_layers = 4

    key = jax.random.PRNGKey(0)
    keys = jax.random.split(key, 3 + n_layers)

    x = jax.random.normal(keys[0], (N, Cin, H, Wd), jnp.float32)

    cins = [Cin] + [Co] * (n_layers - 1)
    w_hwio = [0.1 * jax.random.normal(keys[1 + i], (3, 3, cins[i], Co),
                                      jnp.float32)
              for i in range(n_layers)]
    wc = 0.1 * jax.random.normal(keys[1 + n_layers],
                                 (n_layers * Co, Co), jnp.float32)
    bc = 0.1 * jax.random.normal(keys[2 + n_layers], (Co,), jnp.float32)

    ref = smb_reference(x, w_hwio, wc, bc)

    # Exact-precision path (f32 everywhere) -- tight tolerance.
    out_f32 = jax.block_until_ready(
        smb_forward(x, w_hwio, wc, bc, compute_dtype=jnp.float32))
    np.testing.assert_allclose(np.asarray(out_f32), np.asarray(ref),
                               rtol=1e-4, atol=1e-4)

    # Default fast path (bf16 matmuls, f32 accumulation) -- loose tolerance.
    out_bf16 = jax.block_until_ready(
        smb_forward(x, w_hwio, wc, bc, compute_dtype=jnp.bfloat16))
    np.testing.assert_allclose(np.asarray(out_bf16), np.asarray(ref),
                               rtol=5e-2, atol=5e-2)

    print("KERNEL_OK")
</pallas_src>

<mosaic_0001>
module attributes {stable_mosaic.version = 11 : i64} {
  func.func @_smb_kernel(%arg0: i32, %arg1: memref<1x480x4xf32, #tpu.memory_space<vmem>>, %arg2: memref<36x8xf32, #tpu.memory_space<vmem>>, %arg3: memref<72x8xf32, #tpu.memory_space<vmem>>, %arg4: memref<72x8xf32, #tpu.memory_space<vmem>>, %arg5: memref<72x8xf32, #tpu.memory_space<vmem>>, %arg6: memref<32x8xf32, #tpu.memory_space<vmem>>, %arg7: memref<1x8xf32, #tpu.memory_space<vmem>>, %arg8: memref<1x384x8xf32, #tpu.memory_space<vmem>>, %arg9: memref<480x8xf32, #tpu.memory_space<vmem>>) attributes {dimension_semantics = [#tpu.dimension_semantics<parallel>], iteration_bounds = array<i64: 2>, scalar_prefetch = 0 : i64, scratch_operands = 1 : i64, tpu.core_type = #tpu.core_type<tc>, window_params = [{transform_indices = @transform_0, window_bounds = array<i64: 1, 480, 4>}, {pipeline_mode = #tpu.pipeline_mode<synchronous>, transform_indices = @transform_1, window_bounds = array<i64: 36, 8>}, {pipeline_mode = #tpu.pipeline_mode<synchronous>, transform_indices = @transform_2, window_bounds = array<i64: 72, 8>}, {pipeline_mode = #tpu.pipeline_mode<synchronous>, transform_indices = @transform_3, window_bounds = array<i64: 72, 8>}, {pipeline_mode = #tpu.pipeline_mode<synchronous>, transform_indices = @transform_4, window_bounds = array<i64: 72, 8>}, {pipeline_mode = #tpu.pipeline_mode<synchronous>, transform_indices = @transform_5, window_bounds = array<i64: 32, 8>}, {pipeline_mode = #tpu.pipeline_mode<synchronous>, transform_indices = @transform_6, window_bounds = array<i64: 1, 8>}, {transform_indices = @transform_7, window_bounds = array<i64: 1, 384, 8>}]} {
    %0 = tpu.iota {dimensions = array<i32: 0>} : vector<384x1xi32>
    %c24_i32 = arith.constant 24 : i32
    %c0_i32 = arith.constant 0 : i32
    %1 = arith.cmpi eq, %c24_i32, %c0_i32 : i32
    %c1_i32 = arith.constant 1 : i32
    %2 = arith.select %1, %c1_i32, %c24_i32 : i32
    %3 = vector.broadcast %2 : i32 to vector<384x1xi32>
    %4 = arith.remsi %0, %3 : vector<384x1xi32>
    %c0_i32_0 = arith.constant 0 : i32
    %5 = vector.broadcast %c0_i32_0 : i32 to vector<384x1xi32>
    %6 = arith.cmpi ne, %4, %5 : vector<384x1xi32>
    %c0_i32_1 = arith.constant 0 : i32
    %7 = vector.broadcast %c0_i32_1 : i32 to vector<384x1xi32>
    %8 = arith.cmpi slt, %4, %7 : vector<384x1xi32>
    %c0_i32_2 = arith.constant 0 : i32
    %9 = arith.cmpi slt, %2, %c0_i32_2 : i32
    %10 = vector.broadcast %9 : i1 to vector<384x1xi1>
    %11 = vector.broadcast %10 : vector<384x1xi1> to vector<384x1xi1>
    %12 = arith.xori %8, %11 : vector<384x1xi1>
    %13 = arith.andi %12, %6 : vector<384x1xi1>
    %14 = vector.broadcast %2 : i32 to vector<384x1xi32>
    %15 = arith.addi %4, %14 : vector<384x1xi32>
    %16 = arith.select %13, %15, %4 : vector<384x1xi1>, vector<384x1xi32>
    %c1_i32_3 = arith.constant 1 : i32
    %17 = vector.broadcast %c1_i32_3 : i32 to vector<384x1xi32>
    %18 = arith.cmpi sge, %16, %17 : vector<384x1xi32>
    %c16_i32 = arith.constant 16 : i32
    %19 = vector.broadcast %c16_i32 : i32 to vector<384x1xi32>
    %20 = arith.cmpi sle, %16, %19 : vector<384x1xi32>
    %21 = arith.andi %18, %20 : vector<384x1xi1>
    %cst = arith.constant 0.000000e+00 : f32
    %22 = vector.broadcast %cst : f32 to vector<48x8xf32>
    %c0 = arith.constant 0 : index
    %c0_4 = arith.constant 0 : index
    %23 = vector.load %arg9[%c0, %c0_4] : memref<480x8xf32, #tpu.memory_space<vmem>>, vector<48x8xf32>
    tpu.vector_store %arg9[%c0, %c0_4], %22 {strides = array<i32>} : memref<480x8xf32, #tpu.memory_space<vmem>>, vector<48x8xf32>,
    %c432 = arith.constant 432 : index
    %c0_5 = arith.constant 0 : index
    %24 = vector.load %arg9[%c432, %c0_5] : memref<480x8xf32, #tpu.memory_space<vmem>>, vector<48x8xf32>
    tpu.vector_store %arg9[%c432, %c0_5], %22 {strides = array<i32>} : memref<480x8xf32, #tpu.memory_space<vmem>>, vector<48x8xf32>,
    %cst_6 = arith.constant 0.000000e+00 : f32
    %25 = vector.broadcast %cst_6 : f32 to vector<384x8xf32>
    %c0_7 = arith.constant 0 : index
    %c23 = arith.constant 23 : index
    %c0_8 = arith.constant 0 : index
    %26 = vector.load %arg1[%c0_7, %c23, %c0_8] : memref<1x480x4xf32, #tpu.memory_space<vmem>>, vector<1x386x4xf32>
    %27 = vector.shape_cast %26 : vector<1x386x4xf32> to vector<386x4xf32>
    %c0_9 = arith.constant 0 : index
    %c47 = arith.constant 47 : index
    %c0_10 = arith.constant 0 : index
    %28 = vector.load %arg1[%c0_9, %c47, %c0_10] : memref<1x480x4xf32, #tpu.memory_space<vmem>>, vector<1x386x4xf32>
    %29 = vector.shape_cast %28 : vector<1x386x4xf32> to vector<386x4xf32>
    %c0_11 = arith.constant 0 : index
    %c71 = arith.constant 71 : index
    %c0_12 = arith.constant 0 : index
    %30 = vector.load %arg1[%c0_11, %c71, %c0_12] : memref<1x480x4xf32, #tpu.memory_space<vmem>>, vector<1x386x4xf32>
    %31 = vector.shape_cast %30 : vector<1x386x4xf32> to vector<386x4xf32>
    %32 = tpu.concatenate %27, %29, %31 in 1 : vector<386x4xf32>, vector<386x4xf32>, vector<386x4xf32> -> vector<386x12xf32>
    %33 = vector.extract_strided_slice %32 {offsets = [0, 0], sizes = [384, 12], strides = [1, 1]} : vector<386x12xf32> to vector<384x12xf32>
    %c0_13 = arith.constant 0 : index
    %c0_14 = arith.constant 0 : index
    %34 = vector.load %arg2[%c0_13, %c0_14] : memref<36x8xf32, #tpu.memory_space<vmem>>, vector<12x8xf32>
    %cst_15 = arith.constant dense<0.000000e+00> : vector<384x8xf32>
    %35 = tpu.matmul %33, %34, %cst_15 {dimension_numbers = #tpu.dot_dimension_numbers<[1], [0], [0], [1], [0, 0, 1, 1], [], []>} : vector<384x12xf32>, vector<12x8xf32>, vector<384x8xf32> -> vector<384x8xf32>
    %36 = vector.extract_strided_slice %32 {offsets = [1, 0], sizes = [384, 12], strides = [1, 1]} : vector<386x12xf32> to vector<384x12xf32>
    %c12 = arith.constant 12 : index
    %c0_16 = arith.constant 0 : index
    %37 = vector.load %arg2[%c12, %c0_16] : memref<36x8xf32, #tpu.memory_space<vmem>>, vector<12x8xf32>
    %cst_17 = arith.constant dense<0.000000e+00> : vector<384x8xf32>
    %38 = tpu.matmul %36, %37, %cst_17 {dimension_numbers = #tpu.dot_dimension_numbers<[1], [0], [0], [1], [0, 0, 1, 1], [], []>} : vector<384x12xf32>, vector<12x8xf32>, vector<384x8xf32> -> vector<384x8xf32>
    %39 = arith.addf %35, %38 : vector<384x8xf32>
    %40 = vector.extract_strided_slice %32 {offsets = [2, 0], sizes = [384, 12], strides = [1, 1]} : vector<386x12xf32> to vector<384x12xf32>
    %c24 = arith.constant 24 : index
    %c0_18 = arith.constant 0 : index
    %41 = vector.load %arg2[%c24, %c0_18] : memref<36x8xf32, #tpu.memory_space<vmem>>, vector<12x8xf32>
    %cst_19 = arith.constant dense<0.000000e+00> : vector<384x8xf32>
    %42 = tpu.matmul %40, %41, %cst_19 {dimension_numbers = #tpu.dot_dimension_numbers<[1], [0], [0], [1], [0, 0, 1, 1], [], []>} : vector<384x12xf32>, vector<12x8xf32>, vector<384x8xf32> -> vector<384x8xf32>
    %43 = arith.addf %39, %42 : vector<384x8xf32>
    %cst_20 = arith.constant 0.000000e+00 : f32
    %44 = vector.broadcast %cst_20 : f32 to vector<384x8xf32>
    %45 = arith.maximumf %43, %44 : vector<384x8xf32>
    %c0_21 = arith.constant 0 : index
    %c0_22 = arith.constant 0 : index
    %46 = vector.load %arg6[%c0_21, %c0_22] : memref<32x8xf32, #tpu.memory_space<vmem>>, vector<8x8xf32>
    %cst_23 = arith.constant dense<0.000000e+00> : vector<384x8xf32>
    %47 = tpu.matmul %45, %46, %cst_23 {dimension_numbers = #tpu.dot_dimension_numbers<[1], [0], [0], [1], [0, 0, 1, 1], [], []>} : vector<384x8xf32>, vector<8x8xf32>, vector<384x8xf32> -> vector<384x8xf32>
    %48 = arith.addf %25, %47 : vector<384x8xf32>
    %49 = arith.extui %21 : vector<384x1xi1> to vector<384x1xi32>
    %50 = arith.sitofp %49 : vector<384x1xi32> to vector<384x1xf32>
    %51 = vector.broadcast %50 : vector<384x1xf32> to vector<384x8xf32>
    %52 = arith.mulf %45, %51 : vector<384x8xf32>
    %c48 = arith.constant 48 : index
    %c0_24 = arith.constant 0 : index
    %53 = vector.load %arg9[%c48, %c0_24] : memref<480x8xf32, #tpu.memory_space<vmem>>, vector<384x8xf32>
    tpu.vector_store %arg9[%c48, %c0_24], %52 {strides = array<i32>} : memref<480x8xf32, #tpu.memory_space<vmem>>, vector<384x8xf32>,
    %c23_25 = arith.constant 23 : index
    %c0_26 = arith.constant 0 : index
    %54 = vector.load %arg9[%c23_25, %c0_26] : memref<480x8xf32, #tpu.memory_space<vmem>>, vector<386x8xf32>
    %c47_27 = arith.constant 47 : index
    %c0_28 = arith.constant 0 : index
    %55 = vector.load %arg9[%c47_27, %c0_28] : memref<480x8xf32, #tpu.memory_space<vmem>>, vector<386x8xf32>
    %c71_29 = arith.constant 71 : index
    %c0_30 = arith.constant 0 : index
    %56 = vector.load %arg9[%c71_29, %c0_30] : memref<480x8xf32, #tpu.memory_space<vmem>>, vector<386x8xf32>
    %57 = tpu.concatenate %54, %55, %56 in 1 : vector<386x8xf32>, vector<386x8xf32>, vector<386x8xf32> -> vector<386x24xf32>
    %58 = vector.extract_strided_slice %57 {offsets = [0, 0], sizes = [384, 24], strides = [1, 1]} : vector<386x24xf32> to vector<384x24xf32>
    %c0_31 = arith.constant 0 : index
    %c0_32 = arith.constant 0 : index
    %59 = vector.load %arg3[%c0_31, %c0_32] : memref<72x8xf32, #tpu.memory_space<vmem>>, vector<24x8xf32>
    %cst_33 = arith.constant dense<0.000000e+00> : vector<384x8xf32>
    %60 = tpu.matmul %58, %59, %cst_33 {dimension_numbers = #tpu.dot_dimension_numbers<[1], [0], [0], [1], [0, 0, 1, 1], [], []>} : vector<384x24xf32>, vector<24x8xf32>, vector<384x8xf32> -> vector<384x8xf32>
    %61 = vector.extract_strided_slice %57 {offsets = [1, 0], sizes = [384, 24], strides = [1, 1]} : vector<386x24xf32> to vector<384x24xf32>
    %c24_34 = arith.constant 24 : index
    %c0_35 = arith.constant 0 : index
    %62 = vector.load %arg3[%c24_34, %c0_35] : memref<72x8xf32, #tpu.memory_space<vmem>>, vector<24x8xf32>
    %cst_36 = arith.constant dense<0.000000e+00> : vector<384x8xf32>
    %63 = tpu.matmul %61, %62, %cst_36 {dimension_numbers = #tpu.dot_dimension_numbers<[1], [0], [0], [1], [0, 0, 1, 1], [], []>} : vector<384x24xf32>, vector<24x8xf32>, vector<384x8xf32> -> vector<384x8xf32>
    %64 = arith.addf %60, %63 : vector<384x8xf32>
    %65 = vector.extract_strided_slice %57 {offsets = [2, 0], sizes = [384, 24], strides = [1, 1]} : vector<386x24xf32> to vector<384x24xf32>
    %c48_37 = arith.constant 48 : index
    %c0_38 = arith.constant 0 : index
    %66 = vector.load %arg3[%c48_37, %c0_38] : memref<72x8xf32, #tpu.memory_space<vmem>>, vector<24x8xf32>
    %cst_39 = arith.constant dense<0.000000e+00> : vector<384x8xf32>
    %67 = tpu.matmul %65, %66, %cst_39 {dimension_numbers = #tpu.dot_dimension_numbers<[1], [0], [0], [1], [0, 0, 1, 1], [], []>} : vector<384x24xf32>, vector<24x8xf32>, vector<384x8xf32> -> vector<384x8xf32>
    %68 = arith.addf %64, %67 : vector<384x8xf32>
    %cst_40 = arith.constant 0.000000e+00 : f32
    %69 = vector.broadcast %cst_40 : f32 to vector<384x8xf32>
    %70 = arith.maximumf %68, %69 : vector<384x8xf32>
    %c8 = arith.constant 8 : index
    %c0_41 = arith.constant 0 : index
    %71 = vector.load %arg6[%c8, %c0_41] : memref<32x8xf32, #tpu.memory_space<vmem>>, vector<8x8xf32>
    %cst_42 = arith.constant dense<0.000000e+00> : vector<384x8xf32>
    %72 = tpu.matmul %70, %71, %cst_42 {dimension_numbers = #tpu.dot_dimension_numbers<[1], [0], [0], [1], [0, 0, 1, 1], [], []>} : vector<384x8xf32>, vector<8x8xf32>, vector<384x8xf32> -> vector<384x8xf32>
    %73 = arith.addf %48, %72 : vector<384x8xf32>
    %74 = arith.extui %21 : vector<384x1xi1> to vector<384x1xi32>
    %75 = arith.sitofp %74 : vector<384x1xi32> to vector<384x1xf32>
    %76 = vector.broadcast %75 : vector<384x1xf32> to vector<384x8xf32>
    %77 = arith.mulf %70, %76 : vector<384x8xf32>
    %c48_43 = arith.constant 48 : index
    %c0_44 = arith.constant 0 : index
    %78 = vector.load %arg9[%c48_43, %c0_44] : memref<480x8xf32, #tpu.memory_space<vmem>>, vector<384x8xf32>
    tpu.vector_store %arg9[%c48_43, %c0_44], %77 {strides = array<i32>} : memref<480x8xf32, #tpu.memory_space<vmem>>, vector<384x8xf32>,
    %c23_45 = arith.constant 23 : index
    %c0_46 = arith.constant 0 : index
    %79 = vector.load %arg9[%c23_45, %c0_46] : memref<480x8xf32, #tpu.memory_space<vmem>>, vector<386x8xf32>
    %c47_47 = arith.constant 47 : index
    %c0_48 = arith.constant 0 : index
    %80 = vector.load %arg9[%c47_47, %c0_48] : memref<480x8xf32, #tpu.memory_space<vmem>>, vector<386x8xf32>
    %c71_49 = arith.constant 71 : index
    %c0_50 = arith.constant 0 : index
    %81 = vector.load %arg9[%c71_49, %c0_50] : memref<480x8xf32, #tpu.memory_space<vmem>>, vector<386x8xf32>
    %82 = tpu.concatenate %79, %80, %81 in 1 : vector<386x8xf32>, vector<386x8xf32>, vector<386x8xf32> -> vector<386x24xf32>
    %83 = vector.extract_strided_slice %82 {offsets = [0, 0], sizes = [384, 24], strides = [1, 1]} : vector<386x24xf32> to vector<384x24xf32>
    %c0_51 = arith.constant 0 : index
    %c0_52 = arith.constant 0 : index
    %84 = vector.load %arg4[%c0_51, %c0_52] : memref<72x8xf32, #tpu.memory_space<vmem>>, vector<24x8xf32>
    %cst_53 = arith.constant dense<0.000000e+00> : vector<384x8xf32>
    %85 = tpu.matmul %83, %84, %cst_53 {dimension_numbers = #tpu.dot_dimension_numbers<[1], [0], [0], [1], [0, 0, 1, 1], [], []>} : vector<384x24xf32>, vector<24x8xf32>, vector<384x8xf32> -> vector<384x8xf32>
    %86 = vector.extract_strided_slice %82 {offsets = [1, 0], sizes = [384, 24], strides = [1, 1]} : vector<386x24xf32> to vector<384x24xf32>
    %c24_54 = arith.constant 24 : index
    %c0_55 = arith.constant 0 : index
    %87 = vector.load %arg4[%c24_54, %c0_55] : memref<72x8xf32, #tpu.memory_space<vmem>>, vector<24x8xf32>
    %cst_56 = arith.constant dense<0.000000e+00> : vector<384x8xf32>
    %88 = tpu.matmul %86, %87, %cst_56 {dimension_numbers = #tpu.dot_dimension_numbers<[1], [0], [0], [1], [0, 0, 1, 1], [], []>} : vector<384x24xf32>, vector<24x8xf32>, vector<384x8xf32> -> vector<384x8xf32>
    %89 = arith.addf %85, %88 : vector<384x8xf32>
    %90 = vector.extract_strided_slice %82 {offsets = [2, 0], sizes = [384, 24], strides = [1, 1]} : vector<386x24xf32> to vector<384x24xf32>
    %c48_57 = arith.constant 48 : index
    %c0_58 = arith.constant 0 : index
    %91 = vector.load %arg4[%c48_57, %c0_58] : memref<72x8xf32, #tpu.memory_space<vmem>>, vector<24x8xf32>
    %cst_59 = arith.constant dense<0.000000e+00> : vector<384x8xf32>
    %92 = tpu.matmul %90, %91, %cst_59 {dimension_numbers = #tpu.dot_dimension_numbers<[1], [0], [0], [1], [0, 0, 1, 1], [], []>} : vector<384x24xf32>, vector<24x8xf32>, vector<384x8xf32> -> vector<384x8xf32>
    %93 = arith.addf %89, %92 : vector<384x8xf32>
    %cst_60 = arith.constant 0.000000e+00 : f32
    %94 = vector.broadcast %cst_60 : f32 to vector<384x8xf32>
    %95 = arith.maximumf %93, %94 : vector<384x8xf32>
    %c16 = arith.constant 16 : index
    %c0_61 = arith.constant 0 : index
    %96 = vector.load %arg6[%c16, %c0_61] : memref<32x8xf32, #tpu.memory_space<vmem>>, vector<8x8xf32>
    %cst_62 = arith.constant dense<0.000000e+00> : vector<384x8xf32>
    %97 = tpu.matmul %95, %96, %cst_62 {dimension_numbers = #tpu.dot_dimension_numbers<[1], [0], [0], [1], [0, 0, 1, 1], [], []>} : vector<384x8xf32>, vector<8x8xf32>, vector<384x8xf32> -> vector<384x8xf32>
    %98 = arith.addf %73, %97 : vector<384x8xf32>
    %99 = arith.extui %21 : vector<384x1xi1> to vector<384x1xi32>
    %100 = arith.sitofp %99 : vector<384x1xi32> to vector<384x1xf32>
    %101 = vector.broadcast %100 : vector<384x1xf32> to vector<384x8xf32>
    %102 = arith.mulf %95, %101 : vector<384x8xf32>
    %c48_63 = arith.constant 48 : index
    %c0_64 = arith.constant 0 : index
    %103 = vector.load %arg9[%c48_63, %c0_64] : memref<480x8xf32, #tpu.memory_space<vmem>>, vector<384x8xf32>
    tpu.vector_store %arg9[%c48_63, %c0_64], %102 {strides = array<i32>} : memref<480x8xf32, #tpu.memory_space<vmem>>, vector<384x8xf32>,
    %c23_65 = arith.constant 23 : index
    %c0_66 = arith.constant 0 : index
    %104 = vector.load %arg9[%c23_65, %c0_66] : memref<480x8xf32, #tpu.memory_space<vmem>>, vector<386x8xf32>
    %c47_67 = arith.constant 47 : index
    %c0_68 = arith.constant 0 : index
    %105 = vector.load %arg9[%c47_67, %c0_68] : memref<480x8xf32, #tpu.memory_space<vmem>>, vector<386x8xf32>
    %c71_69 = arith.constant 71 : index
    %c0_70 = arith.constant 0 : index
    %106 = vector.load %arg9[%c71_69, %c0_70] : memref<480x8xf32, #tpu.memory_space<vmem>>, vector<386x8xf32>
    %107 = tpu.concatenate %104, %105, %106 in 1 : vector<386x8xf32>, vector<386x8xf32>, vector<386x8xf32> -> vector<386x24xf32>
    %108 = vector.extract_strided_slice %107 {offsets = [0, 0], sizes = [384, 24], strides = [1, 1]} : vector<386x24xf32> to vector<384x24xf32>
    %c0_71 = arith.constant 0 : index
    %c0_72 = arith.constant 0 : index
    %109 = vector.load %arg5[%c0_71, %c0_72] : memref<72x8xf32, #tpu.memory_space<vmem>>, vector<24x8xf32>
    %cst_73 = arith.constant dense<0.000000e+00> : vector<384x8xf32>
    %110 = tpu.matmul %108, %109, %cst_73 {dimension_numbers = #tpu.dot_dimension_numbers<[1], [0], [0], [1], [0, 0, 1, 1], [], []>} : vector<384x24xf32>, vector<24x8xf32>, vector<384x8xf32> -> vector<384x8xf32>
    %111 = vector.extract_strided_slice %107 {offsets = [1, 0], sizes = [384, 24], strides = [1, 1]} : vector<386x24xf32> to vector<384x24xf32>
    %c24_74 = arith.constant 24 : index
    %c0_75 = arith.constant 0 : index
    %112 = vector.load %arg5[%c24_74, %c0_75] : memref<72x8xf32, #tpu.memory_space<vmem>>, vector<24x8xf32>
    %cst_76 = arith.constant dense<0.000000e+00> : vector<384x8xf32>
    %113 = tpu.matmul %111, %112, %cst_76 {dimension_numbers = #tpu.dot_dimension_numbers<[1], [0], [0], [1], [0, 0, 1, 1], [], []>} : vector<384x24xf32>, vector<24x8xf32>, vector<384x8xf32> -> vector<384x8xf32>
    %114 = arith.addf %110, %113 : vector<384x8xf32>
    %115 = vector.extract_strided_slice %107 {offsets = [2, 0], sizes = [384, 24], strides = [1, 1]} : vector<386x24xf32> to vector<384x24xf32>
    %c48_77 = arith.constant 48 : index
    %c0_78 = arith.constant 0 : index
    %116 = vector.load %arg5[%c48_77, %c0_78] : memref<72x8xf32, #tpu.memory_space<vmem>>, vector<24x8xf32>
    %cst_79 = arith.constant dense<0.000000e+00> : vector<384x8xf32>
    %117 = tpu.matmul %115, %116, %cst_79 {dimension_numbers = #tpu.dot_dimension_numbers<[1], [0], [0], [1], [0, 0, 1, 1], [], []>} : vector<384x24xf32>, vector<24x8xf32>, vector<384x8xf32> -> vector<384x8xf32>
    %118 = arith.addf %114, %117 : vector<384x8xf32>
    %cst_80 = arith.constant 0.000000e+00 : f32
    %119 = vector.broadcast %cst_80 : f32 to vector<384x8xf32>
    %120 = arith.maximumf %118, %119 : vector<384x8xf32>
    %c24_81 = arith.constant 24 : index
    %c0_82 = arith.constant 0 : index
    %121 = vector.load %arg6[%c24_81, %c0_82] : memref<32x8xf32, #tpu.memory_space<vmem>>, vector<8x8xf32>
    %cst_83 = arith.constant dense<0.000000e+00> : vector<384x8xf32>
    %122 = tpu.matmul %120, %121, %cst_83 {dimension_numbers = #tpu.dot_dimension_numbers<[1], [0], [0], [1], [0, 0, 1, 1], [], []>} : vector<384x8xf32>, vector<8x8xf32>, vector<384x8xf32> -> vector<384x8xf32>
    %123 = arith.addf %98, %122 : vector<384x8xf32>
    %c0_84 = arith.constant 0 : index
    %c0_85 = arith.constant 0 : index
    %124 = vector.load %arg7[%c0_84, %c0_85] : memref<1x8xf32, #tpu.memory_space<vmem>>, vector<1x8xf32>
    %125 = vector.broadcast %124 : vector<1x8xf32> to vector<384x8xf32>
    %126 = arith.addf %123, %125 : vector<384x8xf32>
    %c0_86 = arith.constant 0 : index
    %c0_87 = arith.constant 0 : index
    %c0_88 = arith.constant 0 : index
    %127 = vector.load %arg8[%c0_86, %c0_87, %c0_88] : memref<1x384x8xf32, #tpu.memory_space<vmem>>, vector<1x384x8xf32>
    %128 = vector.shape_cast %127 : vector<1x384x8xf32> to vector<384x8xf32>
    %129 = vector.shape_cast %126 : vector<384x8xf32> to vector<1x384x8xf32>
    tpu.vector_store %arg8[%c0_86, %c0_87, %c0_88], %129 {strides = array<i32>} : memref<1x384x8xf32, #tpu.memory_space<vmem>>, vector<1x384x8xf32>,
    return
  }
  func.func @transform_0(%arg0: i32) -> (i32, i32, i32) {
    %c0_i32 = arith.constant 0 : i32
    %c0_i32_0 = arith.constant 0 : i32
    %c0_i32_1 = arith.constant 0 : i32
    return %arg0, %c0_i32, %c0_i32_0 : i32, i32, i32
  }
  func.func @transform_1(%arg0: i32) -> (i32, i32) {
    %c0_i32 = arith.constant 0 : i32
    %c0_i32_0 = arith.constant 0 : i32
    %c0_i32_1 = arith.constant 0 : i32
    return %c0_i32, %c0_i32_0 : i32, i32
  }
  func.func @transform_2(%arg0: i32) -> (i32, i32) {
    %c0_i32 = arith.constant 0 : i32
    %c0_i32_0 = arith.constant 0 : i32
    %c0_i32_1 = arith.constant 0 : i32
    return %c0_i32, %c0_i32_0 : i32, i32
  }
  func.func @transform_3(%arg0: i32) -> (i32, i32) {
    %c0_i32 = arith.constant 0 : i32
    %c0_i32_0 = arith.constant 0 : i32
    %c0_i32_1 = arith.constant 0 : i32
    return %c0_i32, %c0_i32_0 : i32, i32
  }
  func.func @transform_4(%arg0: i32) -> (i32, i32) {
    %c0_i32 = arith.constant 0 : i32
    %c0_i32_0 = arith.constant 0 : i32
    %c0_i32_1 = arith.constant 0 : i32
    return %c0_i32, %c0_i32_0 : i32, i32
  }
  func.func @transform_5(%arg0: i32) -> (i32, i32) {
    %c0_i32 = arith.constant 0 : i32
    %c0_i32_0 = arith.constant 0 : i32
    %c0_i32_1 = arith.constant 0 : i32
    return %c0_i32, %c0_i32_0 : i32, i32
  }
  func.func @transform_6(%arg0: i32) -> (i32, i32) {
    %c0_i32 = arith.constant 0 : i32
    %c0_i32_0 = arith.constant 0 : i32
    %c0_i32_1 = arith.constant 0 : i32
    return %c0_i32, %c0_i32_0 : i32, i32
  }
  func.func @transform_7(%arg0: i32) -> (i32, i32, i32) {
    %c0_i32 = arith.constant 0 : i32
    %c0_i32_0 = arith.constant 0 : i32
    %c0_i32_1 = arith.constant 0 : i32
    return %arg0, %c0_i32, %c0_i32_0 : i32, i32, i32
  }
}

</mosaic_0001>

<bundles_post_ra>
// kernel: tpu_custom_call.1
= control target key start
LH: loop header
LB: loop body
LE: loop exit
PB: predicated region body
PF: predicated region fallthrough
CT: control target
= control target key end

     0   :  { %s11495_s24 = smov 0   ;;  %s18863_s0 = inlined_call_operand.vmem [shape: f32[2,480,4], index: 0, kind: input, shape index: {}]   ;;  %s18864_s1 = inlined_call_operand.vmem [shape: f32[36,8], index: 1, kind: input, shape index: {}]   ;;  %s18865_s2 = inlined_call_operand.vmem [shape: f32[72,8], index: 2, kind: input, shape index: {}]   ;;  %s18866_s3 = inlined_call_operand.vmem [shape: f32[72,8], index: 3, kind: input, shape index: {}]   ;;  %s18867_s4 = inlined_call_operand.vmem [shape: f32[72,8], index: 4, kind: input, shape index: {}]   ;;  %s18868_s5 = inlined_call_operand.vmem [shape: f32[32,8], index: 5, kind: input, shape index: {}]   ;;  %s18869_s6 = inlined_call_operand.vmem [shape: f32[1,8], index: 6, kind: input, shape index: {}]   ;;  %s18870_s7 = inlined_call_operand.vmem [shape: f32[2,384,8], index: 7, kind: output, shape index: {}]  }
   0x1 LB: > { %s10473_s25 = sadd.s32 4294967295, %s11448_s24   ;;  %p10477_p0 = scmp.ge.s32.totalorder %s11448_s24, 1  ;;  %s11448_s24 = sphi %s11495_s24, %s17_s24  }
   0x2   : > { %p237_p1 = scmp.lt.s32.totalorder %s11448_s24, 3 }
   0x4   : > { %p238_p2 = pnand %p10477_p0, %p237_p1 }
   0x6   : > { %241 = sbr.rel (%p238_p2) target bundleno = 2212 (0x8a4), region = 48 }
   0xb   : > { %p269_p3 = scmp.lt.s32.totalorder %s10473_s25, 1  ;;  %s11450_s30 = smov 4   ;;  %v2621_v13 = vld [vmem:[%s18864_s1 + $0x8] sm:$0xf]  ;;  %vm2868_vm0 = vcmask 1043456   ;;  %v2620_v19 = vld [vmem:[%s18864_s1] sm:$0xff] }
   0xc   : > { %s11451_s8 = smov 8   ;;  %10529 = vmatpush.msk.msra.mxu1 %vm2868_vm0, %v2621_v13  ;;  %v2623_v21 = vld [vmem:[%s18864_s1 + $0x14] sm:$0xf]  ;;  %v3294_v22 = vld [vmem:[%s18864_s1 + $0x20] sm:$0xf]  ;;  %v2622_v23 = vld [vmem:[%s18864_s1 + $0xc] sm:$0xff] }
   0xd   : > { %s19906_s25 = smov (!%p269_p3, %s10473_s25), 1  ;;  %10480 = vmatpush.msk.msra.mxu0 %vm2868_vm0, %v2623_v21  ;;  %10578 = vmatpush.msk.msra.mxu2 %vm2868_vm0, %v3294_v22  ;;  %v3293_v24 = vld [vmem:[%s18864_s1 + $0x18] sm:$0xff]  ;;  %vm2521_vm1 = vcmask 31744   ;;  %vm2104_vm2 = vcmask 64512   ;;  %vm2771_vm3 = vcmask 97280   ;;  %vm2673_vm4 = vcmask 1046528  }
   0xe   : > { %s11301_s26 = smul.u32 480, %s19906_s25  ;;  %3147 = vmatpush.msra.mxu1 %v2620_v19  ;;  %vm3295_vm5 = vcmask 1045504   ;;  %s11454_s13 = smov 16  }
   0xf   : > { %2887 = vmatpush.msra.mxu0 %v2622_v23  ;;  %3507 = vmatpush.msra.mxu2 %v3293_v24 }
  0x10   : > { %s11509_s29 = scalar_lea.vmem %s18863_s0, %s11301_s26 }
  0x11   : > { %v11512_v0 = vld [vmem:[%s11509_s29 + $0x2f] sm:$0xff]  ;;  %v11515_v1 = vld [vmem:[%s11509_s29 + $0x47] sm:$0xff]  ;;  %v11522_v2 = vld [vmem:[%s11509_s29 + $0x3f] sm:$0xff] }
  0x12   : > { %2223 = vrot.lane.b32.xlu0 %v11512_v0, %s11450_s30  ;;  %2374 = vrot.lane.b32.xlu1 %v11515_v1, %s11451_s8  ;;  %v11527_v3 = vld [vmem:[%s11509_s29 + $0x37] sm:$0xff]  ;;  %v11530_v4 = vld [vmem:[%s11509_s29 + $0x4f] sm:$0xff] }
  0x13   : > { %2227 = vrot.lane.b32.xlu2 %v11522_v2, %s11450_s30  ;;  %v11533_v5 = vld [vmem:[%s11509_s29 + $0x57] sm:$0xff]  ;;  %v11542_v6 = vld [vmem:[%s11509_s29 + $0x5f] sm:$0xff]  ;;  %v11551_v7 = vld [vmem:[%s11509_s29 + $0x67] sm:$0xff] }
  0x14   : > { %v11554_v8 = vld [vmem:[%s11509_s29 + $0x6f] sm:$0xff]  ;;  %v11563_v9 = vld [vmem:[%s11509_s29 + $0x77] sm:$0xff]  ;;  %v11572_v10 = vld [vmem:[%s11509_s29 + $0x7f] sm:$0xff] }
  0x15   : > { %v11575_v11 = vld [vmem:[%s11509_s29 + $0x87] sm:$0xff]  ;;  %v11584_v12 = vld [vmem:[%s11509_s29 + $0x8f] sm:$0xff]  ;;  %v11597_v14 = vld [vmem:[%s11509_s29 + $0x97] sm:$0xff] }
  0x16   : > { %v11600_v15 = vld [vmem:[%s11509_s29 + $0x9f] sm:$0xff]  ;;  %v11609_v16 = vld [vmem:[%s11509_s29 + $0xa7] sm:$0xff]  ;;  %v11618_v17 = vld [vmem:[%s11509_s29 + $0xaf] sm:$0xff] }
  0x17   : > { %v11625_v18 = vld [vmem:[%s11509_s29 + $0xbf] sm:$0xff]  ;;  %v11635_v20 = vld [vmem:[%s11509_s29 + $0xc7] sm:$0xff]  ;;  %v11654_v25 = vld [vmem:[%s11509_s29 + $0xb7] sm:$0xff] }
  0x18   : > { %v2141_v26 = vld [vmem:[%s11509_s29 + $0xd7] sm:$0xff]  ;;  %v2118_v33 = vld [vmem:[%s11509_s29 + $0x1f] sm:$0xff]  ;;  %v2140_v34 = vld [vmem:[%s11509_s29 + $0xcf] sm:$0xff] }
  0x19   : > { %v2117_v27 = vld [vmem:[%s11509_s29 + $0x17] sm:$0xff]  ;;  %v11673_v35 = vld [vmem:[%s11509_s29 + $0xdf] sm:$0xff]  ;;  %v2119_v36 = vld [vmem:[%s11509_s29 + $0x27] sm:$0xff] }
  0x1a   : > { %2225 = vrot.lane.b32.xlu0 %v11527_v3, %s11450_s30  ;;  %2376 = vrot.lane.b32.xlu1 %v11530_v4, %s11451_s8  ;;  %v2144_v58 = vld [vmem:[%s11509_s29 + $0xef] sm:$0xff]  ;;  %v2145_v21 = vld [vmem:[%s11509_s29 + $0xf7] sm:$0xff] }
  0x1b   : > { %2378 = vrot.lane.b32.xlu2 %v11533_v5, %s11451_s8  ;;  %v2143_v22 = vld [vmem:[%s11509_s29 + $0xe7] sm:$0xff] }
  0x22   : > { %2229 = vrot.lane.b32.xlu0 %v11515_v1, %s11450_s30  ;;  %2380 = vrot.lane.b32.xlu1 %v11542_v6, %s11451_s8 }
  0x23   : > { %2231 = vrot.lane.b32.xlu2 %v11530_v4, %s11450_s30 }
  0x2a   : > { %2382 = vrot.lane.b32.xlu0 %v11551_v7, %s11451_s8  ;;  %2233 = vrot.lane.b32.xlu1 %v11533_v5, %s11450_s30 }
  0x2b   : > { %2384 = vrot.lane.b32.xlu2 %v11554_v8, %s11451_s8 }
  0x32   : > { %2235 = vrot.lane.b32.xlu0 %v11542_v6, %s11450_s30  ;;  %2386 = vrot.lane.b32.xlu1 %v11563_v9, %s11451_s8 }
  0x33   : > { %2237 = vrot.lane.b32.xlu2 %v11551_v7, %s11450_s30 }
  0x3a   : > { %2388 = vrot.lane.b32.xlu0 %v11572_v10, %s11451_s8  ;;  %2239 = vrot.lane.b32.xlu1 %v11554_v8, %s11450_s30 }
  0x3b   : > { %2390 = vrot.lane.b32.xlu2 %v11575_v11, %s11451_s8 }
  0x42   : > { %2241 = vrot.lane.b32.xlu0 %v11563_v9, %s11450_s30  ;;  %2392 = vrot.lane.b32.xlu1 %v11584_v12, %s11451_s8 }
  0x43   : > { %2243 = vrot.lane.b32.xlu2 %v11572_v10, %s11450_s30 }
  0x4a   : > { %2394 = vrot.lane.b32.xlu0 %v11597_v14, %s11451_s8  ;;  %2245 = vrot.lane.b32.xlu1 %v11575_v11, %s11450_s30 }
  0x4b   : > { %2396 = vrot.lane.b32.xlu2 %v11600_v15, %s11451_s8 }
  0x52   : > { %2247 = vrot.lane.b32.xlu0 %v11584_v12, %s11450_s30  ;;  %2398 = vrot.lane.b32.xlu1 %v11609_v16, %s11451_s8 }
  0x53   : > { %2249 = vrot.lane.b32.xlu2 %v11597_v14, %s11450_s30 }
  0x5a   : > { %2400 = vrot.lane.b32.xlu0 %v11618_v17, %s11451_s8  ;;  %2251 = vrot.lane.b32.xlu1 %v11600_v15, %s11450_s30 }
  0x5b   : > { %2402 = vrot.lane.b32.xlu2 %v11654_v25, %s11451_s8 }
  0x62   : > { %2253 = vrot.lane.b32.xlu0 %v11609_v16, %s11450_s30  ;;  %2404 = vrot.lane.b32.xlu1 %v11625_v18, %s11451_s8 }
  0x63   : > { %2255 = vrot.lane.b32.xlu2 %v11618_v17, %s11450_s30 }
  0x6a   : > { %2406 = vrot.lane.b32.xlu0 %v11635_v20, %s11451_s8  ;;  %2257 = vrot.lane.b32.xlu1 %v11654_v25, %s11450_s30 }
  0x6b   : > { %2408 = vrot.lane.b32.xlu2 %v2140_v34, %s11451_s8 }
  0x6d   : > { %v2228_v31 = vpop.permute.xlu2 %2227 }
  0x6e   : > { %v2524_v40 = vsel %vm2521_vm1, %v2119_v36, %v2228_v31 }
  0x72   : > { %2259 = vrot.lane.b32.xlu0 %v11625_v18, %s11450_s30  ;;  %2410 = vrot.lane.b32.xlu1 %v2141_v26, %s11451_s8 }
  0x73   : > { %2261 = vrot.lane.b32.xlu2 %v11635_v20, %s11450_s30 }
  0x75   : > { %v2379_v44 = vpop.permute.xlu2 %2378 }
  0x76   : > { %v2573_v49 = vsel %vm2104_vm2, %v2524_v40, %v2379_v44  ;;  %v2147_v40 = vld [vmem:[%s11509_s29 + $0x107] sm:$0xff] }
  0x77   : > { %v2677_v51 = vrot.slane %v2573_v49, 1  ;;  %v3299_v52 = vrot.slane %v2573_v49, 2 }
  0x7a   : > { %2412 = vrot.lane.b32.xlu0 %v11673_v35, %s11451_s8  ;;  %2263 = vrot.lane.b32.xlu1 %v2140_v34, %s11450_s30 }
  0x7b   : > { %2414 = vrot.lane.b32.xlu2 %v2143_v22, %s11451_s8 }
  0x7d   : > { %v2232_v59 = vpop.permute.xlu2 %2231 }
  0x7e   : > { %v2526_v62 = vsel %vm2521_vm1, %v11527_v3, %v2232_v59 }
  0x82   : > { %2265 = vrot.lane.b32.xlu0 %v2141_v26, %s11450_s30  ;;  %2416 = vrot.lane.b32.xlu1 %v2144_v58, %s11451_s8 }
  0x83   : > { %2267 = vrot.lane.b32.xlu2 %v11673_v35, %s11450_s30  ;;  %v5114_v35 = vld [vmem:[%s18865_s2 + $0x40] sm:$0xff] }
  0x84   : > { %v2224_v28 = vpop.permute.xlu0 %2223  ;;  %v2375_v29 = vpop.permute.xlu1 %2374  ;;  %5321 = vmatpush.msrb.mxu1 %v5114_v35 }
  0x85   : > { %v2522_v30 = vsel %vm2521_vm1, %v2117_v27, %v2224_v28  ;;  %v2385_v26 = vpop.permute.xlu2 %2384 }
  0x86   : > { %v2571_v32 = vsel %vm2104_vm2, %v2522_v30, %v2375_v29 }
  0x87   : > { %10530 = vmatmul.msk.f32.vlgmr.msra.gmra.mxu1 %vm2771_vm3, %v2571_v32  ;;  %v2674_v42 = vrot.slane %v2571_v32, 1  ;;  %v3296_v43 = vrot.slane %v2571_v32, 2 }
  0x8a   : > { %2418 = vrot.lane.b32.xlu0 %v2145_v21, %s11451_s8  ;;  %2269 = vrot.lane.b32.xlu1 %v2143_v22, %s11450_s30 }
  0x8c   : > { %v2226_v37 = vpop.permute.xlu0 %2225  ;;  %v2377_v38 = vpop.permute.xlu1 %2376 }
  0x8d   : > { %v2523_v39 = vsel %vm2521_vm1, %v2118_v33, %v2226_v37  ;;  %v2238_v34 = vpop.permute.xlu2 %2237  ;;  %v4447_v37 = vld [vmem:[%s18865_s2 + $0x10] sm:$0xff] }
  0x8e   : > { %v2572_v41 = vsel %vm2104_vm2, %v2523_v39, %v2377_v38  ;;  %4964 = vmatpush.msrb.mxu0 %v4447_v37 }
  0x8f   : > { %v2675_v45 = vrot.slane %v2572_v41, 1  ;;  %10531 = vmatmul.msk.f32.gmra.mxu1 %vm2771_vm3, %v2572_v41  ;;  %v3297_v46 = vrot.slane %v2572_v41, 2  ;;  %v2146_v41 = vld [vmem:[%s11509_s29 + $0xff] sm:$0xff] }
  0x90   : > { %2420 = vrot.lane.b32.xlu2 %v2146_v41, %s11451_s8 }
  0x91   : > { %v2676_v47 = vsel %vm2673_vm4, %v2674_v42, %v2675_v45  ;;  %v3298_v48 = vsel %vm3295_vm5, %v3296_v43, %v3297_v46  ;;  %v2678_v55 = vsel %vm2673_vm4, %v2675_v45, %v2677_v51  ;;  %v3300_v56 = vsel %vm3295_vm5, %v3297_v46, %v3299_v52 }
  0x92   : > { %10481 = vmatmul.msk.f32.vlgmr.msra.gmra.mxu0 %vm2771_vm3, %v2676_v47  ;;  %10579 = vmatmul.msk.f32.vlgmr.msra.gmra.mxu2 %vm2771_vm3, %v3298_v48  ;;  %v2529_v46 = vsel %vm2521_vm1, %v11530_v4, %v2238_v34 }
  0x93   : > { %2271 = vrot.lane.b32.xlu0 %v2144_v58, %s11450_s30  ;;  %2422 = vrot.lane.b32.xlu1 %v2147_v40, %s11451_s8 }
  0x94   : > { %v2230_v50 = vpop.permute.xlu0 %2229  ;;  %v2381_v54 = vpop.permute.xlu1 %2380 }
  0x95   : > { %v2525_v53 = vsel %vm2521_vm1, %v11512_v0, %v2230_v50  ;;  %v2391_v47 = vpop.permute.xlu2 %2390 }
  0x96   : > { %v2574_v57 = vsel %vm2104_vm2, %v2525_v53, %v2381_v54 }
  0x97   : > { %10532 = vmatmul.msk.f32.gmra.mxu1 %vm2771_vm3, %v2573_v49  ;;  %v2679_v60 = vrot.slane %v2574_v57, 1  ;;  %v3301_v61 = vrot.slane %v2574_v57, 2 }
  0x98   : > { %2273 = vrot.lane.b32.xlu2 %v2145_v21, %s11450_s30 }
  0x99   : > { %v2680_v0 = vsel %vm2673_vm4, %v2677_v51, %v2679_v60  ;;  %v3302_v13 = vsel %vm3295_vm5, %v3299_v52, %v3301_v61  ;;  %v2148_v51 = vld [vmem:[%s11509_s29 + $0x10f] sm:$0xff] }
  0x9a   : > { %10482 = vmatmul.msk.f32.gmra.mxu0 %vm2771_vm3, %v2678_v55  ;;  %10580 = vmatmul.msk.f32.gmra.mxu2 %vm2771_vm3, %v3300_v56 }
  0x9b   : > { %2424 = vrot.lane.b32.xlu0 %v2148_v51, %s11451_s8  ;;  %2275 = vrot.lane.b32.xlu1 %v2146_v41, %s11450_s30  ;;  %v279_v41 = vlaneseq }
  0x9c   : > { %v2383_v63 = vpop.permute.xlu0 %2382  ;;  %v2234_v23 = vpop.permute.xlu1 %2233 }
  0x9d   : > { %v2575_v19 = vsel %vm2104_vm2, %v2526_v62, %v2383_v63  ;;  %v2527_v27 = vsel %vm2521_vm1, %v11522_v2, %v2234_v23  ;;  %v2244_v56 = vpop.permute.xlu2 %2243 }
  0x9e   : > { %v2681_v3 = vrot.slane %v2575_v19, 1  ;;  %v3303_v24 = vrot.slane %v2575_v19, 2  ;;  %v2576_v31 = vsel %vm2104_vm2, %v2527_v27, %v2385_v26  ;;  %v2532_v27 = vsel %vm2521_vm1, %v11551_v7, %v2244_v56 }
  0x9f   : > { %10533 = vmatmul.msk.f32.gmra.mxu1 %vm2771_vm3, %v2574_v57  ;;  %v2683_v32 = vrot.slane %v2576_v31, 1  ;;  %v3305_v33 = vrot.slane %v2576_v31, 2 }
  0xa0   : > { %v2682_v28 = vsel %vm2673_vm4, %v2679_v60, %v2681_v3  ;;  %v3304_v29 = vsel %vm3295_vm5, %v3301_v61, %v3303_v24  ;;  %v2150_v60 = vld [vmem:[%s11509_s29 + $0x11f] sm:$0xff]  ;;  %v2149_v61 = vld [vmem:[%s11509_s29 + $0x117] sm:$0xff] }
  0xa1   : > { %v2684_v38 = vsel %vm2673_vm4, %v2681_v3, %v2683_v32  ;;  %v3306_v39 = vsel %vm3295_vm5, %v3303_v24, %v3305_v33  ;;  %2426 = vrot.lane.b32.xlu2 %v2149_v61, %s11451_s8  ;;  %v2151_v3 = vld [vmem:[%s11509_s29 + $0x127] sm:$0xff] }
  0xa2   : > { %10483 = vmatmul.msk.f32.gmra.mxu0 %vm2771_vm3, %v2680_v0  ;;  %10581 = vmatmul.msk.f32.gmra.mxu2 %vm2771_vm3, %v3302_v13 }
  0xa3   : > { %2277 = vrot.lane.b32.xlu0 %v2147_v40, %s11450_s30  ;;  %2428 = vrot.lane.b32.xlu1 %v2150_v60, %s11451_s8  ;;  %v11803_v40 = vld [vmem:[%s11509_s29 + $0x13f] sm:$0xff] }
  0xa4   : > { %v2236_v30 = vpop.permute.xlu0 %2235  ;;  %v2387_v2 = vpop.permute.xlu1 %2386 }
  0xa5   : > { %v2528_v36 = vsel %vm2521_vm1, %v11515_v1, %v2236_v30  ;;  %v2397_v23 = vpop.permute.xlu2 %2396 }
  0xa6   : > { %v2577_v1 = vsel %vm2104_vm2, %v2528_v36, %v2387_v2 }
  0xa7   : > { %10534 = vmatmul.msk.f32.gmra.mxu1 %vm2771_vm3, %v2575_v19  ;;  %v2685_v43 = vrot.slane %v2577_v1, 1  ;;  %v3307_v44 = vrot.slane %v2577_v1, 2 }
  0xa9   : > { %v2686_v48 = vsel %vm2673_vm4, %v2683_v32, %v2685_v43  ;;  %v3308_v49 = vsel %vm3295_vm5, %v3305_v33, %v3307_v44  ;;  %2279 = vrot.lane.b32.xlu2 %v2148_v51, %s11450_s30  ;;  %v2153_v32 = vld [vmem:[%s11509_s29 + $0x137] sm:$0xff]  ;;  %v2152_v33 = vld [vmem:[%s11509_s29 + $0x12f] sm:$0xff] }
  0xaa   : > { %10484 = vmatmul.msk.f32.gmra.mxu0 %vm2771_vm3, %v2682_v28  ;;  %10582 = vmatmul.msk.f32.gmra.mxu2 %vm2771_vm3, %v3304_v29 }
  0xab   : > { %2430 = vrot.lane.b32.xlu0 %v2151_v3, %s11451_s8  ;;  %2281 = vrot.lane.b32.xlu1 %v2149_v61, %s11450_s30 }
  0xac   : > { %v2389_v42 = vpop.permute.xlu0 %2388  ;;  %v2240_v45 = vpop.permute.xlu1 %2239 }
  0xad   : > { %v2578_v50 = vsel %vm2104_vm2, %v2529_v46, %v2389_v42  ;;  %v2530_v54 = vsel %vm2521_vm1, %v11533_v5, %v2240_v45  ;;  %v2250_v2 = vpop.permute.xlu2 %2249  ;;  %v11809_v42 = vshrl.u32 %v279_v41, 7 }
  0xae   : > { %v2687_v52 = vrot.slane %v2578_v50, 1  ;;  %v3309_v53 = vrot.slane %v2578_v50, 2  ;;  %v2579_v59 = vsel %vm2104_vm2, %v2530_v54, %v2391_v47  ;;  %v2535_v56 = vsel %vm2521_vm1, %v11572_v10, %v2250_v2 }
  0xaf   : > { %10535 = vmatmul.msk.f32.gmra.mxu1 %vm2771_vm3, %v2576_v31  ;;  %v2689_v5 = vrot.slane %v2579_v59, 1  ;;  %v3311_v62 = vrot.slane %v2579_v59, 2  ;;  %v331_v46 = vand.u32 65535, %v11809_v42 }
  0xb0   : > { %v2688_v57 = vsel %vm2673_vm4, %v2685_v43, %v2687_v52  ;;  %v3310_v58 = vsel %vm3295_vm5, %v3307_v44, %v3309_v53 }
  0xb1   : > { %v2690_v19 = vsel %vm2673_vm4, %v2687_v52, %v2689_v5  ;;  %v3312_v21 = vsel %vm3295_vm5, %v3309_v53, %v3311_v62  ;;  %2432 = vrot.lane.b32.xlu2 %v2152_v33, %s11451_s8  ;;  %v11827_v52 = vld [vmem:[%s11509_s29 + $0x147] sm:$0xff]  ;;  %v334_v53 = vmul.u32 43691, %v331_v46 }
  0xb2   : > { %10485 = vmatmul.msk.f32.gmra.mxu0 %vm2771_vm3, %v2684_v38  ;;  %10583 = vmatmul.msk.f32.gmra.mxu2 %vm2771_vm3, %v3306_v39 }
  0xb3   : > { %2283 = vrot.lane.b32.xlu0 %v2150_v60, %s11450_s30  ;;  %2434 = vrot.lane.b32.xlu1 %v2153_v32, %s11451_s8 }
  0xb4   : > { %v2242_v4 = vpop.permute.xlu0 %2241  ;;  %v2393_v55 = vpop.permute.xlu1 %2392 }
  0xb5   : > { %v2531_v0 = vsel %vm2521_vm1, %v11542_v6, %v2242_v4 }
  0xb6   : > { %v2580_v22 = vsel %vm2104_vm2, %v2531_v0, %v2393_v55 }
  0xb7   : > { %10536 = vmatmul.msk.f32.gmra.mxu1 %vm2771_vm3, %v2577_v1  ;;  %v2691_v6 = vrot.slane %v2580_v22, 1  ;;  %v3313_v24 = vrot.slane %v2580_v22, 2 }
  0xb9   : > { %v2692_v28 = vsel %vm2673_vm4, %v2689_v5, %v2691_v6  ;;  %v3314_v29 = vsel %vm3295_vm5, %v3311_v62, %v3313_v24  ;;  %2285 = vrot.lane.b32.xlu2 %v2151_v3, %s11450_s30  ;;  %v18884_v62 = vmov 0  }
  0xba   : > { %10486 = vmatmul.msk.f32.gmra.mxu0 %vm2771_vm3, %v2686_v48  ;;  %10584 = vmatmul.msk.f32.gmra.mxu2 %vm2771_vm3, %v3308_v49  ;;  %v332_v49 = vshrl.u32 %v11809_v42, 16 }
  0xbb   : > { %2436 = vrot.lane.b32.xlu0 %v11803_v40, %s11451_s8  ;;  %2287 = vrot.lane.b32.xlu1 %v2152_v33, %s11450_s30  ;;  %v11861_v33 = vld [vmem:[%s11509_s29 + $0x167] sm:$0xff] }
  0xbc   : > { %v2395_v63 = vpop.permute.xlu0 %2394  ;;  %v2246_v13 = vpop.permute.xlu1 %2245  ;;  %v336_v54 = vmul.u32 43691, %v332_v49  ;;  %v337_v61 = vmul.u32 43690, %v332_v49 }
  0xbd   : > { %v2581_v31 = vsel %vm2104_vm2, %v2532_v27, %v2395_v63  ;;  %v2533_v36 = vsel %vm2521_vm1, %v11554_v8, %v2246_v13  ;;  %v2403_v8 = vpop.permute.xlu2 %2402  ;;  %v11842_v13 = vadd.s32 8, %v11809_v42 }
  0xbe   : > { %v2693_v7 = vrot.slane %v2581_v31, 1  ;;  %v3315_v34 = vrot.slane %v2581_v31, 2  ;;  %v2582_v1 = vsel %vm2104_vm2, %v2533_v36, %v2397_v23  ;;  %v340_v5 = vshll.u32 %v336_v54, 16 }
  0xbf   : > { %10537 = vmatmul.msk.f32.gmra.mxu1 %vm2771_vm3, %v2578_v50  ;;  %v2695_v44 = vrot.slane %v2582_v1, 1  ;;  %v3317_v45 = vrot.slane %v2582_v1, 2  ;;  %v335_v50 = vmul.u32 43690, %v331_v46 }
  0xc0   : > { %v2694_v35 = vsel %vm2673_vm4, %v2691_v6, %v2693_v7  ;;  %v3316_v38 = vsel %vm3295_vm5, %v3313_v24, %v3315_v34 }
  0xc1   : > { %v2696_v51 = vsel %vm2673_vm4, %v2693_v7, %v2695_v44  ;;  %v3318_v4 = vsel %vm3295_vm5, %v3315_v34, %v3317_v45  ;;  %v338_v55 = vshll.u32 %v335_v50, 16  ;;  %2438 = vrot.lane.b32.xlu2 %v11827_v52, %s11451_s8  ;;  %v339_v6 = vshrl.u32 %v335_v50, 16 }
  0xc2   : > { %10487 = vmatmul.msk.f32.gmra.mxu0 %vm2771_vm3, %v2688_v57  ;;  %10585 = vmatmul.msk.f32.gmra.mxu2 %vm2771_vm3, %v3310_v58  ;;  %v341_v7 = vshrl.u32 %v336_v54, 16 }
  0xc3   : > { %2289 = vrot.lane.b32.xlu0 %v2153_v32, %s11450_s30  ;;  %vm342_vm6 = vc.u32 %v334_v53, %v338_v55  ;;  %v344_v0 = vadd.s32 %v338_v55, %v334_v53  ;;  %v2157_v32 = vld [vmem:[%s11509_s29 + $0x157] sm:$0xff] }
  0xc4   : > { %v2248_v26 = vpop.permute.xlu0 %2247  ;;  %v2399_v30 = vpop.permute.xlu1 %2398  ;;  %v343_v63 = vsel %vm342_vm6, 1, %v18884_v62 }
  0xc5   : > { %v2534_v43 = vsel %vm2521_vm1, %v11563_v9, %v2248_v26  ;;  %v11824_v9 = vld [vmem:[%s11509_s29 + $0x14f] sm:$0xff]  ;;  %v2256_v60 = vpop.permute.xlu2 %2255  ;;  %vm346_vm7 = vc.u32 %v344_v0, %v340_v5  ;;  %v361_v26 = vshrl.u32 %v11842_v13, 16 }
  0xc6   : > { %v11816_v47 = vsel %vm2104_vm2, %v2534_v43, %v2399_v30  ;;  %2440 = vrot.lane.b32.xlu1 %v11824_v9, %s11451_s8  ;;  %v347_v24 = vsel %vm346_vm7, 1, %v18884_v62 }
  0xc7   : > { %10538 = vmatmul.msk.f32.gmra.mxu1 %vm2771_vm3, %v2579_v59  ;;  %v2697_v57 = vrot.slane %v11816_v47, 1  ;;  %v3319_v58 = vrot.slane %v11816_v47, 2  ;;  %v365_v36 = vmul.u32 43691, %v361_v26 }
  0xc9   : > { %v3320_v23 = vsel %vm3295_vm5, %v3317_v45, %v3319_v58  ;;  %2291 = vrot.lane.b32.xlu2 %v11803_v40, %s11450_s30  ;;  %v369_v41 = vshll.u32 %v365_v36, 16  ;;  %v2538_v40 = vsel %vm2521_vm1, %v11597_v14, %v2256_v60  ;;  %v11893_v60 = vld [vmem:[%s11509_s29 + $0x15f] sm:$0xff]  ;;  %v370_v5 = vshrl.u32 %v365_v36, 16 }
  0xca   : > { %10488 = vmatmul.msk.f32.gmra.mxu0 %vm2771_vm3, %v2690_v19  ;;  %10586 = vmatmul.msk.f32.gmra.mxu2 %vm2771_vm3, %v3312_v21  ;;  %v345_v21 = vadd.s32 %v343_v63, %v337_v61 }
  0xcb   : > { %2442 = vrot.lane.b32.xlu0 %v2157_v32, %s11451_s8 }
  0xcc   : > { %v2401_v37 = vpop.permute.xlu0 %2400  ;;  %v2252_v39 = vpop.permute.xlu1 %2251 }
  0xcd   : > { %v2536_v10 = vsel %vm2521_vm1, %v11575_v11, %v2252_v39  ;;  %v2584_v19 = vsel %vm2104_vm2, %v2535_v56, %v2401_v37  ;;  %v360_v11 = vand.u32 65535, %v11842_v13 }
  0xce   : > { %v11851_v3 = vsel %vm2104_vm2, %v2536_v10, %v2403_v8  ;;  %v2699_v27 = vrot.slane %v2584_v19, 1  ;;  %2446 = vrot.lane.b32.xlu1 %v11861_v33, %s11451_s8  ;;  %v11873_v8 = vadd.s32 16, %v11809_v42 }
  0xcf   : > { %10539 = vmatmul.msk.f32.gmra.mxu1 %vm2771_vm3, %v2580_v22  ;;  %v2698_v22 = vsel %vm2673_vm4, %v2695_v44, %v2697_v57  ;;  %v364_v30 = vmul.u32 43690, %v360_v11  ;;  %v363_v34 = vmul.u32 43691, %v360_v11  ;;  %v2701_v37 = vrot.slane %v11851_v3, 1 }
  0xd0   : > { %v3323_v43 = vrot.slane %v11851_v3, 2  ;;  %v2700_v46 = vsel %vm2673_vm4, %v2697_v57, %v2699_v27  ;;  %v389_v50 = vand.u32 65535, %v11873_v8  ;;  %v390_v55 = vshrl.u32 %v11873_v8, 16 }
  0xd1   : > { %v368_v54 = vshrl.u32 %v364_v30, 16  ;;  %v2702_v57 = vsel %vm2673_vm4, %v2699_v27, %v2701_v37  ;;  %2293 = vrot.lane.b32.xlu2 %v11827_v52, %s11450_s30 }
  0xd2   : > { %10489 = vmatmul.msk.f32.gmra.mxu0 %vm2771_vm3, %v2692_v28  ;;  %10587 = vmatmul.msk.f32.gmra.mxu2 %vm2771_vm3, %v3314_v29  ;;  %v349_v29 = vadd.s32 %v347_v24, %v345_v21  ;;  %v11885_v56 = vmul.u32 43690, %v389_v50  ;;  %v392_v63 = vmul.u32 43691, %v389_v50  ;;  %v11895_v0 = vmul.u32 43691, %v390_v55 }
  0xd3   : > { %2444 = vrot.lane.b32.xlu0 %v11893_v60, %s11451_s8  ;;  %v395_v24 = vmul.u32 43690, %v390_v55 }
  0xd4   : > { %v2254_v48 = vpop.permute.xlu0 %2253  ;;  %v2405_v59 = vpop.permute.xlu1 %2404 }
  0xd5   : > { %v2537_v28 = vsel %vm2521_vm1, %v11584_v12, %v2254_v48  ;;  %v350_v12 = vadd.s32 %v349_v29, %v339_v6  ;;  %v2409_v48 = vpop.permute.xlu2 %2408  ;;  %v398_v29 = vshll.u32 %v11895_v0, 16 }
  0xd6   : > { %v11868_v39 = vsel %vm2104_vm2, %v2537_v28, %v2405_v59  ;;  %2297 = vrot.lane.b32.xlu1 %v2157_v32, %s11450_s30  ;;  %v11924_v32 = vadd.s32 24, %v11809_v42 }
  0xd7   : > { %10540 = vmatmul.msk.f32.gmra.mxu1 %vm2771_vm3, %v2581_v31  ;;  %v3321_v31 = vrot.slane %v2584_v19, 2  ;;  %v351_v44 = vadd.s32 %v350_v12, %v341_v7  ;;  %v397_v12 = vshrl.u32 %v11885_v56, 16 }
  0xda   : > { %10490 = vmatmul.msk.f32.gmra.mxu0 %vm2771_vm3, %v2694_v35  ;;  %10588 = vmatmul.msk.f32.gmra.mxu2 %vm2771_vm3, %v3316_v38  ;;  %v367_v38 = vshll.u32 %v364_v30, 16 }
  0xdb   : > { %2295 = vrot.lane.b32.xlu0 %v11824_v9, %s11450_s30 }
  0xdc   : > { %v2407_v2 = vpop.permute.xlu0 %2406  ;;  %v2258_v35 = vpop.permute.xlu1 %2257  ;;  %vm371_vm8 = vc.u32 %v363_v34, %v367_v38  ;;  %v373_v45 = vadd.s32 %v367_v38, %v363_v34  ;;  %v18882_v34 = vmov 0.0   ;;  %v418_v38 = vand.u32 65535, %v11924_v32 }
  0xdd   : > { %v372_v49 = vsel %vm371_vm8, 1, %v18884_v62  ;;  %v11920_v30 = vpop.permute.xlu2 %2261  ;;  %2107 = vst.msk [vmem:[#allocation2 + $0x10] sm:$0xff] %vm2104_vm2, %v18882_v34 }
  0xde   : > { %vm375_vm9 = vc.u32 %v373_v45, %v369_v41  ;;  %2108 = vst.msk [vmem:[#allocation2 + $0x18] sm:$0xff] %vm2104_vm2, %v18882_v34  ;;  %v2162_v45 = vld [vmem:[%s11509_s29 + $0x17f] sm:$0xff] }
  0xdf   : > { %10541 = vmatmul.msk.f32.gmra.mxu1 %vm2771_vm3, %v2582_v1  ;;  %v366_v1 = vmul.u32 43690, %v361_v26  ;;  %v376_v61 = vsel %vm375_vm9, 1, %v18884_v62  ;;  %v2539_v26 = vsel %vm2521_vm1, %v11600_v15, %v2258_v35  ;;  %2109 = vst.msk [vmem:[#allocation2 + $0x20] sm:$0xff] %vm2104_vm2, %v18882_v34  ;;  %2452 = vrot.lane.b32.xlu1 %v2162_v45, %s11451_s8 }
  0xe0   : > { %2110 = vst.msk [vmem:[#allocation2 + $0x28] sm:$0xff] %vm2104_vm2, %v18882_v34 }
  0xe1   : > { %v374_v53 = vadd.s32 %v372_v49, %v366_v1  ;;  %v419_v1 = vshrl.u32 %v11924_v32, 16  ;;  %2111 = vst.msk [vmem:[#allocation2 + $0x1b0] sm:$0xff] %vm2104_vm2, %v18882_v34  ;;  %v11966_v49 = vmul.u32 43690, %v418_v38 }
  0xe2   : > { %10491 = vmatmul.msk.f32.gmra.mxu0 %vm2771_vm3, %v2696_v51  ;;  %10589 = vmatmul.msk.f32.gmra.mxu2 %vm2771_vm3, %v3318_v4  ;;  %v2703_v51 = vrot.slane %v11868_v39, 1  ;;  %v352_v4 = vshrl.u32 %v351_v44, 4  ;;  %2112 = vst.msk [vmem:[#allocation2 + $0x1b8] sm:$0xff] %vm2104_vm2, %v18882_v34 }
  0xe3   : > { %v378_v10 = vadd.s32 %v376_v61, %v374_v53  ;;  %v11968_v50 = vmul.u32 43691, %v419_v1  ;;  %2113 = vst.msk [vmem:[#allocation2 + $0x1c0] sm:$0xff] %vm2104_vm2, %v18882_v34 }
  0xe4   : > { %v353_v59 = vmul.u32 24, %v352_v4  ;;  %v2260_v14 = vpop.permute.xlu0 %2259  ;;  %v11901_v21 = vsel %vm2673_vm4, %v2701_v37, %v2703_v51  ;;  %v2411_v28 = vpop.permute.xlu1 %2410  ;;  %v11938_v37 = vsel %vm2104_vm2, %v2539_v26, %v2409_v48  ;;  %v421_v48 = vmul.u32 43691, %v418_v38  ;;  %2114 = vst.msk [vmem:[#allocation2 + $0x1c8] sm:$0xff] %vm2104_vm2, %v18882_v34  ;;  %v12032_v26 = vld [vmem:[%s11509_s29 + $0x177] sm:$0xff] }
  0xe5   : > { %v379_v6 = vadd.s32 %v378_v10, %v368_v54  ;;  %v2540_v27 = vsel %vm2521_vm1, %v11609_v16, %v2260_v14  ;;  %v2707_v4 = vrot.slane %v11938_v37, 1  ;;  %v3329_v53 = vrot.slane %v11938_v37, 2  ;;  %2450 = vrot.lane.b32.xlu0 %v12032_v26, %s11451_s8 }
  0xe6   : > { %v11913_v11 = vsub.s32 %v11809_v42, %v353_v59  ;;  %v427_v59 = vshll.u32 %v11968_v50, 16 }
  0xe7   : > { %10542 = vmatmul.msk.f32.gmra.mxu1 %vm2771_vm3, %v11816_v47  ;;  %v3322_v47 = vsel %vm3295_vm5, %v3319_v58, %v3321_v31  ;;  %v3324_v58 = vsel %vm3295_vm5, %v3321_v31, %v3323_v43  ;;  %v380_v31 = vadd.s32 %v379_v6, %v370_v5  ;;  %v12005_v5 = vadd.s32 32, %v11809_v42 }
  0xe8   : > { %vm1720_vm11 = vcmp.ne.s32.totalorder %v11913_v11, 0  ;;  %vm1768_vm13 = vcmp.lt.s32.totalorder %v11913_v11, 0  ;;  %v1864_v54 = vadd.s32 24, %v11913_v11 }
  0xe9   : > { %v381_v35 = vshrl.u32 %v380_v31, 4  ;;  %vm11992_vm14 = vmand %vm1768_vm13, %vm1720_vm11 }
  0xea   : > { %10492 = vmatmul.msk.f32.gmra.mxu0 %vm2771_vm3, %v2698_v22  ;;  %10590 = vmatmul.msk.f32.gmra.mxu2 %vm2771_vm3, %v3320_v23  ;;  %v11904_v22 = vsel %vm2104_vm2, %v2538_v40, %v2407_v2  ;;  %v396_v23 = vshll.u32 %v11885_v56, 16  ;;  %v425_v56 = vshll.u32 %v11966_v49, 16 }
  0xeb   : > { %v2705_v16 = vrot.slane %v11904_v22, 1  ;;  %v3327_v7 = vrot.slane %v11904_v22, 2  ;;  %v382_v41 = vmul.u32 24, %v381_v35 }
  0xec   : > { %vm400_vm10 = vc.u32 %v392_v63, %v396_v23  ;;  %v402_v2 = vadd.s32 %v396_v23, %v392_v63  ;;  %vm429_vm6 = vc.u32 %v421_v48, %v425_v56  ;;  %v431_v23 = vadd.s32 %v425_v56, %v421_v48  ;;  %v2413_v31 = vpop.permute.xlu0 %2412 }
  0xed   : > { %v401_v52 = vsel %vm400_vm10, 1, %v18884_v62  ;;  %v11973_v40 = vsel %vm2673_vm4, %v2703_v51, %v2705_v16  ;;  %v383_v9 = vsub.s32 %v11842_v13, %v382_v41  ;;  %v2415_v13 = vpop.permute.xlu2 %2414  ;;  %v12008_v10 = vsel %vm2673_vm4, %v2705_v16, %v2707_v4  ;;  %2301 = vrot.lane.b32.xlu0 %v11861_v33, %s11450_s30 }
  0xee   : > { %v403_v36 = vadd.s32 %v401_v52, %v395_v24  ;;  %vm404_vm12 = vc.u32 %v402_v2, %v398_v29  ;;  %v12014_v6 = vsel %vm3295_vm5, %v3327_v7, %v3329_v53  ;;  %vm433_vm8 = vc.u32 %v431_v23, %v427_v59 }
  0xef   : > { %10543 = vmatmul.msk.f32.gmra.mxu1 %vm2771_vm3, %v2584_v19  ;;  %v3325_v19 = vrot.slane %v11868_v39, 2  ;;  %v405_v44 = vsel %vm404_vm12, 1, %v18884_v62  ;;  %vm1721_vm15 = vcmp.ne.s32.totalorder %v383_v9, 0  ;;  %vm1769_vm0 = vcmp.lt.s32.totalorder %v383_v9, 0 }
  0xf0   : > { %v1865_v63 = vadd.s32 24, %v383_v9  ;;  %vm1817_vm7 = vmand %vm1769_vm0, %vm1721_vm15  ;;  %v2541_v29 = vsel %vm2521_vm1, %v11618_v17, %v11920_v30  ;;  %v447_v52 = vand.u32 65535, %v12005_v5  ;;  %v448_v2 = vshrl.u32 %v12005_v5, 16 }
  0xf1   : > { %v11931_v15 = vsel %vm3295_vm5, %v3323_v43, %v3325_v19  ;;  %v399_v43 = vshrl.u32 %v11895_v0, 16  ;;  %v3328_v61 = vsel %vm3295_vm5, %v3325_v19, %v3327_v7  ;;  %v430_v0 = vsel %vm429_vm6, 1, %v18884_v62  ;;  %v2264_v7 = vpop.permute.xlu1 %2263 }
  0xf2   : > { %10493 = vmatmul.msk.f32.gmra.mxu0 %vm2771_vm3, %v2700_v46  ;;  %10591 = vmatmul.msk.f32.gmra.mxu2 %vm2771_vm3, %v3322_v47  ;;  %v11964_v46 = vld [vmem:[%s11509_s29 + $0x16f] sm:$0xff]  ;;  %v407_v47 = vadd.s32 %v405_v44, %v403_v36  ;;  %v1913_v16 = vsel %vm1817_vm7, %v1865_v63, %v383_v9  ;;  %v428_v17 = vshrl.u32 %v11968_v50, 16  ;;  %v2542_v35 = vsel %vm2521_vm1, %v11654_v25, %v2264_v7 }
  0xf3   : > { %2448 = vrot.lane.b32.xlu2 %v11964_v46, %s11451_s8  ;;  %v451_v38 = vmul.u32 43690, %v447_v52  ;;  %vm1961_vm11 = vcmp.ge.s32.totalorder %v1913_v16, 1  ;;  %v453_v45 = vmul.u32 43690, %v448_v2  ;;  %vm2009_vm12 = vcmp.le.s32.totalorder %v1913_v16, 16 }
  0xf4   : > { %v408_v55 = vadd.s32 %v407_v47, %v397_v12  ;;  %v450_v12 = vmul.u32 43691, %v447_v52  ;;  %v12061_v47 = vsel %vm2104_vm2, %v2542_v35, %v2415_v13  ;;  %vm12086_vm6 = vmand %vm1961_vm11, %vm2009_vm12 }
  0xf5   : > { %v454_v25 = vshll.u32 %v451_v38, 16  ;;  %v3335_v63 = vrot.slane %v12061_v47, 2  ;;  %v455_v23 = vshrl.u32 %v451_v38, 16  ;;  %v12146_v38 = vadd.s32 48, %v11809_v42 }
  0xf6   : > { %v409_v14 = vadd.s32 %v408_v55, %v399_v43  ;;  %v12053_v43 = vpop.permute.xlu2 %2267 }
  0xf7   : > { %10544 = vmatmul.msk.f32.gmra.mxu1 %vm2771_vm3, %v11851_v3  ;;  %v11944_v3 = vsel %vm2104_vm2, %v2540_v27, %v2411_v28  ;;  %vm458_vm0 = vc.u32 %v450_v12, %v454_v25 }
  0xf8   : > { %v2709_v51 = vrot.slane %v11944_v3, 1  ;;  %v3331_v19 = vrot.slane %v11944_v3, 2  ;;  %v410_v27 = vshrl.u32 %v409_v14, 4 }
  0xfa   : > { %10494 = vmatmul.msk.f32.gmra.mxu0 %vm2771_vm3, %v2702_v57  ;;  %10592 = vmatmul.msk.f32.gmra.mxu2 %vm2771_vm3, %v3324_v58  ;;  %v424_v58 = vmul.u32 43690, %v419_v1  ;;  %v12023_v24 = vsel %vm2673_vm4, %v2707_v4, %v2709_v51  ;;  %v411_v36 = vmul.u32 24, %v410_v27  ;;  %v12050_v1 = vmul.u32 43691, %v448_v2 }
  0xfb   : > { %2299 = vrot.lane.b32.xlu2 %v11893_v60, %s11450_s30  ;;  %v12058_v60 = vsel %vm2104_vm2, %v2541_v29, %v2413_v31  ;;  %v12082_v55 = vsel %vm3295_vm5, %v3329_v53, %v3331_v19  ;;  %v460_v57 = vadd.s32 %v454_v25, %v450_v12  ;;  %v12112_v27 = vsel %vm12086_vm6, 1.0, %v18882_v34 }
  0xfc   : > { %v432_v28 = vadd.s32 %v430_v0, %v424_v58  ;;  %v412_v41 = vsub.s32 %v11873_v8, %v411_v36  ;;  %v2711_v50 = vrot.slane %v12058_v60, 1  ;;  %v3333_v4 = vrot.slane %v12058_v60, 2  ;;  %v2266_v0 = vpop.permute.xlu0 %2265  ;;  %v2417_v36 = vpop.permute.xlu1 %2416 }
  0xfd   : > { %v457_v2 = vshrl.u32 %v12050_v1, 16  ;;  %v2543_v7 = vsel %vm2521_vm1, %v11625_v18, %v2266_v0 }
  0xfe   : > { %vm1770_vm15 = vcmp.lt.s32.totalorder %v412_v41, 0  ;;  %v1866_v56 = vadd.s32 24, %v412_v41  ;;  %v12124_v29 = vpop.permute.xlu2 %2420 }
  0xff   : > { %10545 = vmatmul.msk.f32.gmra.mxu1 %vm2771_vm3, %v11868_v39  ;;  %v1912_v39 = vsel %vm11992_vm14, %v1864_v54, %v11913_v11  ;;  %v426_v11 = vshrl.u32 %v11966_v49, 16  ;;  %v12064_v49 = vadd.s32 40, %v11809_v42  ;;  %vm1722_vm14 = vcmp.ne.s32.totalorder %v412_v41, 0 }
 0x100   : > { %vm1960_vm9 = vcmp.ge.s32.totalorder %v1912_v39, 1  ;;  %vm2008_vm10 = vcmp.le.s32.totalorder %v1912_v39, 16  ;;  %v459_v54 = vsel %vm458_vm0, 1, %v18884_v62  ;;  %vm12101_vm7 = vmand %vm1770_vm15, %vm1722_vm14 }
 0x101   : > { %vm12066_vm13 = vmand %vm1960_vm9, %vm2008_vm10  ;;  %v461_v13 = vadd.s32 %v459_v54, %v453_v45  ;;  %v476_v33 = vand.u32 65535, %v12064_v49  ;;  %v477_v39 = vshrl.u32 %v12064_v49, 16  ;;  %v1914_v52 = vsel %vm12101_vm7, %v1866_v56, %v412_v41 }
 0x102   : > { %10495 = vmatmul.msk.f32.gmra.mxu0 %vm2771_vm3, %v11901_v21  ;;  %10593 = vmatmul.msk.f32.gmra.mxu2 %vm2771_vm3, %v11931_v15  ;;  %v434_v21 = vsel %vm433_vm8, 1, %v18884_v62  ;;  %v12097_v59 = vsel %vm12066_vm13, 1.0, %v18882_v34  ;;  %vm1962_vm9 = vcmp.ge.s32.totalorder %v1914_v52, 1  ;;  %vm2010_vm10 = vcmp.le.s32.totalorder %v1914_v52, 16 }
 0x103   : > { %v436_v30 = vadd.s32 %v434_v21, %v432_v28  ;;  %v12122_v28 = vsel %vm3295_vm5, %v3331_v19, %v3333_v4  ;;  %v480_v16 = vmul.u32 43690, %v476_v33  ;;  %v481_v12 = vmul.u32 43691, %v477_v39  ;;  %vm12164_vm14 = vmand %vm1962_vm9, %vm2010_vm10 }
 0x104   : > { %v12043_v15 = vpop.f32.mrf.mxu1  ;;  %v482_v18 = vmul.u32 43690, %v477_v39  ;;  %v12154_v41 = vsel %vm2104_vm2, %v2543_v7, %v2417_v36  ;;  %v506_v54 = vshrl.u32 %v12146_v38, 16  ;;  %v2544_v56 = vsel %vm2521_vm1, %v11635_v20, %v12053_v43  ;;  %v2419_v43 = vpop.permute.xlu0 %2418 }
 0x105   : > { %v437_v44 = vadd.s32 %v436_v30, %v426_v11  ;;  %v12117_v11 = vsel %vm2673_vm4, %v2709_v51, %v2711_v50  ;;  %v479_v30 = vmul.u32 43691, %v476_v33  ;;  %v485_v45 = vshll.u32 %v481_v12, 16 }
 0x106   : > { %v2715_v0 = vrot.slane %v12154_v41, 1  ;;  %v12188_v20 = vsel %vm12164_vm14, 1.0, %v18882_v34  ;;  %v12201_v7 = vmul.u32 43691, %v506_v54 }
 0x107   : > { %10546 = vmatmul.msk.f32.gmra.mxu1 %vm2771_vm3, %v11904_v22  ;;  %v438_v48 = vadd.s32 %v437_v44, %v428_v17  ;;  %v456_v22 = vshll.u32 %v12050_v1, 16 }
 0x109   : > { %v439_v9 = vshrl.u32 %v438_v48, 4  ;;  %vm462_vm8 = vc.u32 %v460_v57, %v456_v22 }
 0x10a   : > { %10496 = vmatmul.msk.f32.gmra.mxu0 %vm2771_vm3, %v11973_v40  ;;  %10594 = vmatmul.msk.f32.gmra.mxu2 %vm2771_vm3, %v3328_v61  ;;  %v2713_v61 = vrot.slane %v12061_v47, 1  ;;  %v463_v31 = vsel %vm462_vm8, 1, %v18884_v62 }
 0x10b   : > { %v440_v14 = vmul.u32 24, %v439_v9  ;;  %v465_v51 = vadd.s32 %v463_v31, %v461_v13 }
 0x10c   : > { %v12092_v58 = vpop.f32.mrf.mxu1  ;;  %v12135_v19 = vsel %vm2673_vm4, %v2711_v50, %v2713_v61  ;;  %v505_v50 = vand.u32 65535, %v12146_v38 }
 0x10d   : > { %v441_v17 = vsub.s32 %v11924_v32, %v440_v14  ;;  %v466_v35 = vadd.s32 %v465_v51, %v455_v23  ;;  %v483_v32 = vshll.u32 %v480_v16, 16  ;;  %v12183_v23 = vpop.permute.xlu2 %2273  ;;  %v3337_v51 = vrot.slane %v12154_v41, 2 }
 0x10e   : > { %v12191_v52 = vmul.u32 43690, %v505_v50 }
 0x10f   : > { %v2889_v21 = vpop.f32.mrf.mxu0  ;;  %10547 = vmatmul.msk.f32.gmra.mxu1 %vm2771_vm3, %v11938_v37  ;;  %v12143_v37 = vsel %vm3295_vm5, %v3333_v4, %v3335_v63  ;;  %v467_v44 = vadd.s32 %v466_v35, %v457_v2  ;;  %vm1723_vm11 = vcmp.ne.s32.totalorder %v441_v17, 0  ;;  %vm1771_vm12 = vcmp.lt.s32.totalorder %v441_v17, 0 }
 0x110   : > { %v3150_v1 = vadd.f32 %v12043_v15, %v2889_v21  ;;  %vm487_vm13 = vc.u32 %v479_v30, %v483_v32  ;;  %v1867_v57 = vadd.s32 24, %v441_v17  ;;  %vm12178_vm0 = vmand %vm1771_vm12, %vm1723_vm11  ;;  %v508_v21 = vmul.u32 43691, %v505_v50 }
 0x111   : > { %v468_v8 = vshrl.u32 %v467_v44, 4  ;;  %v488_v22 = vsel %vm487_vm13, 1, %v18884_v62  ;;  %v512_v36 = vshll.u32 %v12191_v52, 16  ;;  %v12218_v35 = vsel %vm2104_vm2, %v2544_v56, %v2419_v43 }
 0x112   : > { %10497 = vmatmul.msk.f32.gmra.mxu0 %vm2771_vm3, %v12008_v10  ;;  %10595 = vmatmul.msk.f32.gmra.mxu2 %vm2771_vm3, %v12014_v6  ;;  %v489_v10 = vadd.s32 %v483_v32, %v479_v30  ;;  %v484_v6 = vshrl.u32 %v480_v16, 16  ;;  %v490_v9 = vadd.s32 %v488_v22, %v482_v18  ;;  %v2270_v32 = vpop.permute.xlu1 %2269  ;;  %v514_v44 = vshll.u32 %v12201_v7, 16 }
 0x113   : > { %v469_v13 = vmul.u32 24, %v468_v8  ;;  %vm516_vm8 = vc.u32 %v508_v21, %v512_v36  ;;  %v518_v8 = vadd.s32 %v512_v36, %v508_v21  ;;  %v3339_v50 = vrot.slane %v12218_v35, 2 }
 0x114   : > { %v12156_v25 = vpop.f32.mrf.mxu1  ;;  %vm491_vm15 = vc.u32 %v489_v10, %v485_v45 }
 0x115   : > { %v3509_v48 = vpop.f32.mrf.mxu2  ;;  %v492_v53 = vsel %vm491_vm15, 1, %v18884_v62  ;;  %v470_v31 = vsub.s32 %v12005_v5, %v469_v13  ;;  %v1915_v5 = vsel %vm12178_vm0, %v1867_v57, %v441_v17  ;;  %vm520_vm12 = vc.u32 %v518_v8, %v514_v44  ;;  %v12258_v13 = vpop.permute.xlu2 %2426  ;;  %v11318_v44 = vld [vmem:[%s11509_s29 + $0xdf] sm:$0xff] }
 0x116   : > { %v12160_v4 = vadd.f32 %v3509_v48, %v3150_v1  ;;  %v494_v39 = vadd.s32 %v492_v53, %v490_v9  ;;  %v511_v1 = vmul.u32 43690, %v506_v54  ;;  %vm1963_vm9 = vcmp.ge.s32.totalorder %v1915_v5, 1 }
 0x117   : > { %v2892_v40 = vpop.f32.mrf.mxu0  ;;  %10548 = vmatmul.msk.f32.gmra.mxu1 %vm2771_vm3, %v11944_v3  ;;  %v486_v3 = vshrl.u32 %v481_v12, 16  ;;  %vm1724_vm6 = vcmp.ne.s32.totalorder %v470_v31, 0  ;;  %vm1772_vm7 = vcmp.lt.s32.totalorder %v470_v31, 0  ;;  %v1868_v18 = vadd.s32 24, %v470_v31 }
 0x118   : > { %19135 = vst [vmem:[#allocation3_spill] sm:$0xff] %v12160_v4  ;;  %v18877_v14 = vmax.f32 %v12160_v4, 0.0  ;;  %v495_v16 = vadd.s32 %v494_v39, %v484_v6  ;;  %v3153_v30 = vadd.f32 %v12092_v58, %v2892_v40  ;;  %vm1820_vm10 = vmand %vm1772_vm7, %vm1724_vm6  ;;  %vm2011_vm11 = vcmp.le.s32.totalorder %v1915_v5, 16  ;;  %v11317_v39 = vld [vmem:[%s11509_s29 + $0xcf] sm:$0xff] }
 0x119   : > { %v517_v48 = vsel %vm516_vm8, 1, %v18884_v62  ;;  %v12236_v6 = vadd.s32 56, %v11809_v42  ;;  %v12241_v9 = vsel %vm1820_vm10, %v1868_v18, %v470_v31  ;;  %v513_v54 = vshrl.u32 %v12191_v52, 16  ;;  %vm12253_vm13 = vmand %vm1963_vm9, %vm2011_vm11 }
 0x11a   : > { %v3846_v2 = vmul.f32 %v12097_v59, %v18877_v14  ;;  %10498 = vmatmul.msk.f32.gmra.mxu0 %vm2771_vm3, %v12023_v24  ;;  %10596 = vmatmul.msk.f32.gmra.mxu2 %vm2771_vm3, %v12082_v55  ;;  %v12215_v55 = vsel %vm2673_vm4, %v2713_v61, %v2715_v0  ;;  %v496_v17 = vadd.s32 %v495_v16, %v486_v3  ;;  %v521_v53 = vsel %vm520_vm12, 1, %v18884_v62 }
 0x11b   : > { %v12228_v61 = vsel %vm3295_vm5, %v3335_v63, %v3337_v51  ;;  %v2717_v63 = vrot.slane %v12218_v35, 1  ;;  %v534_v33 = vand.u32 65535, %v12236_v6  ;;  %v535_v31 = vshrl.u32 %v12236_v6, 16 }
 0x11c   : > { %3894 = vst.msk [vmem:[#allocation2 + $0x30] sm:$0xff] %vm2104_vm2, %v3846_v2  ;;  %v12208_v24 = vpop.f32.mrf.mxu1  ;;  %v497_v45 = vshrl.u32 %v496_v17, 4  ;;  %v2272_v2 = vpop.permute.xlu0 %2271  ;;  %v12298_v18 = vsel %vm3295_vm5, %v3337_v51, %v3339_v50  ;;  %vm1964_vm6 = vcmp.ge.s32.totalorder %v12241_v9, 1  ;;  %vm2012_vm7 = vcmp.le.s32.totalorder %v12241_v9, 16 }
 0x11d   : > { %v3512_v12 = vpop.f32.mrf.mxu2  ;;  %v12280_v36 = vmul.u32 43690, %v534_v33  ;;  %v2423_v51 = vpop.permute.xlu1 %2422  ;;  %vm12344_vm10 = vmand %vm1964_vm6, %vm2012_vm7 }
 0x11e   : > { %v12221_v58 = vadd.f32 %v3512_v12, %v3153_v30  ;;  %v498_v15 = vmul.u32 24, %v497_v45  ;;  %v12282_v30 = vmul.u32 43691, %v535_v31  ;;  %v12291_v12 = vsel %vm2673_vm4, %v2715_v0, %v2717_v63  ;;  %v11319_v45 = vld [vmem:[%s11509_s29 + $0xd7] sm:$0xff] }
 0x11f   : > { %v2895_v10 = vpop.f32.mrf.mxu0  ;;  %10549 = vmatmul.msk.f32.gmra.mxu1 %vm2771_vm3, %v12058_v60  ;;  %v519_v60 = vadd.s32 %v517_v48, %v511_v1  ;;  %v12310_v0 = vsel %vm2521_vm1, %v11318_v44, %v12183_v23  ;;  %v537_v48 = vmul.u32 43691, %v534_v33 }
 0x120   : > { %19140 = vst [vmem:[#allocation4_spill] sm:$0xff] %v12221_v58  ;;  %v18876_v22 = vmax.f32 %v12221_v58, 0.0  ;;  %v499_v57 = vsub.s32 %v12064_v49, %v498_v15  ;;  %v3156_v21 = vadd.f32 %v12156_v25, %v2895_v10  ;;  %v2546_v10 = vsel %vm2521_vm1, %v11319_v45, %v2272_v2 }
 0x121   : > { %v523_v43 = vadd.s32 %v521_v53, %v519_v60  ;;  %v540_v60 = vmul.u32 43690, %v535_v31  ;;  %v543_v23 = vshll.u32 %v12282_v30, 16  ;;  %v542_v31 = vshrl.u32 %v12280_v36, 16 }
 0x122   : > { %v3847_v40 = vmul.f32 %v12112_v27, %v18876_v22  ;;  %10499 = vmatmul.msk.f32.gmra.mxu0 %vm2771_vm3, %v12117_v11  ;;  %10597 = vmatmul.msk.f32.gmra.mxu2 %vm2771_vm3, %v12122_v28  ;;  %v2545_v11 = vsel %vm2521_vm1, %v11317_v39, %v2270_v32  ;;  %v515_v28 = vshrl.u32 %v12201_v7, 16  ;;  %vm1725_vm14 = vcmp.ne.s32.totalorder %v499_v57, 0 }
 0x123   : > { %v3945_v3 = vld [vmem:[#allocation2 + $0x2f] sm:$0xff]  ;;  %vm1773_vm15 = vcmp.lt.s32.totalorder %v499_v57, 0  ;;  %v1869_v52 = vadd.s32 24, %v499_v57  ;;  %v12274_v7 = vsel %vm12253_vm13, 1.0, %v18882_v34  ;;  %v524_v25 = vadd.s32 %v523_v43, %v513_v54  ;;  %v12348_v43 = vpop.permute.xlu2 %2279 }
 0x124   : > { %3895 = vst.msk [vmem:[#allocation2 + $0x38] sm:$0xff] %vm2104_vm2, %v3847_v40  ;;  %v12268_v49 = vpop.f32.mrf.mxu1  ;;  %4048 = vrot.lane.b32.xlu1 %v3945_v3, %s11451_s8  ;;  %vm12276_vm0 = vmand %vm1773_vm15, %vm1725_vm14  ;;  %v12302_v32 = vsel %vm2104_vm2, %v2545_v11, %v12124_v29  ;;  %v12333_v39 = vadd.s32 64, %v11809_v42 }
 0x125   : > { %v3515_v16 = vpop.f32.mrf.mxu2  ;;  %v1917_v29 = vsel %vm12276_vm0, %v1869_v52, %v499_v57  ;;  %v525_v15 = vadd.s32 %v524_v25, %v515_v28  ;;  %v2719_v54 = vrot.slane %v12302_v32, 1  ;;  %v3341_v56 = vrot.slane %v12302_v32, 2  ;;  %v2425_v25 = vpop.permute.xlu0 %2424 }
 0x126   : > { %v12284_v17 = vadd.f32 %v3515_v16, %v3156_v21  ;;  %v12330_v57 = vsel %vm2104_vm2, %v2546_v10, %v2423_v51  ;;  %vm1965_vm8 = vcmp.ge.s32.totalorder %v1917_v29, 1  ;;  %v563_v2 = vand.u32 65535, %v12333_v39 }
 0x127   : > { %v2898_v1 = vpop.f32.mrf.mxu0  ;;  %10550 = vmatmul.msk.f32.gmra.mxu1 %vm2771_vm3, %v12061_v47  ;;  %v541_v47 = vshll.u32 %v12280_v36, 16  ;;  %v526_v53 = vshrl.u32 %v525_v15, 4  ;;  %v564_v16 = vshrl.u32 %v12333_v39, 16  ;;  %vm2013_vm12 = vcmp.le.s32.totalorder %v1917_v29, 16 }
 0x128   : > { %19145 = vst [vmem:[#allocation5_spill] sm:$0xff] %v12284_v17  ;;  %v18874_v8 = vmax.f32 %v12284_v17, 0.0  ;;  %v12363_v36 = vsel %vm12344_vm10, 1.0, %v18882_v34  ;;  %v2721_v45 = vrot.slane %v12330_v57, 1  ;;  %v544_v10 = vshrl.u32 %v12282_v30, 16  ;;  %vm12369_vm15 = vmand %vm1965_vm8, %vm2013_vm12 }
 0x129   : > { %vm545_vm9 = vc.u32 %v537_v48, %v541_v47  ;;  %v547_v3 = vadd.s32 %v541_v47, %v537_v48  ;;  %v527_v28 = vmul.u32 24, %v526_v53  ;;  %v12389_v29 = vsel %vm2673_vm4, %v2717_v63, %v2719_v54 }
 0x12a   : > { %v3848_v40 = vmul.f32 %v12188_v20, %v18874_v8  ;;  %10500 = vmatmul.msk.f32.gmra.mxu0 %vm2771_vm3, %v12135_v19  ;;  %10598 = vmatmul.msk.f32.gmra.mxu2 %vm2771_vm3, %v12143_v37  ;;  %v3159_v19 = vadd.f32 %v12208_v24, %v2898_v1  ;;  %v546_v21 = vsel %vm545_vm9, 1, %v18884_v62  ;;  %v3343_v53 = vrot.slane %v12330_v57, 2 }
 0x12b   : > { %v3946_v33 = vld [vmem:[#allocation2 + $0x37] sm:$0xff]  ;;  %v548_v52 = vadd.s32 %v546_v21, %v540_v60  ;;  %vm549_vm11 = vc.u32 %v547_v3, %v543_v23  ;;  %v528_v9 = vsub.s32 %v12146_v38, %v527_v28  ;;  %v566_v38 = vmul.u32 43691, %v563_v2  ;;  %v2276_v3 = vpop.permute.xlu1 %2275  ;;  %v12445_v15 = vpop.permute.xlu2 %2432 }
 0x12c   : > { %3896 = vst.msk [vmem:[#allocation2 + $0x40] sm:$0xff] %vm2104_vm2, %v3848_v40  ;;  %v12337_v11 = vpop.f32.mrf.mxu1  ;;  %4050 = vrot.lane.b32.xlu2 %v3946_v33, %s11451_s8  ;;  %v550_v1 = vsel %vm549_vm11, 1, %v18884_v62  ;;  %v12373_v60 = vmul.u32 43690, %v563_v2  ;;  %v12375_v23 = vmul.u32 43691, %v564_v16  ;;  %v12396_v40 = vsel %vm3295_vm5, %v3339_v50, %v3341_v56  ;;  %v5113_v21 = vld [vmem:[%s18865_s2 + $0x38] sm:$0xff] }
 0x12d   : > { %v3518_v24 = vpop.f32.mrf.mxu2  ;;  %v552_v51 = vadd.s32 %v550_v1, %v548_v52  ;;  %vm1726_vm13 = vcmp.ne.s32.totalorder %v528_v9, 0  ;;  %vm1774_vm14 = vcmp.lt.s32.totalorder %v528_v9, 0  ;;  %v12405_v33 = vsel %vm2104_vm2, %v12310_v0, %v2425_v25  ;;  %5322 = vmatpush.msrb.mxu1 %v5113_v21 }
 0x12e   : > { %v12354_v5 = vadd.f32 %v3518_v24, %v3159_v19  ;;  %vm12399_vm0 = vmand %vm1774_vm14, %vm1726_vm13  ;;  %v569_v19 = vmul.u32 43690, %v564_v16  ;;  %v570_v37 = vshll.u32 %v12373_v60, 16  ;;  %v12423_v0 = vsel %vm2673_vm4, %v2719_v54, %v2721_v45  ;;  %v5565_v24 = vld [vmem:[%s18868_s5 + $0x8] sm:$0xff] }
 0x12f   : > { %v2901_v44 = vpop.f32.mrf.mxu0  ;;  %10551 = vmatmul.msk.f32.gmra.mxu1 %vm2771_vm3, %v12154_v41  ;;  %v1870_v41 = vadd.s32 24, %v528_v9  ;;  %v553_v47 = vadd.s32 %v552_v51, %v542_v31  ;;  %v12416_v31 = vsel %vm12369_vm15, 1.0, %v18882_v34  ;;  %v12435_v52 = vadd.s32 72, %v11809_v42  ;;  %5725 = vmatpush.msrb.mxu2 %v5565_v24 }
 0x130   : > { %19148 = vst [vmem:[#allocation6_spill] sm:$0xff] %v12354_v5  ;;  %v18873_v48 = vmax.f32 %v12354_v5, 0.0  ;;  %v3162_v50 = vadd.f32 %v12268_v49, %v2901_v44  ;;  %v4446_v49 = vld [vmem:[%s18865_s2 + $0x8] sm:$0xff]  ;;  %v572_v25 = vshll.u32 %v12375_v23, 16  ;;  %vm574_vm6 = vc.u32 %v566_v38, %v570_v37 }
 0x131   : > { %v554_v63 = vadd.s32 %v553_v47, %v544_v10  ;;  %19153 = vst [vmem:[#allocation7_spill] sm:$0xff] %v12416_v31  ;;  %v1918_v54 = vsel %vm12399_vm0, %v1870_v41, %v528_v9  ;;  %4965 = vmatpush.msrb.mxu0 %v4446_v49  ;;  %v2723_v44 = vrot.slane %v12405_v33, 1  ;;  %v11320_v10 = vld [vmem:[%s11509_s29 + $0xe7] sm:$0xff]  ;;  %v575_v47 = vsel %vm574_vm6, 1, %v18884_v62 }
 0x132   : > { %v3849_v30 = vmul.f32 %v12274_v7, %v18873_v48  ;;  %10501 = vmatmul.msk.f32.gmra.mxu0 %vm2771_vm3, %v12215_v55  ;;  %10599 = vmatmul.msk.f32.gmra.mxu2 %vm2771_vm3, %v12228_v61  ;;  %v2548_v51 = vsel %vm2521_vm1, %v11320_v10, %v2276_v3  ;;  %v3345_v9 = vrot.slane %v12405_v33, 2  ;;  %v576_v55 = vadd.s32 %v570_v37, %v566_v38  ;;  %v11321_v10 = vld [vmem:[%s11509_s29 + $0xf7] sm:$0xff] }
 0x133   : > { %v3947_v61 = vld [vmem:[#allocation2 + $0x3f] sm:$0xff]  ;;  %v555_v16 = vshrl.u32 %v554_v63, 4  ;;  %vm1966_vm7 = vcmp.ge.s32.totalorder %v1918_v54, 1  ;;  %vm2014_vm8 = vcmp.le.s32.totalorder %v1918_v54, 16  ;;  %v571_v3 = vshrl.u32 %v12373_v60, 16 }
 0x134   : > { %3897 = vst.msk [vmem:[#allocation2 + $0x48] sm:$0xff] %vm2104_vm2, %v3849_v30  ;;  %v12410_v28 = vpop.f32.mrf.mxu1  ;;  %4052 = vrot.lane.b32.xlu1 %v3947_v61, %s11451_s8  ;;  %v577_v61 = vadd.s32 %v575_v47, %v569_v19  ;;  %vm578_vm9 = vc.u32 %v576_v55, %v572_v25  ;;  %v12456_v21 = vsel %vm2104_vm2, %v2548_v51, %v12258_v13  ;;  %v573_v60 = vshrl.u32 %v12375_v23, 16  ;;  %vm12470_vm10 = vmand %vm1966_vm7, %vm2014_vm8  ;;  %v11322_v47 = vld [vmem:[%s11509_s29 + $0xef] sm:$0xff]  ;;  %v2429_v55 = vpop.permute.xlu1 %2428 }
 0x135   : > { %v3521_v2 = vpop.f32.mrf.mxu2  ;;  %v556_v41 = vmul.u32 24, %v555_v16  ;;  %v593_v19 = vshrl.u32 %v12435_v52, 16  ;;  %v3347_v16 = vrot.slane %v12456_v21, 2  ;;  %v2550_v51 = vsel %vm2521_vm1, %v11321_v10, %v12348_v43 }
 0x136   : > { %v12440_v1 = vadd.f32 %v3521_v2, %v3162_v50  ;;  %v2278_v50 = vpop.permute.xlu0 %2277  ;;  %v12485_v2 = vsel %vm3295_vm5, %v3341_v56, %v3343_v53  ;;  %v12512_v43 = vsel %vm2673_vm4, %v2721_v45, %v2723_v44 }
 0x137   : > { %v2904_v30 = vpop.f32.mrf.mxu0  ;;  %10552 = vmatmul.msk.f32.gmra.mxu1 %vm2771_vm3, %v12218_v35  ;;  %v557_v49 = vsub.s32 %v12236_v6, %v556_v41  ;;  %v592_v35 = vand.u32 65535, %v12435_v52  ;;  %v579_v6 = vsel %vm578_vm9, 1, %v18884_v62 }
 0x138   : > { %19154 = vst [vmem:[#allocation8_spill] sm:$0xff] %v12440_v1  ;;  %v18872_v63 = vmax.f32 %v12440_v1, 0.0  ;;  %v581_v24 = vadd.s32 %v579_v6, %v577_v61 }
 0x139   : > { %vm1727_vm11 = vcmp.ne.s32.totalorder %v557_v49, 0  ;;  %vm1775_vm12 = vcmp.lt.s32.totalorder %v557_v49, 0  ;;  %v12498_v56 = vmul.u32 43690, %v592_v35  ;;  %v595_v37 = vmul.u32 43691, %v592_v35 }
 0x13a   : > { %v3850_v38 = vmul.f32 %v12363_v36, %v18872_v63  ;;  %10502 = vmatmul.msk.f32.gmra.mxu0 %vm2771_vm3, %v12291_v12  ;;  %10600 = vmatmul.msk.f32.gmra.mxu2 %vm2771_vm3, %v12298_v18  ;;  %v1871_v12 = vadd.s32 24, %v557_v49  ;;  %v3165_v18 = vadd.f32 %v12337_v11, %v2904_v30  ;;  %vm12487_vm13 = vmand %vm1775_vm12, %vm1727_vm11  ;;  %v2725_v11 = vrot.slane %v12456_v21, 1 }
 0x13b   : > { %v3948_v13 = vld [vmem:[#allocation2 + $0x47] sm:$0xff]  ;;  %v2549_v30 = vsel %vm2521_vm1, %v11322_v47, %v2278_v50  ;;  %v582_v41 = vadd.s32 %v581_v24, %v571_v3  ;;  %v12517_v50 = vsel %vm3295_vm5, %v3343_v53, %v3345_v9  ;;  %v12523_v24 = vmul.u32 43691, %v593_v19 }
 0x13c   : > { %3898 = vst.msk [vmem:[#allocation2 + $0x50] sm:$0xff] %vm2104_vm2, %v3850_v38  ;;  %v12476_v23 = vpop.f32.mrf.mxu1  ;;  %4054 = vrot.lane.b32.xlu2 %v3948_v13, %s11451_s8  ;;  %4199 = vrot.lane.b32.xlu0 %v3948_v13, %s11454_s13  ;;  %v12505_v38 = vsel %vm12470_vm10, 1.0, %v18882_v34  ;;  %v1919_v6 = vsel %vm12487_vm13, %v1871_v12, %v557_v49  ;;  %v12539_v53 = vsel %vm3295_vm5, %v3345_v9, %v3347_v16  ;;  %v12542_v49 = vld [vmem:[%s11509_s29 + $0x187] sm:$0xff]  ;;  %v599_v12 = vshll.u32 %v12498_v56, 16 }
 0x13d   : > { %v3524_v25 = vpop.f32.mrf.mxu2  ;;  %19160 = vst [vmem:[#allocation10_spill] sm:$0xff] %v12505_v38  ;;  %v583_v13 = vadd.s32 %v582_v41, %v573_v60  ;;  %v598_v60 = vmul.u32 43690, %v593_v19  ;;  %v601_v54 = vshll.u32 %v12523_v24, 16  ;;  %vm1967_vm14 = vcmp.ge.s32.totalorder %v1919_v6, 1 }
 0x13e   : > { %v12500_v61 = vadd.f32 %v3524_v25, %v3165_v18  ;;  %v12527_v18 = vsel %vm2104_vm2, %v2549_v30, %v2429_v55  ;;  %v2286_v25 = vpop.permute.xlu2 %2285  ;;  %vm2015_vm15 = vcmp.le.s32.totalorder %v1919_v6, 16  ;;  %v2431_v19 = vpop.permute.xlu0 %2430  ;;  %vm603_vm0 = vc.u32 %v595_v37, %v599_v12 }
 0x13f   : > { %v2907_v3 = vpop.f32.mrf.mxu0  ;;  %10553 = vmatmul.msk.f32.gmra.mxu1 %vm2771_vm3, %v12302_v32  ;;  %v12534_v32 = vsel %vm2673_vm4, %v2723_v44, %v2725_v11  ;;  %v584_v35 = vshrl.u32 %v583_v13, 4  ;;  %v11323_v44 = vld [vmem:[%s11509_s29 + $0x10f] sm:$0xff]  ;;  %v605_v41 = vadd.s32 %v599_v12, %v595_v37  ;;  %v12558_v55 = vadd.s32 80, %v11809_v42  ;;  %vm12584_vm7 = vmand %vm1967_vm14, %vm2015_vm15 }
 0x140   : > { %19159 = vst [vmem:[#allocation9_spill] sm:$0xff] %v12500_v61  ;;  %v18871_v45 = vmax.f32 %v12500_v61, 0.0  ;;  %v12555_v9 = vsel %vm2521_vm1, %v11323_v44, %v2286_v25  ;;  %v600_v25 = vshrl.u32 %v12498_v56, 16  ;;  %v604_v37 = vsel %vm603_vm0, 1, %v18884_v62 }
 0x141   : > { %v585_v30 = vmul.u32 24, %v584_v35  ;;  %vm607_vm6 = vc.u32 %v605_v41, %v601_v54  ;;  %v602_v44 = vshrl.u32 %v12523_v24, 16  ;;  %v622_v56 = vshrl.u32 %v12558_v55, 16  ;;  %v2282_v24 = vpop.permute.xlu1 %2281 }
 0x142   : > { %v3851_v10 = vmul.f32 %v12416_v31, %v18871_v45  ;;  %10503 = vmatmul.msk.f32.gmra.mxu0 %vm2771_vm3, %v12389_v29  ;;  %10601 = vmatmul.msk.f32.gmra.mxu2 %vm2771_vm3, %v12396_v40  ;;  %v3168_v29 = vadd.f32 %v12410_v28, %v2907_v3  ;;  %v12568_v40 = vsel %vm2104_vm2, %v2550_v51, %v2431_v19  ;;  %v621_v3 = vand.u32 65535, %v12558_v55 }
 0x143   : > { %v3949_v47 = vld [vmem:[#allocation2 + $0x4f] sm:$0xff]  ;;  %v586_v12 = vsub.s32 %v12333_v39, %v585_v30  ;;  %v606_v28 = vadd.s32 %v604_v37, %v598_v60  ;;  %v608_v51 = vsel %vm607_vm6, 1, %v18884_v62  ;;  %v2727_v30 = vrot.slane %v12527_v18, 1 }
 0x144   : > { %3899 = vst.msk [vmem:[#allocation2 + $0x58] sm:$0xff] %vm2104_vm2, %v3851_v10  ;;  %v12562_v13 = vpop.f32.mrf.mxu1  ;;  %2454 = vrot.lane.b32.xlu2 %v12542_v49, %s11451_s8  ;;  %4056 = vrot.lane.b32.xlu0 %v3949_v47, %s11451_s8  ;;  %v624_v41 = vmul.u32 43691, %v621_v3  ;;  %v12591_v37 = vld [vmem:[%s11509_s29 + $0x18f] sm:$0xff]  ;;  %v12595_v45 = vmul.u32 43691, %v622_v56  ;;  %v627_v63 = vmul.u32 43690, %v622_v56 }
 0x145   : > { %4201 = vrot.lane.b32.xlu1 %v3949_v47, %s11454_s13  ;;  %v3527_v35 = vpop.f32.mrf.mxu2  ;;  %vm1728_vm8 = vcmp.ne.s32.totalorder %v586_v12, 0  ;;  %vm1776_vm9 = vcmp.lt.s32.totalorder %v586_v12, 0  ;;  %v1872_v60 = vadd.s32 24, %v586_v12  ;;  %v610_v54 = vadd.s32 %v608_v51, %v606_v28 }
 0x146   : > { %v12575_v10 = vadd.f32 %v3527_v35, %v3168_v29  ;;  %vm1824_vm10 = vmand %vm1776_vm9, %vm1728_vm8  ;;  %v625_v29 = vmul.u32 43690, %v621_v3  ;;  %v12604_v51 = vpop.permute.xlu2 %2438  ;;  %v2284_v56 = vpop.permute.xlu0 %2283 }
 0x147   : > { %v2910_v19 = vpop.f32.mrf.mxu0  ;;  %10554 = vmatmul.msk.f32.gmra.mxu1 %vm2771_vm3, %v12330_v57  ;;  %v18879_v57 = vrot.slane %v12527_v18, 2  ;;  %v611_v35 = vadd.s32 %v610_v54, %v600_v25  ;;  %v1920_v3 = vsel %vm1824_vm10, %v1872_v60, %v586_v12  ;;  %v12609_v25 = vsel %vm12584_vm7, 1.0, %v18882_v34 }
 0x148   : > { %19161 = vst [vmem:[#allocation11_spill] sm:$0xff] %v12575_v10  ;;  %v18875_v47 = vmax.f32 %v12575_v10, 0.0  ;;  %v628_v48 = vshll.u32 %v625_v29, 16  ;;  %vm1968_vm12 = vcmp.ge.s32.totalorder %v1920_v3, 1  ;;  %v629_v22 = vshrl.u32 %v625_v29, 16 }
 0x149   : > { %19164 = vst [vmem:[#allocation12_spill] sm:$0xff] %v12609_v25  ;;  %v612_v54 = vadd.s32 %v611_v35, %v602_v44  ;;  %v11324_v35 = vld [vmem:[%s11509_s29 + $0x107] sm:$0xff]  ;;  %vm2016_vm14 = vcmp.le.s32.totalorder %v1920_v3, 16  ;;  %v12639_v29 = vsel %vm2673_vm4, %v2725_v11, %v2727_v30 }
 0x14a   : > { %v3852_v28 = vmul.f32 %v12505_v38, %v18875_v47  ;;  %10504 = vmatmul.msk.f32.gmra.mxu0 %vm2771_vm3, %v12423_v0  ;;  %10602 = vmatmul.msk.f32.gmra.mxu2 %vm2771_vm3, %v12485_v2  ;;  %v630_v47 = vshll.u32 %v12595_v45, 16  ;;  %v12613_v0 = vadd.s32 88, %v11809_v42  ;;  %v3171_v2 = vadd.f32 %v12476_v23, %v2910_v19  ;;  %vm12664_vm15 = vmand %vm1968_vm12, %vm2016_vm14 }
 0x14b   : > { %v3950_v8 = vld [vmem:[#allocation2 + $0x57] sm:$0xff]  ;;  %vm632_vm11 = vc.u32 %v624_v41, %v628_v48  ;;  %v634_v39 = vadd.s32 %v628_v48, %v624_v41  ;;  %v613_v60 = vshrl.u32 %v612_v54, 4 }
 0x14c   : > { %3900 = vst.msk [vmem:[#allocation2 + $0x60] sm:$0xff] %vm2104_vm2, %v3852_v28  ;;  %v12617_v12 = vpop.f32.mrf.mxu1  ;;  %2456 = vrot.lane.b32.xlu0 %v12591_v37, %s11451_s8  ;;  %4203 = vrot.lane.b32.xlu2 %v3950_v8, %s11454_s13  ;;  %v2552_v28 = vsel %vm2521_vm1, %v11324_v35, %v2284_v56  ;;  %v633_v23 = vsel %vm632_vm11, 1, %v18884_v62  ;;  %v650_v41 = vand.u32 65535, %v12613_v0  ;;  %v651_v11 = vshrl.u32 %v12613_v0, 16 }
 0x14d   : > { %2303 = vrot.lane.b32.xlu1 %v11964_v46, %s11450_s30  ;;  %v3530_v44 = vpop.f32.mrf.mxu2  ;;  %v635_v14 = vadd.s32 %v633_v23, %v627_v63  ;;  %vm636_vm13 = vc.u32 %v634_v39, %v630_v47  ;;  %v614_v46 = vmul.u32 24, %v613_v60  ;;  %v631_v63 = vshrl.u32 %v12595_v45, 16 }
 0x14e   : > { %v12627_v19 = vadd.f32 %v3530_v44, %v3171_v2  ;;  %v637_v48 = vsel %vm636_vm13, 1, %v18884_v62  ;;  %v11325_v2 = vld [vmem:[%s11509_s29 + $0xff] sm:$0xff]  ;;  %v12652_v39 = vsel %vm3295_vm5, %v3347_v16, %v18879_v57  ;;  %v2435_v44 = vpop.permute.xlu1 %2434  ;;  %v2292_v23 = vpop.permute.xlu2 %2291 }
 0x14f   : > { %v2913_v6 = vpop.f32.mrf.mxu0  ;;  %10555 = vmatmul.msk.f32.gmra.mxu1 %vm2771_vm3, %v12405_v33  ;;  %v639_v47 = vadd.s32 %v637_v48, %v635_v14  ;;  %v615_v33 = vsub.s32 %v12435_v52, %v614_v46  ;;  %v12645_v56 = vsel %vm2521_vm1, %v11325_v2, %v2282_v24  ;;  %v12669_v45 = vsel %vm2104_vm2, %v2552_v28, %v2435_v44 }
 0x150   : > { %19165 = vst [vmem:[#allocation13_spill] sm:$0xff] %v12627_v19  ;;  %v18878_v54 = vmax.f32 %v12627_v19, 0.0  ;;  %v653_v24 = vmul.u32 43691, %v650_v41  ;;  %v12681_v46 = vmul.u32 43691, %v651_v11 }
 0x151   : > { %v640_v16 = vadd.s32 %v639_v47, %v629_v22  ;;  %vm1729_vm0 = vcmp.ne.s32.totalorder %v615_v33, 0  ;;  %vm1777_vm6 = vcmp.lt.s32.totalorder %v615_v33, 0  ;;  %v1873_v35 = vadd.s32 24, %v615_v33 }
 0x152   : > { %v3853_v14 = vmul.f32 %v12609_v25, %v18878_v54  ;;  %10505 = vmatmul.msk.f32.gmra.mxu0 %vm2771_vm3, %v12512_v43  ;;  %10603 = vmatmul.msk.f32.gmra.mxu2 %vm2771_vm3, %v12517_v50  ;;  %v12671_v43 = vmul.u32 43690, %v650_v41  ;;  %v3174_v50 = vadd.f32 %v12562_v13, %v2913_v6  ;;  %v3351_v22 = vrot.slane %v12568_v40, 2  ;;  %vm1825_vm7 = vmand %vm1777_vm6, %vm1729_vm0  ;;  %v11326_v6 = vld [vmem:[%s11509_s29 + $0x127] sm:$0xff] }
 0x153   : > { %v3951_v60 = vld [vmem:[#allocation2 + $0x5f] sm:$0xff]  ;;  %v641_v28 = vadd.s32 %v640_v16, %v631_v63  ;;  %v12687_v13 = vsel %vm12664_vm15, 1.0, %v18882_v34  ;;  %v12695_v47 = vadd.s32 96, %v11809_v42  ;;  %v1921_v2 = vsel %vm1825_vm7, %v1873_v35, %v615_v33 }
 0x154   : > { %3901 = vst.msk [vmem:[#allocation2 + $0x68] sm:$0xff] %vm2104_vm2, %v3853_v14  ;;  %v12675_v3 = vpop.f32.mrf.mxu1  ;;  %2305 = vrot.lane.b32.xlu2 %v12032_v26, %s11450_s30  ;;  %4205 = vrot.lane.b32.xlu0 %v3951_v60, %s11454_s13  ;;  %v12691_v26 = vsel %vm2521_vm1, %v11326_v6, %v2292_v23  ;;  %v657_v41 = vshll.u32 %v12671_v43, 16  ;;  %v659_v16 = vshll.u32 %v12681_v46, 16  ;;  %vm1969_vm9 = vcmp.ge.s32.totalorder %v1921_v2, 1 }
 0x155   : > { %4058 = vrot.lane.b32.xlu1 %v3950_v8, %s11451_s8  ;;  %v3533_v48 = vpop.f32.mrf.mxu2  ;;  %19168 = vst [vmem:[#allocation14_spill] sm:$0xff] %v12687_v13  ;;  %v642_v44 = vshrl.u32 %v641_v28, 4  ;;  %v656_v8 = vmul.u32 43690, %v651_v11  ;;  %vm2017_vm10 = vcmp.le.s32.totalorder %v1921_v2, 16 }
 0x156   : > { %v12697_v63 = vadd.f32 %v3533_v48, %v3174_v50  ;;  %vm661_vm8 = vc.u32 %v653_v24, %v657_v41  ;;  %v663_v23 = vadd.s32 %v657_v41, %v653_v24  ;;  %v658_v50 = vshrl.u32 %v12671_v43, 16  ;;  %v2437_v24 = vpop.permute.xlu0 %2436  ;;  %vm12728_vm12 = vmand %vm1969_vm9, %vm2017_vm10 }
 0x157   : > { %v2916_v14 = vpop.f32.mrf.mxu0  ;;  %10556 = vmatmul.msk.f32.gmra.mxu1 %vm2771_vm3, %v12456_v21  ;;  %v643_v54 = vmul.u32 24, %v642_v44  ;;  %v662_v33 = vsel %vm661_vm8, 1, %v18884_v62  ;;  %v660_v41 = vshrl.u32 %v12681_v46, 16  ;;  %v679_v44 = vand.u32 65535, %v12695_v47 }
 0x158   : > { %19169 = vst [vmem:[#allocation15_spill] sm:$0xff] %v12697_v63  ;;  %v18880_v6 = vmax.f32 %v12697_v63, 0.0  ;;  %vm665_vm11 = vc.u32 %v663_v23, %v659_v16  ;;  %v664_v35 = vadd.s32 %v662_v33, %v656_v8  ;;  %v3177_v28 = vadd.f32 %v12617_v12, %v2916_v14 }
 0x159   : > { %v644_v11 = vsub.s32 %v12558_v55, %v643_v54  ;;  %v666_v43 = vsel %vm665_vm11, 1, %v18884_v62  ;;  %v680_v16 = vshrl.u32 %v12695_v47, 16  ;;  %v19172_v8 = vrot.slane %v12568_v40, 1 }
 0x15a   : > { %v3854_v21 = vmul.f32 %v12687_v13, %v18880_v6  ;;  %10506 = vmatmul.msk.f32.gmra.mxu0 %vm2771_vm3, %v12534_v32  ;;  %10604 = vmatmul.msk.f32.gmra.mxu2 %vm2771_vm3, %v12539_v53  ;;  %v11327_v53 = vld [vmem:[%s11509_s29 + $0x17f] sm:$0xff]  ;;  %v668_v54 = vadd.s32 %v666_v43, %v664_v35  ;;  %v12742_v2 = vsel %vm2104_vm2, %v12555_v9, %v2437_v24  ;;  %v682_v14 = vmul.u32 43691, %v679_v44  ;;  %v11328_v6 = vld [vmem:[%s11509_s29 + $0x117] sm:$0xff] }
 0x15b   : > { %v3952_v48 = vld [vmem:[#allocation2 + $0x67] sm:$0xff]  ;;  %vm1730_vm13 = vcmp.ne.s32.totalorder %v644_v11, 0  ;;  %vm1778_vm14 = vcmp.lt.s32.totalorder %v644_v11, 0  ;;  %v1874_v12 = vadd.s32 24, %v644_v11  ;;  %v12744_v23 = vmul.u32 43690, %v679_v44 }
 0x15c   : > { %3902 = vst.msk [vmem:[#allocation2 + $0x70] sm:$0xff] %vm2104_vm2, %v3854_v21  ;;  %v12721_v32 = vpop.f32.mrf.mxu1  ;;  %4060 = vrot.lane.b32.xlu2 %v3951_v60, %s11451_s8  ;;  %2307 = vrot.lane.b32.xlu0 %v11327_v53, %s11450_s30  ;;  %vm1826_vm15 = vmand %vm1778_vm14, %vm1730_vm13  ;;  %v12738_v60 = vsel %vm2673_vm4, %v2727_v30, %v19172_v8  ;;  %v669_v35 = vadd.s32 %v668_v54, %v658_v50  ;;  %v12748_v43 = vmul.u32 43691, %v680_v16  ;;  %v12753_v53 = vsel %vm12728_vm12, 1.0, %v18882_v34  ;;  %v2288_v50 = vpop.permute.xlu1 %2287 }
 0x15d   : > { %4207 = vrot.lane.b32.xlu1 %v3952_v48, %s11454_s13  ;;  %v3536_v46 = vpop.f32.mrf.mxu2  ;;  %v1922_v21 = vsel %vm1826_vm15, %v1874_v12, %v644_v11  ;;  %19174 = vst [vmem:[#allocation17_spill] sm:$0xff] %v12753_v53  ;;  %v19175_v9 = vrot.slane %v12527_v18, 2  ;;  %v685_v11 = vmul.u32 43690, %v680_v16  ;;  %v2294_v54 = vpop.permute.xlu2 %2293  ;;  %v12789_v55 = vsel %vm2521_vm1, %v11328_v6, %v2288_v50 }
 0x15e   : > { %v12746_v33 = vadd.f32 %v3536_v46, %v3177_v28  ;;  %v686_v28 = vshll.u32 %v12744_v23, 16  ;;  %v670_v12 = vadd.s32 %v669_v35, %v660_v41  ;;  %v12770_v46 = vsel %vm2104_vm2, %v12645_v56, %v12445_v15  ;;  %v12781_v41 = vld [vmem:[%s11509_s29 + $0x197] sm:$0xff] }
 0x15f   : > { %v2919_v30 = vpop.f32.mrf.mxu0  ;;  %10557 = vmatmul.msk.f32.gmra.mxu1 %vm2771_vm3, %v12527_v18  ;;  %v12762_v24 = vsel %vm3295_vm5, %v19175_v9, %v3351_v22  ;;  %vm1970_vm0 = vcmp.ge.s32.totalorder %v1922_v21, 1  ;;  %vm2018_vm6 = vcmp.le.s32.totalorder %v1922_v21, 16  ;;  %v688_v18 = vshll.u32 %v12748_v43, 16 }
 0x160   : > { %19173 = vst [vmem:[#allocation16_spill] sm:$0xff] %v12746_v33  ;;  %v18881_v44 = vmax.f32 %v12746_v33, 0.0  ;;  %vm690_vm7 = vc.u32 %v682_v14, %v686_v28  ;;  %v671_v15 = vshrl.u32 %v670_v12, 4  ;;  %v692_v8 = vadd.s32 %v686_v28, %v682_v14  ;;  %vm12804_vm8 = vmand %vm1970_vm0, %vm2018_vm6 }
 0x161   : > { %v691_v56 = vsel %vm690_vm7, 1, %v18884_v62  ;;  %v3180_v12 = vadd.f32 %v12675_v3, %v2919_v30  ;;  %v2731_v50 = vrot.slane %v12770_v46, 1  ;;  %v11330_v30 = vld [vmem:[%s11509_s29 + $0x11f] sm:$0xff]  ;;  %v687_v28 = vshrl.u32 %v12744_v23, 16 }
 0x162   : > { %v3855_v16 = vmul.f32 %v12753_v53, %v18881_v44  ;;  %10507 = vmatmul.msk.f32.gmra.mxu0 %vm2771_vm3, %v12639_v29  ;;  %10605 = vmatmul.msk.f32.gmra.mxu2 %vm2771_vm3, %v12652_v39  ;;  %v11329_v44 = vld [vmem:[%s11509_s29 + $0x12f] sm:$0xff]  ;;  %v693_v39 = vadd.s32 %v691_v56, %v685_v11  ;;  %v672_v14 = vmul.u32 24, %v671_v15  ;;  %v2290_v11 = vpop.permute.xlu0 %2289  ;;  %vm694_vm9 = vc.u32 %v692_v8, %v688_v18 }
 0x163   : > { %v12784_v35 = vld [vmem:[#allocation2 + $0x6f] sm:$0xff]  ;;  %v12793_v29 = vsel %vm2521_vm1, %v11329_v44, %v2294_v54  ;;  %v695_v21 = vsel %vm694_vm9, 1, %v18884_v62  ;;  %v12816_v44 = vadd.s32 104, %v11809_v42  ;;  %v3353_v18 = vrot.slane %v12770_v46, 2 }
 0x164   : > { %3903 = vst.msk [vmem:[#allocation2 + $0x78] sm:$0xff] %vm2104_vm2, %v3855_v16  ;;  %v12797_v57 = vpop.f32.mrf.mxu1  ;;  %4062 = vrot.lane.b32.xlu0 %v3952_v48, %s11451_s8  ;;  %4209 = vrot.lane.b32.xlu2 %v12784_v35, %s11454_s13  ;;  %v2555_v48 = vsel %vm2521_vm1, %v11330_v30, %v2290_v11  ;;  %v673_v16 = vsub.s32 %v12613_v0, %v672_v14  ;;  %v12825_v56 = vsel %vm12804_vm8, 1.0, %v18882_v34  ;;  %v689_v23 = vshrl.u32 %v12748_v43, 16  ;;  %v2441_v30 = vpop.permute.xlu1 %2440 }
 0x165   : > { %2458 = vrot.lane.b32.xlu1 %v12781_v41, %s11451_s8  ;;  %v3539_v3 = vpop.f32.mrf.mxu2  ;;  %v697_v15 = vadd.s32 %v695_v21, %v693_v39  ;;  %19179 = vst [vmem:[#allocation19_spill] sm:$0xff] %v12825_v56  ;;  %v708_v11 = vand.u32 65535, %v12816_v44  ;;  %v19180_v39 = vrot.slane %v12568_v40, 1  ;;  %v12847_v34 = vsel %vm2104_vm2, %v2555_v48, %v2441_v30 }
 0x166   : > { %v12818_v54 = vadd.f32 %v3539_v3, %v3180_v12  ;;  %v709_v12 = vshrl.u32 %v12816_v44, 16  ;;  %vm1731_vm10 = vcmp.ne.s32.totalorder %v673_v16, 0  ;;  %vm1779_vm11 = vcmp.lt.s32.totalorder %v673_v16, 0 }
 0x167   : > { %v2922_v8 = vpop.f32.mrf.mxu0  ;;  %10558 = vmatmul.msk.f32.gmra.mxu1 %vm2771_vm3, %v12568_v40  ;;  %v2732_v6 = vsel %vm2673_vm4, %v19180_v39, %v2731_v50  ;;  %vm1827_vm12 = vmand %vm1779_vm11, %vm1731_vm10  ;;  %v1875_v14 = vadd.s32 24, %v673_v16  ;;  %v698_v3 = vadd.s32 %v697_v15, %v687_v28  ;;  %v711_v21 = vmul.u32 43691, %v708_v11  ;;  %v12849_v28 = vpop.permute.xlu2 %2448 }
 0x168   : > { %19178 = vst [vmem:[#allocation18_spill] sm:$0xff] %v12818_v54  ;;  %v18886_v0 = vmax.f32 %v12818_v54, 0.0  ;;  %v712_v9 = vmul.u32 43690, %v708_v11  ;;  %v3354_v39 = vsel %vm3295_vm5, %v3351_v22, %v3353_v18  ;;  %v12851_v15 = vmul.u32 43691, %v709_v12 }
 0x169   : > { %v1923_v62 = vsel %vm1827_vm12, %v1875_v14, %v673_v16  ;;  %v714_v52 = vmul.u32 43690, %v709_v12  ;;  %v19181_v16 = vrot.slane %v12669_v45, 1  ;;  %v19185_v30 = vmov 0.0  }
 0x16a   : > { %v3856_v43 = vmul.f32 %v12825_v56, %v18886_v0  ;;  %10508 = vmatmul.msk.f32.gmra.mxu0 %vm2771_vm3, %v12738_v60  ;;  %10606 = vmatmul.msk.f32.gmra.mxu2 %vm2771_vm3, %v12762_v24  ;;  %v699_v0 = vadd.s32 %v698_v3, %v689_v23  ;;  %v715_v54 = vshll.u32 %v712_v9, 16  ;;  %v3183_v60 = vadd.f32 %v12721_v32, %v2922_v8 }
 0x16b   : > { %v3954_v11 = vld [vmem:[#allocation2 + $0x77] sm:$0xff]  ;;  %vm1971_vm13 = vcmp.ge.s32.totalorder %v1923_v62, 1  ;;  %vm2019_vm14 = vcmp.le.s32.totalorder %v1923_v62, 16  ;;  %v717_v40 = vshll.u32 %v12851_v15, 16  ;;  %v12865_v32 = vsel %vm2673_vm4, %v2731_v50, %v19181_v16 }
 0x16c   : > { %3904 = vst.msk [vmem:[#allocation2 + $0x80] sm:$0xff] %vm2104_vm2, %v3856_v43  ;;  %v12855_v24 = vpop.f32.mrf.mxu1  ;;  %4066 = vrot.lane.b32.xlu2 %v3954_v11, %s11451_s8  ;;  %4211 = vrot.lane.b32.xlu0 %v3954_v11, %s11454_s13  ;;  %vm2067_vm15 = vmand %vm1971_vm13, %vm2019_vm14  ;;  %v700_v48 = vshrl.u32 %v699_v0, 4  ;;  %vm719_vm0 = vc.u32 %v711_v21, %v715_v54  ;;  %v721_v8 = vadd.s32 %v715_v54, %v711_v21  ;;  %v19183_v62 = vrot.slane %v12669_v45, 2  ;;  %v2443_v54 = vpop.permute.xlu0 %2442 }
 0x16d   : > { %4064 = vrot.lane.b32.xlu1 %v12784_v35, %s11451_s8  ;;  %v3542_v22 = vpop.f32.mrf.mxu2  ;;  %v716_v14 = vshrl.u32 %v712_v9, 16  ;;  %v19184_v35 = vmov 0   ;;  %v12876_v0 = vsel %vm2067_vm15, 1.0, %v19185_v30  ;;  %v12884_v9 = vadd.s32 112, %v11809_v42 }
 0x16e   : > { %v12867_v23 = vadd.f32 %v3542_v22, %v3183_v60  ;;  %v12872_v12 = vsel %vm3295_vm5, %v3353_v18, %v19183_v62  ;;  %v720_v3 = vsel %vm719_vm0, 1, %v19184_v35  ;;  %19186 = vst [vmem:[#allocation21_spill] sm:$0xff] %v12876_v0  ;;  %v701_v50 = vmul.u32 24, %v700_v48  ;;  %v12887_v22 = vld [vmem:[%s11509_s29 + $0x19f] sm:$0xff] }
 0x16f   : > { %v2925_v43 = vpop.f32.mrf.mxu0  ;;  %10559 = vmatmul.msk.f32.gmra.mxu1 %vm2771_vm3, %v12770_v46  ;;  %v722_v21 = vadd.s32 %v720_v3, %v714_v52  ;;  %vm723_vm6 = vc.u32 %v721_v8, %v717_v40  ;;  %v718_v46 = vshrl.u32 %v12851_v15, 16  ;;  %v12899_v40 = vsel %vm2104_vm2, %v12691_v26, %v2443_v54  ;;  %v2300_v26 = vpop.permute.xlu2 %2299 }
 0x170   : > { %19182 = vst [vmem:[#allocation20_spill] sm:$0xff] %v12867_v23  ;;  %v18888_v11 = vmax.f32 %v12867_v23, 0.0  ;;  %v724_v18 = vsel %vm723_vm6, 1, %v19184_v35  ;;  %v702_v16 = vsub.s32 %v12695_v47, %v701_v50  ;;  %v737_v8 = vand.u32 65535, %v12884_v9 }
 0x171   : > { %v726_v48 = vadd.s32 %v724_v18, %v722_v21  ;;  %v738_v47 = vshrl.u32 %v12884_v9, 16 }
 0x172   : > { %v3857_v52 = vmul.f32 %v12876_v0, %v18888_v11  ;;  %10509 = vmatmul.msk.f32.gmra.mxu0 %vm2771_vm3, %v2732_v6  ;;  %10607 = vmatmul.msk.f32.gmra.mxu2 %vm2771_vm3, %v3354_v39  ;;  %vm1732_vm7 = vcmp.ne.s32.totalorder %v702_v16, 0  ;;  %vm1780_vm8 = vcmp.lt.s32.totalorder %v702_v16, 0  ;;  %v1876_v15 = vadd.s32 24, %v702_v16 }
 0x173   : > { %v3955_v3 = vld [vmem:[#allocation2 + $0x7f] sm:$0xff]  ;;  %v727_v50 = vadd.s32 %v726_v48, %v716_v14  ;;  %v3186_v6 = vadd.f32 %v12797_v57, %v2925_v43  ;;  %vm1828_vm9 = vmand %vm1780_vm8, %vm1732_vm7  ;;  %v740_v39 = vmul.u32 43691, %v737_v8  ;;  %v12910_v54 = vmul.u32 43690, %v737_v8  ;;  %v11331_v57 = vld [vmem:[%s11509_s29 + $0x147] sm:$0xff] }
 0x174   : > { %3905 = vst.msk [vmem:[#allocation2 + $0x88] sm:$0xff] %vm2104_vm2, %v3857_v52  ;;  %v12905_v21 = vpop.f32.mrf.mxu1  ;;  %2460 = vrot.lane.b32.xlu2 %v12887_v22, %s11451_s8  ;;  %4068 = vrot.lane.b32.xlu0 %v3955_v3, %s11451_s8  ;;  %v12912_v18 = vmul.u32 43691, %v738_v47  ;;  %v1924_v14 = vsel %vm1828_vm9, %v1876_v15, %v702_v16  ;;  %v12917_v43 = vsel %vm2521_vm1, %v11331_v57, %v2300_v26  ;;  %v743_v11 = vmul.u32 43690, %v738_v47  ;;  %v2445_v47 = vpop.permute.xlu0 %2444 }
 0x175   : > { %4213 = vrot.lane.b32.xlu1 %v3955_v3, %s11454_s13  ;;  %v3545_v48 = vpop.f32.mrf.mxu2  ;;  %v728_v52 = vadd.s32 %v727_v50, %v718_v46  ;;  %vm1972_vm10 = vcmp.ge.s32.totalorder %v1924_v14, 1  ;;  %vm2020_vm11 = vcmp.le.s32.totalorder %v1924_v14, 16  ;;  %v744_v8 = vshll.u32 %v12910_v54, 16 }
 0x176   : > { %v12919_v62 = vadd.f32 %v3545_v48, %v3186_v6  ;;  %vm2068_vm12 = vmand %vm1972_vm10, %vm2020_vm11  ;;  %v746_v15 = vshll.u32 %v12912_v18, 16  ;;  %v19189_v6 = vrot.slane %v12742_v2, 1  ;;  %v19190_v26 = vrot.slane %v12669_v45, 1  ;;  %v12937_v48 = vld [vmem:[%s11509_s29 + $0x1a7] sm:$0xff] }
 0x177   : > { %v2928_v60 = vpop.f32.mrf.mxu0  ;;  %10560 = vmatmul.msk.f32.gmra.mxu1 %vm2771_vm3, %v12669_v45  ;;  %v729_v3 = vshrl.u32 %v728_v52, 4  ;;  %v12929_v50 = vsel %vm2068_vm12, 1.0, %v19185_v30  ;;  %vm748_vm13 = vc.u32 %v740_v39, %v744_v8  ;;  %v19191_v46 = vrot.slane %v12742_v2, 2 }
 0x178   : > { %19187 = vst [vmem:[#allocation22_spill] sm:$0xff] %v12919_v62  ;;  %v2736_v14 = vsel %vm2673_vm4, %v19190_v26, %v19189_v6  ;;  %v19192_v52 = vrot.slane %v12669_v45, 2  ;;  %v749_v23 = vsel %vm748_vm13, 1, %v19184_v35  ;;  %v750_v33 = vadd.s32 %v744_v8, %v740_v39 }
 0x179   : > { %19188 = vst [vmem:[#allocation23_spill] sm:$0xff] %v12929_v50  ;;  %v730_v57 = vmul.u32 24, %v729_v3  ;;  %v19193_v63 = vmax.f32 %v12919_v62, 0.0  ;;  %v12954_v3 = vsel %vm2104_vm2, %v12793_v29, %v2445_v47  ;;  %v751_v45 = vadd.s32 %v749_v23, %v743_v11 }
 0x17a   : > { %v3358_v16 = vsel %vm3295_vm5, %v19192_v52, %v19191_v46  ;;  %10510 = vmatmul.msk.f32.gmra.mxu0 %vm2771_vm3, %v12865_v32  ;;  %10608 = vmatmul.msk.f32.gmra.mxu2 %vm2771_vm3, %v12872_v12  ;;  %v12957_v46 = vadd.s32 120, %v11809_v42  ;;  %v745_v8 = vshrl.u32 %v12910_v54, 16  ;;  %vm752_vm14 = vc.u32 %v750_v33, %v746_v15 }
 0x17b   : > { %v3858_v19 = vmul.f32 %v12929_v50, %v19193_v63  ;;  %v3956_v6 = vld [vmem:[#allocation2 + $0x87] sm:$0xff]  ;;  %v731_v39 = vsub.s32 %v12816_v44, %v730_v57  ;;  %v747_v63 = vshrl.u32 %v12912_v18, 16  ;;  %v3189_v32 = vadd.f32 %v12855_v24, %v2928_v60 }
 0x17c   : > { %2462 = vrot.lane.b32.xlu0 %v12937_v48, %s11451_s8  ;;  %4215 = vrot.lane.b32.xlu2 %v3956_v6, %s11454_s13  ;;  %v753_v29 = vsel %vm752_vm14, 1, %v19184_v35  ;;  %v766_v23 = vand.u32 65535, %v12957_v46  ;;  %v767_v44 = vshrl.u32 %v12957_v46, 16  ;;  %v12970_v12 = vpop.f32.mrf.mxu1 }
 0x17d   : > { %3906 = vst.msk [vmem:[#allocation2 + $0x90] sm:$0xff] %vm2104_vm2, %v3858_v19  ;;  %2309 = vrot.lane.b32.xlu1 %v12542_v49, %s11450_s30  ;;  %vm1733_vm15 = vcmp.ne.s32.totalorder %v731_v39, 0  ;;  %vm1781_vm0 = vcmp.lt.s32.totalorder %v731_v39, 0  ;;  %v1877_v19 = vadd.s32 24, %v731_v39  ;;  %v3548_v33 = vpop.f32.mrf.mxu2  ;;  %v755_v24 = vadd.s32 %v753_v29, %v751_v45 }
 0x17e   : > { %vm1829_vm6 = vmand %vm1781_vm0, %vm1733_vm15  ;;  %v12974_v11 = vadd.f32 %v3548_v33, %v3189_v32  ;;  %v770_v54 = vmul.u32 43690, %v766_v23  ;;  %v12977_v18 = vmul.u32 43691, %v767_v44  ;;  %v12984_v49 = vsel %vm2104_vm2, %v12789_v55, %v12604_v51 }
 0x17f   : > { %v1925_v15 = vsel %vm1829_vm6, %v1877_v19, %v731_v39  ;;  %v2931_v47 = vpop.f32.mrf.mxu0  ;;  %10561 = vmatmul.msk.f32.gmra.mxu1 %vm2771_vm3, %v12742_v2  ;;  %v756_v26 = vadd.s32 %v755_v24, %v745_v8  ;;  %v769_v57 = vmul.u32 43691, %v766_v23  ;;  %v772_v39 = vmul.u32 43690, %v767_v44 }
 0x180   : > { %19194 = vst [vmem:[#allocation24_spill] sm:$0xff] %v12974_v11  ;;  %vm1973_vm7 = vcmp.ge.s32.totalorder %v1925_v15, 1  ;;  %vm2021_vm8 = vcmp.le.s32.totalorder %v1925_v15, 16  ;;  %v18893_v52 = vmax.f32 %v12974_v11, 0.0  ;;  %v773_v29 = vshll.u32 %v770_v54, 16 }
 0x181   : > { %vm2069_vm9 = vmand %vm1973_vm7, %vm2021_vm8  ;;  %v757_v32 = vadd.s32 %v756_v26, %v747_v63  ;;  %v775_v19 = vshll.u32 %v12977_v18, 16  ;;  %v2737_v51 = vrot.slane %v12984_v49, 1  ;;  %v12997_v23 = vadd.s32 128, %v11809_v42 }
 0x182   : > { %v12990_v8 = vsel %vm2069_vm9, 1.0, %v19185_v30  ;;  %10511 = vmatmul.msk.f32.gmra.mxu0 %vm2771_vm3, %v2736_v14  ;;  %10609 = vmatmul.msk.f32.gmra.mxu2 %vm2771_vm3, %v3358_v16  ;;  %vm777_vm10 = vc.u32 %v769_v57, %v773_v29  ;;  %v779_v24 = vadd.s32 %v773_v29, %v769_v57  ;;  %v3192_v15 = vadd.f32 %v12905_v21, %v2931_v47 }
 0x183   : > { %19195 = vst [vmem:[#allocation25_spill] sm:$0xff] %v12990_v8  ;;  %v3859_v63 = vmul.f32 %v12990_v8, %v18893_v52  ;;  %v758_v33 = vshrl.u32 %v757_v32, 4  ;;  %v778_v16 = vsel %vm777_vm10, 1, %v19184_v35  ;;  %v795_v14 = vand.u32 65535, %v12997_v23  ;;  %v2165_v8 = vld [vmem:[%s11509_s29 + $0x197] sm:$0x3] }
 0x184   : > { %v3957_v44 = vld [vmem:[#allocation2 + $0x8f] sm:$0xff]  ;;  %2311 = vrot.lane.b32.xlu2 %v12591_v37, %s11450_s30  ;;  %v796_v26 = vshrl.u32 %v12997_v23, 16  ;;  %v774_v57 = vshrl.u32 %v770_v54, 16  ;;  %v780_v29 = vadd.s32 %v778_v16, %v772_v39  ;;  %vm781_vm11 = vc.u32 %v779_v24, %v775_v19  ;;  %v2296_v37 = vpop.permute.xlu0 %2295  ;;  %v13016_v55 = vpop.f32.mrf.mxu1 }
 0x185   : > { %4217 = vrot.lane.b32.xlu0 %v3957_v44, %s11454_s13  ;;  %3907 = vst.msk [vmem:[#allocation2 + $0x98] sm:$0xff] %vm2104_vm2, %v3859_v63  ;;  %4070 = vrot.lane.b32.xlu1 %v3956_v6, %s11451_s8  ;;  %v759_v32 = vmul.u32 24, %v758_v33  ;;  %v3551_v52 = vpop.f32.mrf.mxu2  ;;  %v782_v47 = vsel %vm781_vm11, 1, %v19184_v35  ;;  %v798_v45 = vmul.u32 43691, %v795_v14  ;;  %v13014_v60 = vmul.u32 43690, %v795_v14  ;;  %v13033_v14 = vpop.permute.xlu1 %2446 }
 0x186   : > { %v13011_v21 = vadd.f32 %v3551_v52, %v3192_v15  ;;  %v776_v6 = vshrl.u32 %v12977_v18, 16  ;;  %v784_v54 = vadd.s32 %v782_v47, %v780_v29  ;;  %v13022_v52 = vmul.u32 43691, %v796_v26  ;;  %v11332_v47 = vld [vmem:[%s11509_s29 + $0x137] sm:$0xff] }
 0x187   : > { %v760_v11 = vsub.s32 %v12884_v9, %v759_v32  ;;  %v2934_v63 = vpop.f32.mrf.mxu0  ;;  %10562 = vmatmul.msk.f32.gmra.mxu1 %vm2771_vm3, %v12984_v49  ;;  %v19197_v39 = vrot.slane %v12742_v2, 1  ;;  %v19198_v33 = vrot.slane %v12984_v49, 2  ;;  %v19199_v24 = vrot.slane %v12742_v2, 2 }
 0x188   : > { %19196 = vst [vmem:[#allocation26_spill] sm:$0xff] %v13011_v21  ;;  %v801_v15 = vmul.u32 43690, %v796_v26  ;;  %v802_v16 = vshll.u32 %v13014_v60, 16  ;;  %v785_v32 = vadd.s32 %v784_v54, %v774_v57  ;;  %v18896_v29 = vmax.f32 %v13011_v21, 0.0 }
 0x189   : > { %v2738_v19 = vsel %vm2673_vm4, %v19197_v39, %v2737_v51  ;;  %v3360_v9 = vsel %vm3295_vm5, %v19199_v24, %v19198_v33  ;;  %vm1734_vm12 = vcmp.ne.s32.totalorder %v760_v11, 0  ;;  %vm1782_vm13 = vcmp.lt.s32.totalorder %v760_v11, 0 }
 0x18a   : > { %v1878_v18 = vadd.s32 24, %v760_v11  ;;  %vm1830_vm14 = vmand %vm1782_vm13, %vm1734_vm12  ;;  %10512 = vmatmul.msk.f32.gmra.mxu0 %vm2771_vm3, %v2738_v19  ;;  %10610 = vmatmul.msk.f32.gmra.mxu2 %vm2771_vm3, %v3360_v9  ;;  %v13040_v2 = vsel %vm2521_vm1, %v11332_v47, %v2296_v37  ;;  %v804_v26 = vshll.u32 %v13022_v52, 16  ;;  %vm806_vm15 = vc.u32 %v798_v45, %v802_v16 }
 0x18b   : > { %v786_v33 = vadd.s32 %v785_v32, %v776_v6  ;;  %v807_v24 = vsel %vm806_vm15, 1, %v19184_v35  ;;  %v808_v62 = vadd.s32 %v802_v16, %v798_v45  ;;  %v19200_v54 = vrot.slane %v12847_v34, 1 }
 0x18c   : > { %v1926_v39 = vsel %vm1830_vm14, %v1878_v18, %v760_v11  ;;  %4072 = vrot.lane.b32.xlu2 %v3957_v44, %s11451_s8  ;;  %v3958_v57 = vld [vmem:[#allocation2 + $0x97] sm:$0xff]  ;;  %v809_v19 = vadd.s32 %v807_v24, %v801_v15  ;;  %v803_v45 = vshrl.u32 %v13014_v60, 16  ;;  %v13053_v9 = vadd.s32 136, %v11809_v42  ;;  %v13079_v24 = vpop.f32.mrf.mxu1 }
 0x18d   : > { %vm1974_vm0 = vcmp.ge.s32.totalorder %v1926_v39, 1  ;;  %vm2022_vm6 = vcmp.le.s32.totalorder %v1926_v39, 16  ;;  %2313 = vrot.lane.b32.xlu0 %v12781_v41, %s11450_s30  ;;  %v2740_v37 = vsel %vm2673_vm4, %v2737_v51, %v19200_v54  ;;  %4219 = vrot.lane.b32.xlu1 %v3958_v57, %s11454_s13  ;;  %v787_v11 = vshrl.u32 %v786_v33, 4  ;;  %v3554_v6 = vpop.f32.mrf.mxu2 }
 0x18e   : > { %vm2070_vm7 = vmand %vm1974_vm0, %vm2022_vm6  ;;  %vm810_vm8 = vc.u32 %v808_v62, %v804_v26  ;;  %v3195_v41 = vadd.f32 %v12970_v12, %v2934_v63  ;;  %v805_v16 = vshrl.u32 %v13022_v52, 16  ;;  %v824_v60 = vand.u32 65535, %v13053_v9  ;;  %v2451_v26 = vpop.permute.xlu0 %2450 }
 0x18f   : > { %v13056_v44 = vsel %vm2070_vm7, 1.0, %v19185_v30  ;;  %v811_v51 = vsel %vm810_vm8, 1, %v19184_v35  ;;  %v788_v18 = vmul.u32 24, %v787_v11  ;;  %v2937_v32 = vpop.f32.mrf.mxu0  ;;  %10563 = vmatmul.msk.f32.gmra.mxu1 %vm2771_vm3, %v12847_v34  ;;  %v19203_v12 = vrot.slane %v12847_v34, 2 }
 0x190   : > { %19201 = vst [vmem:[#allocation27_spill] sm:$0xff] %v13056_v44  ;;  %v3860_v15 = vmul.f32 %v13056_v44, %v18896_v29  ;;  %v813_v62 = vadd.s32 %v811_v51, %v809_v19  ;;  %v13067_v47 = vadd.f32 %v3554_v6, %v3195_v41  ;;  %v19204_v63 = vrot.slane %v12984_v49, 2  ;;  %v2170_v6 = vld [vmem:[%s11509_s29 + $0x1af] sm:$0xff] }
 0x191   : > { %v825_v39 = vshrl.u32 %v13053_v9, 16  ;;  %v13076_v33 = vadd.s32 144, %v11809_v42  ;;  %v789_v54 = vsub.s32 %v12957_v46, %v788_v18  ;;  %v13084_v19 = vsel %vm2104_vm2, %v12917_v43, %v2451_v26  ;;  %v13099_v18 = vpop.permute.xlu1 %2297 }
 0x192   : > { %19202 = vst [vmem:[#allocation28_spill] sm:$0xff] %v13067_v47  ;;  %v3362_v52 = vsel %vm3295_vm5, %v19204_v63, %v19203_v12  ;;  %v814_v11 = vadd.s32 %v813_v62, %v803_v45  ;;  %v13086_v49 = vmul.u32 43690, %v824_v60  ;;  %10513 = vmatmul.msk.f32.gmra.mxu0 %vm2771_vm3, %v2740_v37  ;;  %v19205_v41 = vrot.slane %v12899_v40, 1 }
 0x193   : > { %3908 = vst.msk [vmem:[#allocation2 + $0xa0] sm:$0xff] %vm2104_vm2, %v3860_v15  ;;  %10611 = vmatmul.msk.f32.gmra.mxu2 %vm2771_vm3, %v3362_v52  ;;  %v19206_v51 = vrot.slane %v12847_v34, 1  ;;  %v827_v12 = vmul.u32 43691, %v824_v60  ;;  %v13096_v46 = vmul.u32 43691, %v825_v39  ;;  %v853_v43 = vand.u32 65535, %v13076_v33 }
 0x194   : > { %vm1735_vm9 = vcmp.ne.s32.totalorder %v789_v54, 0  ;;  %vm1783_vm10 = vcmp.lt.s32.totalorder %v789_v54, 0  ;;  %v1879_v45 = vadd.s32 24, %v789_v54  ;;  %v815_v37 = vadd.s32 %v814_v11, %v805_v16 }
 0x195   : > { %v2742_v15 = vsel %vm2673_vm4, %v19206_v51, %v19205_v41  ;;  %vm1831_vm11 = vmand %vm1783_vm10, %vm1735_vm9  ;;  %v3198_v63 = vadd.f32 %v13016_v55, %v2937_v32  ;;  %4074 = vrot.lane.b32.xlu0 %v3958_v57, %s11451_s8  ;;  %v830_v52 = vmul.u32 43690, %v825_v39  ;;  %v831_v60 = vshll.u32 %v13086_v49, 16  ;;  %2464 = vrot.lane.b32.xlu1 %v2170_v6, %s11451_s8  ;;  %v3557_v51 = vpop.f32.mrf.mxu2 }
 0x196   : > { %v1927_v26 = vsel %vm1831_vm11, %v1879_v45, %v789_v54  ;;  %v816_v41 = vshrl.u32 %v815_v37, 4  ;;  %v833_v29 = vshll.u32 %v13096_v46, 16  ;;  %v854_v21 = vshrl.u32 %v13076_v33, 16 }
 0x197   : > { %vm1975_vm12 = vcmp.ge.s32.totalorder %v1927_v26, 1  ;;  %vm2023_vm13 = vcmp.le.s32.totalorder %v1927_v26, 16  ;;  %vm835_vm14 = vc.u32 %v827_v12, %v831_v60  ;;  %v13108_v16 = vmul.u32 43690, %v853_v43  ;;  %v2940_v57 = vpop.f32.mrf.mxu0  ;;  %10564 = vmatmul.msk.f32.gmra.mxu1 %vm2771_vm3, %v12899_v40 }
 0x198   : > { %vm2071_vm15 = vmand %vm1975_vm12, %vm2023_vm13  ;;  %v817_v55 = vmul.u32 24, %v816_v41  ;;  %v19207_v32 = vrot.slane %v12899_v40, 2  ;;  %v19208_v39 = vrot.slane %v12847_v34, 2  ;;  %v836_v11 = vsel %vm835_vm14, 1, %v19184_v35 }
 0x199   : > { %v19209_v6 = vrot.slane %v12954_v3, 1  ;;  %v19210_v45 = vrot.slane %v12899_v40, 1  ;;  %v13124_v26 = vsel %vm2071_vm15, 1.0, %v19185_v30  ;;  %v13128_v62 = vadd.f32 %v3557_v51, %v3198_v63  ;;  %v13145_v51 = vpop.f32.mrf.mxu1 }
 0x19a   : > { %v3364_v54 = vsel %vm3295_vm5, %v19208_v39, %v19207_v32  ;;  %19211 = vst [vmem:[#allocation29_spill] sm:$0xff] %v13124_v26  ;;  %v13126_v41 = vld [vmem:[#allocation2 + $0x9f] sm:$0xff]  ;;  %v837_v10 = vadd.s32 %v831_v60, %v827_v12  ;;  %v856_v61 = vmul.u32 43691, %v853_v43  ;;  %v19213_v34 = vmax.f32 %v13067_v47, 0.0  ;;  %10514 = vmatmul.msk.f32.gmra.mxu0 %vm2771_vm3, %v2742_v15  ;;  %v13142_v60 = vpop.permute.xlu2 %4050  ;;  %v2169_v47 = vld [vmem:[%s11509_s29 + $0x1af] sm:$0x3] }
 0x19b   : > { %v2744_v37 = vsel %vm2673_vm4, %v19210_v45, %v19209_v6  ;;  %19212 = vst [vmem:[#allocation30_spill] sm:$0xff] %v13128_v62  ;;  %4221 = vrot.lane.b32.xlu2 %v13126_v41, %s11454_s13  ;;  %v818_v39 = vsub.s32 %v12997_v23, %v817_v55  ;;  %v838_v1 = vadd.s32 %v836_v11, %v830_v52  ;;  %v13136_v6 = vmul.u32 43691, %v854_v21 }
 0x19c   : > { %v3861_v32 = vmul.f32 %v13124_v26, %v19213_v34  ;;  %10612 = vmatmul.msk.f32.gmra.mxu2 %vm2771_vm3, %v3364_v54  ;;  %v832_v63 = vshrl.u32 %v13086_v49, 16  ;;  %vm839_vm0 = vc.u32 %v837_v10, %v833_v29  ;;  %v859_v12 = vmul.u32 43690, %v854_v21  ;;  %v13150_v21 = vpop.permute.xlu1 %2452  ;;  %v2171_v34 = vld [vmem:[%s11509_s29 + $0x1b7] sm:$0xff] }
 0x19d   : > { %v860_v43 = vshll.u32 %v13108_v16, 16  ;;  %vm1736_vm6 = vcmp.ne.s32.totalorder %v818_v39, 0  ;;  %vm1784_vm7 = vcmp.lt.s32.totalorder %v818_v39, 0  ;;  %v1880_v23 = vadd.s32 24, %v818_v39  ;;  %2315 = vrot.lane.b32.xlu1 %v12887_v22, %s11450_s30  ;;  %v3560_v54 = vpop.f32.mrf.mxu2 }
 0x19e   : > { %3909 = vst.msk [vmem:[#allocation2 + $0xa8] sm:$0xff] %vm2104_vm2, %v3861_v32  ;;  %v840_v15 = vsel %vm839_vm0, 1, %v19184_v35  ;;  %vm1832_vm8 = vmand %vm1784_vm7, %vm1736_vm6  ;;  %v834_v52 = vshrl.u32 %v13096_v46, 16  ;;  %v862_v10 = vshll.u32 %v13136_v6, 16  ;;  %v18901_v55 = vmax.f32 %v13128_v62, 0.0 }
 0x19f   : > { %v842_v49 = vadd.s32 %v840_v15, %v838_v1  ;;  %vm864_vm9 = vc.u32 %v856_v61, %v860_v43  ;;  %v1928_v29 = vsel %vm1832_vm8, %v1880_v23, %v818_v39  ;;  %v866_v45 = vadd.s32 %v860_v43, %v856_v61  ;;  %10565 = vmatmul.msk.f32.gmra.mxu1 %vm2771_vm3, %v12954_v3 }
 0x1a0   : > { %v865_v11 = vsel %vm864_vm9, 1, %v19184_v35  ;;  %vm1976_vm10 = vcmp.ge.s32.totalorder %v1928_v29, 1  ;;  %vm2024_vm11 = vcmp.le.s32.totalorder %v1928_v29, 16  ;;  %v19214_v1 = vrot.slane %v12954_v3, 2 }
 0x1a1   : > { %v843_v46 = vadd.s32 %v842_v49, %v832_v63  ;;  %v19215_v32 = vrot.slane %v12899_v40, 2  ;;  %vm2072_vm12 = vmand %vm1976_vm10, %vm2024_vm11  ;;  %v3201_v39 = vadd.f32 %v13079_v24, %v2940_v57  ;;  %v867_v22 = vadd.s32 %v865_v11, %v859_v12  ;;  %v2943_v12 = vpop.f32.mrf.mxu0  ;;  %v11333_v11 = vld [vmem:[%s11509_s29 + $0x13f] sm:$0xff] }
 0x1a2   : > { %vm868_vm13 = vc.u32 %v866_v45, %v862_v10  ;;  %v13166_v61 = vadd.s32 152, %v11809_v42  ;;  %v13169_v43 = vsel %vm2072_vm12, 1.0, %v19185_v30  ;;  %v861_v23 = vshrl.u32 %v13108_v16, 16  ;;  %10515 = vmatmul.msk.f32.gmra.mxu0 %vm2771_vm3, %v2744_v37 }
 0x1a3   : > { %v3366_v15 = vsel %vm3295_vm5, %v19215_v32, %v19214_v1  ;;  %19216 = vst [vmem:[#allocation31_spill] sm:$0xff] %v13169_v43  ;;  %v844_v63 = vadd.s32 %v843_v46, %v834_v52  ;;  %v13175_v40 = vsel %vm2104_vm2, %v13040_v2, %v13033_v14  ;;  %v3862_v24 = vmul.f32 %v13169_v43, %v18901_v55  ;;  %v13203_v32 = vpop.f32.mrf.mxu1 }
 0x1a4   : > { %2466 = vrot.lane.b32.xlu2 %v2171_v34, %s11451_s8  ;;  %v13181_v57 = vadd.f32 %v3560_v54, %v3201_v39  ;;  %v863_v49 = vshrl.u32 %v13136_v6, 16  ;;  %v869_v52 = vsel %vm868_vm13, 1, %v19184_v35  ;;  %10613 = vmatmul.msk.f32.gmra.mxu2 %vm2771_vm3, %v3366_v15  ;;  %v882_v2 = vand.u32 65535, %v13166_v61  ;;  %v13192_v54 = vpop.permute.xlu2 %4054 }
 0x1a5   : > { %v13185_v16 = vld [vmem:[#allocation2 + $0xa7] sm:$0xff]  ;;  %v845_v10 = vshrl.u32 %v844_v63, 4  ;;  %v871_v14 = vadd.s32 %v869_v52, %v867_v22  ;;  %v883_v29 = vshrl.u32 %v13166_v61, 16  ;;  %3910 = vst.msk [vmem:[#allocation2 + $0xb0] sm:$0xff] %vm2104_vm2, %v3862_v24  ;;  %v18903_v6 = vrot.slane %v13175_v40, 1  ;;  %v3563_v15 = vpop.f32.mrf.mxu2  ;;  %v13208_v24 = vpop.permute.xlu0 %2301 }
 0x1a6   : > { %19217 = vst [vmem:[#allocation32_spill] sm:$0xff] %v13181_v57  ;;  %4223 = vrot.lane.b32.xlu0 %v13185_v16, %s11454_s13  ;;  %v2559_v37 = vsel %vm2521_vm1, %v11333_v11, %v13099_v18  ;;  %v13200_v46 = vmul.u32 43690, %v882_v2  ;;  %v18902_v39 = vrot.slane %v13175_v40, 2  ;;  %v885_v22 = vmul.u32 43691, %v882_v2 }
 0x1a7   : > { %v846_v45 = vmul.u32 24, %v845_v10  ;;  %v872_v34 = vadd.s32 %v871_v14, %v861_v23  ;;  %v13206_v63 = vmul.u32 43691, %v883_v29  ;;  %v18904_v18 = vmax.f32 %v13181_v57, 0.0  ;;  %v4049_v14 = vpop.permute.xlu1 %4048  ;;  %10566 = vmatmul.msk.f32.gmra.mxu1 %vm2771_vm3, %v13175_v40  ;;  %v3943_v57 = vld [vmem:[#allocation2 + $0x1f] sm:$0xff] }
 0x1a8   : > { %v889_v10 = vshll.u32 %v13200_v46, 16  ;;  %v3204_v11 = vadd.f32 %v13145_v51, %v2943_v12  ;;  %v19218_v2 = vrot.slane %v12954_v3, 1  ;;  %v888_v1 = vmul.u32 43690, %v883_v29 }
 0x1a9   : > { %v847_v52 = vsub.s32 %v13053_v9, %v846_v45  ;;  %v873_v23 = vadd.s32 %v872_v34, %v863_v49  ;;  %v13223_v9 = vsel %vm2104_vm2, %v2559_v37, %v12849_v28  ;;  %v2172_v45 = vld [vmem:[%s11509_s29 + $0x1bf] sm:$0xff]  ;;  %v19219_v51 = vrot.slane %v12954_v3, 2 }
 0x1aa   : > { %v2746_v55 = vsel %vm2673_vm4, %v19218_v2, %v18903_v6  ;;  %v891_v29 = vshll.u32 %v13206_v63, 16  ;;  %vm893_vm6 = vc.u32 %v885_v22, %v889_v10  ;;  %v13235_v28 = vadd.s32 160, %v11809_v42 }
 0x1ab   : > { %vm1737_vm14 = vcmp.ne.s32.totalorder %v847_v52, 0  ;;  %vm1785_vm15 = vcmp.lt.s32.totalorder %v847_v52, 0  ;;  %v1881_v49 = vadd.s32 24, %v847_v52  ;;  %v874_v34 = vshrl.u32 %v873_v23, 4  ;;  %10516 = vmatmul.msk.f32.gmra.mxu0 %vm2771_vm3, %v2746_v55 }
 0x1ac   : > { %vm1833_vm0 = vmand %vm1785_vm15, %vm1737_vm14  ;;  %2317 = vrot.lane.b32.xlu2 %v12937_v48, %s11450_s30  ;;  %v3368_v12 = vsel %vm3295_vm5, %v19219_v51, %v18902_v39  ;;  %v13237_v2 = vld [vmem:[#allocation2 + $0xaf] sm:$0xff]  ;;  %v2946_v51 = vpop.f32.mrf.mxu0  ;;  %v890_v39 = vshrl.u32 %v13200_v46, 16  ;;  %vm4395_vm14 = vcmask 130048   ;;  %v19225_v6 = vrot.slane %v13175_v40, 1 }
 0x1ad   : > { %v1929_v37 = vsel %vm1833_vm0, %v1881_v49, %v847_v52  ;;  %v875_v23 = vmul.u32 24, %v874_v34  ;;  %10614 = vmatmul.msk.f32.gmra.mxu2 %vm2771_vm3, %v3368_v12  ;;  %4225 = vrot.lane.b32.xlu1 %v13237_v2, %s11454_s13  ;;  %v894_v52 = vsel %vm893_vm6, 1, %v19184_v35  ;;  %v895_v49 = vadd.s32 %v889_v10, %v885_v22  ;;  %v3942_v34 = vld [vmem:[#allocation2 + $0x17] sm:$0xff] }
 0x1ae   : > { %vm1977_vm7 = vcmp.ge.s32.totalorder %v1929_v37, 1  ;;  %vm2025_vm8 = vcmp.le.s32.totalorder %v1929_v37, 16  ;;  %2468 = vrot.lane.b32.xlu0 %v2172_v45, %s11451_s8  ;;  %v13248_v12 = vadd.f32 %v3563_v15, %v3204_v11  ;;  %v896_v3 = vadd.s32 %v894_v52, %v888_v1  ;;  %v13254_v45 = vpop.permute.xlu2 %2454  ;;  %v3566_v1 = vpop.f32.mrf.mxu2  ;;  %v4450_v11 = vld [vmem:[%s18865_s2 + $0x28] sm:$0xff] }
 0x1af   : > { %vm2073_vm9 = vmand %vm1977_vm7, %vm2025_vm8  ;;  %v876_v55 = vsub.s32 %v13076_v33, %v875_v23  ;;  %vm13256_vm10 = vc.u32 %v895_v49, %v891_v29  ;;  %v911_v22 = vand.u32 65535, %v13235_v28  ;;  %v912_v10 = vshrl.u32 %v13235_v28, 16  ;;  %v4200_v15 = vpop.permute.xlu0 %4199  ;;  %v4449_v29 = vld [vmem:[%s18865_s2 + $0x20] sm:$0xff]  ;;  %v13272_v52 = vpop.f32.mrf.mxu1  ;;  %10567 = vmatmul.msk.f32.gmra.mxu1 %vm2771_vm3, %v13223_v9  ;;  %4707 = vmatpush.msra.mxu3 %v4450_v11 }
 0x1b0   : > { %19220 = vst [vmem:[#allocation33_spill] sm:$0xff] %v13248_v12  ;;  %v13252_v37 = vsel %vm2073_vm9, 1.0, %v19185_v30  ;;  %v4346_v23 = vsel %vm2104_vm2, %v3942_v34, %v4049_v14  ;;  %v4053_v49 = vpop.permute.xlu1 %4052  ;;  %v898_v48 = vsel %vm13256_vm10, 1, %v19184_v35  ;;  %v18911_v14 = vmax.f32 %v13248_v12, 0.0 }
 0x1b1   : > { %19221 = vst [vmem:[#allocation34_spill] sm:$0xff] %v13252_v37  ;;  %v3863_v33 = vmul.f32 %v13252_v37, %v18904_v18  ;;  %vm1738_vm11 = vcmp.ne.s32.totalorder %v876_v55, 0  ;;  %vm1786_vm12 = vcmp.lt.s32.totalorder %v876_v55, 0  ;;  %v1882_v46 = vadd.s32 24, %v876_v55  ;;  %4708 = vmatpush.msra.mxu3 %v4449_v29 }
 0x1b2   : > { %vm1834_vm13 = vmand %vm1786_vm12, %vm1738_vm11  ;;  %v892_v18 = vshrl.u32 %v13206_v63, 16  ;;  %v3207_v34 = vadd.f32 %v13203_v32, %v2946_v51  ;;  %v900_v5 = vadd.s32 %v898_v48, %v896_v3  ;;  %v19224_v63 = vrot.slane %v13223_v9, 1  ;;  %v4448_v32 = vld [vmem:[%s18865_s2 + $0x18] sm:$0xff]  ;;  %v3944_v48 = vld [vmem:[#allocation2 + $0x27] sm:$0xff] }
 0x1b3   : > { %3911 = vst.msk [vmem:[#allocation2 + $0xb8] sm:$0xff] %vm2104_vm2, %v3863_v33  ;;  %v1930_v62 = vsel %vm1834_vm13, %v1882_v46, %v876_v55  ;;  %v19226_v11 = vrot.slane %v13223_v9, 2  ;;  %v19227_v58 = vrot.slane %v13175_v40, 2  ;;  %v914_v3 = vmul.u32 43691, %v911_v22  ;;  %4709 = vmatpush.msra.mxu3 %v4448_v32 }
 0x1b4   : > { %vm1978_vm15 = vcmp.ge.s32.totalorder %v1930_v62, 1  ;;  %vm2026_vm0 = vcmp.le.s32.totalorder %v1930_v62, 16  ;;  %v2748_v17 = vsel %vm2673_vm4, %v19225_v6, %v19224_v63  ;;  %v901_v62 = vadd.s32 %v900_v5, %v890_v39  ;;  %v13322_v63 = vpop.f32.mrf.mxu0 }
 0x1b5   : > { %v3370_v55 = vsel %vm3295_vm5, %v19227_v58, %v19226_v11  ;;  %vm2074_vm6 = vmand %vm1978_vm15, %vm2026_vm0  ;;  %10517 = vmatmul.msk.f32.gmra.mxu0 %vm2771_vm3, %v2748_v17  ;;  %v915_v51 = vmul.u32 43690, %v911_v22  ;;  %v13299_v33 = vmul.u32 43691, %v912_v10  ;;  %v4347_v58 = vsel %vm2104_vm2, %v3943_v57, %v13142_v60  ;;  %4076 = vrot.lane.b32.xlu1 %v13126_v41, %s11451_s8  ;;  %v11334_v57 = vld [vmem:[%s11509_s29 + $0x14f] sm:$0xff] }
 0x1b6   : > { %10615 = vmatmul.msk.f32.gmra.mxu2 %vm2771_vm3, %v3370_v55  ;;  %v13305_v46 = vsel %vm2074_vm6, 1.0, %v19185_v30  ;;  %2319 = vrot.lane.b32.xlu0 %v2169_v47, %s11450_s30  ;;  %v13311_v17 = vsel %vm4395_vm14, %v4346_v23, %v4200_v15  ;;  %v902_v39 = vadd.s32 %v901_v62, %v892_v18  ;;  %v917_v22 = vmul.u32 43690, %v912_v10 }
 0x1b7   : > { %19228 = vst [vmem:[#allocation35_spill] sm:$0xff] %v13305_v46  ;;  %v3864_v5 = vmul.f32 %v13305_v46, %v18911_v14  ;;  %v918_v60 = vshll.u32 %v915_v51, 16  ;;  %v13319_v29 = vsel %vm2521_vm1, %v11334_v57, %v13208_v24  ;;  %v4348_v47 = vsel %vm2104_vm2, %v3944_v48, %v4053_v49  ;;  %v13331_v6 = vpop.permute.xlu0 %4056  ;;  %v4204_v24 = vpop.permute.xlu2 %4203  ;;  %10568 = vmatmul.msk.f32.gmra.mxu1 %vm2771_vm3, %v13084_v19 }
 0x1b8   : > { %v920_v41 = vshll.u32 %v13299_v33, 16  ;;  %v13326_v15 = vadd.s32 168, %v11809_v42  ;;  %v903_v18 = vshrl.u32 %v902_v39, 4  ;;  %v13329_v10 = vadd.f32 %v3566_v1, %v3207_v34  ;;  %v4202_v32 = vpop.permute.xlu1 %4201  ;;  %v13348_v57 = vpop.f32.mrf.mxu2 }
 0x1b9   : > { %3912 = vst.msk [vmem:[#allocation2 + $0xc0] sm:$0xff] %vm2104_vm2, %v3864_v5  ;;  %vm922_vm7 = vc.u32 %v914_v3, %v918_v60  ;;  %v924_v23 = vadd.s32 %v918_v60, %v914_v3  ;;  %v4500_v49 = vrot.slane %v13311_v17, 1  ;;  %v19230_v48 = vrot.slane %v13084_v19, 1  ;;  %v2173_v5 = vld [vmem:[%s11509_s29 + $0x1c7] sm:$0x3]  ;;  %v3212_v14 = vpop.f32.mrf.mxu1 }
 0x1ba   : > { %19229 = vst [vmem:[#allocation36_spill] sm:$0xff] %v13329_v10  ;;  %v13333_v11 = vld [vmem:[#allocation2 + $0xb7] sm:$0xff]  ;;  %v923_v55 = vsel %vm922_vm7, 1, %v19184_v35  ;;  %v19231_v1 = vrot.slane %v13223_v9, 1  ;;  %v940_v62 = vand.u32 65535, %v13326_v15  ;;  %v904_v3 = vmul.u32 24, %v903_v18 }
 0x1bb   : > { %4227 = vrot.lane.b32.xlu2 %v13333_v11, %s11454_s13  ;;  %v919_v39 = vshrl.u32 %v915_v51, 16  ;;  %v925_v60 = vadd.s32 %v923_v55, %v917_v22  ;;  %vm926_vm8 = vc.u32 %v924_v23, %v920_v41  ;;  %v13352_v12 = vsel %vm4395_vm14, %v4347_v58, %v4202_v32 }
 0x1bc   : > { %v2750_v34 = vsel %vm2673_vm4, %v19231_v1, %v19230_v48  ;;  %v927_v40 = vsel %vm926_vm8, 1, %v19184_v35  ;;  %v19232_v48 = vrot.slane %v13084_v19, 2  ;;  %v19233_v1 = vrot.slane %v13223_v9, 2 }
 0x1bd   : > { %v941_v18 = vshrl.u32 %v13326_v15, 16  ;;  %v905_v51 = vsub.s32 %v13166_v61, %v904_v3  ;;  %v921_v22 = vshrl.u32 %v13299_v33, 16  ;;  %v929_v41 = vadd.s32 %v927_v40, %v925_v60  ;;  %10518 = vmatmul.msk.f32.gmra.mxu0 %vm2771_vm3, %v2750_v34  ;;  %2470 = vrot.lane.b32.xlu1 %v2173_v5, %s11451_s8 }
 0x1be   : > { %v3372_v4 = vsel %vm3295_vm5, %v19233_v1, %v19232_v48  ;;  %v4501_v23 = vrot.slane %v13352_v12, 1  ;;  %vm4597_vm9 = vcmask 195584   ;;  %v943_v58 = vmul.u32 43691, %v940_v62 }
 0x1bf   : > { %10616 = vmatmul.msk.f32.gmra.mxu2 %vm2771_vm3, %v3372_v4  ;;  %v944_v9 = vmul.u32 43690, %v940_v62  ;;  %v13366_v55 = vmul.u32 43691, %v941_v18  ;;  %vm1739_vm10 = vcmp.ne.s32.totalorder %v905_v51, 0  ;;  %vm1787_vm11 = vcmp.lt.s32.totalorder %v905_v51, 0  ;;  %v13381_v48 = vpop.permute.xlu0 %2456 }
 0x1c0   : > { %v1883_v32 = vadd.s32 24, %v905_v51  ;;  %v930_v61 = vadd.s32 %v929_v41, %v919_v39  ;;  %vm1835_vm12 = vmand %vm1787_vm11, %vm1739_vm10  ;;  %v13368_v33 = vld [vmem:[#allocation2 + $0xbf] sm:$0xff]  ;;  %v4502_v40 = vsel %vm2673_vm4, %v4500_v49, %v4501_v23  ;;  %v946_v34 = vmul.u32 43690, %v941_v18  ;;  %v2952_v49 = vpop.f32.mrf.mxu0  ;;  %v2304_v18 = vpop.permute.xlu1 %2303 }
 0x1c1   : > { %v947_v4 = vshll.u32 %v944_v9, 16  ;;  %v949_v3 = vshll.u32 %v13366_v55, 16  ;;  %v13375_v5 = vsel %vm4395_vm14, %v4348_v47, %v4204_v24  ;;  %v18915_v60 = vmax.f32 %v13329_v10, 0.0  ;;  %4229 = vrot.lane.b32.xlu0 %v13368_v33, %s11454_s13  ;;  %10675 = vmatmul.msk.f32.vlgmr.msra.gmra.mxu3 %vm4597_vm9, %v4502_v40 }
 0x1c2   : > { %v1931_v62 = vsel %vm1835_vm12, %v1883_v32, %v905_v51  ;;  %v931_v39 = vadd.s32 %v930_v61, %v921_v22  ;;  %v3210_v47 = vadd.f32 %v13272_v52, %v13322_v63  ;;  %v3213_v51 = vadd.f32 %v3212_v14, %v2952_v49  ;;  %v2306_v32 = vpop.permute.xlu2 %2305  ;;  %v3572_v63 = vpop.f32.mrf.mxu2 }
 0x1c3   : > { %vm1979_vm13 = vcmp.ge.s32.totalorder %v1931_v62, 1  ;;  %vm2027_vm15 = vcmp.le.s32.totalorder %v1931_v62, 16  ;;  %vm951_vm0 = vc.u32 %v943_v58, %v947_v4  ;;  %v953_v1 = vadd.s32 %v947_v4, %v943_v58  ;;  %4078 = vrot.lane.b32.xlu2 %v13185_v16, %s11451_s8  ;;  %v11335_v58 = vld [vmem:[#allocation2 + $0x2f] sm:$0xff] }
 0x1c4   : > { %vm2075_vm6 = vmand %vm1979_vm13, %vm2027_vm15  ;;  %v932_v24 = vshrl.u32 %v931_v39, 4  ;;  %v952_v22 = vsel %vm951_vm0, 1, %v19184_v35  ;;  %v948_v61 = vshrl.u32 %v944_v9, 16  ;;  %v4349_v4 = vsel %vm2104_vm2, %v11335_v58, %v13192_v54  ;;  %v3215_v39 = vpop.f32.mrf.mxu1 }
 0x1c5   : > { %v13389_v41 = vsel %vm2075_vm6, 1.0, %v19185_v30  ;;  %v954_v40 = vadd.s32 %v952_v22, %v946_v34  ;;  %vm955_vm7 = vc.u32 %v953_v1, %v949_v3  ;;  %v4503_v62 = vrot.slane %v13375_v5, 1  ;;  %4080 = vrot.lane.b32.xlu1 %v13237_v2, %s11451_s8 }
 0x1c6   : > { %19234 = vst [vmem:[#allocation37_spill] sm:$0xff] %v13389_v41  ;;  %v3865_v52 = vmul.f32 %v13389_v41, %v18915_v60  ;;  %v933_v16 = vmul.u32 24, %v932_v24  ;;  %v956_v14 = vsel %vm955_vm7, 1, %v19184_v35  ;;  %v950_v9 = vshrl.u32 %v13366_v55, 16 }
 0x1c7   : > { %v958_v34 = vadd.s32 %v956_v14, %v954_v40  ;;  %v13404_v54 = vsel %vm2104_vm2, %v13319_v29, %v13150_v21  ;;  %v13409_v49 = vadd.f32 %v13348_v57, %v3210_v47  ;;  %v13415_v24 = vadd.f32 %v3572_v63, %v3213_v51  ;;  %v4206_v58 = vpop.permute.xlu0 %4205 }
 0x1c8   : > { %3913 = vst.msk [vmem:[#allocation2 + $0xc8] sm:$0xff] %vm2104_vm2, %v3865_v52  ;;  %v934_v3 = vsub.s32 %v13235_v28, %v933_v16  ;;  %v2751_v1 = vrot.slane %v13404_v54, 1  ;;  %10569 = vmatmul.msk.f32.gmra.mxu1 %vm2771_vm3, %v13404_v54  ;;  %v18916_v2 = vrot.slane %v13404_v54, 2  ;;  %v4504_v21 = vsel %vm2673_vm4, %v4501_v23, %v4503_v62  ;;  %v13441_v40 = vpop.permute.xlu1 %4058  ;;  %v11336_v52 = vld [vmem:[%s11509_s29 + $0x15f] sm:$0xff] }
 0x1c9   : > { %19235 = vst [vmem:[#allocation38_spill] sm:$0xff] %v13409_v49  ;;  %v959_v55 = vadd.s32 %v958_v34, %v948_v61  ;;  %v13423_v28 = vadd.s32 176, %v11809_v42  ;;  %4082 = vrot.lane.b32.xlu0 %v13333_v11, %s11451_s8  ;;  %v19237_v57 = vrot.slane %v13084_v19, 1  ;;  %10676 = vmatmul.msk.f32.gmra.mxu3 %vm4597_vm9, %v4504_v21  ;;  %v19238_v51 = vrot.slane %v13084_v19, 2 }
 0x1ca   : > { %19236 = vst [vmem:[#allocation39_spill] sm:$0xff] %v13415_v24  ;;  %vm1740_vm8 = vcmp.ne.s32.totalorder %v934_v3, 0  ;;  %vm1788_vm10 = vcmp.lt.s32.totalorder %v934_v3, 0  ;;  %v1884_v29 = vadd.s32 24, %v934_v3  ;;  %v2563_v16 = vsel %vm2521_vm1, %v11336_v52, %v2306_v32 }
 0x1cb   : > { %v2752_v47 = vsel %vm2673_vm4, %v19237_v57, %v2751_v1  ;;  %vm1836_vm11 = vmand %vm1788_vm10, %vm1740_vm8  ;;  %v960_v23 = vadd.s32 %v959_v55, %v950_v9  ;;  %v3374_v22 = vsel %vm3295_vm5, %v19238_v51, %v18916_v2  ;;  %v969_v11 = vand.u32 65535, %v13423_v28  ;;  %v11337_v9 = vld [vmem:[%s11509_s29 + $0x157] sm:$0xff] }
 0x1cc   : > { %10519 = vmatmul.msk.f32.gmra.mxu0 %vm2771_vm3, %v2752_v47  ;;  %v970_v61 = vshrl.u32 %v13423_v28, 16  ;;  %v1932_v14 = vsel %vm1836_vm11, %v1884_v29, %v934_v3  ;;  %v18914_v63 = vmax.f32 %v13409_v49, 0.0  ;;  %v2562_v34 = vsel %vm2521_vm1, %v11337_v9, %v2304_v18  ;;  %10617 = vmatmul.msk.f32.gmra.mxu2 %vm2771_vm3, %v3374_v22  ;;  %v13460_v18 = vpop.permute.xlu2 %4060 }
 0x1cd   : > { %vm1980_vm12 = vcmp.ge.s32.totalorder %v1932_v14, 1  ;;  %vm2028_vm13 = vcmp.le.s32.totalorder %v1932_v14, 16  ;;  %v961_v19 = vshrl.u32 %v960_v23, 4  ;;  %v972_v21 = vmul.u32 43691, %v969_v11 }
 0x1ce   : > { %vm2076_vm15 = vmand %vm1980_vm12, %vm2028_vm13  ;;  %v13450_v57 = vmul.u32 43690, %v969_v11  ;;  %v13452_v47 = vmul.u32 43691, %v970_v61  ;;  %v13455_v32 = vsel %vm4395_vm14, %v4349_v4, %v4206_v58  ;;  %v13466_v23 = vsel %vm2104_vm2, %v2563_v16, %v13381_v48  ;;  %v2955_v11 = vpop.f32.mrf.mxu0  ;;  %v13481_v48 = vpop.f32.mrf.mxu1 }
 0x1cf   : > { %v13458_v3 = vsel %vm2076_vm15, 1.0, %v19185_v30  ;;  %v13462_v29 = vld [vmem:[#allocation2 + $0xc7] sm:$0xff]  ;;  %v962_v51 = vmul.u32 24, %v961_v19  ;;  %v13470_v22 = vsel %vm2104_vm2, %v2562_v34, %v13254_v45  ;;  %v975_v58 = vmul.u32 43690, %v970_v61 }
 0x1d0   : > { %19239 = vst [vmem:[#allocation40_spill] sm:$0xff] %v13458_v3  ;;  %v3866_v4 = vmul.f32 %v13458_v3, %v18914_v63  ;;  %4231 = vrot.lane.b32.xlu2 %v13462_v29, %s11454_s13  ;;  %v976_v52 = vshll.u32 %v13450_v57, 16  ;;  %v978_v14 = vshll.u32 %v13452_v47, 16  ;;  %10570 = vmatmul.msk.f32.gmra.mxu1 %vm2771_vm3, %v13470_v22  ;;  %v3216_v16 = vadd.f32 %v3215_v39, %v2955_v11  ;;  %v5112_v39 = vld [vmem:[%s18865_s2 + $0x30] sm:$0xff] }
 0x1d1   : > { %v963_v45 = vsub.s32 %v13326_v15, %v962_v51  ;;  %v18918_v9 = vrot.slane %v13455_v32, 1  ;;  %v13486_v34 = vadd.s32 184, %v11809_v42  ;;  %v977_v61 = vshrl.u32 %v13450_v57, 16  ;;  %v4445_v15 = vld [vmem:[%s18865_s2] sm:$0xff]  ;;  %v3575_v57 = vpop.f32.mrf.mxu2  ;;  %5323 = vmatpush.msrb.mxu1 %v5112_v39  ;;  %v2308_v39 = vpop.permute.xlu0 %2307 }
 0x1d2   : > { %3914 = vst.msk [vmem:[#allocation2 + $0xd0] sm:$0xff] %vm2104_vm2, %v3866_v4  ;;  %v979_v19 = vshrl.u32 %v13452_v47, 16  ;;  %vm980_vm0 = vc.u32 %v972_v21, %v976_v52  ;;  %v982_v63 = vadd.s32 %v976_v52, %v972_v21  ;;  %v2753_v47 = vrot.slane %v13470_v22, 1  ;;  %4966 = vmatpush.msrb.mxu0 %v4445_v15 }
 0x1d3   : > { %vm1741_vm6 = vcmp.ne.s32.totalorder %v963_v45, 0  ;;  %vm1789_vm7 = vcmp.lt.s32.totalorder %v963_v45, 0  ;;  %v1885_v60 = vadd.s32 24, %v963_v45  ;;  %v981_v55 = vsel %vm980_vm0, 1, %v19184_v35 }
 0x1d4   : > { %vm1837_vm8 = vmand %vm1789_vm7, %vm1741_vm6  ;;  %v983_v51 = vadd.s32 %v981_v55, %v975_v58  ;;  %vm984_vm10 = vc.u32 %v982_v63, %v978_v14  ;;  %v18917_v21 = vrot.slane %v13470_v22, 2  ;;  %v4506_v52 = vsel %vm2673_vm4, %v4503_v62, %v18918_v9  ;;  %v4208_v55 = vpop.permute.xlu1 %4207 }
 0x1d5   : > { %v1933_v4 = vsel %vm1837_vm8, %v1885_v60, %v963_v45  ;;  %v985_v11 = vsel %vm984_vm10, 1, %v19184_v35  ;;  %v998_v2 = vand.u32 65535, %v13486_v34  ;;  %v2754_v58 = vsel %vm2673_vm4, %v2751_v1, %v2753_v47  ;;  %10677 = vmatmul.msk.f32.gmra.mxu3 %vm4597_vm9, %v4506_v52 }
 0x1d6   : > { %vm1981_vm11 = vcmp.ge.s32.totalorder %v1933_v4, 1  ;;  %vm2029_vm12 = vcmp.le.s32.totalorder %v1933_v4, 16  ;;  %v987_v63 = vadd.s32 %v985_v11, %v983_v51  ;;  %10520 = vmatmul.msk.f32.gmra.mxu0 %vm2771_vm3, %v2754_v58  ;;  %v19240_v60 = vrot.slane %v13404_v54, 2  ;;  %v11338_v51 = vld [vmem:[#allocation2 + $0x37] sm:$0xff]  ;;  %v4210_v58 = vpop.permute.xlu2 %4209  ;;  %v2958_v11 = vpop.f32.mrf.mxu0 }
 0x1d7   : > { %vm2077_vm13 = vmand %vm1981_vm11, %vm2029_vm12  ;;  %v999_v14 = vshrl.u32 %v13486_v34, 16  ;;  %v1001_v45 = vmul.u32 43691, %v998_v2  ;;  %v1002_v15 = vmul.u32 43690, %v998_v2  ;;  %v4350_v1 = vsel %vm2104_vm2, %v11338_v51, %v13331_v6 }
 0x1d8   : > { %v3376_v62 = vsel %vm3295_vm5, %v19240_v60, %v18917_v21  ;;  %v13521_v4 = vsel %vm2077_vm13, 1.0, %v19185_v30  ;;  %4084 = vrot.lane.b32.xlu2 %v13368_v33, %s11451_s8  ;;  %v988_v54 = vadd.s32 %v987_v63, %v977_v61  ;;  %v19242_v52 = vmax.f32 %v13415_v24, 0.0  ;;  %10571 = vmatmul.msk.f32.gmra.mxu1 %vm2771_vm3, %v13466_v23 }
 0x1d9   : > { %19241 = vst [vmem:[#allocation41_spill] sm:$0xff] %v13521_v4  ;;  %10618 = vmatmul.msk.f32.gmra.mxu2 %vm2771_vm3, %v3376_v62  ;;  %v13530_v60 = vld [vmem:[#allocation2 + $0xcf] sm:$0xff]  ;;  %v1003_v21 = vmul.u32 43691, %v999_v14  ;;  %v1004_v6 = vmul.u32 43690, %v999_v14  ;;  %v1005_v51 = vshll.u32 %v1002_v15, 16  ;;  %v13537_v61 = vadd.f32 %v3575_v57, %v3216_v16  ;;  %v13543_v62 = vpop.f32.mrf.mxu1  ;;  %v11339_v14 = vld [vmem:[#allocation2 + $0x3f] sm:$0xff] }
 0x1da   : > { %v3867_v2 = vmul.f32 %v13521_v4, %v19242_v52  ;;  %4233 = vrot.lane.b32.xlu1 %v13530_v60, %s11454_s13  ;;  %v989_v33 = vadd.s32 %v988_v54, %v979_v19  ;;  %v13540_v63 = vsel %vm4395_vm14, %v4350_v1, %v4208_v55  ;;  %v4351_v52 = vsel %vm2104_vm2, %v11339_v14, %v13441_v40  ;;  %v11340_v54 = vld [vmem:[%s11509_s29 + $0x167] sm:$0xff]  ;;  %v3578_v14 = vpop.f32.mrf.mxu2 }
 0x1db   : > { %19243 = vst [vmem:[#allocation42_spill] sm:$0xff] %v13537_v61  ;;  %v1007_v9 = vshll.u32 %v1003_v21, 16  ;;  %vm1009_vm15 = vc.u32 %v1001_v45, %v1005_v51  ;;  %v1011_v24 = vadd.s32 %v1005_v51, %v1001_v45  ;;  %v3219_v16 = vadd.f32 %v13481_v48, %v2958_v11 }
 0x1dc   : > { %3915 = vst.msk [vmem:[#allocation2 + $0xd8] sm:$0xff] %vm2104_vm2, %v3867_v2  ;;  %v990_v49 = vshrl.u32 %v989_v33, 4  ;;  %v1010_v19 = vsel %vm1009_vm15, 1, %v19184_v35  ;;  %v4507_v57 = vrot.slane %v13540_v63, 1  ;;  %v1006_v55 = vshrl.u32 %v1002_v15, 16 }
 0x1dd   : > { %v1012_v1 = vadd.s32 %v1010_v19, %v1004_v6  ;;  %vm1013_vm0 = vc.u32 %v1011_v24, %v1007_v9  ;;  %v2564_v2 = vsel %vm2521_vm1, %v11340_v54, %v2308_v39  ;;  %v19244_v4 = vrot.slane %v13466_v23, 1  ;;  %v2459_v39 = vpop.permute.xlu1 %2458 }
 0x1de   : > { %v991_v10 = vmul.u32 24, %v990_v49  ;;  %v1014_v40 = vsel %vm1013_vm0, 1, %v19184_v35  ;;  %v19245_v48 = vrot.slane %v13455_v32, 1  ;;  %v1008_v15 = vshrl.u32 %v1003_v21, 16 }
 0x1df   : > { %v2756_v45 = vsel %vm2673_vm4, %v2753_v47, %v19244_v4  ;;  %v1016_v6 = vadd.s32 %v1014_v40, %v1012_v1  ;;  %v19246_v24 = vrot.slane %v13466_v23, 2  ;;  %v19247_v49 = vrot.slane %v13470_v22, 2  ;;  %v3749_v4 = vld [vmem:[%s18868_s5] sm:$0xff] }
 0x1e0   : > { %v4508_v11 = vsel %vm2673_vm4, %v19245_v48, %v4507_v57  ;;  %10521 = vmatmul.msk.f32.gmra.mxu0 %vm2771_vm3, %v2756_v45  ;;  %v13569_v47 = vadd.s32 192, %v11809_v42  ;;  %v992_v21 = vsub.s32 %v13423_v28, %v991_v10  ;;  %v18925_v51 = vmax.f32 %v13537_v61, 0.0  ;;  %6030 = vmatpush.msrb.mxu3 %v3749_v4  ;;  %v13587_v45 = vpop.permute.xlu0 %4062 }
 0x1e1   : > { %v3378_v9 = vsel %vm3295_vm5, %v19247_v49, %v19246_v24  ;;  %10678 = vmatmul.msk.f32.gmra.mxu3 %vm4597_vm9, %v4508_v11  ;;  %v13577_v33 = vsel %vm4395_vm14, %v4351_v52, %v4210_v58  ;;  %v13581_v22 = vsel %vm2104_vm2, %v2564_v2, %v2459_v39  ;;  %v1017_v19 = vadd.s32 %v1016_v6, %v1006_v55  ;;  %v13596_v52 = vpop.permute.xlu2 %4066  ;;  %v13604_v24 = vpop.f32.mrf.mxu1 }
 0x1e2   : > { %10619 = vmatmul.msk.f32.gmra.mxu2 %vm2771_vm3, %v3378_v9  ;;  %v13583_v1 = vadd.f32 %v3578_v14, %v3219_v16  ;;  %v1027_v54 = vand.u32 65535, %v13569_v47  ;;  %v1028_v40 = vshrl.u32 %v13569_v47, 16  ;;  %10572 = vmatmul.msk.f32.gmra.mxu1 %vm2771_vm3, %v13581_v22  ;;  %vm1742_vm6 = vcmp.ne.s32.totalorder %v992_v21, 0 }
 0x1e3   : > { %vm1790_vm7 = vcmp.lt.s32.totalorder %v992_v21, 0  ;;  %v1886_v10 = vadd.s32 24, %v992_v21  ;;  %4086 = vrot.lane.b32.xlu1 %v13462_v29, %s11451_s8  ;;  %v13593_v28 = vld [vmem:[#allocation2 + $0xd7] sm:$0xff]  ;;  %v18924_v58 = vrot.slane %v13581_v22, 1  ;;  %v1018_v16 = vadd.s32 %v1017_v19, %v1008_v15 }
 0x1e4   : > { %19248 = vst [vmem:[#allocation43_spill] sm:$0xff] %v13583_v1  ;;  %vm1838_vm8 = vmand %vm1790_vm7, %vm1742_vm6  ;;  %4235 = vrot.lane.b32.xlu0 %v13593_v28, %s11454_s13  ;;  %v1030_v55 = vmul.u32 43691, %v1027_v54  ;;  %v1031_v2 = vmul.u32 43690, %v1027_v54  ;;  %v1032_v14 = vmul.u32 43691, %v1028_v40  ;;  %v1033_v11 = vmul.u32 43690, %v1028_v40 }
 0x1e5   : > { %v1934_v48 = vsel %vm1838_vm8, %v1886_v10, %v992_v21  ;;  %v18926_v6 = vrot.slane %v13581_v22, 2  ;;  %v13602_v29 = vadd.s32 200, %v11809_v42  ;;  %v1019_v49 = vshrl.u32 %v1018_v16, 4  ;;  %v13616_v16 = vpop.permute.xlu1 %4064 }
 0x1e6   : > { %vm1982_vm10 = vcmp.ge.s32.totalorder %v1934_v48, 1  ;;  %vm2030_vm11 = vcmp.le.s32.totalorder %v1934_v48, 16  ;;  %v1034_v9 = vshll.u32 %v1031_v2, 16  ;;  %v1035_v39 = vshrl.u32 %v1031_v2, 16 }
 0x1e7   : > { %vm2078_vm12 = vmand %vm1982_vm10, %vm2030_vm11  ;;  %v1036_v4 = vshll.u32 %v1032_v14, 16  ;;  %v19249_v15 = vrot.slane %v13466_v23, 1  ;;  %v18927_v19 = vrot.slane %v13577_v33, 1  ;;  %v1020_v40 = vmul.u32 24, %v1019_v49 }
 0x1e8   : > { %v13613_v54 = vsel %vm2078_vm12, 1.0, %v19185_v30  ;;  %vm1038_vm13 = vc.u32 %v1030_v55, %v1034_v9  ;;  %v1040_v10 = vadd.s32 %v1034_v9, %v1030_v55 }
 0x1e9   : > { %v2758_v21 = vsel %vm2673_vm4, %v19249_v15, %v18924_v58  ;;  %19250 = vst [vmem:[#allocation44_spill] sm:$0xff] %v13613_v54  ;;  %v3868_v2 = vmul.f32 %v13613_v54, %v18925_v51  ;;  %v1039_v48 = vsel %vm1038_vm13, 1, %v19184_v35  ;;  %v19251_v15 = vrot.slane %v13466_v23, 2  ;;  %v2961_v23 = vpop.f32.mrf.mxu0 }
 0x1ea   : > { %10522 = vmatmul.msk.f32.gmra.mxu0 %vm2771_vm3, %v2758_v21  ;;  %v4510_v55 = vsel %vm2673_vm4, %v4507_v57, %v18927_v19  ;;  %v1021_v49 = vsub.s32 %v13486_v34, %v1020_v40  ;;  %v1041_v9 = vadd.s32 %v1039_v48, %v1033_v11  ;;  %vm1042_vm15 = vc.u32 %v1040_v10, %v1036_v4  ;;  %v3581_v11 = vpop.f32.mrf.mxu2  ;;  %v13642_v48 = vpop.permute.xlu2 %2460 }
 0x1eb   : > { %v3380_v58 = vsel %vm3295_vm5, %v19251_v15, %v18926_v6  ;;  %10679 = vmatmul.msk.f32.gmra.mxu3 %vm4597_vm9, %v4510_v55  ;;  %v1056_v21 = vand.u32 65535, %v13602_v29  ;;  %3916 = vst.msk [vmem:[#allocation2 + $0xe0] sm:$0xff] %vm2104_vm2, %v3868_v2  ;;  %v1037_v15 = vshrl.u32 %v1032_v14, 16  ;;  %v1043_v51 = vsel %vm1042_vm15, 1, %v19184_v35 }
 0x1ec   : > { %10620 = vmatmul.msk.f32.gmra.mxu2 %vm2771_vm3, %v3380_v58  ;;  %v1057_v6 = vshrl.u32 %v13602_v29, 16  ;;  %vm1743_vm0 = vcmp.ne.s32.totalorder %v1021_v49, 0  ;;  %vm1791_vm6 = vcmp.lt.s32.totalorder %v1021_v49, 0  ;;  %v1887_v57 = vadd.s32 24, %v1021_v49  ;;  %4088 = vrot.lane.b32.xlu0 %v13530_v60, %s11451_s8  ;;  %v4212_v58 = vpop.permute.xlu0 %4211  ;;  %v11341_v60 = vld [vmem:[#allocation2 + $0x47] sm:$0xff] }
 0x1ed   : > { %v1045_v34 = vadd.s32 %v1043_v51, %v1041_v9  ;;  %vm1839_vm7 = vmand %vm1791_vm6, %vm1743_vm0  ;;  %v1059_v4 = vmul.u32 43691, %v1056_v21  ;;  %v1060_v40 = vmul.u32 43690, %v1056_v21  ;;  %v3222_v55 = vadd.f32 %v13543_v62, %v2961_v23  ;;  %v13647_v9 = vpop.f32.mrf.mxu1 }
 0x1ee   : > { %v1061_v10 = vmul.u32 43691, %v1057_v6  ;;  %v1935_v2 = vsel %vm1839_vm7, %v1887_v57, %v1021_v49  ;;  %v1062_v61 = vmul.u32 43690, %v1057_v6  ;;  %v4352_v51 = vsel %vm2104_vm2, %v11341_v60, %v13460_v18  ;;  %v11342_v60 = vld [vmem:[#allocation2 + $0x4f] sm:$0xff] }
 0x1ef   : > { %v1046_v19 = vadd.s32 %v1045_v34, %v1035_v39  ;;  %vm1983_vm8 = vcmp.ge.s32.totalorder %v1935_v2, 1  ;;  %vm2031_vm10 = vcmp.le.s32.totalorder %v1935_v2, 16  ;;  %v1063_v54 = vshll.u32 %v1060_v40, 16 }
 0x1f0   : > { %vm2079_vm11 = vmand %vm1983_vm8, %vm2031_vm10  ;;  %v1065_v49 = vshll.u32 %v1061_v10, 16  ;;  %v13653_v62 = vsel %vm4395_vm14, %v4352_v51, %v4212_v58  ;;  %v19253_v6 = vmax.f32 %v13583_v1, 0.0  ;;  %v13664_v2 = vadd.f32 %v3581_v11, %v3222_v55 }
 0x1f1   : > { %v1047_v21 = vadd.s32 %v1046_v19, %v1037_v15  ;;  %v13650_v57 = vsel %vm2079_vm11, 1.0, %v19185_v30  ;;  %vm1067_vm12 = vc.u32 %v1059_v4, %v1063_v54  ;;  %v1069_v14 = vadd.s32 %v1063_v54, %v1059_v4  ;;  %v4214_v15 = vpop.permute.xlu1 %4213 }
 0x1f2   : > { %19252 = vst [vmem:[#allocation45_spill] sm:$0xff] %v13650_v57  ;;  %v3869_v39 = vmul.f32 %v13650_v57, %v19253_v6  ;;  %v13658_v23 = vld [vmem:[#allocation2 + $0xdf] sm:$0xff]  ;;  %v1068_v34 = vsel %vm1067_vm12, 1, %v19184_v35  ;;  %v4511_v19 = vrot.slane %v13653_v62, 1  ;;  %v1064_v54 = vshrl.u32 %v1060_v40, 16  ;;  %v2964_v57 = vpop.f32.mrf.mxu0 }
 0x1f3   : > { %v1048_v18 = vshrl.u32 %v1047_v21, 4  ;;  %4237 = vrot.lane.b32.xlu2 %v13658_v23, %s11454_s13  ;;  %19254 = vst [vmem:[#allocation46_spill] sm:$0xff] %v13664_v2  ;;  %v1070_v58 = vadd.s32 %v1068_v34, %v1062_v61  ;;  %vm1071_vm13 = vc.u32 %v1069_v14, %v1065_v49  ;;  %v4353_v51 = vsel %vm2104_vm2, %v11342_v60, %v13587_v45 }
 0x1f4   : > { %3917 = vst.msk [vmem:[#allocation2 + $0xe8] sm:$0xff] %vm2104_vm2, %v3869_v39  ;;  %v1072_v21 = vsel %vm1071_vm13, 1, %v19184_v35  ;;  %v19255_v6 = vrot.slane %v13577_v33, 1  ;;  %v1066_v3 = vshrl.u32 %v1061_v10, 16  ;;  %v13675_v61 = vadd.s32 208, %v11809_v42  ;;  %v13682_v55 = vpop.permute.xlu0 %4068 }
 0x1f5   : > { %v1049_v4 = vmul.u32 24, %v1048_v18  ;;  %v1074_v11 = vadd.s32 %v1072_v21, %v1070_v58  ;;  %v13678_v40 = vsel %vm4395_vm14, %v4353_v51, %v4214_v15  ;;  %v3225_v45 = vadd.f32 %v13604_v24, %v2964_v57  ;;  %v3584_v18 = vpop.f32.mrf.mxu2  ;;  %v4216_v58 = vpop.permute.xlu2 %4215 }
 0x1f6   : > { %v4512_v1 = vsel %vm2673_vm4, %v19255_v6, %v4511_v19  ;;  %v18936_v49 = vrot.slane %v13678_v40, 1  ;;  %v1085_v10 = vand.u32 65535, %v13675_v61  ;;  %v18941_v15 = vmax.f32 %v13664_v2, 0.0  ;;  %v13690_v51 = vpop.f32.mrf.mxu1 }
 0x1f7   : > { %10680 = vmatmul.msk.f32.gmra.mxu3 %vm4597_vm9, %v4512_v1  ;;  %v1050_v14 = vsub.s32 %v13569_v47, %v1049_v4  ;;  %v1075_v39 = vadd.s32 %v1074_v11, %v1064_v54  ;;  %v1086_v1 = vshrl.u32 %v13675_v61, 16  ;;  %v13692_v54 = vadd.f32 %v3584_v18, %v3225_v45 }
 0x1f8   : > { %v1088_v4 = vmul.u32 43691, %v1085_v10  ;;  %v1089_v24 = vmul.u32 43690, %v1085_v10  ;;  %v4514_v6 = vsel %vm2673_vm4, %v4511_v19, %v18936_v49  ;;  %v13707_v10 = vadd.s32 216, %v11809_v42 }
 0x1f9   : > { %vm1744_vm15 = vcmp.ne.s32.totalorder %v1050_v14, 0  ;;  %vm1792_vm0 = vcmp.lt.s32.totalorder %v1050_v14, 0  ;;  %v1888_v34 = vadd.s32 24, %v1050_v14  ;;  %v1076_v47 = vadd.s32 %v1075_v39, %v1066_v3  ;;  %19256 = vst [vmem:[#allocation47_spill] sm:$0xff] %v13692_v54 }
 0x1fa   : > { %vm1840_vm6 = vmand %vm1792_vm0, %vm1744_vm15  ;;  %v13688_v57 = vmul.u32 43691, %v1086_v1  ;;  %v1091_v21 = vmul.u32 43690, %v1086_v1  ;;  %v1092_v39 = vshll.u32 %v1089_v24, 16  ;;  %v1093_v18 = vshrl.u32 %v1089_v24, 16  ;;  %v2967_v41 = vpop.f32.mrf.mxu0 }
 0x1fb   : > { %v1936_v60 = vsel %vm1840_vm6, %v1888_v34, %v1050_v14  ;;  %4090 = vrot.lane.b32.xlu2 %v13593_v28, %s11451_s8  ;;  %v13699_v3 = vld [vmem:[#allocation2 + $0xe7] sm:$0xff]  ;;  %v1077_v11 = vshrl.u32 %v1076_v47, 4  ;;  %v11343_v14 = vld [vmem:[#allocation2 + $0x57] sm:$0xff]  ;;  %v2310_v47 = vpop.permute.xlu1 %2309  ;;  %v1114_v24 = vand.u32 65535, %v13707_v10 }
 0x1fc   : > { %vm1984_vm7 = vcmp.ge.s32.totalorder %v1936_v60, 1  ;;  %vm2032_vm8 = vcmp.le.s32.totalorder %v1936_v60, 16  ;;  %4239 = vrot.lane.b32.xlu1 %v13699_v3, %s11454_s13  ;;  %v4354_v45 = vsel %vm2104_vm2, %v11343_v14, %v13616_v16  ;;  %v1094_v19 = vshll.u32 %v13688_v57, 16  ;;  %v13725_v2 = vpop.permute.xlu0 %2462 }
 0x1fd   : > { %vm2080_vm10 = vmand %vm1984_vm7, %vm2032_vm8  ;;  %v1078_v1 = vmul.u32 24, %v1077_v11  ;;  %vm1096_vm11 = vc.u32 %v1088_v4, %v1092_v39  ;;  %v1098_v34 = vadd.s32 %v1092_v39, %v1088_v4  ;;  %v1115_v14 = vshrl.u32 %v13707_v10, 16 }
 0x1fe   : > { %v13710_v28 = vsel %vm2080_vm10, 1.0, %v19185_v30  ;;  %v1097_v16 = vsel %vm1096_vm11, 1, %v19184_v35  ;;  %v1095_v11 = vshrl.u32 %v13688_v57, 16  ;;  %v1118_v39 = vmul.u32 43690, %v1114_v24 }
 0x1ff   : > { %19257 = vst [vmem:[#allocation48_spill] sm:$0xff] %v13710_v28  ;;  %10681 = vmatmul.msk.f32.gmra.mxu3 %vm4597_vm9, %v4514_v6  ;;  %v3870_v60 = vmul.f32 %v13710_v28, %v18941_v15  ;;  %v1079_v49 = vsub.s32 %v13602_v29, %v1078_v1  ;;  %v1099_v46 = vadd.s32 %v1097_v16, %v1091_v21  ;;  %v1117_v6 = vmul.u32 43691, %v1114_v24  ;;  %v11344_v29 = vld [vmem:[#allocation2 + $0x5f] sm:$0xff]  ;;  %v2312_v21 = vpop.permute.xlu2 %2311 }
 0x200   : > { %vm1100_vm12 = vc.u32 %v1098_v34, %v1094_v19  ;;  %v13723_v15 = vmul.u32 43691, %v1115_v14  ;;  %v13729_v57 = vsel %vm2104_vm2, %v11344_v29, %v13596_v52  ;;  %v3587_v19 = vpop.f32.mrf.mxu2  ;;  %v1120_v1 = vmul.u32 43690, %v1115_v14 }
 0x201   : > { %3918 = vst.msk [vmem:[#allocation2 + $0xf0] sm:$0xff] %vm2104_vm2, %v3870_v60  ;;  %v1101_v4 = vsel %vm1100_vm12, 1, %v19184_v35  ;;  %vm1745_vm13 = vcmp.ne.s32.totalorder %v1079_v49, 0  ;;  %vm1793_vm15 = vcmp.lt.s32.totalorder %v1079_v49, 0  ;;  %v1889_v28 = vadd.s32 24, %v1079_v49 }
 0x202   : > { %v1103_v37 = vadd.s32 %v1101_v4, %v1099_v46  ;;  %vm1841_vm0 = vmand %vm1793_vm15, %vm1745_vm13  ;;  %v1121_v34 = vshll.u32 %v1118_v39, 16  ;;  %v1123_v60 = vshll.u32 %v13723_v15, 16  ;;  %v18949_v24 = vmax.f32 %v13692_v54, 0.0  ;;  %v13736_v4 = vpop.f32.mrf.mxu1  ;;  %v11348_v54 = vld [vmem:[%s11509_s29 + $0x17f] sm:$0xff] }
 0x203   : > { %v1937_v16 = vsel %vm1841_vm0, %v1889_v28, %v1079_v49  ;;  %v13734_v43 = vsel %vm4395_vm14, %v4354_v45, %v4216_v58  ;;  %v3228_v14 = vadd.f32 %v13647_v9, %v2967_v41  ;;  %v11345_v28 = vld [vmem:[%s11509_s29 + $0x16f] sm:$0xff]  ;;  %v1122_v45 = vshrl.u32 %v1118_v39, 16 }
 0x204   : > { %v1104_v46 = vadd.s32 %v1103_v37, %v1093_v18  ;;  %vm1985_vm6 = vcmp.ge.s32.totalorder %v1937_v16, 1  ;;  %vm2033_vm7 = vcmp.le.s32.totalorder %v1937_v16, 16  ;;  %4092 = vrot.lane.b32.xlu1 %v13658_v23, %s11451_s8  ;;  %vm1125_vm8 = vc.u32 %v1117_v6, %v1121_v34  ;;  %v2970_v16 = vpop.f32.mrf.mxu0 }
 0x205   : > { %v1127_v52 = vadd.s32 %v1121_v34, %v1117_v6  ;;  %vm2081_vm10 = vmand %vm1985_vm6, %vm2033_vm7  ;;  %v1126_v49 = vsel %vm1125_vm8, 1, %v19184_v35  ;;  %v2565_v58 = vsel %vm2521_vm1, %v11345_v28, %v2310_v47  ;;  %v13752_v41 = vadd.f32 %v3587_v19, %v3228_v14  ;;  %v11346_v14 = vld [vmem:[%s11509_s29 + $0x177] sm:$0xff] }
 0x206   : > { %v1105_v29 = vadd.s32 %v1104_v46, %v1095_v11  ;;  %v13745_v37 = vsel %vm2081_vm10, 1.0, %v19185_v30  ;;  %v1128_v18 = vadd.s32 %v1126_v49, %v1120_v1  ;;  %v13755_v11 = vpop.permute.xlu1 %4070  ;;  %v1124_v47 = vshrl.u32 %v13723_v15, 16 }
 0x207   : > { %19258 = vst [vmem:[#allocation49_spill] sm:$0xff] %v13745_v37  ;;  %vm1129_vm11 = vc.u32 %v1127_v52, %v1123_v60  ;;  %v3871_v23 = vmul.f32 %v13745_v37, %v18949_v24  ;;  %v13762_v1 = vsel %vm2104_vm2, %v2565_v58, %v13642_v48  ;;  %v4515_v60 = vrot.slane %v13734_v43, 1 }
 0x208   : > { %v13750_v6 = vld [vmem:[#allocation2 + $0xef] sm:$0xff]  ;;  %v1106_v34 = vshrl.u32 %v1105_v29, 4  ;;  %19259 = vst [vmem:[#allocation50_spill] sm:$0xff] %v13752_v41  ;;  %v1130_v9 = vsel %vm1129_vm11, 1, %v19184_v35  ;;  %v18951_v46 = vrot.slane %v13762_v1, 1  ;;  %10573 = vmatmul.msk.f32.gmra.mxu1 %vm2771_vm3, %v13762_v1  ;;  %v18950_v52 = vrot.slane %v13762_v1, 2 }
 0x209   : > { %4241 = vrot.lane.b32.xlu0 %v13750_v6, %s11454_s13  ;;  %v1132_v39 = vadd.s32 %v1130_v9, %v1128_v18  ;;  %3919 = vst.msk [vmem:[#allocation2 + $0xf8] sm:$0xff] %vm2104_vm2, %v3871_v23  ;;  %v13771_v15 = vadd.s32 224, %v11809_v42  ;;  %v2566_v48 = vsel %vm2521_vm1, %v11346_v14, %v2312_v21  ;;  %v11347_v29 = vld [vmem:[#allocation2 + $0x67] sm:$0xff]  ;;  %v19260_v58 = vrot.slane %v13678_v40, 1  ;;  %v4218_v23 = vpop.permute.xlu0 %4217 }
 0x20a   : > { %v1107_v19 = vmul.u32 24, %v1106_v34  ;;  %v13777_v49 = vsel %vm2104_vm2, %v11347_v29, %v13682_v55  ;;  %v19261_v21 = vrot.slane %v13581_v22, 1  ;;  %v19262_v55 = vrot.slane %v13581_v22, 2  ;;  %v13798_v29 = vpop.permute.xlu2 %4072 }
 0x20b   : > { %v1133_v28 = vadd.s32 %v1132_v39, %v1122_v45  ;;  %v4516_v18 = vsel %vm2673_vm4, %v19260_v58, %v4515_v60  ;;  %v1143_v39 = vand.u32 65535, %v13771_v15  ;;  %v18952_v14 = vmax.f32 %v13752_v41, 0.0  ;;  %v3590_v58 = vpop.f32.mrf.mxu2 }
 0x20c   : > { %v1108_v34 = vsub.s32 %v13675_v61, %v1107_v19  ;;  %10682 = vmatmul.msk.f32.gmra.mxu3 %vm4597_vm9, %v4516_v18  ;;  %v2760_v9 = vsel %vm2673_vm4, %v19261_v21, %v18951_v46  ;;  %v3382_v45 = vsel %vm3295_vm5, %v19262_v55, %v18950_v52  ;;  %v3231_v61 = vadd.f32 %v13690_v51, %v2970_v16  ;;  %v13808_v55 = vpop.f32.mrf.mxu1 }
 0x20d   : > { %v1134_v19 = vadd.s32 %v1133_v28, %v1124_v47  ;;  %10523 = vmatmul.msk.f32.gmra.mxu0 %vm2771_vm3, %v2760_v9  ;;  %10621 = vmatmul.msk.f32.gmra.mxu2 %vm2771_vm3, %v3382_v45  ;;  %v1144_v18 = vshrl.u32 %v13771_v15, 16  ;;  %v13806_v21 = vsel %vm2104_vm2, %v2566_v48, %v13725_v2  ;;  %v1146_v51 = vmul.u32 43691, %v1143_v39 }
 0x20e   : > { %vm1746_vm12 = vcmp.ne.s32.totalorder %v1108_v34, 0  ;;  %vm1794_vm13 = vcmp.lt.s32.totalorder %v1108_v34, 0  ;;  %v1890_v22 = vadd.s32 24, %v1108_v34  ;;  %v1147_v47 = vmul.u32 43690, %v1143_v39 }
 0x20f   : > { %vm1842_vm15 = vmand %vm1794_vm13, %vm1746_vm12  ;;  %v1135_v24 = vshrl.u32 %v1134_v19, 4  ;;  %v13810_v16 = vmul.u32 43691, %v1144_v18  ;;  %v13812_v9 = vadd.f32 %v3590_v58, %v3231_v61  ;;  %v1149_v45 = vmul.u32 43690, %v1144_v18 }
 0x210   : > { %v1938_v28 = vsel %vm1842_vm15, %v1890_v22, %v1108_v34  ;;  %v13816_v52 = vsel %vm4395_vm14, %v13729_v57, %v4218_v23  ;;  %v13820_v2 = vld [vmem:[#allocation2 + $0xf7] sm:$0xff]  ;;  %v1150_v19 = vshll.u32 %v1147_v47, 16  ;;  %10574 = vmatmul.msk.f32.gmra.mxu1 %vm2771_vm3, %v13806_v21  ;;  %v1151_v22 = vshrl.u32 %v1147_v47, 16 }
 0x211   : > { %19263 = vst [vmem:[#allocation51_spill] sm:$0xff] %v13812_v9  ;;  %vm1986_vm0 = vcmp.ge.s32.totalorder %v1938_v28, 1  ;;  %vm2034_vm6 = vcmp.le.s32.totalorder %v1938_v28, 16  ;;  %4094 = vrot.lane.b32.xlu0 %v13699_v3, %s11451_s8  ;;  %v1136_v48 = vmul.u32 24, %v1135_v24  ;;  %4243 = vrot.lane.b32.xlu2 %v13820_v2, %s11454_s13  ;;  %v1152_v57 = vshll.u32 %v13810_v16, 16  ;;  %v4220_v3 = vpop.permute.xlu1 %4219 }
 0x212   : > { %vm2082_vm7 = vmand %vm1986_vm0, %vm2034_vm6  ;;  %v18953_v23 = vrot.slane %v13816_v52, 1  ;;  %vm1154_vm8 = vc.u32 %v1146_v51, %v1150_v19  ;;  %v1156_v58 = vadd.s32 %v1150_v19, %v1146_v51  ;;  %v2973_v51 = vpop.f32.mrf.mxu0  ;;  %v19265_v47 = vrot.slane %v13806_v21, 1 }
 0x213   : > { %v13831_v61 = vsel %vm2082_vm7, 1.0, %v19185_v30  ;;  %v1137_v24 = vsub.s32 %v13707_v10, %v1136_v48  ;;  %v1155_v28 = vsel %vm1154_vm8, 1, %v19184_v35  ;;  %v2314_v10 = vpop.permute.xlu0 %2313  ;;  %v19266_v48 = vrot.slane %v13762_v1, 1 }
 0x214   : > { %19264 = vst [vmem:[#allocation52_spill] sm:$0xff] %v13831_v61  ;;  %v3872_v18 = vmul.f32 %v13831_v61, %v18952_v14  ;;  %v4518_v39 = vsel %vm2673_vm4, %v4515_v60, %v18953_v23  ;;  %v1157_v34 = vadd.s32 %v1155_v28, %v1149_v45  ;;  %vm1158_vm13 = vc.u32 %v1156_v58, %v1152_v57  ;;  %v4222_v23 = vpop.permute.xlu2 %4221 }
 0x215   : > { %vm1747_vm10 = vcmp.ne.s32.totalorder %v1137_v24, 0  ;;  %vm1795_vm11 = vcmp.lt.s32.totalorder %v1137_v24, 0  ;;  %v1891_v46 = vadd.s32 24, %v1137_v24  ;;  %10683 = vmatmul.msk.f32.gmra.mxu3 %vm4597_vm9, %v4518_v39  ;;  %v2762_v19 = vsel %vm2673_vm4, %v19266_v48, %v19265_v47  ;;  %v3593_v47 = vpop.f32.mrf.mxu2 }
 0x216   : > { %3920 = vst.msk [vmem:[#allocation2 + $0x100] sm:$0xff] %vm2104_vm2, %v3872_v18  ;;  %vm1843_vm12 = vmand %vm1795_vm11, %vm1747_vm10  ;;  %v19267_v60 = vrot.slane %v13806_v21, 2  ;;  %v19268_v14 = vrot.slane %v13762_v1, 2  ;;  %v13856_v39 = vadd.s32 232, %v11809_v42  ;;  %v18960_v18 = vmax.f32 %v13812_v9, 0.0  ;;  %10524 = vmatmul.msk.f32.gmra.mxu0 %vm2771_vm3, %v2762_v19 }
 0x217   : > { %v1939_v28 = vsel %vm1843_vm12, %v1891_v46, %v1137_v24  ;;  %v1153_v57 = vshrl.u32 %v13810_v16, 16  ;;  %v1159_v58 = vsel %vm1158_vm13, 1, %v19184_v35  ;;  %v3234_v46 = vadd.f32 %v13736_v4, %v2973_v51  ;;  %v13866_v24 = vpop.f32.mrf.mxu1 }
 0x218   : > { %v3384_v45 = vsel %vm3295_vm5, %v19268_v14, %v19267_v60  ;;  %vm1987_vm15 = vcmp.ge.s32.totalorder %v1939_v28, 1  ;;  %vm2035_vm0 = vcmp.le.s32.totalorder %v1939_v28, 16  ;;  %v1161_v1 = vadd.s32 %v1159_v58, %v1157_v34 }
 0x219   : > { %10622 = vmatmul.msk.f32.gmra.mxu2 %vm2771_vm3, %v3384_v45  ;;  %v1172_v14 = vand.u32 65535, %v13856_v39  ;;  %vm2083_vm6 = vmand %vm1987_vm15, %vm2035_vm0  ;;  %v1173_v16 = vshrl.u32 %v13856_v39, 16  ;;  %v13871_v19 = vsel %vm4395_vm14, %v13777_v49, %v4220_v3  ;;  %4096 = vrot.lane.b32.xlu2 %v13750_v6, %s11451_s8  ;;  %v13881_v51 = vadd.f32 %v3593_v47, %v3234_v46  ;;  %v2465_v37 = vpop.permute.xlu1 %2464  ;;  %v11349_v6 = vld [vmem:[#allocation2 + $0x77] sm:$0xff]  ;;  %v11350_v47 = vld [vmem:[#allocation2 + $0x6f] sm:$0xff] }
 0x21a   : > { %v13874_v60 = vsel %vm2083_vm6, 1.0, %v19185_v30  ;;  %v1162_v34 = vadd.s32 %v1161_v1, %v1151_v22  ;;  %v18961_v48 = vrot.slane %v13871_v19, 1  ;;  %v2567_v61 = vsel %vm2521_vm1, %v11348_v54, %v2314_v10 }
 0x21b   : > { %19269 = vst [vmem:[#allocation53_spill] sm:$0xff] %v13874_v60  ;;  %v1175_v45 = vmul.u32 43691, %v1172_v14  ;;  %v1176_v28 = vmul.u32 43690, %v1172_v14  ;;  %v3873_v4 = vmul.f32 %v13874_v60, %v18960_v18  ;;  %v1177_v58 = vmul.u32 43691, %v1173_v16  ;;  %v2976_v18 = vpop.f32.mrf.mxu0 }
 0x21c   : > { %19270 = vst [vmem:[#allocation54_spill] sm:$0xff] %v13881_v51  ;;  %v1163_v49 = vadd.s32 %v1162_v34, %v1153_v57  ;;  %v1178_v3 = vmul.u32 43690, %v1173_v16  ;;  %v13888_v22 = vsel %vm2104_vm2, %v11349_v6, %v13798_v29  ;;  %v4357_v14 = vsel %vm2104_vm2, %v11350_v47, %v13755_v11  ;;  %v13908_v6 = vpop.permute.xlu0 %4074 }
 0x21d   : > { %v1179_v41 = vshll.u32 %v1176_v28, 16  ;;  %3921 = vst.msk [vmem:[#allocation2 + $0x108] sm:$0xff] %vm2104_vm2, %v3873_v4  ;;  %v13891_v1 = vld [vmem:[#allocation2 + $0xff] sm:$0xff]  ;;  %v1181_v57 = vshll.u32 %v1177_v58, 16  ;;  %v19271_v46 = vrot.slane %v13816_v52, 1  ;;  %v13904_v16 = vadd.s32 240, %v11809_v42 }
 0x21e   : > { %4245 = vrot.lane.b32.xlu1 %v13891_v1, %s11454_s13  ;;  %v1164_v29 = vshrl.u32 %v1163_v49, 4  ;;  %v1180_v34 = vshrl.u32 %v1176_v28, 16  ;;  %v13911_v47 = vsel %vm2104_vm2, %v2567_v61, %v2465_v37  ;;  %v13919_v28 = vpop.permute.xlu2 %2466 }
 0x21f   : > { %v4520_v54 = vsel %vm2673_vm4, %v19271_v46, %v18961_v48  ;;  %vm1183_vm7 = vc.u32 %v1175_v45, %v1179_v41  ;;  %v1185_v10 = vadd.s32 %v1179_v41, %v1175_v45  ;;  %v1201_v41 = vand.u32 65535, %v13904_v16  ;;  %10575 = vmatmul.msk.f32.gmra.mxu1 %vm2771_vm3, %v13911_v47  ;;  %v13926_v11 = vpop.f32.mrf.mxu1 }
 0x220   : > { %10684 = vmatmul.msk.f32.gmra.mxu3 %vm4597_vm9, %v4520_v54  ;;  %v1184_v4 = vsel %vm1183_vm7, 1, %v19184_v35  ;;  %v1165_v46 = vmul.u32 24, %v1164_v29  ;;  %v13917_v45 = vsel %vm4395_vm14, %v4357_v14, %v4222_v23  ;;  %v1182_v54 = vshrl.u32 %v1177_v58, 16 }
 0x221   : > { %v1186_v49 = vadd.s32 %v1184_v4, %v1178_v3  ;;  %vm1187_vm8 = vc.u32 %v1185_v10, %v1181_v57  ;;  %v1202_v37 = vshrl.u32 %v13904_v16, 16  ;;  %v3596_v3 = vpop.f32.mrf.mxu2  ;;  %v1205_v57 = vmul.u32 43690, %v1201_v41 }
 0x222   : > { %v1188_v48 = vsel %vm1187_vm8, 1, %v19184_v35  ;;  %v1166_v61 = vsub.s32 %v13771_v15, %v1165_v46  ;;  %v18965_v10 = vrot.slane %v13911_v47, 1  ;;  %v3237_v4 = vadd.f32 %v13808_v55, %v2976_v18 }
 0x223   : > { %v1190_v29 = vadd.s32 %v1188_v48, %v1186_v49  ;;  %v1204_v23 = vmul.u32 43691, %v1201_v41  ;;  %v13928_v14 = vmul.u32 43691, %v1202_v37  ;;  %v1207_v55 = vmul.u32 43690, %v1202_v37 }
 0x224   : > { %vm1748_vm10 = vcmp.ne.s32.totalorder %v1166_v61, 0  ;;  %vm1796_vm11 = vcmp.lt.s32.totalorder %v1166_v61, 0  ;;  %v1892_v9 = vadd.s32 24, %v1166_v61  ;;  %v13931_v60 = vld [vmem:[#allocation2 + $0x107] sm:$0xff]  ;;  %v13935_v48 = vadd.f32 %v3596_v3, %v3237_v4 }
 0x225   : > { %v1191_v15 = vadd.s32 %v1190_v29, %v1180_v34  ;;  %vm1844_vm12 = vmand %vm1796_vm11, %vm1748_vm10  ;;  %4247 = vrot.lane.b32.xlu0 %v13931_v60, %s11454_s13  ;;  %v1208_v18 = vshll.u32 %v1205_v57, 16  ;;  %v1210_v46 = vshll.u32 %v13928_v14, 16  ;;  %v19273_v58 = vrot.slane %v13806_v21, 1 }
 0x226   : > { %19272 = vst [vmem:[#allocation55_spill] sm:$0xff] %v13935_v48  ;;  %v1940_v49 = vsel %vm1844_vm12, %v1892_v9, %v1166_v61  ;;  %4098 = vrot.lane.b32.xlu1 %v13820_v2, %s11451_s8  ;;  %v19274_v29 = vrot.slane %v13911_v47, 2  ;;  %v19275_v3 = vrot.slane %v13806_v21, 2  ;;  %v18966_v61 = vrot.slane %v13917_v45, 1 }
 0x227   : > { %v1192_v41 = vadd.s32 %v1191_v15, %v1182_v54  ;;  %v2764_v34 = vsel %vm2673_vm4, %v19273_v58, %v18965_v10  ;;  %vm1988_vm13 = vcmp.ge.s32.totalorder %v1940_v49, 1  ;;  %vm2036_vm15 = vcmp.le.s32.totalorder %v1940_v49, 16  ;;  %v2979_v10 = vpop.f32.mrf.mxu0 }
 0x228   : > { %v3386_v37 = vsel %vm3295_vm5, %v19275_v3, %v19274_v29  ;;  %vm1212_vm0 = vc.u32 %v1204_v23, %v1208_v18  ;;  %v1214_v9 = vadd.s32 %v1208_v18, %v1204_v23  ;;  %10525 = vmatmul.msk.f32.gmra.mxu0 %vm2771_vm3, %v2764_v34  ;;  %vm2084_vm6 = vmand %vm1988_vm13, %vm2036_vm15  ;;  %v13955_v4 = vadd.s32 248, %v11809_v42  ;;  %v4224_v23 = vpop.permute.xlu0 %4223 }
 0x229   : > { %10623 = vmatmul.msk.f32.gmra.mxu2 %vm2771_vm3, %v3386_v37  ;;  %v1193_v2 = vshrl.u32 %v1192_v41, 4  ;;  %v1213_v54 = vsel %vm1212_vm0, 1, %v19184_v35  ;;  %v13958_v21 = vsel %vm2084_vm6, 1.0, %v19185_v30  ;;  %v1209_v58 = vshrl.u32 %v1205_v57, 16  ;;  %v2318_v37 = vpop.permute.xlu2 %2317 }
 0x22a   : > { %19276 = vst [vmem:[#allocation56_spill] sm:$0xff] %v13958_v21  ;;  %v1215_v15 = vadd.s32 %v1213_v54, %v1207_v55  ;;  %vm1216_vm7 = vc.u32 %v1214_v9, %v1210_v46  ;;  %v19277_v18 = vmax.f32 %v13881_v51, 0.0  ;;  %v19278_v29 = vrot.slane %v13871_v19, 1  ;;  %v11352_v51 = vld [vmem:[%s11509_s29 + $0x187] sm:$0xff] }
 0x22b   : > { %v1194_v41 = vmul.u32 24, %v1193_v2  ;;  %v1217_v34 = vsel %vm1216_vm7, 1, %v19184_v35  ;;  %v1211_v57 = vshrl.u32 %v13928_v14, 16  ;;  %v1230_v46 = vand.u32 65535, %v13955_v4 }
 0x22c   : > { %v3874_v49 = vmul.f32 %v13958_v21, %v19277_v18  ;;  %v4522_v3 = vsel %vm2673_vm4, %v19278_v29, %v18966_v61  ;;  %v1219_v55 = vadd.s32 %v1217_v34, %v1215_v15  ;;  %v1231_v9 = vshrl.u32 %v13955_v4, 16  ;;  %v11351_v18 = vld [vmem:[%s11509_s29 + $0x18f] sm:$0xff]  ;;  %v2316_v61 = vpop.permute.xlu1 %2315  ;;  %v13984_v15 = vpop.f32.mrf.mxu1 }
 0x22d   : > { %10685 = vmatmul.msk.f32.gmra.mxu3 %vm4597_vm9, %v4522_v3  ;;  %v1195_v2 = vsub.s32 %v13856_v39, %v1194_v41  ;;  %v13978_v29 = vsel %vm2521_vm1, %v11351_v18, %v2318_v37  ;;  %v13982_v14 = vsel %vm4395_vm14, %v13888_v22, %v4224_v23  ;;  %4100 = vrot.lane.b32.xlu0 %v13891_v1, %s11451_s8  ;;  %v3599_v34 = vpop.f32.mrf.mxu2  ;;  %v1233_v39 = vmul.u32 43691, %v1230_v46 }
 0x22e   : > { %3922 = vst.msk [vmem:[#allocation2 + $0x110] sm:$0xff] %vm2104_vm2, %v3874_v49  ;;  %v1220_v49 = vadd.s32 %v1219_v55, %v1209_v58  ;;  %v1234_v41 = vmul.u32 43690, %v1230_v46  ;;  %v13988_v3 = vmul.u32 43691, %v1231_v9  ;;  %v3240_v18 = vadd.f32 %v13866_v24, %v2979_v10 }
 0x22f   : > { %vm1749_vm8 = vcmp.ne.s32.totalorder %v1195_v2, 0  ;;  %vm1797_vm10 = vcmp.lt.s32.totalorder %v1195_v2, 0  ;;  %v1893_v37 = vadd.s32 24, %v1195_v2  ;;  %v1236_v23 = vmul.u32 43690, %v1231_v9 }
 0x230   : > { %vm1845_vm11 = vmand %vm1797_vm10, %vm1749_vm8  ;;  %v1221_v22 = vadd.s32 %v1220_v49, %v1211_v57  ;;  %v1237_v54 = vshll.u32 %v1234_v41, 16  ;;  %v2568_v21 = vsel %vm2521_vm1, %v11352_v51, %v2316_v61  ;;  %v13993_v1 = vadd.f32 %v3599_v34, %v3240_v18 }
 0x231   : > { %v1941_v26 = vsel %vm1845_vm11, %v1893_v37, %v1195_v2  ;;  %v1239_v58 = vshll.u32 %v13988_v3, 16  ;;  %v18973_v55 = vrot.slane %v13982_v14, 1  ;;  %v1238_v24 = vshrl.u32 %v1234_v41, 16 }
 0x232   : > { %19279 = vst [vmem:[#allocation57_spill] sm:$0xff] %v13993_v1  ;;  %vm1989_vm12 = vcmp.ge.s32.totalorder %v1941_v26, 1  ;;  %vm2037_vm13 = vcmp.le.s32.totalorder %v1941_v26, 16  ;;  %v1222_v46 = vshrl.u32 %v1221_v22, 4  ;;  %vm1241_vm15 = vc.u32 %v1233_v39, %v1237_v54 }
 0x233   : > { %vm2085_vm0 = vmand %vm1989_vm12, %vm2037_vm13  ;;  %v1242_v10 = vsel %vm1241_vm15, 1, %v19184_v35  ;;  %v1243_v57 = vadd.s32 %v1237_v54, %v1233_v39  ;;  %v14000_v9 = vsel %vm2104_vm2, %v2568_v21, %v13919_v28  ;;  %v19281_v34 = vmax.f32 %v13935_v48, 0.0 }
 0x234   : > { %v14003_v51 = vsel %vm2085_vm0, 1.0, %v19185_v30  ;;  %v1223_v2 = vmul.u32 24, %v1222_v46  ;;  %v1244_v49 = vadd.s32 %v1242_v10, %v1236_v23  ;;  %v18974_v26 = vrot.slane %v14000_v9, 1  ;;  %10576 = vmatmul.msk.f32.gmra.mxu1 %vm2771_vm3, %v14000_v9  ;;  %v11353_v46 = vld [vmem:[#allocation2 + $0x7f] sm:$0xff]  ;;  %v2982_v10 = vpop.f32.mrf.mxu0 }
 0x235   : > { %19280 = vst [vmem:[#allocation58_spill] sm:$0xff] %v14003_v51  ;;  %v14005_v61 = vld [vmem:[#allocation2 + $0x10f] sm:$0xff]  ;;  %v3875_v54 = vmul.f32 %v14003_v51, %v19281_v34  ;;  %vm1245_vm6 = vc.u32 %v1243_v57, %v1239_v58  ;;  %v18972_v28 = vrot.slane %v14000_v9, 2  ;;  %v19282_v21 = vrot.slane %v13917_v45, 1  ;;  %v2469_v58 = vpop.permute.xlu0 %2468 }
 0x236   : > { %4249 = vrot.lane.b32.xlu2 %v14005_v61, %s11454_s13  ;;  %v1224_v41 = vsub.s32 %v13904_v16, %v1223_v2  ;;  %v1246_v37 = vsel %vm1245_vm6, 1, %v19184_v35  ;;  %v19283_v18 = vrot.slane %v13911_v47, 1  ;;  %v14030_v23 = vadd.s32 256, %v11809_v42 }
 0x237   : > { %v4524_v39 = vsel %vm2673_vm4, %v19282_v21, %v18973_v55  ;;  %3923 = vst.msk [vmem:[#allocation2 + $0x118] sm:$0xff] %vm2104_vm2, %v3875_v54  ;;  %v4359_v16 = vsel %vm2104_vm2, %v11353_v46, %v13908_v6  ;;  %v1240_v57 = vshrl.u32 %v13988_v3, 16  ;;  %v1248_v2 = vadd.s32 %v1246_v37, %v1244_v49 }
 0x238   : > { %10686 = vmatmul.msk.f32.gmra.mxu3 %vm4597_vm9, %v4524_v39  ;;  %v2766_v22 = vsel %vm2673_vm4, %v19283_v18, %v18974_v26  ;;  %v19284_v34 = vrot.slane %v13911_v47, 2  ;;  %v4226_v39 = vpop.permute.xlu1 %4225  ;;  %vm1750_vm7 = vcmp.ne.s32.totalorder %v1224_v41, 0  ;;  %vm1798_vm8 = vcmp.lt.s32.totalorder %v1224_v41, 0  ;;  %v14042_v18 = vpop.f32.mrf.mxu1 }
 0x239   : > { %10526 = vmatmul.msk.f32.gmra.mxu0 %vm2771_vm3, %v2766_v22  ;;  %v1894_v54 = vadd.s32 24, %v1224_v41  ;;  %v1259_v6 = vand.u32 65535, %v14030_v23  ;;  %vm1846_vm10 = vmand %vm1798_vm8, %vm1750_vm7  ;;  %v1249_v49 = vadd.s32 %v1248_v2, %v1238_v24  ;;  %v1260_v37 = vshrl.u32 %v14030_v23, 16 }
 0x23a   : > { %v3388_v21 = vsel %vm3295_vm5, %v19284_v34, %v18972_v28  ;;  %v14050_v47 = vsel %vm2104_vm2, %v13978_v29, %v2469_v58  ;;  %v3243_v46 = vadd.f32 %v13926_v11, %v2982_v10  ;;  %v3602_v34 = vpop.f32.mrf.mxu2  ;;  %v14057_v29 = vadd.s32 264, %v11809_v42 }
 0x23b   : > { %10624 = vmatmul.msk.f32.gmra.mxu2 %vm2771_vm3, %v3388_v21  ;;  %v1942_v22 = vsel %vm1846_vm10, %v1894_v54, %v1224_v41  ;;  %v1262_v28 = vmul.u32 43691, %v1259_v6  ;;  %v1263_v55 = vmul.u32 43690, %v1259_v6  ;;  %v1250_v21 = vadd.s32 %v1249_v49, %v1240_v57 }
 0x23c   : > { %vm1990_vm11 = vcmp.ge.s32.totalorder %v1942_v22, 1  ;;  %vm2038_vm12 = vcmp.le.s32.totalorder %v1942_v22, 16  ;;  %v1264_v26 = vmul.u32 43691, %v1260_v37  ;;  %v1265_v48 = vmul.u32 43690, %v1260_v37  ;;  %10577 = vmatmul.msk.f32.gmra.mxu1 %vm2771_vm3, %v14050_v47  ;;  %v4228_v37 = vpop.permute.xlu2 %4227 }
 0x23d   : > { %vm2086_vm13 = vmand %vm1990_vm11, %vm2038_vm12  ;;  %v1266_v3 = vshll.u32 %v1263_v55, 16  ;;  %v1251_v41 = vshrl.u32 %v1250_v21, 4  ;;  %v19286_v57 = vmax.f32 %v13993_v1, 0.0  ;;  %v14071_v49 = vsel %vm4395_vm14, %v4359_v16, %v4226_v39  ;;  %v11354_v1 = vld [vmem:[#allocation2 + $0x87] sm:$0xff] }
 0x23e   : > { %v14060_v11 = vsel %vm2086_vm13, 1.0, %v19185_v30  ;;  %4102 = vrot.lane.b32.xlu2 %v13931_v60, %s11451_s8  ;;  %v1268_v58 = vshll.u32 %v1264_v26, 16  ;;  %v14068_v54 = vld [vmem:[#allocation2 + $0x117] sm:$0xff]  ;;  %v14075_v22 = vadd.f32 %v3602_v34, %v3243_v46  ;;  %v18976_v10 = vrot.slane %v14071_v49, 1 }
 0x23f   : > { %19285 = vst [vmem:[#allocation59_spill] sm:$0xff] %v14060_v11  ;;  %v3876_v2 = vmul.f32 %v14060_v11, %v19286_v57  ;;  %vm1270_vm15 = vc.u32 %v1262_v28, %v1266_v3  ;;  %v1272_v6 = vadd.s32 %v1266_v3, %v1262_v28  ;;  %4251 = vrot.lane.b32.xlu1 %v14068_v54, %s11454_s13  ;;  %v1252_v60 = vmul.u32 24, %v1251_v41  ;;  %v2985_v41 = vpop.f32.mrf.mxu0 }
 0x240   : > { %19287 = vst [vmem:[#allocation60_spill] sm:$0xff] %v14075_v22  ;;  %v1271_v21 = vsel %vm1270_vm15, 1, %v19184_v35  ;;  %v1267_v57 = vshrl.u32 %v1263_v55, 16  ;;  %v19288_v28 = vrot.slane %v14050_v47, 1  ;;  %v19289_v16 = vrot.slane %v14000_v9, 1 }
 0x241   : > { %3924 = vst.msk [vmem:[#allocation2 + $0x120] sm:$0xff] %vm2104_vm2, %v3876_v2  ;;  %v1273_v24 = vadd.s32 %v1271_v21, %v1265_v48  ;;  %vm1274_vm0 = vc.u32 %v1272_v6, %v1268_v58  ;;  %v1253_v3 = vsub.s32 %v13955_v4, %v1252_v60  ;;  %v19290_v34 = vrot.slane %v13982_v14, 1  ;;  %v4077_v6 = vpop.permute.xlu1 %4076  ;;  %v14098_v21 = vpop.f32.mrf.mxu1 }
 0x242   : > { %v2768_v39 = vsel %vm2673_vm4, %v19289_v16, %v19288_v28  ;;  %v1275_v46 = vsel %vm1274_vm0, 1, %v19184_v35  ;;  %v19291_v48 = vrot.slane %v14050_v47, 2  ;;  %v19292_v55 = vrot.slane %v14000_v9, 2 }
 0x243   : > { %v4526_v2 = vsel %vm2673_vm4, %v19290_v34, %v18976_v10  ;;  %10527 = vmatmul.msk.f32.gmra.mxu0 %vm2771_vm3, %v2768_v39  ;;  %v1269_v4 = vshrl.u32 %v1264_v26, 16  ;;  %v1277_v60 = vadd.s32 %v1275_v46, %v1273_v24  ;;  %v1288_v28 = vand.u32 65535, %v14057_v29  ;;  %v2320_v10 = vpop.permute.xlu0 %2319 }
 0x244   : > { %v3390_v58 = vsel %vm3295_vm5, %v19292_v55, %v19291_v48  ;;  %10687 = vmatmul.msk.f32.gmra.mxu3 %vm4597_vm9, %v4526_v2  ;;  %v1289_v16 = vshrl.u32 %v14057_v29, 16  ;;  %v5115_v39 = vrot.slane %v13311_v17, 2  ;;  %vm1751_vm6 = vcmp.ne.s32.totalorder %v1253_v3, 0  ;;  %v3605_v48 = vpop.f32.mrf.mxu2 }
 0x245   : > { %10625 = vmatmul.msk.f32.gmra.mxu2 %vm2771_vm3, %v3390_v58  ;;  %vm1799_vm7 = vcmp.lt.s32.totalorder %v1253_v3, 0  ;;  %v1895_v9 = vadd.s32 24, %v1253_v3  ;;  %v1278_v34 = vadd.s32 %v1277_v60, %v1267_v57  ;;  %v1291_v55 = vmul.u32 43691, %v1288_v28 }
 0x246   : > { %vm1847_vm8 = vmand %vm1799_vm7, %vm1751_vm6  ;;  %v1292_v26 = vmul.u32 43690, %v1288_v28  ;;  %v14105_v24 = vmul.u32 43691, %v1289_v16  ;;  %v18986_v2 = vmax.f32 %v14075_v22, 0.0  ;;  %v1294_v58 = vmul.u32 43690, %v1289_v16 }
 0x247   : > { %v1943_v46 = vsel %vm1847_vm8, %v1895_v9, %v1253_v3  ;;  %v4360_v11 = vsel %vm2104_vm2, %v11354_v1, %v4077_v6  ;;  %v1279_v51 = vadd.s32 %v1278_v34, %v1269_v4  ;;  %v18988_v57 = vrot.slane %v13352_v12, 2  ;;  %4104 = vrot.lane.b32.xlu1 %v14005_v61, %s11451_s8  ;;  %v4079_v61 = vpop.permute.xlu2 %4078 }
 0x248   : > { %vm1991_vm10 = vcmp.ge.s32.totalorder %v1943_v46, 1  ;;  %vm2039_vm11 = vcmp.le.s32.totalorder %v1943_v46, 16  ;;  %v1295_v44 = vshll.u32 %v1292_v26, 16  ;;  %v3246_v60 = vadd.f32 %v13984_v15, %v2985_v41  ;;  %v14114_v3 = vld [vmem:[#allocation2 + $0x11f] sm:$0xff] }
 0x249   : > { %vm2087_vm12 = vmand %vm1991_vm10, %vm2039_vm11  ;;  %v1297_v28 = vshll.u32 %v14105_v24, 16  ;;  %v14118_v16 = vsel %vm4395_vm14, %v4360_v11, %v4228_v37  ;;  %4253 = vrot.lane.b32.xlu0 %v14114_v3, %s11454_s13  ;;  %v1280_v6 = vshrl.u32 %v1279_v51, 4  ;;  %v2570_v11 = vsel %vm2521_vm1, %v2165_v8, %v2320_v10  ;;  %v2988_v51 = vpop.f32.mrf.mxu0  ;;  %v11355_v8 = vld [vmem:[#allocation2 + $0x8f] sm:$0xff] }
 0x24a   : > { %v14121_v1 = vsel %vm2087_vm12, 1.0, %v19185_v30  ;;  %vm1299_vm13 = vc.u32 %v1291_v55, %v1295_v44  ;;  %v1301_v4 = vadd.s32 %v1295_v44, %v1291_v55  ;;  %v14128_v41 = vadd.f32 %v3605_v48, %v3246_v60 }
 0x24b   : > { %19293 = vst [vmem:[#allocation61_spill] sm:$0xff] %v14121_v1  ;;  %v3877_v15 = vmul.f32 %v14121_v1, %v18986_v2  ;;  %v1300_v9 = vsel %vm1299_vm13, 1, %v19184_v35  ;;  %v1281_v37 = vmul.u32 24, %v1280_v6  ;;  %v1296_v34 = vshrl.u32 %v1292_v26, 16  ;;  %v2471_v2 = vpop.permute.xlu1 %2470 }
 0x24c   : > { %19294 = vst [vmem:[#allocation62_spill] sm:$0xff] %v14128_v41  ;;  %v1302_v46 = vadd.s32 %v1300_v9, %v1294_v58  ;;  %vm1303_vm15 = vc.u32 %v1301_v4, %v1297_v28  ;;  %v5117_v55 = vsel %vm3295_vm5, %v5115_v39, %v18988_v57  ;;  %v18987_v48 = vrot.slane %v14118_v16, 1  ;;  %v14143_v58 = vpop.f32.mrf.mxu1 }
 0x24d   : > { %3925 = vst.msk [vmem:[#allocation2 + $0x128] sm:$0xff] %vm2104_vm2, %v3877_v15  ;;  %v1304_v44 = vsel %vm1303_vm15, 1, %v19184_v35  ;;  %v14139_v60 = vadd.s32 272, %v11809_v42  ;;  %v4361_v10 = vsel %vm2104_vm2, %v11355_v8, %v4079_v61  ;;  %v1282_v26 = vsub.s32 %v14030_v23, %v1281_v37  ;;  %10771 = vmatmul.msk.f32.vlgmr.msrb.gmra.mxu1 %vm4597_vm9, %v5117_v55 }
 0x24e   : > { %v1298_v28 = vshrl.u32 %v14105_v24, 16  ;;  %v1306_v6 = vadd.s32 %v1304_v44, %v1302_v46  ;;  %v19295_v39 = vrot.slane %v14071_v49, 1  ;;  %v2619_v61 = vsel %vm2104_vm2, %v2570_v11, %v2471_v2  ;;  %v3608_v24 = vpop.f32.mrf.mxu2 }
 0x24f   : > { %v1317_v15 = vand.u32 65535, %v14139_v60  ;;  %v1318_v9 = vshrl.u32 %v14139_v60, 16  ;;  %vm1752_vm1 = vcmp.ne.s32.totalorder %v1282_v26, 0  ;;  %vm1800_vm0 = vcmp.lt.s32.totalorder %v1282_v26, 0 }
 0x250   : > { %v4528_v4 = vsel %vm2673_vm4, %v19295_v39, %v18987_v48  ;;  %v1896_v23 = vadd.s32 24, %v1282_v26  ;;  %v1307_v37 = vadd.s32 %v1306_v6, %v1296_v34  ;;  %vm1848_vm6 = vmand %vm1800_vm0, %vm1752_vm1  ;;  %v4230_v39 = vpop.permute.xlu0 %4229  ;;  %v3249_v57 = vadd.f32 %v14042_v18, %v2988_v51 }
 0x251   : > { %10688 = vmatmul.msk.f32.gmra.mxu3 %vm4597_vm9, %v4528_v4  ;;  %v1320_v44 = vmul.u32 43691, %v1317_v15  ;;  %v1321_v55 = vmul.u32 43690, %v1317_v15  ;;  %v14157_v8 = vmul.u32 43691, %v1318_v9  ;;  %4106 = vrot.lane.b32.xlu0 %v14068_v54, %s11451_s8  ;;  %v2769_v11 = vrot.slane %v2619_v61, 1 }
 0x252   : > { %v1944_v48 = vsel %vm1848_vm6, %v1896_v23, %v1282_v26  ;;  %v1308_v2 = vadd.s32 %v1307_v37, %v1298_v28  ;;  %v1323_v34 = vmul.u32 43690, %v1318_v9  ;;  %v3391_v22 = vrot.slane %v2619_v61, 2  ;;  %v2991_v61 = vpop.f32.mrf.mxu0 }
 0x253   : > { %vm1992_vm7 = vcmp.ge.s32.totalorder %v1944_v48, 1  ;;  %vm2040_vm8 = vcmp.le.s32.totalorder %v1944_v48, 16  ;;  %v1324_v6 = vshll.u32 %v1321_v55, 16  ;;  %v1326_v15 = vshll.u32 %v14157_v8, 16 }
 0x254   : > { %vm2088_vm10 = vmand %vm1992_vm7, %vm2040_vm8  ;;  %v14162_v4 = vld [vmem:[#allocation2 + $0x127] sm:$0xff]  ;;  %v1309_v46 = vshrl.u32 %v1308_v2, 4  ;;  %v14166_v26 = vsel %vm4395_vm14, %v4361_v10, %v4230_v39  ;;  %v19297_v48 = vmax.f32 %v14128_v41, 0.0  ;;  %v14177_v23 = vadd.f32 %v3608_v24, %v3249_v57 }
 0x255   : > { %v14169_v18 = vsel %vm2088_vm10, 1.0, %v19185_v30  ;;  %4255 = vrot.lane.b32.xlu2 %v14162_v4, %s11454_s13  ;;  %vm1328_vm11 = vc.u32 %v1320_v44, %v1324_v6  ;;  %v1330_v54 = vadd.s32 %v1324_v6, %v1320_v44  ;;  %v4529_v51 = vrot.slane %v14166_v26, 1 }
 0x256   : > { %19296 = vst [vmem:[#allocation63_spill] sm:$0xff] %v14169_v18  ;;  %v3878_v28 = vmul.f32 %v14169_v18, %v19297_v48  ;;  %v1310_v9 = vmul.u32 24, %v1309_v46  ;;  %v1329_v10 = vsel %vm1328_vm11, 1, %v19184_v35  ;;  %v1325_v37 = vshrl.u32 %v1321_v55, 16  ;;  %v14187_v48 = vpop.f32.mrf.mxu1 }
 0x257   : > { %19298 = vst [vmem:[#allocation64_spill] sm:$0xff] %v14177_v23  ;;  %v1331_v39 = vadd.s32 %v1329_v10, %v1323_v34  ;;  %vm1332_vm12 = vc.u32 %v1330_v54, %v1326_v15  ;;  %v19299_v2 = vrot.slane %v13375_v5, 2  ;;  %v19300_v1 = vrot.slane %v13352_v12, 2 }
 0x258   : > { %3926 = vst.msk [vmem:[#allocation2 + $0x130] sm:$0xff] %vm2104_vm2, %v3878_v28  ;;  %v1311_v6 = vsub.s32 %v14057_v29, %v1310_v9  ;;  %v1333_v57 = vsel %vm1332_vm12, 1, %v19184_v35  ;;  %v19301_v24 = vrot.slane %v14050_v47, 1  ;;  %v19302_v55 = vrot.slane %v14050_v47, 2 }
 0x259   : > { %v5119_v44 = vsel %vm3295_vm5, %v19300_v1, %v19299_v2  ;;  %v1327_v1 = vshrl.u32 %v14157_v8, 16  ;;  %v1335_v15 = vadd.s32 %v1333_v57, %v1331_v39  ;;  %v19303_v29 = vrot.slane %v14118_v16, 1  ;;  %v3611_v8 = vpop.f32.mrf.mxu2 }
 0x25a   : > { %10772 = vmatmul.msk.f32.gmra.mxu1 %vm4597_vm9, %v5119_v44  ;;  %v2770_v46 = vsel %vm2673_vm4, %v19301_v24, %v2769_v11  ;;  %v3392_v34 = vsel %vm3295_vm5, %v19302_v55, %v3391_v22  ;;  %v14206_v28 = vadd.s32 280, %v11809_v42  ;;  %v18993_v47 = vrot.slane %v13455_v32, 2  ;;  %v4081_v11 = vpop.permute.xlu1 %4080 }
 0x25b   : > { %10528 = vmatmul.msk.f32.gmra.mxu0 %vm2771_vm3, %v2770_v46  ;;  %10626 = vmatmul.msk.f32.gmra.mxu2 %vm2771_vm3, %v3392_v34  ;;  %v4530_v54 = vsel %vm2673_vm4, %v19303_v29, %v4529_v51  ;;  %vm1753_vm13 = vcmp.ne.s32.totalorder %v1311_v6, 0  ;;  %vm1801_vm15 = vcmp.lt.s32.totalorder %v1311_v6, 0  ;;  %v1897_v22 = vadd.s32 24, %v1311_v6  ;;  %v11356_v46 = vld [vmem:[#allocation2 + $0x97] sm:$0xff]  ;;  %v4232_v34 = vpop.permute.xlu2 %4231 }
 0x25c   : > { %10689 = vmatmul.msk.f32.gmra.mxu3 %vm4597_vm9, %v4530_v54  ;;  %vm1849_vm1 = vmand %vm1801_vm15, %vm1753_vm13  ;;  %v3252_v9 = vadd.f32 %v14098_v21, %v2991_v61  ;;  %v1336_v10 = vadd.s32 %v1335_v15, %v1325_v37  ;;  %v1346_v39 = vand.u32 65535, %v14206_v28  ;;  %v1347_v2 = vshrl.u32 %v14206_v28, 16 }
 0x25d   : > { %v1945_v57 = vsel %vm1849_vm1, %v1897_v22, %v1311_v6  ;;  %v18992_v24 = vmax.f32 %v14177_v23, 0.0  ;;  %v4362_v55 = vsel %vm2104_vm2, %v11356_v46, %v4081_v11  ;;  %4108 = vrot.lane.b32.xlu2 %v14114_v3, %s11451_s8  ;;  %v19306_v3 = vrot.slane %v13375_v5, 2 }
 0x25e   : > { %vm1993_vm3 = vcmp.ge.s32.totalorder %v1945_v57, 1  ;;  %vm2041_vm0 = vcmp.le.s32.totalorder %v1945_v57, 16  ;;  %v1337_v21 = vadd.s32 %v1336_v10, %v1327_v1  ;;  %v14218_v61 = vadd.f32 %v3611_v8, %v3252_v9  ;;  %v4083_v57 = vpop.permute.xlu0 %4082 }
 0x25f   : > { %vm2089_vm6 = vmand %vm1993_vm3, %vm2041_vm0  ;;  %v1349_v37 = vmul.u32 43691, %v1346_v39  ;;  %v1350_v15 = vmul.u32 43690, %v1346_v39  ;;  %v14220_v29 = vmul.u32 43691, %v1347_v2  ;;  %v14223_v6 = vsel %vm4395_vm14, %v4362_v55, %v4232_v34  ;;  %v14228_v22 = vld [vmem:[#allocation2 + $0x12f] sm:$0xff] }
 0x260   : > { %19304 = vst [vmem:[#allocation65_spill] sm:$0xff] %v14218_v61  ;;  %v14226_v54 = vsel %vm2089_vm6, 1.0, %v19185_v30  ;;  %v1338_v11 = vshrl.u32 %v1337_v21, 4  ;;  %v5121_v1 = vsel %vm3295_vm5, %v19306_v3, %v18993_v47  ;;  %v18994_v8 = vrot.slane %v14223_v6, 1  ;;  %4257 = vrot.lane.b32.xlu1 %v14228_v22, %s11454_s13  ;;  %v2994_v21 = vpop.f32.mrf.mxu0  ;;  %v11357_v47 = vld [vmem:[#allocation2 + $0x9f] sm:$0xff] }
 0x261   : > { %19305 = vst [vmem:[#allocation66_spill] sm:$0xff] %v14226_v54  ;;  %v3879_v9 = vmul.f32 %v14226_v54, %v18992_v24  ;;  %v1352_v10 = vmul.u32 43690, %v1347_v2  ;;  %v1353_v39 = vshll.u32 %v1350_v15, 16  ;;  %v1355_v46 = vshll.u32 %v14220_v29, 16  ;;  %v14255_v24 = vpop.f32.mrf.mxu1 }
 0x262   : > { %10773 = vmatmul.msk.f32.gmra.mxu1 %vm4597_vm9, %v5121_v1  ;;  %v1339_v55 = vmul.u32 24, %v1338_v11  ;;  %v4532_v3 = vsel %vm2673_vm4, %v4529_v51, %v18994_v8  ;;  %v14252_v2 = vadd.s32 288, %v11809_v42  ;;  %v1354_v11 = vshrl.u32 %v1350_v15, 16  ;;  %v3614_v15 = vpop.f32.mrf.mxu2 }
 0x263   : > { %10723 = vmatmul.msk.f32.vlgmr.msrb.gmra.mxu0 %vm4597_vm9, %v13311_v17  ;;  %3927 = vst.msk [vmem:[#allocation2 + $0x138] sm:$0xff] %vm2104_vm2, %v3879_v9  ;;  %vm1357_vm7 = vc.u32 %v1349_v37, %v1353_v39  ;;  %v1359_v1 = vadd.s32 %v1353_v39, %v1349_v37  ;;  %v4363_v44 = vsel %vm2104_vm2, %v11357_v47, %v4083_v57  ;;  %v4234_v17 = vpop.permute.xlu1 %4233  ;;  %v1356_v9 = vshrl.u32 %v14220_v29, 16 }
 0x264   : > { %10690 = vmatmul.msk.f32.gmra.mxu3 %vm4597_vm9, %v4532_v3  ;;  %v1340_v34 = vsub.s32 %v14139_v60, %v1339_v55  ;;  %v1358_v51 = vsel %vm1357_vm7, 1, %v19184_v35  ;;  %v1375_v8 = vand.u32 65535, %v14252_v2  ;;  %v1376_v23 = vshrl.u32 %v14252_v2, 16 }
 0x265   : > { %v1360_v41 = vadd.s32 %v1358_v51, %v1352_v10  ;;  %vm1361_vm8 = vc.u32 %v1359_v1, %v1355_v46  ;;  %v14265_v37 = vsel %vm4395_vm14, %v4363_v44, %v4234_v17  ;;  %v3255_v29 = vadd.f32 %v14143_v58, %v2994_v21  ;;  %v4085_v21 = vpop.permute.xlu2 %4084 }
 0x266   : > { %vm1754_vm10 = vcmp.ne.s32.totalorder %v1340_v34, 0  ;;  %vm1802_vm11 = vcmp.lt.s32.totalorder %v1340_v34, 0  ;;  %v1898_v47 = vadd.s32 24, %v1340_v34  ;;  %v1362_v57 = vsel %vm1361_vm8, 1, %v19184_v35 }
 0x267   : > { %vm1850_vm12 = vmand %vm1802_vm11, %vm1754_vm10  ;;  %v1364_v60 = vadd.s32 %v1362_v57, %v1360_v41  ;;  %v1378_v39 = vmul.u32 43691, %v1375_v8  ;;  %v1379_v55 = vmul.u32 43690, %v1375_v8  ;;  %v14268_v3 = vmul.u32 43691, %v1376_v23 }
 0x268   : > { %v1946_v54 = vsel %vm1850_vm12, %v1898_v47, %v1340_v34  ;;  %v1381_v10 = vmul.u32 43690, %v1376_v23  ;;  %4110 = vrot.lane.b32.xlu1 %v14162_v4, %s11451_s8  ;;  %v14277_v8 = vadd.f32 %v3614_v15, %v3255_v29  ;;  %v14283_v58 = vadd.s32 296, %v11809_v42  ;;  %v2997_v15 = vpop.f32.mrf.mxu0 }
 0x269   : > { %vm1994_vm13 = vcmp.ge.s32.totalorder %v1946_v54, 1  ;;  %vm2042_vm15 = vcmp.le.s32.totalorder %v1946_v54, 16  ;;  %v1365_v44 = vadd.s32 %v1364_v60, %v1354_v11  ;;  %v1382_v1 = vshll.u32 %v1379_v55, 16  ;;  %v14299_v46 = vpop.f32.mrf.mxu1 }
 0x26a   : > { %vm2090_vm1 = vmand %vm1994_vm13, %vm2042_vm15  ;;  %v14275_v41 = vld [vmem:[#allocation2 + $0x137] sm:$0xff]  ;;  %19307 = vst [vmem:[#allocation67_spill] sm:$0xff] %v14277_v8  ;;  %v1384_v34 = vshll.u32 %v14268_v3, 16  ;;  %v19309_v11 = vmax.f32 %v14218_v61, 0.0  ;;  %v1383_v47 = vshrl.u32 %v1379_v55, 16  ;;  %v19310_v57 = vrot.slane %v13540_v63, 2 }
 0x26b   : > { %10724 = vmatmul.msk.f32.gmra.mxu0 %vm4597_vm9, %v13352_v12  ;;  %v14286_v23 = vsel %vm2090_vm1, 1.0, %v19185_v30  ;;  %4259 = vrot.lane.b32.xlu0 %v14275_v41, %s11454_s13  ;;  %v1366_v4 = vadd.s32 %v1365_v44, %v1356_v9  ;;  %vm1386_vm3 = vc.u32 %v1378_v39, %v1382_v1  ;;  %v1388_v54 = vadd.s32 %v1382_v1, %v1378_v39  ;;  %v4087_v0 = vpop.permute.xlu1 %4086 }
 0x26c   : > { %19308 = vst [vmem:[#allocation68_spill] sm:$0xff] %v14286_v23  ;;  %v3880_v51 = vmul.f32 %v14286_v23, %v19309_v11  ;;  %v1387_v12 = vsel %vm1386_vm3, 1, %v19184_v35  ;;  %v19311_v60 = vrot.slane %v13455_v32, 2  ;;  %v19312_v39 = vrot.slane %v14265_v37, 1 }
 0x26d   : > { %v1367_v17 = vshrl.u32 %v1366_v4, 4  ;;  %v1389_v9 = vadd.s32 %v1387_v12, %v1381_v10  ;;  %vm1390_vm0 = vc.u32 %v1388_v54, %v1384_v34  ;;  %v19313_v44 = vrot.slane %v14223_v6, 1  ;;  %v14313_v34 = vpop.f32.mrf.mxu3  ;;  %v4236_v54 = vpop.permute.xlu0 %4235  ;;  %v11358_v12 = vld [vmem:[#allocation2 + $0xa7] sm:$0xff] }
 0x26e   : > { %v5123_v29 = vsel %vm3295_vm5, %v19311_v60, %v19310_v57  ;;  %3928 = vst.msk [vmem:[#allocation2 + $0x140] sm:$0xff] %vm2104_vm2, %v3880_v51  ;;  %v1391_v11 = vsel %vm1390_vm0, 1, %v19184_v35  ;;  %v1404_v4 = vand.u32 65535, %v14283_v58  ;;  %v1405_v10 = vshrl.u32 %v14283_v58, 16 }
 0x26f   : > { %10774 = vmatmul.msk.f32.gmra.mxu1 %vm4597_vm9, %v5123_v29  ;;  %v4534_v55 = vsel %vm2673_vm4, %v19313_v44, %v19312_v39  ;;  %v4364_v57 = vsel %vm2104_vm2, %v11358_v12, %v4085_v21  ;;  %v1368_v60 = vmul.u32 24, %v1367_v17  ;;  %v1385_v29 = vshrl.u32 %v14268_v3, 16  ;;  %v3617_v44 = vpop.f32.mrf.mxu2 }
 0x270   : > { %10691 = vmatmul.msk.f32.gmra.mxu3 %vm4597_vm9, %v4534_v55  ;;  %v1393_v39 = vadd.s32 %v1391_v11, %v1389_v9  ;;  %v3258_v51 = vadd.f32 %v14187_v48, %v2997_v15  ;;  %v1407_v1 = vmul.u32 43691, %v1404_v4  ;;  %v1408_v61 = vmul.u32 43690, %v1404_v4 }
 0x271   : > { %v14318_v55 = vmul.u32 43691, %v1405_v10  ;;  %v1369_v23 = vsub.s32 %v14206_v28, %v1368_v60  ;;  %v19011_v18 = vmax.f32 %v14277_v8, 0.0  ;;  %v14323_v56 = vsel %vm4395_vm14, %v4364_v57, %v4236_v54 }
 0x272   : > { %v1394_v50 = vadd.s32 %v1393_v39, %v1383_v47  ;;  %v14325_v17 = vadd.f32 %v3617_v44, %v3258_v51  ;;  %v1410_v3 = vmul.u32 43690, %v1405_v10  ;;  %v1411_v21 = vshll.u32 %v1408_v61, 16  ;;  %v11359_v47 = vld [vmem:[#allocation2 + $0xaf] sm:$0xff] }
 0x273   : > { %v1413_v9 = vshll.u32 %v14318_v55, 16  ;;  %10725 = vmatmul.msk.f32.gmra.mxu0 %vm4597_vm9, %v13375_v5  ;;  %vm1755_vm6 = vcmp.ne.s32.totalorder %v1369_v23, 0  ;;  %vm1803_vm7 = vcmp.lt.s32.totalorder %v1369_v23, 0  ;;  %v1899_v48 = vadd.s32 24, %v1369_v23  ;;  %4112 = vrot.lane.b32.xlu0 %v14228_v22, %s11451_s8 }
 0x274   : > { %19314 = vst [vmem:[#allocation69_spill] sm:$0xff] %v14325_v17  ;;  %v1395_v28 = vadd.s32 %v1394_v50, %v1385_v29  ;;  %vm1851_vm8 = vmand %vm1803_vm7, %vm1755_vm6  ;;  %vm1415_vm10 = vc.u32 %v1407_v1, %v1411_v21  ;;  %v1417_v15 = vadd.s32 %v1411_v21, %v1407_v1  ;;  %v4365_v11 = vsel %vm2104_vm2, %v11359_v47, %v4087_v0  ;;  %v3000_v50 = vpop.f32.mrf.mxu0  ;;  %v14339_v0 = vpop.f32.mrf.mxu1 }
 0x275   : > { %v4535_v4 = vrot.slane %v14323_v56, 1  ;;  %v1947_v10 = vsel %vm1851_vm8, %v1899_v48, %v1369_v23  ;;  %v14334_v54 = vld [vmem:[#allocation2 + $0x13f] sm:$0xff]  ;;  %v1412_v5 = vshrl.u32 %v1408_v61, 16  ;;  %v1416_v57 = vsel %vm1415_vm10, 1, %v19184_v35 }
 0x276   : > { %v1396_v12 = vshrl.u32 %v1395_v28, 4  ;;  %vm1995_vm11 = vcmp.ge.s32.totalorder %v1947_v10, 1  ;;  %vm2043_vm12 = vcmp.le.s32.totalorder %v1947_v10, 16  ;;  %4261 = vrot.lane.b32.xlu2 %v14334_v54, %s11454_s13  ;;  %v1418_v22 = vadd.s32 %v1416_v57, %v1410_v3 }
 0x277   : > { %vm1419_vm13 = vc.u32 %v1417_v15, %v1413_v9  ;;  %vm2091_vm15 = vmand %vm1995_vm11, %vm2043_vm12  ;;  %v1414_v23 = vshrl.u32 %v14318_v55, 16  ;;  %v19315_v61 = vrot.slane %v13577_v33, 2  ;;  %v19316_v29 = vrot.slane %v13540_v63, 2  ;;  %v14358_v9 = vpop.f32.mrf.mxu3  ;;  %v4238_v15 = vpop.permute.xlu2 %4237 }
 0x278   : > { %v1397_v1 = vmul.u32 24, %v1396_v12  ;;  %v1420_v60 = vsel %vm1419_vm13, 1, %v19184_v35  ;;  %v14349_v44 = vsel %vm2091_vm15, 1.0, %v19185_v30  ;;  %v19318_v3 = vrot.slane %v14265_v37, 1  ;;  %v3620_v12 = vpop.f32.mrf.mxu2 }
 0x279   : > { %v5125_v39 = vsel %vm3295_vm5, %v19316_v29, %v19315_v61  ;;  %19317 = vst [vmem:[#allocation70_spill] sm:$0xff] %v14349_v44  ;;  %v1422_v51 = vadd.s32 %v1420_v60, %v1418_v22  ;;  %v14356_v55 = vadd.s32 304, %v11809_v42  ;;  %v3881_v28 = vmul.f32 %v14349_v44, %v19011_v18 }
 0x27a   : > { %10775 = vmatmul.msk.f32.gmra.mxu1 %vm4597_vm9, %v5125_v39  ;;  %v4536_v21 = vsel %vm2673_vm4, %v19318_v3, %v4535_v4  ;;  %v1398_v47 = vsub.s32 %v14252_v2, %v1397_v1  ;;  %v19010_v10 = vmax.f32 %v14325_v17, 0.0  ;;  %v14368_v22 = vsel %vm4395_vm14, %v4365_v11, %v4238_v15 }
 0x27b   : > { %10692 = vmatmul.msk.f32.gmra.mxu3 %vm4597_vm9, %v4536_v21  ;;  %v1423_v57 = vadd.s32 %v1422_v51, %v1412_v5  ;;  %v1433_v60 = vand.u32 65535, %v14356_v55  ;;  %v1434_v61 = vshrl.u32 %v14356_v55, 16  ;;  %10726 = vmatmul.msk.f32.gmra.mxu0 %vm4597_vm9, %v13455_v32  ;;  %3929 = vst.msk [vmem:[#allocation2 + $0x148] sm:$0xff] %vm2104_vm2, %v3881_v28  ;;  %v3261_v1 = vadd.f32 %v14255_v24, %v3000_v50  ;;  %v4089_v51 = vpop.permute.xlu0 %4088 }
 0x27c   : > { %vm1756_vm1 = vcmp.ne.s32.totalorder %v1398_v47, 0  ;;  %vm1804_vm3 = vcmp.lt.s32.totalorder %v1398_v47, 0  ;;  %v1900_v2 = vadd.s32 24, %v1398_v47  ;;  %v19012_v32 = vrot.slane %v14368_v22, 1 }
 0x27d   : > { %vm1852_vm0 = vmand %vm1804_vm3, %vm1756_vm1  ;;  %v1424_v29 = vadd.s32 %v1423_v57, %v1414_v23  ;;  %v1436_v5 = vmul.u32 43691, %v1433_v60  ;;  %v1437_v39 = vmul.u32 43690, %v1433_v60  ;;  %v14376_v11 = vmul.u32 43691, %v1434_v61  ;;  %v11360_v23 = vld [vmem:[#allocation2 + $0xb7] sm:$0xff] }
 0x27e   : > { %v1948_v3 = vsel %vm1852_vm0, %v1900_v2, %v1398_v47  ;;  %v14378_v21 = vadd.f32 %v3620_v12, %v3261_v1  ;;  %v1439_v15 = vmul.u32 43690, %v1434_v61  ;;  %4114 = vrot.lane.b32.xlu2 %v14275_v41, %s11451_s8  ;;  %v4366_v57 = vsel %vm2104_vm2, %v11360_v23, %v4089_v51  ;;  %v3003_v1 = vpop.f32.mrf.mxu0 }
 0x27f   : > { %vm1996_vm6 = vcmp.ge.s32.totalorder %v1948_v3, 1  ;;  %vm2044_vm7 = vcmp.le.s32.totalorder %v1948_v3, 16  ;;  %v1425_v28 = vshrl.u32 %v1424_v29, 4  ;;  %v1440_v24 = vshll.u32 %v1437_v39, 16  ;;  %v14400_v3 = vpop.f32.mrf.mxu1 }
 0x280   : > { %19319 = vst [vmem:[#allocation71_spill] sm:$0xff] %v14378_v21  ;;  %vm2092_vm8 = vmand %vm1996_vm6, %vm2044_vm7  ;;  %v1442_v50 = vshll.u32 %v14376_v11, 16  ;;  %v19320_v47 = vrot.slane %v13653_v62, 2  ;;  %v19321_v12 = vrot.slane %v13577_v33, 2  ;;  %v4538_v61 = vsel %vm2673_vm4, %v4535_v4, %v19012_v32 }
 0x281   : > { %v14394_v41 = vsel %vm2092_vm8, 1.0, %v19185_v30  ;;  %v1426_v2 = vmul.u32 24, %v1425_v28  ;;  %vm1444_vm10 = vc.u32 %v1436_v5, %v1440_v24  ;;  %v1446_v29 = vadd.s32 %v1440_v24, %v1436_v5  ;;  %v4240_v28 = vpop.permute.xlu1 %4239 }
 0x282   : > { %v5127_v60 = vsel %vm3295_vm5, %v19321_v12, %v19320_v47  ;;  %19322 = vst [vmem:[#allocation72_spill] sm:$0xff] %v14394_v41  ;;  %v3882_v51 = vmul.f32 %v14394_v41, %v19010_v10  ;;  %v1441_v23 = vshrl.u32 %v1437_v39, 16  ;;  %v1445_v47 = vsel %vm1444_vm10, 1, %v19184_v35  ;;  %v14407_v12 = vld [vmem:[#allocation2 + $0x147] sm:$0xff]  ;;  %v14411_v10 = vpop.f32.mrf.mxu3 }
 0x283   : > { %10776 = vmatmul.msk.f32.gmra.mxu1 %vm4597_vm9, %v5127_v60  ;;  %10693 = vmatmul.msk.f32.gmra.mxu3 %vm4597_vm9, %v4538_v61  ;;  %v14405_v4 = vadd.s32 312, %v11809_v42  ;;  %v1427_v5 = vsub.s32 %v14283_v58, %v1426_v2  ;;  %v1443_v24 = vshrl.u32 %v14376_v11, 16  ;;  %v1447_v60 = vadd.s32 %v1445_v47, %v1439_v15  ;;  %v3623_v61 = vpop.f32.mrf.mxu2 }
 0x284   : > { %vm1448_vm11 = vc.u32 %v1446_v29, %v1442_v50  ;;  %10727 = vmatmul.msk.f32.gmra.mxu0 %vm4597_vm9, %v13540_v63  ;;  %3930 = vst.msk [vmem:[#allocation2 + $0x150] sm:$0xff] %vm2104_vm2, %v3882_v51  ;;  %4263 = vrot.lane.b32.xlu1 %v14407_v12, %s11454_s13  ;;  %v14422_v11 = vsel %vm4395_vm14, %v4366_v57, %v4240_v28 }
 0x285   : > { %v1449_v39 = vsel %vm1448_vm11, 1, %v19184_v35  ;;  %v1462_v18 = vand.u32 65535, %v14405_v4  ;;  %v1463_v58 = vshrl.u32 %v14405_v4, 16  ;;  %vm1757_vm12 = vcmp.ne.s32.totalorder %v1427_v5, 0 }
 0x286   : > { %vm1805_vm13 = vcmp.lt.s32.totalorder %v1427_v5, 0  ;;  %v1901_v15 = vadd.s32 24, %v1427_v5  ;;  %v1451_v50 = vadd.s32 %v1449_v39, %v1447_v60  ;;  %v3264_v32 = vadd.f32 %v14299_v46, %v3003_v1  ;;  %v4091_v39 = vpop.permute.xlu2 %4090 }
 0x287   : > { %vm1853_vm15 = vmand %vm1805_vm13, %vm1757_vm12  ;;  %v1465_v2 = vmul.u32 43691, %v1462_v18  ;;  %v1466_v29 = vmul.u32 43690, %v1462_v18  ;;  %v1467_v51 = vmul.u32 43691, %v1463_v58  ;;  %v1468_v17 = vmul.u32 43690, %v1463_v58 }
 0x288   : > { %v1949_v47 = vsel %vm1853_vm15, %v1901_v15, %v1427_v5  ;;  %v1452_v48 = vadd.s32 %v1451_v50, %v1441_v23  ;;  %v19017_v57 = vrot.slane %v14422_v11, 1  ;;  %v14427_v41 = vadd.f32 %v3623_v61, %v3264_v32  ;;  %v14449_v61 = vpop.f32.mrf.mxu1 }
 0x289   : > { %vm1997_vm1 = vcmp.ge.s32.totalorder %v1949_v47, 1  ;;  %vm2045_vm3 = vcmp.le.s32.totalorder %v1949_v47, 16  ;;  %v1469_v8 = vshll.u32 %v1466_v29, 16  ;;  %v1471_v60 = vshll.u32 %v1467_v51, 16 }
 0x28a   : > { %vm2093_vm0 = vmand %vm1997_vm1, %vm2045_vm3  ;;  %v1453_v28 = vadd.s32 %v1452_v48, %v1443_v24  ;;  %19323 = vst [vmem:[#allocation73_spill] sm:$0xff] %v14427_v41  ;;  %v1470_v18 = vshrl.u32 %v1466_v29, 16  ;;  %v19325_v46 = vmax.f32 %v14378_v21, 0.0  ;;  %v19326_v48 = vrot.slane %v13678_v40, 2 }
 0x28b   : > { %v14430_v63 = vsel %vm2093_vm0, 1.0, %v19185_v30  ;;  %vm1473_vm6 = vc.u32 %v1465_v2, %v1469_v8  ;;  %v1475_v5 = vadd.s32 %v1469_v8, %v1465_v2  ;;  %v14435_v23 = vld [vmem:[#allocation2 + $0x14f] sm:$0xff]  ;;  %v19327_v32 = vrot.slane %v13653_v62, 2  ;;  %v3006_v8 = vpop.f32.mrf.mxu0 }
 0x28c   : > { %19324 = vst [vmem:[#allocation74_spill] sm:$0xff] %v14430_v63  ;;  %v3883_v1 = vmul.f32 %v14430_v63, %v19325_v46  ;;  %v1454_v58 = vshrl.u32 %v1453_v28, 4  ;;  %v1474_v15 = vsel %vm1473_vm6, 1, %v19184_v35  ;;  %10728 = vmatmul.msk.f32.gmra.mxu0 %vm4597_vm9, %v13577_v33  ;;  %4116 = vrot.lane.b32.xlu1 %v14334_v54, %s11451_s8  ;;  %v19328_v2 = vrot.slane %v14368_v22, 1  ;;  %v11361_v54 = vld [vmem:[#allocation2 + $0xbf] sm:$0xff]  ;;  %v11362_v63 = vld [vmem:[#allocation2 + $0xc7] sm:$0xff] }
 0x28d   : > { %v5129_v24 = vsel %vm3295_vm5, %v19327_v32, %v19326_v48  ;;  %4265 = vrot.lane.b32.xlu0 %v14435_v23, %s11454_s13  ;;  %v1476_v50 = vadd.s32 %v1474_v15, %v1468_v17  ;;  %vm1477_vm7 = vc.u32 %v1475_v5, %v1471_v60  ;;  %v14457_v47 = vadd.s32 320, %v11809_v42  ;;  %v14465_v60 = vpop.f32.mrf.mxu3  ;;  %v3626_v48 = vpop.f32.mrf.mxu2 }
 0x28e   : > { %v4540_v29 = vsel %vm2673_vm4, %v19328_v2, %v19017_v57  ;;  %v4367_v28 = vsel %vm2104_vm2, %v11361_v54, %v4091_v39  ;;  %3931 = vst.msk [vmem:[#allocation2 + $0x158] sm:$0xff] %vm2104_vm2, %v3883_v1  ;;  %v1455_v46 = vmul.u32 24, %v1454_v58  ;;  %v1478_v17 = vsel %vm1477_vm7, 1, %v19184_v35  ;;  %10777 = vmatmul.msk.f32.gmra.mxu1 %vm4597_vm9, %v5129_v24  ;;  %v4242_v57 = vpop.permute.xlu0 %4241  ;;  %v4093_v54 = vpop.permute.xlu1 %4092 }
 0x28f   : > { %10694 = vmatmul.msk.f32.gmra.mxu3 %vm4597_vm9, %v4540_v29  ;;  %v1472_v5 = vshrl.u32 %v1467_v51, 16  ;;  %v1480_v15 = vadd.s32 %v1478_v17, %v1476_v50  ;;  %v1491_v32 = vand.u32 65535, %v14457_v47  ;;  %v1492_v2 = vshrl.u32 %v14457_v47, 16 }
 0x290   : > { %v1456_v39 = vsub.s32 %v14356_v55, %v1455_v46  ;;  %v3267_v58 = vadd.f32 %v14339_v0, %v3006_v8  ;;  %v14473_v24 = vsel %vm4395_vm14, %v4367_v28, %v4242_v57  ;;  %v4368_v0 = vsel %vm2104_vm2, %v11362_v63, %v4093_v54 }
 0x291   : > { %v1481_v29 = vadd.s32 %v1480_v15, %v1470_v18  ;;  %v1494_v33 = vmul.u32 43691, %v1491_v32  ;;  %v1495_v51 = vmul.u32 43690, %v1491_v32  ;;  %v14475_v50 = vmul.u32 43691, %v1492_v2 }
 0x292   : > { %vm1758_vm8 = vcmp.ne.s32.totalorder %v1456_v39, 0  ;;  %vm1806_vm10 = vcmp.lt.s32.totalorder %v1456_v39, 0  ;;  %v1902_v17 = vadd.s32 24, %v1456_v39  ;;  %v14477_v21 = vadd.f32 %v3626_v48, %v3267_v58 }
 0x293   : > { %vm1854_vm11 = vmand %vm1806_vm10, %vm1758_vm8  ;;  %v1482_v55 = vadd.s32 %v1481_v29, %v1472_v5  ;;  %v1497_v46 = vmul.u32 43690, %v1492_v2  ;;  %v1498_v1 = vshll.u32 %v1495_v51, 16  ;;  %v1500_v57 = vshll.u32 %v14475_v50, 16  ;;  %v4244_v5 = vpop.permute.xlu2 %4243  ;;  %v3009_v29 = vpop.f32.mrf.mxu0 }
 0x294   : > { %19329 = vst [vmem:[#allocation75_spill] sm:$0xff] %v14477_v21  ;;  %v1950_v8 = vsel %vm1854_vm11, %v1902_v17, %v1456_v39  ;;  %v19021_v18 = vrot.slane %v14473_v24, 1  ;;  %v19330_v28 = vrot.slane %v13734_v43, 2  ;;  %v19331_v15 = vrot.slane %v13678_v40, 2  ;;  %10729 = vmatmul.msk.f32.gmra.mxu0 %vm4597_vm9, %v13653_v62  ;;  %v14504_v17 = vpop.f32.mrf.mxu1 }
 0x295   : > { %vm1998_vm12 = vcmp.ge.s32.totalorder %v1950_v8, 1  ;;  %vm2046_vm13 = vcmp.le.s32.totalorder %v1950_v8, 16  ;;  %4118 = vrot.lane.b32.xlu0 %v14407_v12, %s11451_s8  ;;  %v14491_v63 = vld [vmem:[#allocation2 + $0x157] sm:$0xff]  ;;  %v1483_v48 = vshrl.u32 %v1482_v55, 4  ;;  %vm1502_vm15 = vc.u32 %v1494_v33, %v1498_v1 }
 0x296   : > { %v5131_v32 = vsel %vm3295_vm5, %v19331_v15, %v19330_v28  ;;  %vm2094_vm1 = vmand %vm1998_vm12, %vm2046_vm13  ;;  %4267 = vrot.lane.b32.xlu2 %v14491_v63, %s11454_s13  ;;  %v1503_v39 = vsel %vm1502_vm15, 1, %v19184_v35  ;;  %v1504_v58 = vadd.s32 %v1498_v1, %v1494_v33  ;;  %v14498_v62 = vsel %vm4395_vm14, %v4368_v0, %v4244_v5  ;;  %v4246_v2 = vpop.permute.xlu1 %4245 }
 0x297   : > { %10778 = vmatmul.msk.f32.gmra.mxu1 %vm4597_vm9, %v5131_v32  ;;  %v14502_v12 = vsel %vm2094_vm1, 1.0, %v19185_v30  ;;  %v1484_v54 = vmul.u32 24, %v1483_v48  ;;  %v1505_v55 = vadd.s32 %v1503_v39, %v1497_v46  ;;  %v19333_v8 = vrot.slane %v14422_v11, 1  ;;  %v14518_v32 = vpop.f32.mrf.mxu3  ;;  %v4095_v46 = vpop.permute.xlu0 %4094 }
 0x298   : > { %19332 = vst [vmem:[#allocation76_spill] sm:$0xff] %v14502_v12  ;;  %v19334_v33 = vmax.f32 %v14427_v41, 0.0  ;;  %v1499_v0 = vshrl.u32 %v1495_v51, 16  ;;  %vm1506_vm3 = vc.u32 %v1504_v58, %v1500_v57  ;;  %v14516_v15 = vadd.s32 328, %v11809_v42  ;;  %v3629_v57 = vpop.f32.mrf.mxu2 }
 0x299   : > { %v4542_v28 = vsel %vm2673_vm4, %v19333_v8, %v19021_v18  ;;  %v1485_v5 = vsub.s32 %v14405_v4, %v1484_v54  ;;  %v1501_v39 = vshrl.u32 %v14475_v50, 16  ;;  %v1507_v8 = vsel %vm1506_vm3, 1, %v19184_v35 }
 0x29a   : > { %v3884_v1 = vmul.f32 %v14502_v12, %v19334_v33  ;;  %10695 = vmatmul.msk.f32.gmra.mxu3 %vm4597_vm9, %v4542_v28  ;;  %v1509_v51 = vadd.s32 %v1507_v8, %v1505_v55  ;;  %v1520_v58 = vand.u32 65535, %v14516_v15  ;;  %v1521_v28 = vshrl.u32 %v14516_v15, 16  ;;  %v11363_v33 = vld [vmem:[#allocation2 + $0xcf] sm:$0xff] }
 0x29b   : > { %v4369_v18 = vsel %vm2104_vm2, %v11363_v33, %v4095_v46  ;;  %vm1759_vm0 = vcmp.ne.s32.totalorder %v1485_v5, 0  ;;  %vm1807_vm6 = vcmp.lt.s32.totalorder %v1485_v5, 0  ;;  %v1903_v4 = vadd.s32 24, %v1485_v5 }
 0x29c   : > { %3932 = vst.msk [vmem:[#allocation2 + $0x160] sm:$0xff] %vm2104_vm2, %v3884_v1  ;;  %v4543_v54 = vrot.slane %v14498_v62, 1  ;;  %vm1855_vm7 = vmand %vm1807_vm6, %vm1759_vm0  ;;  %v1510_v50 = vadd.s32 %v1509_v51, %v1499_v0  ;;  %v1523_v48 = vmul.u32 43691, %v1520_v58  ;;  %v1524_v41 = vmul.u32 43690, %v1520_v58  ;;  %10730 = vmatmul.msk.f32.gmra.mxu0 %vm4597_vm9, %v13678_v40 }
 0x29d   : > { %v14529_v1 = vmul.u32 43691, %v1521_v28  ;;  %v1951_v55 = vsel %vm1855_vm7, %v1903_v4, %v1485_v5  ;;  %v1526_v8 = vmul.u32 43690, %v1521_v28  ;;  %v19335_v12 = vrot.slane %v13816_v52, 2 }
 0x29e   : > { %v19336_v46 = vrot.slane %v13734_v43, 2  ;;  %v14539_v44 = vsel %vm4395_vm14, %v4369_v18, %v4246_v2  ;;  %vm1999_vm8 = vcmp.ge.s32.totalorder %v1951_v55, 1  ;;  %vm2047_vm10 = vcmp.le.s32.totalorder %v1951_v55, 16  ;;  %4120 = vrot.lane.b32.xlu2 %v14435_v23, %s11451_s8  ;;  %v4097_v55 = vpop.permute.xlu2 %4096 }
 0x29f   : > { %v1511_v0 = vadd.s32 %v1510_v50, %v1501_v39  ;;  %v1527_v51 = vshll.u32 %v1524_v41, 16  ;;  %vm2095_vm11 = vmand %vm1999_vm8, %vm2047_vm10  ;;  %v1529_v5 = vshll.u32 %v14529_v1, 16  ;;  %v19337_v58 = vrot.slane %v14473_v24, 1  ;;  %v14553_v23 = vpop.f32.mrf.mxu3  ;;  %v14555_v39 = vpop.f32.mrf.mxu1 }
 0x2a0   : > { %v5133_v33 = vsel %vm3295_vm5, %v19336_v46, %v19335_v12  ;;  %v14550_v18 = vsel %vm2095_vm11, 1.0, %v19185_v30  ;;  %19339 = vst [vmem:[#allocation78_spill] sm:$0xff] %v14553_v23  ;;  %v19340_v4 = vmax.f32 %v14477_v21, 0.0  ;;  %v3270_v46 = vadd.f32 %v14400_v3, %v3009_v29  ;;  %v4248_v21 = vpop.permute.xlu0 %4247  ;;  %v11364_v29 = vld [vmem:[#allocation2 + $0xd7] sm:$0xff]  ;;  %v3632_v25 = vpop.f32.mrf.mxu2 }
 0x2a1   : > { %10779 = vmatmul.msk.f32.gmra.mxu1 %vm4597_vm9, %v5133_v33  ;;  %v4544_v12 = vsel %vm2673_vm4, %v19337_v58, %v4543_v54  ;;  %19338 = vst [vmem:[#allocation77_spill] sm:$0xff] %v14550_v18  ;;  %v1512_v2 = vshrl.u32 %v1511_v0, 4  ;;  %vm1531_vm12 = vc.u32 %v1523_v48, %v1527_v51  ;;  %v1533_v28 = vadd.s32 %v1527_v51, %v1523_v48  ;;  %v3012_v58 = vpop.f32.mrf.mxu0 }
 0x2a2   : > { %10696 = vmatmul.msk.f32.gmra.mxu3 %vm4597_vm9, %v4544_v12  ;;  %v3885_v50 = vmul.f32 %v14550_v18, %v19340_v4  ;;  %v1532_v0 = vsel %vm1531_vm12, 1, %v19184_v35  ;;  %v1528_v12 = vshrl.u32 %v1524_v41, 16  ;;  %v14568_v4 = vadd.f32 %v3629_v57, %v3270_v46 }
 0x2a3   : > { %v14561_v33 = vld [vmem:[#allocation2 + $0x15f] sm:$0xff]  ;;  %v1513_v51 = vmul.u32 24, %v1512_v2  ;;  %v1534_v40 = vadd.s32 %v1532_v0, %v1526_v8  ;;  %vm1535_vm13 = vc.u32 %v1533_v28, %v1529_v5  ;;  %v4370_v18 = vsel %vm2104_vm2, %v11364_v29, %v4097_v55 }
 0x2a4   : > { %4269 = vrot.lane.b32.xlu1 %v14561_v33, %s11454_s13  ;;  %3933 = vst.msk [vmem:[#allocation2 + $0x168] sm:$0xff] %vm2104_vm2, %v3885_v50  ;;  %v1536_v3 = vsel %vm1535_vm13, 1, %v19184_v35  ;;  %v1530_v48 = vshrl.u32 %v14529_v1, 16  ;;  %10731 = vmatmul.msk.f32.gmra.mxu0 %vm4597_vm9, %v13734_v43  ;;  %v3273_v41 = vadd.f32 %v14449_v61, %v3012_v58  ;;  %v19342_v8 = vrot.slane %v13871_v19, 2 }
 0x2a5   : > { %19341 = vst [vmem:[#allocation79_spill] sm:$0xff] %v14568_v4  ;;  %v1514_v53 = vsub.s32 %v14457_v47, %v1513_v51  ;;  %v1538_v13 = vadd.s32 %v1536_v3, %v1534_v40  ;;  %v19343_v57 = vrot.slane %v13816_v52, 2  ;;  %v19344_v2 = vrot.slane %v14539_v44, 1  ;;  %v4099_v47 = vpop.permute.xlu1 %4098 }
 0x2a6   : > { %v14586_v1 = vsel %vm4395_vm14, %v4370_v18, %v4248_v21  ;;  %v5136_v61 = vrot.slane %v13917_v45, 2  ;;  %v19036_v55 = vmax.f32 %v14568_v4, 0.0  ;;  %v14592_v46 = vadd.f32 %v3632_v25, %v3273_v41  ;;  %v11365_v18 = vld [vmem:[#allocation2 + $0xdf] sm:$0xff]  ;;  %v4250_v41 = vpop.permute.xlu2 %4249 }
 0x2a7   : > { %v5135_v5 = vsel %vm3295_vm5, %v19343_v57, %v19342_v8  ;;  %v4546_v28 = vsel %vm2673_vm4, %v4543_v54, %v19344_v2  ;;  %vm1760_vm15 = vcmp.ne.s32.totalorder %v1514_v53, 0  ;;  %vm1808_vm1 = vcmp.lt.s32.totalorder %v1514_v53, 0  ;;  %v14595_v21 = vpop.f32.mrf.mxu3  ;;  %v14604_v25 = vpop.f32.mrf.mxu1 }
 0x2a8   : > { %v1904_v40 = vadd.s32 24, %v1514_v53  ;;  %v1539_v43 = vadd.s32 %v1538_v13, %v1528_v12  ;;  %vm1856_vm3 = vmand %vm1808_vm1, %vm1760_vm15  ;;  %19345 = vst [vmem:[#allocation80_spill] sm:$0xff] %v14592_v46  ;;  %v4371_v13 = vsel %vm2104_vm2, %v11365_v18, %v4099_v47  ;;  %v14599_v0 = vadd.s32 336, %v11809_v42 }
 0x2a9   : > { %10780 = vmatmul.msk.f32.gmra.mxu1 %vm4597_vm9, %v5135_v5  ;;  %19346 = vst [vmem:[#allocation81_spill] sm:$0xff] %v14595_v21  ;;  %v19038_v51 = vrot.slane %v14586_v1, 1  ;;  %v14602_v12 = vpop.f32.mrf.mxu0 }
 0x2aa   : > { %v1952_v54 = vsel %vm1856_vm3, %v1904_v40, %v1514_v53  ;;  %v1540_v58 = vadd.s32 %v1539_v43, %v1530_v48  ;;  %10697 = vmatmul.msk.f32.gmra.mxu3 %vm4597_vm9, %v4546_v28  ;;  %v14607_v53 = vadd.s32 344, %v11809_v42  ;;  %v1549_v8 = vand.u32 65535, %v14599_v0 }
 0x2ab   : > { %vm2000_vm0 = vcmp.ge.s32.totalorder %v1952_v54, 1  ;;  %vm2048_vm6 = vcmp.le.s32.totalorder %v1952_v54, 16  ;;  %v14612_v3 = vld [vmem:[#allocation2 + $0x167] sm:$0xff]  ;;  %v1550_v57 = vshrl.u32 %v14599_v0, 16  ;;  %v14623_v28 = vsel %vm4395_vm14, %v4371_v13, %v4250_v41 }
 0x2ac   : > { %vm2096_vm7 = vmand %vm2000_vm0, %vm2048_vm6  ;;  %4122 = vrot.lane.b32.xlu1 %v14491_v63, %s11451_s8  ;;  %v1541_v29 = vshrl.u32 %v1540_v58, 4  ;;  %4271 = vrot.lane.b32.xlu0 %v14612_v3, %s11454_s13  ;;  %v1578_v63 = vand.u32 65535, %v14607_v53  ;;  %v1552_v43 = vmul.u32 43691, %v1549_v8  ;;  %v1553_v54 = vmul.u32 43690, %v1549_v8 }
 0x2ad   : > { %v14617_v5 = vsel %vm2096_vm7, 1.0, %v19185_v30  ;;  %10732 = vmatmul.msk.f32.gmra.mxu0 %vm4597_vm9, %v13816_v52  ;;  %v19348_v58 = vrot.slane %v13871_v19, 2  ;;  %v19349_v13 = vmov %v19344_v2  ;;  %v14639_v48 = vmul.u32 43691, %v1550_v57  ;;  %v14646_v2 = vpop.f32.mrf.mxu2 }
 0x2ae   : > { %19347 = vst [vmem:[#allocation82_spill] sm:$0xff] %v14617_v5  ;;  %v3886_v47 = vmul.f32 %v14617_v5, %v19036_v55  ;;  %v1542_v40 = vmul.u32 24, %v1541_v29  ;;  %v4548_v41 = vsel %vm2673_vm4, %v19349_v13, %v19038_v51  ;;  %v1579_v55 = vshrl.u32 %v14607_v53, 16 }
 0x2af   : > { %v5137_v18 = vsel %vm3295_vm5, %v19348_v58, %v5136_v61  ;;  %v1555_v8 = vmul.u32 43690, %v1550_v57  ;;  %v1556_v58 = vshll.u32 %v1553_v54, 16  ;;  %v1558_v50 = vshll.u32 %v14639_v48, 16  ;;  %v4101_v57 = vpop.permute.xlu0 %4100  ;;  %v14661_v38 = vpop.f32.mrf.mxu1 }
 0x2b0   : > { %3934 = vst.msk [vmem:[#allocation2 + $0x170] sm:$0xff] %vm2104_vm2, %v3886_v47  ;;  %v1543_v29 = vsub.s32 %v14516_v15, %v1542_v40  ;;  %v1581_v4 = vmul.u32 43691, %v1578_v63  ;;  %v14649_v13 = vmul.u32 43690, %v1578_v63  ;;  %v14651_v51 = vmul.u32 43691, %v1579_v55  ;;  %v14654_v15 = vpop.f32.mrf.mxu3 }
 0x2b1   : > { %10781 = vmatmul.msk.f32.gmra.mxu1 %vm4597_vm9, %v5137_v18  ;;  %19350 = vst [vmem:[#allocation83_spill] sm:$0xff] %v14654_v15  ;;  %vm1560_vm11 = vc.u32 %v1552_v43, %v1556_v58  ;;  %v1562_v18 = vadd.s32 %v1556_v58, %v1552_v43  ;;  %v19351_v52 = vrot.slane %v13982_v14, 2  ;;  %v1584_v23 = vmul.u32 43690, %v1579_v55  ;;  %v3018_v43 = vpop.f32.mrf.mxu0  ;;  %v11366_v58 = vld [vmem:[#allocation2 + $0xe7] sm:$0xff] }
 0x2b2   : > { %vm1761_vm8 = vcmp.ne.s32.totalorder %v1543_v29, 0  ;;  %vm1809_vm10 = vcmp.lt.s32.totalorder %v1543_v29, 0  ;;  %v1905_v47 = vadd.s32 24, %v1543_v29  ;;  %10698 = vmatmul.msk.f32.gmra.mxu3 %vm4597_vm9, %v4548_v41  ;;  %v1561_v40 = vsel %vm1560_vm11, 1, %v19184_v35 }
 0x2b3   : > { %vm1857_vm12 = vmand %vm1809_vm10, %vm1761_vm8  ;;  %v5139_v63 = vsel %vm3295_vm5, %v5136_v61, %v19351_v52  ;;  %v1585_v5 = vshll.u32 %v14649_v13, 16  ;;  %v1563_v31 = vadd.s32 %v1561_v40, %v1555_v8  ;;  %v1587_v41 = vshll.u32 %v14651_v51, 16 }
 0x2b4   : > { %v1953_v21 = vsel %vm1857_vm12, %v1905_v47, %v1543_v29  ;;  %4124 = vrot.lane.b32.xlu0 %v14561_v33, %s11451_s8  ;;  %v1557_v15 = vshrl.u32 %v1553_v54, 16  ;;  %vm1564_vm1 = vc.u32 %v1562_v18, %v1558_v50  ;;  %v4372_v61 = vsel %vm2104_vm2, %v11366_v58, %v4101_v57 }
 0x2b5   : > { %vm2001_vm13 = vcmp.ge.s32.totalorder %v1953_v21, 1  ;;  %vm2049_vm15 = vcmp.le.s32.totalorder %v1953_v21, 16  ;;  %v1565_v52 = vsel %vm1564_vm1, 1, %v19184_v35  ;;  %vm1589_vm0 = vc.u32 %v1581_v4, %v1585_v5  ;;  %10733 = vmatmul.msk.f32.gmra.mxu0 %vm4597_vm9, %v13871_v19  ;;  %v4252_v19 = vpop.permute.xlu1 %4251 }
 0x2b6   : > { %vm2097_vm3 = vmand %vm2001_vm13, %vm2049_vm15  ;;  %v1591_v29 = vadd.s32 %v1585_v5, %v1581_v4  ;;  %v1559_v33 = vshrl.u32 %v14639_v48, 16  ;;  %v1567_v50 = vadd.s32 %v1565_v52, %v1563_v31  ;;  %v1590_v54 = vsel %vm1589_vm0, 1, %v19184_v35 }
 0x2b7   : > { %v14671_v55 = vsel %vm2097_vm3, 1.0, %v19185_v30  ;;  %v14673_v21 = vld [vmem:[#allocation2 + $0x16f] sm:$0xff]  ;;  %v19353_v8 = vmax.f32 %v14592_v46, 0.0  ;;  %v1586_v4 = vshrl.u32 %v14649_v13, 16  ;;  %v1592_v5 = vadd.s32 %v1590_v54, %v1584_v23 }
 0x2b8   : > { %19352 = vst [vmem:[#allocation84_spill] sm:$0xff] %v14671_v55  ;;  %4273 = vrot.lane.b32.xlu2 %v14673_v21, %s11454_s13  ;;  %vm1593_vm6 = vc.u32 %v1591_v29, %v1587_v41  ;;  %v1568_v57 = vadd.s32 %v1567_v50, %v1557_v15  ;;  %v19354_v48 = vrot.slane %v14623_v28, 1  ;;  %v19355_v31 = vrot.slane %v14586_v1, 1  ;;  %v14697_v23 = vpop.f32.mrf.mxu3  ;;  %v3638_v41 = vpop.f32.mrf.mxu2 }
 0x2b9   : > { %v3887_v47 = vmul.f32 %v14671_v55, %v19353_v8  ;;  %10782 = vmatmul.msk.f32.gmra.mxu1 %vm4597_vm9, %v5139_v63  ;;  %v14690_v18 = vsel %vm4395_vm14, %v4372_v61, %v4252_v19  ;;  %v1594_v58 = vsel %vm1593_vm6, 1, %v19184_v35  ;;  %v3276_v63 = vadd.f32 %v14504_v17, %v14602_v12  ;;  %v4103_v29 = vpop.permute.xlu2 %4102 }
 0x2ba   : > { %v4550_v40 = vsel %vm2673_vm4, %v19355_v31, %v19354_v48  ;;  %v1588_v13 = vshrl.u32 %v14651_v51, 16  ;;  %v1596_v15 = vadd.s32 %v1594_v58, %v1592_v5  ;;  %v14701_v52 = vadd.s32 352, %v11809_v42 }
 0x2bb   : > { %3935 = vst.msk [vmem:[#allocation2 + $0x178] sm:$0xff] %vm2104_vm2, %v3887_v47  ;;  %10699 = vmatmul.msk.f32.gmra.mxu3 %vm4597_vm9, %v4550_v40  ;;  %v19045_v61 = vrot.slane %v14118_v16, 2  ;;  %v1569_v50 = vadd.s32 %v1568_v57, %v1559_v33  ;;  %v3279_v54 = vadd.f32 %v14555_v39, %v3018_v43  ;;  %v4551_v8 = vrot.slane %v14690_v18, 1  ;;  %v3021_v33 = vpop.f32.mrf.mxu0  ;;  %v14715_v57 = vpop.f32.mrf.mxu1  ;;  %v11367_v39 = vld [vmem:[#allocation2 + $0xef] sm:$0xff] }
 0x2bc   : > { %v14707_v17 = vadd.f32 %v14646_v2, %v3276_v63  ;;  %v1597_v12 = vadd.s32 %v1596_v15, %v1586_v4  ;;  %v1607_v47 = vand.u32 65535, %v14701_v52  ;;  %v1608_v51 = vshrl.u32 %v14701_v52, 16 }
 0x2bd   : > { %v1570_v48 = vshrl.u32 %v1569_v50, 4  ;;  %v14713_v31 = vadd.f32 %v3638_v41, %v3279_v54  ;;  %v4373_v43 = vsel %vm2104_vm2, %v11367_v39, %v4103_v29  ;;  %10734 = vmatmul.msk.f32.gmra.mxu0 %vm4597_vm9, %v13917_v45  ;;  %v19358_v63 = vrot.slane %v14071_v49, 2 }
 0x2be   : > { %19356 = vst [vmem:[#allocation85_spill] sm:$0xff] %v14707_v17  ;;  %v1598_v2 = vadd.s32 %v1597_v12, %v1588_v13  ;;  %v1610_v4 = vmul.u32 43691, %v1607_v47  ;;  %v14720_v40 = vmul.u32 43690, %v1607_v47  ;;  %v19359_v15 = vrot.slane %v13982_v14, 2 }
 0x2bf   : > { %19357 = vst [vmem:[#allocation86_spill] sm:$0xff] %v14713_v31  ;;  %v1571_v58 = vmul.u32 24, %v1570_v48  ;;  %v19360_v50 = vrot.slane %v14623_v28, 1  ;;  %v14732_v13 = vmul.u32 43691, %v1608_v51  ;;  %v14739_v12 = vadd.f32 %v14604_v25, %v3021_v33 }
 0x2c0   : > { %v5141_v41 = vsel %vm3295_vm5, %v19359_v15, %v19358_v63  ;;  %4126 = vrot.lane.b32.xlu2 %v14612_v3, %s11451_s8  ;;  %v1599_v54 = vshrl.u32 %v1598_v2, 4  ;;  %v1614_v47 = vshll.u32 %v14720_v40, 16  ;;  %v4105_v15 = vpop.permute.xlu1 %4104  ;;  %v19361_v3 = vmov %v19358_v63 }
 0x2c1   : > { %v4552_v29 = vsel %vm2673_vm4, %v19360_v50, %v4551_v8  ;;  %10783 = vmatmul.msk.f32.gmra.mxu1 %vm4597_vm9, %v5141_v41  ;;  %v1572_v39 = vsub.s32 %v14599_v0, %v1571_v58  ;;  %v4254_v50 = vpop.permute.xlu0 %4253  ;;  %v5143_v2 = vsel %vm3295_vm5, %v19361_v3, %v19045_v61  ;;  %v14752_v41 = vadd.s32 360, %v11809_v42  ;;  %v14757_v0 = vpop.f32.mrf.mxu3  ;;  %v11368_v61 = vld [vmem:[#allocation2 + $0xf7] sm:$0xff] }
 0x2c2   : > { %v14742_v48 = vld [vmem:[#allocation2 + $0x177] sm:$0xff]  ;;  %v1600_v25 = vmul.u32 24, %v1599_v54  ;;  %v14760_v33 = vsel %vm4395_vm14, %v4373_v43, %v4254_v50  ;;  %v1613_v58 = vmul.u32 43690, %v1608_v51  ;;  %vm1618_vm7 = vc.u32 %v1610_v4, %v1614_v47 }
 0x2c3   : > { %4275 = vrot.lane.b32.xlu1 %v14742_v48, %s11454_s13  ;;  %10700 = vmatmul.msk.f32.gmra.mxu3 %vm4597_vm9, %v4552_v29  ;;  %vm1762_vm8 = vcmp.ne.s32.totalorder %v1572_v39, 0  ;;  %vm1810_vm10 = vcmp.lt.s32.totalorder %v1572_v39, 0  ;;  %v1906_v5 = vadd.s32 24, %v1572_v39  ;;  %v1616_v3 = vshll.u32 %v14732_v13, 16 }
 0x2c4   : > { %vm1858_vm11 = vmand %vm1810_vm10, %vm1762_vm8  ;;  %v1601_v63 = vsub.s32 %v14607_v53, %v1600_v25  ;;  %v4374_v54 = vsel %vm2104_vm2, %v11368_v61, %v4105_v15  ;;  %v19046_v29 = vrot.slane %v14760_v33, 1  ;;  %v1615_v19 = vshrl.u32 %v14720_v40, 16  ;;  %v14776_v40 = vpop.f32.mrf.mxu1 }
 0x2c5   : > { %v1954_v45 = vsel %vm1858_vm11, %v1906_v5, %v1572_v39  ;;  %v1619_v43 = vsel %vm1618_vm7, 1, %v19184_v35  ;;  %v1620_v51 = vadd.s32 %v1614_v47, %v1610_v4  ;;  %v1636_v50 = vand.u32 65535, %v14752_v41  ;;  %10735 = vmatmul.msk.f32.gmra.mxu0 %vm4597_vm9, %v13982_v14  ;;  %v3641_v4 = vpop.f32.mrf.mxu2  ;;  %v4256_v47 = vpop.permute.xlu2 %4255 }
 0x2c6   : > { %vm2002_vm12 = vcmp.ge.s32.totalorder %v1954_v45, 1  ;;  %vm2050_vm13 = vcmp.le.s32.totalorder %v1954_v45, 16  ;;  %vm1763_vm15 = vcmp.ne.s32.totalorder %v1601_v63, 0  ;;  %vm1811_vm1 = vcmp.lt.s32.totalorder %v1601_v63, 0 }
 0x2c7   : > { %vm2098_vm3 = vmand %vm2002_vm12, %vm2050_vm13  ;;  %v1907_v53 = vadd.s32 24, %v1601_v63  ;;  %v4554_v61 = vsel %vm2673_vm4, %v4551_v8, %v19046_v29  ;;  %v1621_v5 = vadd.s32 %v1619_v43, %v1613_v58  ;;  %vm1622_vm0 = vc.u32 %v1620_v51, %v1616_v3  ;;  %v3024_v51 = vpop.f32.mrf.mxu0 }
 0x2c8   : > { %v14779_v45 = vsel %vm2098_vm3, 1.0, %v19185_v30  ;;  %vm1859_vm6 = vmand %vm1811_vm1, %vm1763_vm15  ;;  %v1617_v14 = vshrl.u32 %v14732_v13, 16  ;;  %v1623_v39 = vsel %vm1622_vm0, 1, %v19184_v35  ;;  %v1637_v15 = vshrl.u32 %v14752_v41, 16 }
 0x2c9   : > { %19362 = vst [vmem:[#allocation87_spill] sm:$0xff] %v14779_v45  ;;  %10784 = vmatmul.msk.f32.gmra.mxu1 %vm4597_vm9, %v5143_v2  ;;  %v19363_v8 = vmax.f32 %v14707_v17, 0.0  ;;  %v1955_v58 = vsel %vm1859_vm6, %v1907_v53, %v1601_v63  ;;  %v14789_v3 = vsel %vm4395_vm14, %v4374_v54, %v4256_v47  ;;  %v1625_v43 = vadd.s32 %v1623_v39, %v1621_v5  ;;  %v14794_v13 = vpop.f32.mrf.mxu3 }
 0x2ca   : > { %vm2003_vm7 = vcmp.ge.s32.totalorder %v1955_v58, 1  ;;  %vm2051_vm8 = vcmp.le.s32.totalorder %v1955_v58, 16  ;;  %v1639_v2 = vmul.u32 43691, %v1636_v50  ;;  %v1640_v29 = vmul.u32 43690, %v1636_v50 }
 0x2cb   : > { %v3888_v25 = vmul.f32 %v14779_v45, %v19363_v8  ;;  %4128 = vrot.lane.b32.xlu1 %v14673_v21, %s11451_s8  ;;  %10701 = vmatmul.msk.f32.gmra.mxu3 %vm4597_vm9, %v4554_v61  ;;  %vm2099_vm10 = vmand %vm2003_vm7, %vm2051_vm8  ;;  %v1626_v63 = vadd.s32 %v1625_v43, %v1615_v19  ;;  %v19364_v54 = vrot.slane %v14166_v26, 2  ;;  %v19365_v53 = vrot.slane %v14118_v16, 2 }
 0x2cc   : > { %v1641_v5 = vmul.u32 43691, %v1637_v15  ;;  %v14804_v47 = vsel %vm2099_vm10, 1.0, %v19185_v30  ;;  %v14807_v61 = vadd.f32 %v3641_v4, %v14739_v12  ;;  %v1642_v50 = vmul.u32 43690, %v1637_v15 }
 0x2cd   : > { %3936 = vst.msk [vmem:[#allocation2 + $0x180] sm:$0xff] %vm2104_vm2, %v3888_v25  ;;  %v5145_v21 = vsel %vm3295_vm5, %v19365_v53, %v19364_v54  ;;  %v1643_v39 = vshll.u32 %v1640_v29, 16  ;;  %v19367_v8 = vmax.f32 %v14713_v31, 0.0  ;;  %v19049_v19 = vrot.slane %v14789_v3, 1  ;;  %10736 = vmatmul.msk.f32.gmra.mxu0 %vm4597_vm9, %v14071_v49 }
 0x2ce   : > { %19366 = vst [vmem:[#allocation88_spill] sm:$0xff] %v14804_v47  ;;  %v1627_v58 = vadd.s32 %v1626_v63, %v1617_v14  ;;  %v1645_v43 = vshll.u32 %v1641_v5, 16  ;;  %v19368_v54 = vrot.slane %v14223_v6, 2  ;;  %v19369_v53 = vrot.slane %v14166_v26, 2  ;;  %v4107_v63 = vpop.permute.xlu0 %4106 }
 0x2cf   : > { %v3889_v25 = vmul.f32 %v14804_v47, %v19367_v8  ;;  %vm1647_vm11 = vc.u32 %v1639_v2, %v1643_v39  ;;  %v1649_v17 = vadd.s32 %v1643_v39, %v1639_v2  ;;  %v14821_v12 = vadd.s32 368, %v11809_v42  ;;  %v3027_v47 = vpop.f32.mrf.mxu0 }
 0x2d0   : > { %v5147_v46 = vsel %vm3295_vm5, %v19369_v53, %v19368_v54  ;;  %v1628_v4 = vshrl.u32 %v1627_v58, 4  ;;  %v3285_v14 = vadd.f32 %v14661_v38, %v3024_v51  ;;  %v1644_v15 = vshrl.u32 %v1640_v29, 16  ;;  %v3644_v51 = vpop.f32.mrf.mxu2  ;;  %v14835_v53 = vpop.f32.mrf.mxu1 }
 0x2d1   : > { %3937 = vst.msk [vmem:[#allocation2 + $0x188] sm:$0xff] %vm2104_vm2, %v3889_v25  ;;  %v1648_v2 = vsel %vm1647_vm11, 1, %v19184_v35  ;;  %10785 = vmatmul.msk.f32.gmra.mxu1 %vm4597_vm9, %v5145_v21  ;;  %vm1651_vm12 = vc.u32 %v1649_v17, %v1645_v43  ;;  %v1665_v8 = vand.u32 65535, %v14821_v12  ;;  %v1666_v49 = vshrl.u32 %v14821_v12, 16  ;;  %v14840_v17 = vpop.f32.mrf.mxu3 }
 0x2d2   : > { %v1650_v39 = vadd.s32 %v1648_v2, %v1642_v50  ;;  %v1629_v54 = vmul.u32 24, %v1628_v4  ;;  %v19370_v25 = vrot.slane %v14760_v33, 1  ;;  %v1646_v38 = vshrl.u32 %v1641_v5, 16  ;;  %19371 = vst [vmem:[#allocation89_spill] sm:$0xff] %v14840_v17 }
 0x2d3   : > { %v1652_v29 = vsel %vm1651_vm12, 1, %v19184_v35  ;;  %v1668_v43 = vmul.u32 43691, %v1665_v8  ;;  %v1669_v4 = vmul.u32 43690, %v1665_v8  ;;  %v14842_v2 = vmul.u32 43691, %v1666_v49 }
 0x2d4   : > { %v4556_v58 = vsel %vm2673_vm4, %v19370_v25, %v19049_v19  ;;  %v14837_v21 = vld [vmem:[#allocation2 + $0x17f] sm:$0xff]  ;;  %v1654_v50 = vadd.s32 %v1652_v29, %v1650_v39  ;;  %v1630_v5 = vsub.s32 %v14701_v52, %v1629_v54  ;;  %v14852_v39 = vadd.f32 %v3644_v51, %v3285_v14  ;;  %v4258_v14 = vpop.permute.xlu1 %4257 }
 0x2d5   : > { %10702 = vmatmul.msk.f32.gmra.mxu3 %vm4597_vm9, %v4556_v58  ;;  %4277 = vrot.lane.b32.xlu0 %v14837_v21, %s11454_s13  ;;  %v11369_v19 = vld [vmem:[#allocation2 + $0xff] sm:$0xff]  ;;  %v14850_v58 = vadd.s32 376, %v11809_v42  ;;  %v1671_v8 = vmul.u32 43690, %v1666_v49  ;;  %v1672_v29 = vshll.u32 %v1669_v4, 16  ;;  %v1674_v17 = vshll.u32 %v14842_v2, 16 }
 0x2d6   : > { %v4375_v31 = vsel %vm2104_vm2, %v11369_v19, %v4107_v63  ;;  %v1655_v45 = vadd.s32 %v1654_v50, %v1644_v15  ;;  %vm1764_vm13 = vcmp.ne.s32.totalorder %v1630_v5, 0  ;;  %vm1812_vm15 = vcmp.lt.s32.totalorder %v1630_v5, 0  ;;  %10737 = vmatmul.msk.f32.gmra.mxu0 %vm4597_vm9, %v14118_v16 }
 0x2d7   : > { %v1908_v55 = vadd.s32 24, %v1630_v5  ;;  %vm1860_vm1 = vmand %vm1812_vm15, %vm1764_vm13  ;;  %v1673_v25 = vshrl.u32 %v1669_v4, 16  ;;  %vm1676_vm3 = vc.u32 %v1668_v43, %v1672_v29  ;;  %v1678_v19 = vadd.s32 %v1672_v29, %v1668_v43 }
 0x2d8   : > { %v14855_v52 = vld [vmem:[#allocation2 + $0x187] sm:$0xff]  ;;  %v1656_v54 = vadd.s32 %v1655_v45, %v1646_v38  ;;  %v1677_v15 = vsel %vm1676_vm3, 1, %v19184_v35  ;;  %v1694_v63 = vand.u32 65535, %v14850_v58  ;;  %v1695_v49 = vshrl.u32 %v14850_v58, 16 }
 0x2d9   : > { %v1956_v42 = vsel %vm1860_vm1, %v1908_v55, %v1630_v5  ;;  %4279 = vrot.lane.b32.xlu2 %v14855_v52, %s11454_s13  ;;  %v14865_v45 = vsel %vm4395_vm14, %v4375_v31, %v4258_v14  ;;  %10786 = vmatmul.msk.f32.gmra.mxu1 %vm4597_vm9, %v5147_v46  ;;  %v1675_v55 = vshrl.u32 %v14842_v2, 16  ;;  %v1679_v51 = vadd.s32 %v1677_v15, %v1671_v8  ;;  %v14873_v4 = vpop.f32.mrf.mxu3 }
 0x2da   : > { %vm2004_vm0 = vcmp.ge.s32.totalorder %v1956_v42, 1  ;;  %vm2052_vm6 = vcmp.le.s32.totalorder %v1956_v42, 16  ;;  %v1657_v38 = vshrl.u32 %v1656_v54, 4  ;;  %v19057_v16 = vrot.slane %v14865_v45, 1  ;;  %v14886_v54 = vpop.f32.mrf.mxu1 }
 0x2db   : > { %vm2100_vm7 = vmand %vm2004_vm0, %vm2052_vm6  ;;  %vm1680_vm8 = vc.u32 %v1678_v19, %v1674_v17  ;;  %v1697_v31 = vmul.u32 43691, %v1694_v63  ;;  %v19373_v29 = vmax.f32 %v14807_v61, 0.0  ;;  %v19374_v17 = vrot.slane %v14789_v3, 1  ;;  %v14888_v19 = vpop.f32.mrf.mxu0 }
 0x2dc   : > { %v14871_v50 = vsel %vm2100_vm7, 1.0, %v19185_v30  ;;  %v1658_v43 = vmul.u32 24, %v1657_v38  ;;  %v1681_v5 = vsel %vm1680_vm8, 1, %v19184_v35  ;;  %v14890_v42 = vmul.u32 43690, %v1694_v63 }
 0x2dd   : > { %19372 = vst [vmem:[#allocation90_spill] sm:$0xff] %v14871_v50  ;;  %v3890_v46 = vmul.f32 %v14871_v50, %v19373_v29  ;;  %4130 = vrot.lane.b32.xlu0 %v14742_v48, %s11451_s8  ;;  %v4558_v2 = vsel %vm2673_vm4, %v19374_v17, %v19057_v16  ;;  %v1683_v8 = vadd.s32 %v1681_v5, %v1679_v51  ;;  %v14894_v15 = vmul.u32 43691, %v1695_v49  ;;  %v4109_v48 = vpop.permute.xlu2 %4108 }
 0x2de   : > { %v1659_v14 = vsub.s32 %v14752_v41, %v1658_v43  ;;  %10703 = vmatmul.msk.f32.gmra.mxu3 %vm4597_vm9, %v4558_v2  ;;  %v3288_v38 = vadd.f32 %v14715_v57, %v3027_v47  ;;  %v1701_v51 = vshll.u32 %v14890_v42, 16  ;;  %10738 = vmatmul.msk.f32.gmra.mxu0 %vm4597_vm9, %v14166_v26  ;;  %v1700_v63 = vmul.u32 43690, %v1695_v49  ;;  %v4111_v2 = vpop.permute.xlu1 %4110 }
 0x2df   : > { %3938 = vst.msk [vmem:[#allocation2 + $0x190] sm:$0xff] %vm2104_vm2, %v3890_v46  ;;  %v1684_v29 = vadd.s32 %v1683_v8, %v1673_v25  ;;  %v3647_v46 = vpop.f32.mrf.mxu2  ;;  %v19375_v57 = vrot.slane %v14265_v37, 2  ;;  %v19376_v47 = vrot.slane %v14223_v6, 2  ;;  %v1703_v26 = vshll.u32 %v14894_v15, 16  ;;  %v11370_v8 = vld [vmem:[#allocation2 + $0x107] sm:$0xff] }
 0x2e0   : > { %vm1765_vm10 = vcmp.ne.s32.totalorder %v1659_v14, 0  ;;  %vm1813_vm11 = vcmp.lt.s32.totalorder %v1659_v14, 0  ;;  %v1909_v5 = vadd.s32 24, %v1659_v14  ;;  %vm1705_vm13 = vc.u32 %v1697_v31, %v1701_v51 }
 0x2e1   : > { %4132 = vrot.lane.b32.xlu2 %v14837_v21, %s11451_s8  ;;  %vm1861_vm12 = vmand %vm1813_vm11, %vm1765_vm10  ;;  %v1685_v43 = vadd.s32 %v1684_v29, %v1675_v55  ;;  %v5149_v25 = vsel %vm3295_vm5, %v19376_v47, %v19375_v57  ;;  %v1706_v21 = vsel %vm1705_vm13, 1, %v19184_v35  ;;  %v1707_v49 = vadd.s32 %v1701_v51, %v1697_v31  ;;  %v4260_v29 = vpop.permute.xlu0 %4259  ;;  %v14919_v57 = vpop.f32.mrf.mxu3  ;;  %v11371_v51 = vld [vmem:[#allocation2 + $0x10f] sm:$0xff] }
 0x2e2   : > { %v1957_v17 = vsel %vm1861_vm12, %v1909_v5, %v1659_v14  ;;  %10787 = vmatmul.msk.f32.gmra.mxu1 %vm4597_vm9, %v5149_v25  ;;  %v4376_v55 = vsel %vm2104_vm2, %v11370_v8, %v4109_v48  ;;  %v14917_v5 = vadd.f32 %v3647_v46, %v3288_v38  ;;  %v1708_v47 = vadd.s32 %v1706_v21, %v1700_v63  ;;  %v14941_v41 = vpop.f32.mrf.mxu1 }
 0x2e3   : > { %vm2005_vm15 = vcmp.ge.s32.totalorder %v1957_v17, 1  ;;  %vm2053_vm1 = vcmp.le.s32.totalorder %v1957_v17, 16  ;;  %v1686_v16 = vshrl.u32 %v1685_v43, 4  ;;  %v14915_v14 = vsel %vm4395_vm14, %v4376_v55, %v4260_v29  ;;  %v4968_v17 = vpop.f32.mrf.mxu0 }
 0x2e4   : > { %vm2101_vm3 = vmand %vm2005_vm15, %vm2053_vm1  ;;  %v4377_v48 = vsel %vm2104_vm2, %v11371_v51, %v4111_v2  ;;  %v4559_v25 = vrot.slane %v14915_v14, 1  ;;  %v19378_v8 = vmax.f32 %v14852_v39, 0.0  ;;  %v1702_v38 = vshrl.u32 %v14890_v42, 16 }
 0x2e5   : > { %v14922_v31 = vsel %vm2101_vm3, 1.0, %v19185_v30  ;;  %v1687_v43 = vmul.u32 24, %v1686_v16  ;;  %vm1709_vm0 = vc.u32 %v1707_v49, %v1703_v26  ;;  %v4969_v63 = vadd.f32 %v4968_v17, %v14313_v34  ;;  %v4262_v46 = vpop.permute.xlu2 %4261 }
 0x2e6   : > { %19377 = vst [vmem:[#allocation91_spill] sm:$0xff] %v14922_v31  ;;  %v3891_v55 = vmul.f32 %v14922_v31, %v19378_v8  ;;  %v14929_v29 = vld [vmem:[#allocation2 + $0x18f] sm:$0xff]  ;;  %v19379_v16 = vrot.slane %v14865_v45, 1  ;;  %v1704_v51 = vshrl.u32 %v14894_v15, 16  ;;  %v1710_v8 = vsel %vm1709_vm0, 1, %v19184_v35  ;;  %10739 = vmatmul.msk.f32.gmra.mxu0 %vm4597_vm9, %v14223_v6 }
 0x2e7   : > { %4281 = vrot.lane.b32.xlu1 %v14929_v29, %s11454_s13  ;;  %v1688_v2 = vsub.s32 %v14821_v12, %v1687_v43  ;;  %v14945_v34 = vsel %vm4395_vm14, %v4377_v48, %v4262_v46  ;;  %v1712_v42 = vadd.s32 %v1710_v8, %v1708_v47  ;;  %v5469_v12 = vadd.f32 %v14835_v53, %v4969_v63 }
 0x2e8   : > { %v4560_v21 = vsel %vm2673_vm4, %v19379_v16, %v4559_v25  ;;  %3939 = vst.msk [vmem:[#allocation2 + $0x198] sm:$0xff] %vm2104_vm2, %v3891_v55  ;;  %v19380_v35 = vrot.slane %v14323_v56, 2  ;;  %v19381_v26 = vrot.slane %v14265_v37, 2  ;;  %v4561_v47 = vrot.slane %v14945_v34, 1 }
 0x2e9   : > { %10704 = vmatmul.msk.f32.gmra.mxu3 %vm4597_vm9, %v4560_v21  ;;  %vm1766_vm6 = vcmp.ne.s32.totalorder %v1688_v2, 0  ;;  %vm1814_vm7 = vcmp.lt.s32.totalorder %v1688_v2, 0  ;;  %v1910_v15 = vadd.s32 24, %v1688_v2  ;;  %v1713_v48 = vadd.s32 %v1712_v42, %v1702_v38  ;;  %v14959_v55 = vpop.f32.mrf.mxu3 }
 0x2ea   : > { %v5151_v49 = vsel %vm3295_vm5, %v19381_v26, %v19380_v35  ;;  %vm1862_vm8 = vmand %vm1814_vm7, %vm1766_vm6  ;;  %v5517_v43 = vmax.f32 %v5469_v12, 0.0  ;;  %v19059_v17 = vmax.f32 %v14917_v5, 0.0  ;;  %v5152_v63 = vrot.slane %v14368_v22, 2  ;;  %v3650_v12 = vpop.f32.mrf.mxu2 }
 0x2eb   : > { %10788 = vmatmul.msk.f32.gmra.mxu1 %vm4597_vm9, %v5151_v49  ;;  %v1958_v53 = vsel %vm1862_vm8, %v1910_v15, %v1688_v2  ;;  %v1714_v6 = vadd.s32 %v1713_v48, %v1704_v51  ;;  %v4971_v16 = vpop.f32.mrf.mxu0  ;;  %v4562_v42 = vsel %vm2673_vm4, %v4559_v25, %v4561_v47 }
 0x2ec   : > { %vm2006_vm10 = vcmp.ge.s32.totalorder %v1958_v53, 1  ;;  %vm2054_vm11 = vcmp.le.s32.totalorder %v1958_v53, 16  ;;  %10819 = vmatmul.msk.f32.vlgmr.msrb.gmra.mxu2 %vm2104_vm2, %v5517_v43  ;;  %v6176_v46 = vmul.f32 %v12097_v59, %v5517_v43  ;;  %v4972_v2 = vadd.f32 %v4971_v16, %v14358_v9  ;;  %v5334_v25 = vpop.f32.mrf.mxu1  ;;  %v4113_v16 = vpop.permute.xlu0 %4112 }
 0x2ed   : > { %vm2102_vm12 = vmand %vm2006_vm10, %vm2054_vm11  ;;  %v1715_v21 = vshrl.u32 %v1714_v6, 4  ;;  %v3291_v9 = vadd.f32 %v14776_v40, %v14888_v19  ;;  %v5154_v53 = vrot.slane %v14422_v11, 2 }
 0x2ee   : > { %v14965_v38 = vsel %vm2102_vm12, 1.0, %v19185_v30  ;;  %6224 = vst.msk [vmem:[#allocation2 + $0x30] sm:$0xff] %vm2104_vm2, %v6176_v46  ;;  %v5470_v35 = vadd.f32 %v14886_v54, %v4972_v2  ;;  %10740 = vmatmul.msk.f32.gmra.mxu0 %vm4597_vm9, %v14265_v37 }
 0x2ef   : > { %19382 = vst [vmem:[#allocation92_spill] sm:$0xff] %v14965_v38  ;;  %v3892_v51 = vmul.f32 %v14965_v38, %v19059_v17  ;;  %4134 = vrot.lane.b32.xlu1 %v14855_v52, %s11451_s8  ;;  %v3991_v8 = vld [vmem:[#allocation2 + $0x197] sm:$0xff]  ;;  %v1716_v15 = vmul.u32 24, %v1715_v21  ;;  %v19383_v52 = vrot.slane %v14323_v56, 2  ;;  %v14989_v48 = vadd.f32 %v3650_v12, %v3291_v9 }
 0x2f0   : > { %4283 = vrot.lane.b32.xlu0 %v3991_v8, %s11454_s13  ;;  %v5518_v40 = vmax.f32 %v5470_v35, 0.0  ;;  %v11372_v9 = vld [vmem:[#allocation2 + $0x117] sm:$0xff] }
 0x2f1   : > { %10705 = vmatmul.msk.f32.gmra.mxu3 %vm4597_vm9, %v4562_v42  ;;  %3940 = vst.msk [vmem:[#allocation2 + $0x1a0] sm:$0xff] %vm2104_vm2, %v3892_v51  ;;  %v5153_v26 = vsel %vm3295_vm5, %v19383_v52, %v5152_v63  ;;  %v1717_v49 = vsub.s32 %v14850_v58, %v1716_v15  ;;  %v14992_v19 = vpop.f32.mrf.mxu3  ;;  %v19058_v58 = vmax.f32 %v14989_v48, 0.0  ;;  %v5155_v42 = vsel %vm3295_vm5, %v5152_v63, %v5154_v53 }
 0x2f2   : > { %v6177_v43 = vmul.f32 %v12112_v27, %v5518_v40  ;;  %v5156_v52 = vrot.slane %v14473_v24, 2 }
 0x2f3   : > { %10789 = vmatmul.msk.f32.gmra.mxu1 %vm4597_vm9, %v5153_v26  ;;  %vm1767_vm13 = vcmp.ne.s32.totalorder %v1717_v49, 0  ;;  %vm1815_vm15 = vcmp.lt.s32.totalorder %v1717_v49, 0  ;;  %v1911_v54 = vadd.s32 24, %v1717_v49  ;;  %v4974_v37 = vpop.f32.mrf.mxu0 }
 0x2f4   : > { %10820 = vmatmul.msk.f32.gmra.mxu2 %vm2104_vm2, %v5518_v40  ;;  %vm1863_vm1 = vmand %vm1815_vm15, %vm1767_vm13  ;;  %6225 = vst.msk [vmem:[#allocation2 + $0x38] sm:$0xff] %vm2104_vm2, %v6177_v43  ;;  %v4975_v46 = vadd.f32 %v4974_v37, %v14411_v10 }
 0x2f5   : > { %v1959_v6 = vsel %vm1863_vm1, %v1911_v54, %v1717_v49  ;;  %v4115_v54 = vpop.permute.xlu2 %4114 }
 0x2f6   : > { %vm2007_vm3 = vcmp.ge.s32.totalorder %v1959_v6, 1  ;;  %vm2055_vm0 = vcmp.le.s32.totalorder %v1959_v6, 16  ;;  %v5471_v2 = vadd.f32 %v14941_v41, %v4975_v46  ;;  %10741 = vmatmul.msk.f32.gmra.mxu0 %vm4597_vm9, %v14323_v56  ;;  %v4378_v41 = vsel %vm2104_vm2, %v11372_v9, %v4113_v16  ;;  %v11373_v16 = vld [vmem:[#allocation2 + $0x11f] sm:$0xff] }
 0x2f7   : > { %vm2103_vm6 = vmand %vm2007_vm3, %vm2055_vm0  ;;  %v5337_v15 = vpop.f32.mrf.mxu1  ;;  %v5157_v6 = vsel %vm3295_vm5, %v5154_v53, %v5156_v52  ;;  %v11374_v53 = vld [vmem:[#allocation2 + $0x127] sm:$0xff] }
 0x2f8   : > { %4136 = vrot.lane.b32.xlu0 %v14929_v29, %s11451_s8  ;;  %v15002_v21 = vld [vmem:[#allocation2 + $0x19f] sm:$0xff]  ;;  %v15006_v51 = vsel %vm2103_vm6, 1.0, %v19185_v30  ;;  %v5519_v12 = vmax.f32 %v5471_v2, 0.0  ;;  %v4264_v30 = vpop.permute.xlu1 %4263 }
 0x2f9   : > { %19384 = vst [vmem:[#allocation93_spill] sm:$0xff] %v15006_v51  ;;  %4285 = vrot.lane.b32.xlu2 %v15002_v21, %s11454_s13  ;;  %v3893_v10 = vmul.f32 %v15006_v51, %v19058_v58  ;;  %v15020_v35 = vsel %vm4395_vm14, %v4378_v41, %v4264_v30  ;;  %v15022_v63 = vpop.f32.mrf.mxu3 }
 0x2fa   : > { %v6178_v56 = vmul.f32 %v12188_v20, %v5519_v12  ;;  %v4563_v26 = vrot.slane %v15020_v35, 1 }
 0x2fb   : > { %10790 = vmatmul.msk.f32.gmra.mxu1 %vm4597_vm9, %v5155_v42  ;;  %3941 = vst.msk [vmem:[#allocation2 + $0x1a8] sm:$0xff] %vm2104_vm2, %v3893_v10  ;;  %v4977_v49 = vpop.f32.mrf.mxu0 }
 0x2fc   : > { %10821 = vmatmul.msk.f32.gmra.mxu2 %vm2104_vm2, %v5519_v12  ;;  %6226 = vst.msk [vmem:[#allocation2 + $0x40] sm:$0xff] %vm2104_vm2, %v6178_v56  ;;  %v4978_v40 = vadd.f32 %v4977_v49, %v14465_v60  ;;  %v4564_v43 = vsel %vm2673_vm4, %v4561_v47, %v4563_v26  ;;  %v4379_v60 = vsel %vm2104_vm2, %v11373_v16, %v4115_v54  ;;  %v3996_v49 = vld [vmem:[#allocation2 + $0x1b7] sm:$0xff]  ;;  %v7442_v54 = vld [vmem:[%s18866_s3 + $0x40] sm:$0xff] }
 0x2fd   : > { %10706 = vmatmul.msk.f32.gmra.mxu3 %vm4597_vm9, %v4564_v43  ;;  %v4268_v43 = vpop.permute.xlu2 %4267  ;;  %7649 = vmatpush.msra.mxu2 %v7442_v54 }
 0x2fe   : > { %v5472_v37 = vadd.f32 %v5334_v25, %v4978_v40  ;;  %10742 = vmatmul.msk.f32.gmra.mxu0 %vm4597_vm9, %v14368_v22  ;;  %v5158_v25 = vrot.slane %v14498_v62, 2 }
 0x2ff   : > { %v4266_v42 = vpop.permute.xlu0 %4265 }
 0x300   : > { %v5520_v46 = vmax.f32 %v5472_v37, 0.0  ;;  %v4117_v2 = vpop.permute.xlu1 %4116  ;;  %v15041_v12 = vsel %vm4395_vm14, %v4379_v60, %v4266_v42  ;;  %v5340_v30 = vpop.f32.mrf.mxu1  ;;  %v5159_v16 = vsel %vm3295_vm5, %v5156_v52, %v5158_v25  ;;  %v6776_v60 = vld [vmem:[%s18866_s3 + $0x10] sm:$0xff] }
 0x301   : > { %4138 = vrot.lane.b32.xlu2 %v3991_v8, %s11451_s8  ;;  %v15045_v8 = vpop.f32.mrf.mxu3  ;;  %v4380_v9 = vsel %vm2104_vm2, %v11374_v53, %v4117_v2  ;;  %v4565_v41 = vrot.slane %v15041_v12, 1  ;;  %7292 = vmatpush.msra.mxu1 %v6776_v60  ;;  %v5160_v2 = vrot.slane %v14539_v44, 2 }
 0x302   : > { %v3995_v10 = vld [vmem:[#allocation2 + $0x1af] sm:$0xff]  ;;  %v3993_v47 = vld [vmem:[#allocation2 + $0x1a7] sm:$0xff]  ;;  %v6179_v22 = vmul.f32 %v12274_v7, %v5520_v46 }
 0x303   : > { %10791 = vmatmul.msk.f32.gmra.mxu1 %vm4597_vm9, %v5157_v6  ;;  %4289 = vrot.lane.b32.xlu0 %v3995_v10, %s11454_s13  ;;  %v4980_v56 = vpop.f32.mrf.mxu0  ;;  %v4566_v37 = vsel %vm2673_vm4, %v4563_v26, %v4565_v41  ;;  %v15059_v6 = vsel %vm4395_vm14, %v4380_v9, %v4268_v43  ;;  %v6779_v26 = vld [vmem:[%s18866_s3 + $0x28] sm:$0xff]  ;;  %v19385_v10 = vld [vmem:[#allocation78_spill] sm:$0xff] }
 0x304   : > { %4287 = vrot.lane.b32.xlu1 %v3993_v47, %s11454_s13  ;;  %10822 = vmatmul.msk.f32.gmra.mxu2 %vm2104_vm2, %v5520_v46  ;;  %6227 = vst.msk [vmem:[#allocation2 + $0x48] sm:$0xff] %vm2104_vm2, %v6179_v22  ;;  %v4981_v40 = vadd.f32 %v4980_v56, %v14518_v32  ;;  %v3998_v56 = vld [vmem:[#allocation2 + $0x1c7] sm:$0x3] }
 0x305   : > { %10707 = vmatmul.msk.f32.gmra.mxu3 %vm4597_vm9, %v4566_v37  ;;  %7035 = vmatpush.msra.mxu0 %v6779_v26  ;;  %v6276_v26 = vld [vmem:[#allocation2 + $0x37] sm:$0xff] }
 0x306   : > { %v5473_v46 = vadd.f32 %v5337_v15, %v4981_v40  ;;  %10743 = vmatmul.msk.f32.gmra.mxu0 %vm4597_vm9, %v14422_v11  ;;  %v4567_v15 = vrot.slane %v15059_v6, 1  ;;  %v5161_v40 = vsel %vm3295_vm5, %v5158_v25, %v5160_v2 }
 0x307   : > { %v4119_v37 = vpop.permute.xlu0 %4118 }
 0x308   : > { %v5521_v32 = vmax.f32 %v5473_v46, 0.0  ;;  %v4568_v53 = vsel %vm2673_vm4, %v4565_v41, %v4567_v15  ;;  %v19386_v41 = vld [vmem:[#allocation7_spill] sm:$0xff] }
 0x309   : > { %4291 = vrot.lane.b32.xlu2 %v3996_v49, %s11454_s13  ;;  %v15077_v11 = vpop.f32.mrf.mxu3  ;;  %v3997_v49 = vld [vmem:[#allocation2 + $0x1bf] sm:$0xff] }
 0x30a   : > { %v6180_v52 = vmul.f32 %v12363_v36, %v5521_v32 }
 0x30b   : > { %10792 = vmatmul.msk.f32.gmra.mxu1 %vm4597_vm9, %v5159_v16  ;;  %4142 = vrot.lane.b32.xlu0 %v3993_v47, %s11451_s8  ;;  %v4983_v42 = vpop.f32.mrf.mxu0  ;;  %v5343_v9 = vpop.f32.mrf.mxu1  ;;  %v3994_v47 = vld [vmem:[#allocation2 + $0x1af] sm:$0x3] }
 0x30c   : > { %4140 = vrot.lane.b32.xlu1 %v15002_v21, %s11451_s8  ;;  %10823 = vmatmul.msk.f32.gmra.mxu2 %vm2104_vm2, %v5521_v32  ;;  %6228 = vst.msk [vmem:[#allocation2 + $0x50] sm:$0xff] %vm2104_vm2, %v6180_v52  ;;  %v4984_v22 = vadd.f32 %v4983_v42, %v19385_v10  ;;  %v6278_v10 = vld [vmem:[#allocation2 + $0x47] sm:$0xff] }
 0x30d   : > { %10708 = vmatmul.msk.f32.gmra.mxu3 %vm4597_vm9, %v4568_v53 }
 0x30e   : > { %v5474_v21 = vadd.f32 %v5340_v30, %v4984_v22  ;;  %10744 = vmatmul.msk.f32.gmra.mxu0 %vm4597_vm9, %v14473_v24  ;;  %v5162_v30 = vrot.slane %v14586_v1, 2  ;;  %v11375_v24 = vld [vmem:[#allocation2 + $0x12f] sm:$0xff] }
 0x30f   : > { %v4381_v16 = vsel %vm2104_vm2, %v11375_v24, %v4119_v37  ;;  %v19387_v22 = vld [vmem:[#allocation81_spill] sm:$0xff]  ;;  %v19388_v37 = vld [vmem:[#allocation10_spill] sm:$0xff] }
 0x310   : > { %v5522_v54 = vmax.f32 %v5474_v21, 0.0  ;;  %v5163_v42 = vsel %vm3295_vm5, %v5160_v2, %v5162_v30  ;;  %v6275_v21 = vld [vmem:[#allocation2 + $0x2f] sm:$0xff]  ;;  %v5164_v2 = vrot.slane %v14623_v28, 2 }
 0x311   : > { %4144 = vrot.lane.b32.xlu2 %v3994_v47, %s11451_s8 }
 0x312   : > { %v6181_v43 = vmul.f32 %v19386_v41, %v5522_v54  ;;  %v15095_v46 = vpop.f32.mrf.mxu3 }
 0x313   : > { %10793 = vmatmul.msk.f32.gmra.mxu1 %vm4597_vm9, %v5161_v40  ;;  %4295 = vrot.lane.b32.xlu0 %v3998_v56, %s11454_s13  ;;  %v4986_v60 = vpop.f32.mrf.mxu0  ;;  %v4121_v40 = vpop.permute.xlu2 %4120 }
 0x314   : > { %4293 = vrot.lane.b32.xlu1 %v3997_v49, %s11454_s13  ;;  %10824 = vmatmul.msk.f32.gmra.mxu2 %vm2104_vm2, %v5522_v54  ;;  %6229 = vst.msk [vmem:[#allocation2 + $0x58] sm:$0xff] %vm2104_vm2, %v6181_v43  ;;  %v5346_v25 = vpop.f32.mrf.mxu1  ;;  %v4987_v53 = vadd.f32 %v4986_v60, %v19387_v22  ;;  %v5165_v60 = vsel %vm3295_vm5, %v5162_v30, %v5164_v2 }
 0x316   : > { %v4270_v32 = vpop.permute.xlu1 %4269  ;;  %10745 = vmatmul.msk.f32.gmra.mxu0 %vm4597_vm9, %v14498_v62  ;;  %v5475_v56 = vadd.f32 %v5343_v9, %v4987_v53 }
 0x317   : > { %v15101_v52 = vsel %vm4395_vm14, %v4381_v16, %v4270_v32  ;;  %v6277_v16 = vld [vmem:[#allocation2 + $0x3f] sm:$0xff] }
 0x318   : > { %v4569_v47 = vrot.slane %v15101_v52, 1  ;;  %v5523_v54 = vmax.f32 %v5475_v56, 0.0  ;;  %v19389_v56 = vld [vmem:[#allocation83_spill] sm:$0xff] }
 0x319   : > { %6380 = vrot.lane.b32.xlu2 %v6276_v26, %s11451_s8 }
 0x31a   : > { %v4570_v49 = vsel %vm2673_vm4, %v4567_v15, %v4569_v47  ;;  %v6182_v24 = vmul.f32 %v19388_v37, %v5523_v54  ;;  %v11376_v15 = vld [vmem:[#allocation2 + $0x137] sm:$0xff] }
 0x31b   : > { %10794 = vmatmul.msk.f32.gmra.mxu1 %vm4597_vm9, %v5163_v42  ;;  %6529 = vrot.lane.b32.xlu0 %v6278_v10, %s11454_s13  ;;  %v4382_v32 = vsel %vm2104_vm2, %v11376_v15, %v4121_v40  ;;  %v6279_v42 = vld [vmem:[#allocation2 + $0x4f] sm:$0xff]  ;;  %v4989_v22 = vpop.f32.mrf.mxu0  ;;  %v6280_v53 = vld [vmem:[#allocation2 + $0x57] sm:$0xff]  ;;  %v11377_v40 = vld [vmem:[#allocation2 + $0x13f] sm:$0xff] }
 0x31c   : > { %6378 = vrot.lane.b32.xlu1 %v6275_v21, %s11451_s8  ;;  %10709 = vmatmul.msk.f32.gmra.mxu3 %vm4597_vm9, %v4570_v49  ;;  %6230 = vst.msk [vmem:[#allocation2 + $0x60] sm:$0xff] %vm2104_vm2, %v6182_v24  ;;  %v4990_v49 = vadd.f32 %v4989_v22, %v19389_v56  ;;  %v19390_v22 = vld [vmem:[#allocation12_spill] sm:$0xff] }
 0x31d   : > { %v15115_v62 = vpop.f32.mrf.mxu3  ;;  %10825 = vmatmul.msk.f32.gmra.mxu2 %vm2104_vm2, %v5523_v54 }
 0x31e   : > { %v5349_v43 = vpop.f32.mrf.mxu1  ;;  %v4123_v9 = vpop.permute.xlu1 %4122  ;;  %10746 = vmatmul.msk.f32.gmra.mxu0 %vm4597_vm9, %v14539_v44  ;;  %v5476_v30 = vadd.f32 %v5346_v25, %v4990_v49 }
 0x31f   : > { %v4272_v26 = vpop.permute.xlu0 %4271  ;;  %v4383_v54 = vsel %vm2104_vm2, %v11377_v40, %v4123_v9  ;;  %v4274_v44 = vpop.permute.xlu2 %4273 }
 0x320   : > { %v15126_v21 = vsel %vm4395_vm14, %v4382_v32, %v4272_v26  ;;  %v15137_v32 = vsel %vm4395_vm14, %v4383_v54, %v4274_v44  ;;  %v5524_v26 = vmax.f32 %v5476_v30, 0.0  ;;  %v5168_v30 = vrot.slane %v14760_v33, 2 }
 0x321   : > { %6382 = vrot.lane.b32.xlu2 %v6277_v16, %s11451_s8  ;;  %v4571_v24 = vrot.slane %v15126_v21, 1  ;;  %v5166_v16 = vrot.slane %v14690_v18, 2  ;;  %v4573_v49 = vrot.slane %v15137_v32, 1 }
 0x322   : > { %v6183_v56 = vmul.f32 %v19390_v22, %v5524_v26 }
 0x323   : > { %10795 = vmatmul.msk.f32.gmra.mxu1 %vm4597_vm9, %v5165_v60  ;;  %6533 = vrot.lane.b32.xlu0 %v6280_v53, %s11454_s13  ;;  %v4572_v15 = vsel %vm2673_vm4, %v4569_v47, %v4571_v24  ;;  %v6281_v25 = vld [vmem:[#allocation2 + $0x5f] sm:$0xff]  ;;  %v5167_v40 = vsel %vm3295_vm5, %v5164_v2, %v5166_v16  ;;  %v4992_v58 = vpop.f32.mrf.mxu0  ;;  %v4574_v2 = vsel %vm2673_vm4, %v4571_v24, %v4573_v49 }
 0x324   : > { %6531 = vrot.lane.b32.xlu1 %v6279_v42, %s11454_s13  ;;  %10710 = vmatmul.msk.f32.gmra.mxu3 %vm4597_vm9, %v4572_v15  ;;  %6231 = vst.msk [vmem:[#allocation2 + $0x68] sm:$0xff] %vm2104_vm2, %v6183_v56  ;;  %v4993_v47 = vadd.f32 %v4992_v58, %v14697_v23  ;;  %v5169_v56 = vsel %vm3295_vm5, %v5166_v16, %v5168_v30  ;;  %v5170_v16 = vrot.slane %v14789_v3, 2 }
 0x325   : > { %v15140_v9 = vpop.f32.mrf.mxu3  ;;  %10826 = vmatmul.msk.f32.gmra.mxu2 %vm2104_vm2, %v5524_v26 }
 0x326   : > { %v5352_v60 = vpop.f32.mrf.mxu1  ;;  %10747 = vmatmul.msk.f32.gmra.mxu0 %vm4597_vm9, %v14586_v1  ;;  %v5477_v54 = vadd.f32 %v5349_v43, %v4993_v47  ;;  %v19391_v1 = vld [vmem:[#allocation14_spill] sm:$0xff] }
 0x328   : > { %v5525_v44 = vmax.f32 %v5477_v54, 0.0 }
 0x329   : > { %6535 = vrot.lane.b32.xlu2 %v6281_v25, %s11454_s13 }
 0x32a   : > { %v6184_v26 = vmul.f32 %v19391_v1, %v5525_v44 }
 0x32b   : > { %10796 = vmatmul.msk.f32.gmra.mxu1 %vm4597_vm9, %v5167_v40  ;;  %6386 = vrot.lane.b32.xlu0 %v6279_v42, %s11451_s8  ;;  %v4995_v23 = vpop.f32.mrf.mxu0  ;;  %v6282_v58 = vld [vmem:[#allocation2 + $0x67] sm:$0xff]  ;;  %v4125_v42 = vpop.permute.xlu0 %4124 }
 0x32c   : > { %6384 = vrot.lane.b32.xlu1 %v6278_v10, %s11451_s8  ;;  %10711 = vmatmul.msk.f32.gmra.mxu3 %vm4597_vm9, %v4574_v2  ;;  %6232 = vst.msk [vmem:[#allocation2 + $0x70] sm:$0xff] %vm2104_vm2, %v6184_v26  ;;  %v4996_v43 = vadd.f32 %v4995_v23, %v14757_v0  ;;  %v11378_v40 = vld [vmem:[#allocation2 + $0x147] sm:$0xff]  ;;  %v19392_v26 = vld [vmem:[#allocation17_spill] sm:$0xff]  ;;  %v5171_v0 = vsel %vm3295_vm5, %v5168_v30, %v5170_v16 }
 0x32d   : > { %10827 = vmatmul.msk.f32.gmra.mxu2 %vm2104_vm2, %v5525_v44  ;;  %v15163_v10 = vpop.f32.mrf.mxu3 }
 0x32e   : > { %v5355_v15 = vpop.f32.mrf.mxu1  ;;  %10748 = vmatmul.msk.f32.gmra.mxu0 %vm4597_vm9, %v14623_v28  ;;  %v5478_v24 = vadd.f32 %v5352_v60, %v4996_v43 }
 0x330   : > { %v5526_v54 = vmax.f32 %v5478_v24, 0.0 }
 0x331   : > { %6388 = vrot.lane.b32.xlu2 %v6280_v53, %s11451_s8  ;;  %v4384_v53 = vsel %vm2104_vm2, %v11378_v40, %v4125_v42  ;;  %v5172_v40 = vrot.slane %v14865_v45, 2 }
 0x333   : > { %10797 = vmatmul.msk.f32.gmra.mxu1 %vm4597_vm9, %v5169_v56  ;;  %v6185_v56 = vmul.f32 %v19392_v26, %v5526_v54  ;;  %v4998_v60 = vpop.f32.mrf.mxu0  ;;  %v6283_v23 = vld [vmem:[#allocation2 + $0x6f] sm:$0xff] }
 0x334   : > { %6537 = vrot.lane.b32.xlu1 %v6282_v58, %s11454_s13  ;;  %v4999_v42 = vadd.f32 %v4998_v60, %v14794_v13  ;;  %6539 = vrot.lane.b32.xlu0 %v6283_v23, %s11454_s13 }
 0x335   : > { %v4276_v47 = vpop.permute.xlu1 %4275  ;;  %10828 = vmatmul.msk.f32.gmra.mxu2 %vm2104_vm2, %v5526_v54  ;;  %6233 = vst.msk [vmem:[#allocation2 + $0x78] sm:$0xff] %vm2104_vm2, %v6185_v56  ;;  %v15186_v24 = vpop.f32.mrf.mxu3  ;;  %v5173_v54 = vsel %vm3295_vm5, %v5170_v16, %v5172_v40 }
 0x336   : > { %v15172_v28 = vsel %vm4395_vm14, %v4384_v53, %v4276_v47  ;;  %v5358_v2 = vpop.f32.mrf.mxu1  ;;  %10749 = vmatmul.msk.f32.gmra.mxu0 %vm4597_vm9, %v14690_v18  ;;  %v5479_v30 = vadd.f32 %v5355_v15, %v4999_v42 }
 0x337   : > { %v4575_v44 = vrot.slane %v15172_v28, 1 }
 0x338   : > { %v5527_v18 = vmax.f32 %v5479_v30, 0.0  ;;  %v11379_v30 = vld [vmem:[#allocation2 + $0x14f] sm:$0xff] }
 0x339   : > { %v4576_v43 = vsel %vm2673_vm4, %v4573_v49, %v4575_v44  ;;  %v19393_v49 = vld [vmem:[#allocation19_spill] sm:$0xff] }
 0x33a   : > { %10712 = vmatmul.msk.f32.gmra.mxu3 %vm4597_vm9, %v4576_v43  ;;  %v6186_v47 = vmul.f32 %v19393_v49, %v5527_v18  ;;  %v5174_v43 = vrot.slane %v14915_v14, 2 }
 0x33b   : > { %10798 = vmatmul.msk.f32.gmra.mxu1 %vm4597_vm9, %v5171_v0  ;;  %v5001_v13 = vpop.f32.mrf.mxu0  ;;  %v4127_v0 = vpop.permute.xlu2 %4126 }
 0x33c   : > { %6390 = vrot.lane.b32.xlu1 %v6281_v25, %s11451_s8  ;;  %v6284_v56 = vld [vmem:[#allocation2 + $0x77] sm:$0xff]  ;;  %6234 = vst.msk [vmem:[#allocation2 + $0x80] sm:$0xff] %vm2104_vm2, %v6186_v47  ;;  %6392 = vrot.lane.b32.xlu0 %v6282_v58, %s11451_s8 }
 0x33d   : > { %10829 = vmatmul.msk.f32.gmra.mxu2 %vm2104_vm2, %v5527_v18  ;;  %v19394_v25 = vld [vmem:[#allocation89_spill] sm:$0xff]  ;;  %6541 = vrot.lane.b32.xlu2 %v6284_v56, %s11454_s13  ;;  %v4129_v17 = vpop.permute.xlu1 %4128 }
 0x33e   : > { %v5361_v53 = vpop.f32.mrf.mxu1  ;;  %10750 = vmatmul.msk.f32.gmra.mxu0 %vm4597_vm9, %v14760_v33  ;;  %v5002_v15 = vadd.f32 %v5001_v13, %v19394_v25  ;;  %v15201_v16 = vpop.f32.mrf.mxu3  ;;  %v4385_v33 = vsel %vm2104_vm2, %v11379_v30, %v4127_v0  ;;  %v19395_v13 = vld [vmem:[#allocation21_spill] sm:$0xff] }
 0x340   : > { %v5480_v60 = vadd.f32 %v5358_v2, %v5002_v15  ;;  %v5175_v2 = vsel %vm3295_vm5, %v5172_v40, %v5174_v43 }
 0x342   : > { %v5528_v42 = vmax.f32 %v5480_v60, 0.0  ;;  %v11380_v60 = vld [vmem:[#allocation2 + $0x157] sm:$0xff] }
 0x343   : > { %10799 = vmatmul.msk.f32.gmra.mxu1 %vm4597_vm9, %v5173_v54  ;;  %v5004_v15 = vpop.f32.mrf.mxu0  ;;  %v6285_v49 = vld [vmem:[#allocation2 + $0x7f] sm:$0xff]  ;;  %v4280_v30 = vpop.permute.xlu2 %4279 }
 0x344   : > { %v6187_v25 = vmul.f32 %v19395_v13, %v5528_v42  ;;  %v5005_v0 = vadd.f32 %v5004_v15, %v14873_v4  ;;  %6543 = vrot.lane.b32.xlu1 %v6285_v49, %s11454_s13 }
 0x345   : > { %10830 = vmatmul.msk.f32.gmra.mxu2 %vm2104_vm2, %v5528_v42  ;;  %6394 = vrot.lane.b32.xlu2 %v6283_v23, %s11451_s8  ;;  %v4386_v42 = vsel %vm2104_vm2, %v11380_v60, %v4129_v17  ;;  %v19396_v23 = vld [vmem:[#allocation23_spill] sm:$0xff] }
 0x346   : > { %v5364_v47 = vpop.f32.mrf.mxu1  ;;  %10751 = vmatmul.msk.f32.gmra.mxu0 %vm4597_vm9, %v14789_v3  ;;  %6235 = vst.msk [vmem:[#allocation2 + $0x88] sm:$0xff] %vm2104_vm2, %v6187_v25  ;;  %v5481_v40 = vadd.f32 %v5361_v53, %v5005_v0  ;;  %v5176_v3 = vrot.slane %v14945_v34, 2 }
 0x347   : > { %v4278_v18 = vpop.permute.xlu0 %4277 }
 0x348   : > { %v15205_v54 = vsel %vm4395_vm14, %v4385_v33, %v4278_v18  ;;  %v15223_v18 = vsel %vm4395_vm14, %v4386_v42, %v4280_v30  ;;  %v5529_v25 = vmax.f32 %v5481_v40, 0.0  ;;  %v5178_v42 = vrot.slane %v15020_v35, 2 }
 0x349   : > { %v4577_v58 = vrot.slane %v15205_v54, 1  ;;  %v4579_v17 = vrot.slane %v15223_v18, 1 }
 0x34a   : > { %v6188_v15 = vmul.f32 %v19396_v23, %v5529_v25 }
 0x34b   : > { %10800 = vmatmul.msk.f32.gmra.mxu1 %vm4597_vm9, %v5175_v2  ;;  %v4578_v33 = vsel %vm2673_vm4, %v4575_v44, %v4577_v58  ;;  %v15225_v2 = vpop.f32.mrf.mxu3  ;;  %v5177_v44 = vsel %vm3295_vm5, %v5174_v43, %v5176_v3  ;;  %v5007_v60 = vpop.f32.mrf.mxu0  ;;  %v4580_v0 = vsel %vm2673_vm4, %v4577_v58, %v4579_v17  ;;  %v5179_v58 = vsel %vm3295_vm5, %v5176_v3, %v5178_v42 }
 0x34c   : > { %10713 = vmatmul.msk.f32.gmra.mxu3 %vm4597_vm9, %v4578_v33  ;;  %6236 = vst.msk [vmem:[#allocation2 + $0x90] sm:$0xff] %vm2104_vm2, %v6188_v15  ;;  %v5008_v53 = vadd.f32 %v5007_v60, %v14919_v57  ;;  %6396 = vrot.lane.b32.xlu1 %v6284_v56, %s11451_s8 }
 0x34d   : > { %10831 = vmatmul.msk.f32.gmra.mxu2 %vm2104_vm2, %v5529_v25  ;;  %v6286_v33 = vld [vmem:[#allocation2 + $0x87] sm:$0xff]  ;;  %v19397_v25 = vld [vmem:[#allocation25_spill] sm:$0xff] }
 0x34e   : > { %v5367_v4 = vpop.f32.mrf.mxu1  ;;  %10752 = vmatmul.msk.f32.gmra.mxu0 %vm4597_vm9, %v14865_v45  ;;  %6545 = vrot.lane.b32.xlu0 %v6286_v33, %s11454_s13  ;;  %v5482_v43 = vadd.f32 %v5364_v47, %v5008_v53 }
 0x34f   : > { %v4131_v30 = vpop.permute.xlu0 %4130 }
 0x350   : > { %v5530_v40 = vmax.f32 %v5482_v43, 0.0 }
 0x352   : > { %v6189_v15 = vmul.f32 %v19397_v25, %v5530_v40 }
 0x353   : > { %10801 = vmatmul.msk.f32.gmra.mxu1 %vm4597_vm9, %v5177_v44  ;;  %v11381_v44 = vld [vmem:[#allocation2 + $0x15f] sm:$0xff]  ;;  %v5010_v23 = vpop.f32.mrf.mxu0  ;;  %v6287_v56 = vld [vmem:[#allocation2 + $0x8f] sm:$0xff]  ;;  %v15247_v47 = vpop.f32.mrf.mxu3 }
 0x354   : > { %10714 = vmatmul.msk.f32.gmra.mxu3 %vm4597_vm9, %v4580_v0  ;;  %v4387_v57 = vsel %vm2104_vm2, %v11381_v44, %v4131_v30  ;;  %6237 = vst.msk [vmem:[#allocation2 + $0x98] sm:$0xff] %vm2104_vm2, %v6189_v15  ;;  %v5011_v0 = vadd.f32 %v5010_v23, %v14959_v55  ;;  %6547 = vrot.lane.b32.xlu2 %v6287_v56, %s11454_s13 }
 0x355   : > { %10832 = vmatmul.msk.f32.gmra.mxu2 %vm2104_vm2, %v5530_v40  ;;  %v4133_v40 = vpop.permute.xlu2 %4132 }
 0x356   : > { %v5370_v45 = vpop.f32.mrf.mxu1  ;;  %10753 = vmatmul.msk.f32.gmra.mxu0 %vm4597_vm9, %v14915_v14  ;;  %6398 = vrot.lane.b32.xlu0 %v6285_v49, %s11451_s8  ;;  %v5483_v43 = vadd.f32 %v5367_v4, %v5011_v0  ;;  %v5180_v14 = vrot.slane %v15041_v12, 2  ;;  %v11382_v49 = vld [vmem:[#allocation2 + $0x167] sm:$0xff] }
 0x357   : > { %v4388_v4 = vsel %vm2104_vm2, %v11382_v49, %v4133_v40 }
 0x358   : > { %v5531_v44 = vmax.f32 %v5483_v43, 0.0  ;;  %v5181_v23 = vsel %vm3295_vm5, %v5178_v42, %v5180_v14 }
 0x359   : > { %v4282_v60 = vpop.permute.xlu1 %4281 }
 0x35a   : > { %v15250_v53 = vsel %vm4395_vm14, %v4387_v57, %v4282_v60  ;;  %v19398_v57 = vld [vmem:[#allocation27_spill] sm:$0xff] }
 0x35b   : > { %10802 = vmatmul.msk.f32.gmra.mxu1 %vm4597_vm9, %v5179_v58  ;;  %v4581_v3 = vrot.slane %v15250_v53, 1  ;;  %v6190_v60 = vmul.f32 %v19398_v57, %v5531_v44  ;;  %v6288_v58 = vld [vmem:[#allocation2 + $0x97] sm:$0xff]  ;;  %v5013_v0 = vpop.f32.mrf.mxu0 }
 0x35c   : > { %6400 = vrot.lane.b32.xlu2 %v6286_v33, %s11451_s8  ;;  %v5014_v42 = vadd.f32 %v5013_v0, %v14992_v19  ;;  %6549 = vrot.lane.b32.xlu1 %v6288_v58, %s11454_s13  ;;  %v19399_v0 = vld [vmem:[#allocation29_spill] sm:$0xff] }
 0x35d   : > { %v4582_v30 = vsel %vm2673_vm4, %v4579_v17, %v4581_v3  ;;  %10833 = vmatmul.msk.f32.gmra.mxu2 %vm2104_vm2, %v5531_v44  ;;  %6238 = vst.msk [vmem:[#allocation2 + $0xa0] sm:$0xff] %vm2104_vm2, %v6190_v60  ;;  %v5182_v60 = vrot.slane %v15059_v6, 2  ;;  %v4286_v49 = vpop.permute.xlu2 %4285 }
 0x35e   : > { %10715 = vmatmul.msk.f32.gmra.mxu3 %vm4597_vm9, %v4582_v30  ;;  %10754 = vmatmul.msk.f32.gmra.mxu0 %vm4597_vm9, %v14945_v34  ;;  %v15275_v30 = vpop.f32.mrf.mxu3  ;;  %v11383_v34 = vld [vmem:[#allocation2 + $0x16f] sm:$0xff] }
 0x35f   : > { %v5373_v15 = vpop.f32.mrf.mxu1  ;;  %v5183_v25 = vsel %vm3295_vm5, %v5180_v14, %v5182_v60  ;;  %v5184_v14 = vrot.slane %v15101_v52, 2 }
 0x361   : > { %v4135_v55 = vpop.permute.xlu1 %4134 }
 0x362   : > { %v4284_v17 = vpop.permute.xlu0 %4283  ;;  %v4389_v40 = vsel %vm2104_vm2, %v11383_v34, %v4135_v55 }
 0x363   : > { %10803 = vmatmul.msk.f32.gmra.mxu1 %vm4597_vm9, %v5181_v23  ;;  %v15271_v43 = vsel %vm4395_vm14, %v4388_v4, %v4284_v17  ;;  %v5484_v23 = vadd.f32 %v5370_v45, %v5014_v42  ;;  %v15282_v4 = vsel %vm4395_vm14, %v4389_v40, %v4286_v49 }
 0x364   : > { %v4583_v44 = vrot.slane %v15271_v43, 1  ;;  %v6289_v55 = vld [vmem:[#allocation2 + $0x9f] sm:$0xff]  ;;  %v4585_v45 = vrot.slane %v15282_v4, 1  ;;  %6402 = vrot.lane.b32.xlu1 %v6287_v56, %s11451_s8 }
 0x365   : > { %v5532_v17 = vmax.f32 %v5484_v23, 0.0  ;;  %6551 = vrot.lane.b32.xlu0 %v6289_v55, %s11454_s13 }
 0x366   : > { %v4584_v33 = vsel %vm2673_vm4, %v4581_v3, %v4583_v44  ;;  %10755 = vmatmul.msk.f32.gmra.mxu0 %vm4597_vm9, %v15020_v35  ;;  %v5016_v3 = vpop.f32.mrf.mxu0  ;;  %v15297_v40 = vpop.f32.mrf.mxu3  ;;  %v4586_v35 = vsel %vm2673_vm4, %v4583_v44, %v4585_v45 }
 0x367   : > { %10716 = vmatmul.msk.f32.gmra.mxu3 %vm4597_vm9, %v4584_v33  ;;  %v6191_v57 = vmul.f32 %v19399_v0, %v5532_v17  ;;  %10834 = vmatmul.msk.f32.gmra.mxu2 %vm2104_vm2, %v5532_v17  ;;  %v5017_v42 = vadd.f32 %v5016_v3, %v15022_v63  ;;  %v19401_v17 = vld [vmem:[#allocation31_spill] sm:$0xff]  ;;  %v5185_v63 = vsel %vm3295_vm5, %v5182_v60, %v5184_v14  ;;  %v5186_v3 = vrot.slane %v15126_v21, 2 }
 0x368   : > { %v5376_v19 = vpop.f32.mrf.mxu1 }
 0x369   : > { %6239 = vst.msk [vmem:[#allocation2 + $0xa8] sm:$0xff] %vm2104_vm2, %v6191_v57  ;;  %v5485_v34 = vadd.f32 %v5373_v15, %v5017_v42  ;;  %v4139_v42 = vpop.permute.xlu2 %4138 }
 0x36a   : > { %v4137_v33 = vpop.permute.xlu0 %4136 }
 0x36b   : > { %10804 = vmatmul.msk.f32.gmra.mxu1 %vm4597_vm9, %v5183_v25  ;;  %v5533_v25 = vmax.f32 %v5485_v34, 0.0  ;;  %v11384_v34 = vld [vmem:[#allocation2 + $0x177] sm:$0xff] }
 0x36d   : > { %v6192_v57 = vmul.f32 %v19401_v17, %v5533_v25  ;;  %6404 = vrot.lane.b32.xlu0 %v6288_v58, %s11451_s8  ;;  %v19403_v17 = vld [vmem:[#allocation34_spill] sm:$0xff] }
 0x36e   : > { %10756 = vmatmul.msk.f32.gmra.mxu0 %vm4597_vm9, %v15041_v12  ;;  %v5019_v56 = vpop.f32.mrf.mxu0 }
 0x36f   : > { %10717 = vmatmul.msk.f32.gmra.mxu3 %vm4597_vm9, %v4586_v35  ;;  %v15301_v49 = vpop.f32.mrf.mxu2  ;;  %10835 = vmatmul.msk.f32.gmra.mxu2 %vm2104_vm2, %v5533_v25  ;;  %6240 = vst.msk [vmem:[#allocation2 + $0xb0] sm:$0xff] %vm2104_vm2, %v6192_v57  ;;  %v5020_v44 = vadd.f32 %v5019_v56, %v15045_v8  ;;  %v4390_v35 = vsel %vm2104_vm2, %v11384_v34, %v4137_v33  ;;  %v15320_v57 = vpop.f32.mrf.mxu3  ;;  %v11385_v33 = vld [vmem:[#allocation2 + $0x17f] sm:$0xff] }
 0x370   : > { %v5379_v23 = vpop.f32.mrf.mxu1  ;;  %19400 = vst [vmem:[#allocation78_spill] sm:$0xff] %v15301_v49  ;;  %v6290_v15 = vld [vmem:[#allocation2 + $0xa7] sm:$0xff] }
 0x371   : > { %6553 = vrot.lane.b32.xlu2 %v6290_v15, %s11454_s13  ;;  %v5486_v60 = vadd.f32 %v5376_v19, %v5020_v44  ;;  %v5187_v19 = vsel %vm3295_vm5, %v5184_v14, %v5186_v3  ;;  %v4391_v44 = vsel %vm2104_vm2, %v11385_v33, %v4139_v42 }
 0x373   : > { %10805 = vmatmul.msk.f32.gmra.mxu1 %vm4597_vm9, %v5185_v63  ;;  %v5534_v49 = vmax.f32 %v5486_v60, 0.0 }
 0x375   : > { %v4290_v8 = vpop.permute.xlu0 %4289  ;;  %v6193_v0 = vmul.f32 %v19403_v17, %v5534_v49 }
 0x376   : > { %v4288_v12 = vpop.permute.xlu1 %4287  ;;  %10757 = vmatmul.msk.f32.gmra.mxu0 %vm4597_vm9, %v15059_v6  ;;  %v5022_v34 = vpop.f32.mrf.mxu0  ;;  %v5188_v6 = vrot.slane %v15137_v32, 2 }
 0x377   : > { %v15316_v25 = vsel %vm4395_vm14, %v4390_v35, %v4288_v12  ;;  %v15318_v58 = vpop.f32.mrf.mxu2  ;;  %10836 = vmatmul.msk.f32.gmra.mxu2 %vm2104_vm2, %v5534_v49  ;;  %v6291_v35 = vld [vmem:[#allocation2 + $0xaf] sm:$0xff]  ;;  %v15332_v12 = vsel %vm4395_vm14, %v4391_v44, %v4290_v8  ;;  %6241 = vst.msk [vmem:[#allocation2 + $0xb8] sm:$0xff] %vm2104_vm2, %v6193_v0  ;;  %v5023_v14 = vadd.f32 %v5022_v34, %v15077_v11  ;;  %v11386_v44 = vld [vmem:[#allocation2 + $0x187] sm:$0xff]  ;;  %v7441_v11 = vld [vmem:[%s18866_s3 + $0x38] sm:$0xff]  ;;  %v4292_v0 = vpop.permute.xlu2 %4291 }
 0x378   : > { %v5382_v63 = vpop.f32.mrf.mxu1  ;;  %19402 = vst [vmem:[#allocation7_spill] sm:$0xff] %v15318_v58  ;;  %v4587_v56 = vrot.slane %v15316_v25, 1  ;;  %6555 = vrot.lane.b32.xlu1 %v6291_v35, %s11454_s13  ;;  %v4589_v49 = vrot.slane %v15332_v12, 1  ;;  %v5189_v58 = vsel %vm3295_vm5, %v5186_v3, %v5188_v6  ;;  %7650 = vmatpush.msra.mxu2 %v7441_v11 }
 0x379   : > { %6406 = vrot.lane.b32.xlu2 %v6289_v55, %s11451_s8  ;;  %v19405_v55 = vld [vmem:[#allocation35_spill] sm:$0xff] }
 0x37a   : > { %v4588_v60 = vsel %vm2673_vm4, %v4585_v45, %v4587_v56  ;;  %v5487_v45 = vadd.f32 %v5379_v23, %v5023_v14  ;;  %v15352_v23 = vpop.f32.mrf.mxu3  ;;  %v4590_v14 = vsel %vm2673_vm4, %v4587_v56, %v4589_v49 }
 0x37b   : > { %10806 = vmatmul.msk.f32.gmra.mxu1 %vm4597_vm9, %v5187_v19  ;;  %10718 = vmatmul.msk.f32.gmra.mxu3 %vm4597_vm9, %v4588_v60 }
 0x37c   : > { %v5535_v33 = vmax.f32 %v5487_v45, 0.0 }
 0x37e   : > { %v4141_v42 = vpop.permute.xlu1 %4140  ;;  %v6194_v34 = vmul.f32 %v19405_v55, %v5535_v33  ;;  %10758 = vmatmul.msk.f32.gmra.mxu0 %vm4597_vm9, %v15101_v52  ;;  %v5025_v45 = vpop.f32.mrf.mxu0  ;;  %v5190_v52 = vrot.slane %v15172_v28, 2 }
 0x37f   : > { %v15341_v8 = vpop.f32.mrf.mxu2  ;;  %v4392_v60 = vsel %vm2104_vm2, %v11386_v44, %v4141_v42  ;;  %10837 = vmatmul.msk.f32.gmra.mxu2 %vm2104_vm2, %v5535_v33  ;;  %v6292_v42 = vld [vmem:[#allocation2 + $0xb7] sm:$0xff]  ;;  %v5026_v3 = vadd.f32 %v5025_v45, %v15095_v46  ;;  %v6778_v46 = vld [vmem:[%s18866_s3 + $0x20] sm:$0xff] }
 0x380   : > { %v5385_v19 = vpop.f32.mrf.mxu1  ;;  %19404 = vst [vmem:[#allocation81_spill] sm:$0xff] %v15341_v8  ;;  %v15357_v44 = vsel %vm4395_vm14, %v4392_v60, %v4292_v0  ;;  %6557 = vrot.lane.b32.xlu0 %v6292_v42, %s11454_s13  ;;  %6408 = vrot.lane.b32.xlu1 %v6290_v15, %s11451_s8  ;;  %v6775_v15 = vld [vmem:[%s18866_s3 + $0x8] sm:$0xff] }
 0x381   : > { %6242 = vst.msk [vmem:[#allocation2 + $0xc0] sm:$0xff] %vm2104_vm2, %v6194_v34  ;;  %v5488_v56 = vadd.f32 %v5382_v63, %v5026_v3  ;;  %v4591_v33 = vrot.slane %v15357_v44, 1  ;;  %v5191_v34 = vsel %vm3295_vm5, %v5188_v6, %v5190_v52  ;;  %7036 = vmatpush.msra.mxu0 %v6778_v46  ;;  %7293 = vmatpush.msra.mxu1 %v6775_v15 }
 0x383   : > { %10807 = vmatmul.msk.f32.gmra.mxu1 %vm4597_vm9, %v5189_v58  ;;  %10719 = vmatmul.msk.f32.gmra.mxu3 %vm4597_vm9, %v4590_v14  ;;  %v4143_v58 = vpop.permute.xlu0 %4142  ;;  %v5536_v8 = vmax.f32 %v5488_v56, 0.0  ;;  %v19407_v14 = vld [vmem:[#allocation37_spill] sm:$0xff]  ;;  %v4592_v45 = vsel %vm2673_vm4, %v4589_v49, %v4591_v33  ;;  %v15393_v49 = vpop.f32.mrf.mxu3  ;;  %v5192_v56 = vrot.slane %v15205_v54, 2 }
 0x384   : > { %v4393_v63 = vsel %vm2104_vm2, %v14929_v29, %v4143_v58 }
 0x385   : > { %v6195_v55 = vmul.f32 %v19407_v14, %v5536_v8  ;;  %v5193_v14 = vsel %vm3295_vm5, %v5190_v52, %v5192_v56 }
 0x386   : > { %v4294_v60 = vpop.permute.xlu1 %4293  ;;  %10759 = vmatmul.msk.f32.gmra.mxu0 %vm4597_vm9, %v15126_v21  ;;  %v5028_v6 = vpop.f32.mrf.mxu0  ;;  %v7893_v21 = vld [vmem:[%s18868_s5 + $0x10] sm:$0xff] }
 0x387   : > { %v15366_v0 = vpop.f32.mrf.mxu2  ;;  %10838 = vmatmul.msk.f32.gmra.mxu2 %vm2104_vm2, %v5536_v8  ;;  %v15387_v3 = vsel %vm4395_vm14, %v4393_v63, %v4294_v60  ;;  %6243 = vst.msk [vmem:[#allocation2 + $0xc8] sm:$0xff] %vm2104_vm2, %v6195_v55  ;;  %v5029_v29 = vadd.f32 %v5028_v6, %v15115_v62  ;;  %8053 = vmatpush.msra.mxu3 %v7893_v21  ;;  %v3990_v62 = vld [vmem:[#allocation2 + $0x197] sm:$0x3]  ;;  %v19409_v6 = vld [vmem:[#allocation40_spill] sm:$0xff] }
 0x388   : > { %v5388_v11 = vpop.f32.mrf.mxu1  ;;  %19406 = vst [vmem:[#allocation10_spill] sm:$0xff] %v15366_v0  ;;  %v6293_v8 = vld [vmem:[#allocation2 + $0xbf] sm:$0xff]  ;;  %6410 = vrot.lane.b32.xlu0 %v6291_v35, %s11451_s8  ;;  %v4593_v60 = vrot.slane %v15387_v3, 1 }
 0x389   : > { %6559 = vrot.lane.b32.xlu2 %v6293_v8, %s11454_s13  ;;  %v5489_v58 = vadd.f32 %v5385_v19, %v5029_v29 }
 0x38a   : > { %v4594_v19 = vsel %vm2673_vm4, %v4591_v33, %v4593_v60 }
 0x38b   : > { %10808 = vmatmul.msk.f32.gmra.mxu1 %vm4597_vm9, %v5191_v34  ;;  %10720 = vmatmul.msk.f32.gmra.mxu3 %vm4597_vm9, %v4592_v45  ;;  %v4145_v34 = vpop.permute.xlu2 %4144  ;;  %v5537_v63 = vmax.f32 %v5489_v58, 0.0  ;;  %v4296_v45 = vpop.permute.xlu0 %4295 }
 0x38c   : > { %v4394_v35 = vsel %vm2104_vm2, %v3990_v62, %v4145_v34  ;;  %v15416_v58 = vpop.f32.mrf.mxu3  ;;  %v19411_v62 = vld [vmem:[#allocation41_spill] sm:$0xff] }
 0x38d   : > { %v6196_v0 = vmul.f32 %v19409_v6, %v5537_v63  ;;  %v15409_v29 = vsel %vm4395_vm14, %v4394_v35, %v4296_v45 }
 0x38e   : > { %10760 = vmatmul.msk.f32.gmra.mxu0 %vm4597_vm9, %v15137_v32  ;;  %v5031_v15 = vpop.f32.mrf.mxu0  ;;  %v6294_v21 = vld [vmem:[#allocation2 + $0xc7] sm:$0xff]  ;;  %v4595_v33 = vrot.slane %v15409_v29, 1 }
 0x38f   : > { %v15398_v55 = vpop.f32.mrf.mxu2  ;;  %10839 = vmatmul.msk.f32.gmra.mxu2 %vm2104_vm2, %v5537_v63  ;;  %6244 = vst.msk [vmem:[#allocation2 + $0xd0] sm:$0xff] %vm2104_vm2, %v6196_v0  ;;  %v5032_v52 = vadd.f32 %v5031_v15, %v15140_v9  ;;  %6561 = vrot.lane.b32.xlu1 %v6294_v21, %s11454_s13 }
 0x390   : > { %v5391_v46 = vpop.f32.mrf.mxu1  ;;  %19408 = vst [vmem:[#allocation83_spill] sm:$0xff] %v15398_v55  ;;  %v4596_v9 = vsel %vm2673_vm4, %v4593_v60, %v4595_v33 }
 0x391   : > { %6412 = vrot.lane.b32.xlu2 %v6292_v42, %s11451_s8  ;;  %v5490_v32 = vadd.f32 %v5388_v11, %v5032_v52 }
 0x393   : > { %10809 = vmatmul.msk.f32.gmra.mxu1 %vm4597_vm9, %v5193_v14  ;;  %10721 = vmatmul.msk.f32.gmra.mxu3 %vm4597_vm9, %v4594_v19  ;;  %v5194_v14 = vrot.slane %v15223_v18, 2  ;;  %v5538_v63 = vmax.f32 %v5490_v32, 0.0  ;;  %v19412_v32 = vld [vmem:[#allocation44_spill] sm:$0xff] }
 0x394   : > { %v15435_v60 = vpop.f32.mrf.mxu3 }
 0x395   : > { %v6197_v35 = vmul.f32 %v19411_v62, %v5538_v63  ;;  %v5195_v0 = vsel %vm3295_vm5, %v5192_v56, %v5194_v14  ;;  %v5196_v56 = vrot.slane %v15250_v53, 2 }
 0x396   : > { %10761 = vmatmul.msk.f32.gmra.mxu0 %vm4597_vm9, %v15172_v28  ;;  %v5034_v42 = vpop.f32.mrf.mxu0  ;;  %v6295_v11 = vld [vmem:[#allocation2 + $0xcf] sm:$0xff] }
 0x397   : > { %v15420_v45 = vpop.f32.mrf.mxu2  ;;  %10840 = vmatmul.msk.f32.gmra.mxu2 %vm2104_vm2, %v5538_v63  ;;  %6245 = vst.msk [vmem:[#allocation2 + $0xd8] sm:$0xff] %vm2104_vm2, %v6197_v35  ;;  %v5035_v19 = vadd.f32 %v5034_v42, %v15163_v10  ;;  %6563 = vrot.lane.b32.xlu0 %v6295_v11, %s11454_s13  ;;  %v5197_v63 = vsel %vm3295_vm5, %v5194_v14, %v5196_v56 }
 0x398   : > { %v5394_v34 = vpop.f32.mrf.mxu1  ;;  %19410 = vst [vmem:[#allocation12_spill] sm:$0xff] %v15420_v45  ;;  %6414 = vrot.lane.b32.xlu1 %v6293_v8, %s11451_s8  ;;  %v19472_v45 = vld [vmem:[#allocation74_spill] sm:$0xff] }
 0x399   : > { %v5491_v15 = vadd.f32 %v5391_v46, %v5035_v19  ;;  %v19414_v46 = vld [vmem:[#allocation3_spill] sm:$0xff] }
 0x39b   : > { %10810 = vmatmul.msk.f32.gmra.mxu1 %vm4597_vm9, %v5195_v0  ;;  %10722 = vmatmul.msk.f32.gmra.mxu3 %vm4597_vm9, %v4596_v9  ;;  %v5539_v52 = vmax.f32 %v5491_v15, 0.0  ;;  %v19415_v0 = vmax.f32 %v19414_v46, 0.0  ;;  %v19416_v15 = vld [vmem:[#allocation45_spill] sm:$0xff] }
 0x39d   : > { %v6198_v33 = vmul.f32 %v19412_v32, %v5539_v52 }
 0x39e   : > { %10762 = vmatmul.msk.f32.gmra.mxu0 %vm4597_vm9, %v15205_v54  ;;  %v5037_v10 = vpop.f32.mrf.mxu0  ;;  %v6296_v8 = vld [vmem:[#allocation2 + $0xd7] sm:$0xff]  ;;  %v5198_v54 = vrot.slane %v15271_v43, 2 }
 0x39f   : > { %10841 = vmatmul.msk.f32.gmra.mxu2 %vm2104_vm2, %v5539_v52  ;;  %6246 = vst.msk [vmem:[#allocation2 + $0xe0] sm:$0xff] %vm2104_vm2, %v6198_v33  ;;  %v5038_v9 = vadd.f32 %v5037_v10, %v15186_v24  ;;  %6565 = vrot.lane.b32.xlu2 %v6296_v8, %s11454_s13  ;;  %v15458_v33 = vpop.f32.mrf.mxu3  ;;  %v19417_v10 = vld [vmem:[#allocation4_spill] sm:$0xff] }
 0x3a0   : > { %v5397_v28 = vpop.f32.mrf.mxu1  ;;  %v15443_v35 = vpop.f32.mrf.mxu2  ;;  %6416 = vrot.lane.b32.xlu0 %v6294_v21, %s11451_s8  ;;  %v19418_v46 = vmax.f32 %v19417_v10, 0.0 }
 0x3a1   : > { %19413 = vst [vmem:[#allocation14_spill] sm:$0xff] %v15443_v35  ;;  %v5492_v14 = vadd.f32 %v5394_v34, %v5038_v9  ;;  %v19460_v35 = vld [vmem:[#allocation68_spill] sm:$0xff] }
 0x3a3   : > { %10811 = vmatmul.msk.f32.gmra.mxu1 %vm4597_vm9, %v5197_v63  ;;  %10867 = vmatmul.msk.f32.vlgmr.msrb.gmra.mxu3 %vm2104_vm2, %v19415_v0  ;;  %v5540_v19 = vmax.f32 %v5492_v14, 0.0  ;;  %v5199_v63 = vsel %vm3295_vm5, %v5196_v56, %v5198_v54 }
 0x3a5   : > { %v6199_v52 = vmul.f32 %v19416_v15, %v5540_v19 }
 0x3a6   : > { %10763 = vmatmul.msk.f32.gmra.mxu0 %vm4597_vm9, %v15223_v18  ;;  %v5040_v24 = vpop.f32.mrf.mxu0  ;;  %v6297_v21 = vld [vmem:[#allocation2 + $0xdf] sm:$0xff]  ;;  %v5200_v18 = vrot.slane %v15282_v4, 2 }
 0x3a7   : > { %10842 = vmatmul.msk.f32.gmra.mxu2 %vm2104_vm2, %v5540_v19  ;;  %6247 = vst.msk [vmem:[#allocation2 + $0xe8] sm:$0xff] %vm2104_vm2, %v6199_v52  ;;  %v5041_v34 = vadd.f32 %v5040_v24, %v15201_v16  ;;  %6418 = vrot.lane.b32.xlu2 %v6295_v11, %s11451_s8  ;;  %v19420_v19 = vld [vmem:[#allocation48_spill] sm:$0xff]  ;;  %v19421_v52 = vld [vmem:[#allocation5_spill] sm:$0xff] }
 0x3a8   : > { %v5400_v42 = vpop.f32.mrf.mxu1  ;;  %v15467_v56 = vpop.f32.mrf.mxu2  ;;  %6567 = vrot.lane.b32.xlu1 %v6297_v21, %s11454_s13  ;;  %v5201_v10 = vsel %vm3295_vm5, %v5198_v54, %v5200_v18  ;;  %v19422_v24 = vmax.f32 %v19421_v52, 0.0 }
 0x3a9   : > { %19419 = vst [vmem:[#allocation17_spill] sm:$0xff] %v15467_v56  ;;  %v5493_v0 = vadd.f32 %v5397_v28, %v5041_v34 }
 0x3ab   : > { %10812 = vmatmul.msk.f32.gmra.mxu1 %vm4597_vm9, %v5199_v63  ;;  %10868 = vmatmul.msk.f32.gmra.mxu3 %vm2104_vm2, %v19418_v46  ;;  %v5541_v14 = vmax.f32 %v5493_v0, 0.0  ;;  %v15485_v46 = vpop.f32.mrf.mxu3 }
 0x3ad   : > { %v6200_v63 = vmul.f32 %v19420_v19, %v5541_v14 }
 0x3ae   : > { %10764 = vmatmul.msk.f32.gmra.mxu0 %vm4597_vm9, %v15250_v53  ;;  %v5043_v16 = vpop.f32.mrf.mxu0  ;;  %v6298_v11 = vld [vmem:[#allocation2 + $0xe7] sm:$0xff]  ;;  %v5202_v53 = vrot.slane %v15316_v25, 2 }
 0x3af   : > { %10843 = vmatmul.msk.f32.gmra.mxu2 %vm2104_vm2, %v5541_v14  ;;  %6248 = vst.msk [vmem:[#allocation2 + $0xf0] sm:$0xff] %vm2104_vm2, %v6200_v63  ;;  %v5044_v28 = vadd.f32 %v5043_v16, %v15225_v2  ;;  %6569 = vrot.lane.b32.xlu0 %v6298_v11, %s11454_s13  ;;  %v19425_v16 = vld [vmem:[#allocation6_spill] sm:$0xff] }
 0x3b0   : > { %v5403_v9 = vpop.f32.mrf.mxu1  ;;  %v15483_v54 = vpop.f32.mrf.mxu2  ;;  %6420 = vrot.lane.b32.xlu1 %v6296_v8, %s11451_s8  ;;  %v19426_v8 = vmax.f32 %v19425_v16, 0.0  ;;  %v19428_v16 = vld [vmem:[#allocation52_spill] sm:$0xff] }
 0x3b1   : > { %19423 = vst [vmem:[#allocation89_spill] sm:$0xff] %v15483_v54  ;;  %v5494_v34 = vadd.f32 %v5400_v42, %v5044_v28 }
 0x3b3   : > { %10813 = vmatmul.msk.f32.gmra.mxu1 %vm4597_vm9, %v5201_v10  ;;  %10869 = vmatmul.msk.f32.gmra.mxu3 %vm2104_vm2, %v19422_v24  ;;  %v5542_v14 = vmax.f32 %v5494_v34, 0.0  ;;  %v19424_v10 = vld [vmem:[#allocation49_spill] sm:$0xff]  ;;  %v5203_v24 = vsel %vm3295_vm5, %v5200_v18, %v5202_v53  ;;  %v15505_v34 = vpop.f32.mrf.mxu3 }
 0x3b5   : > { %v6201_v52 = vmul.f32 %v19424_v10, %v5542_v14  ;;  %v19486_v10 = vld [vmem:[#allocation82_spill] sm:$0xff] }
 0x3b6   : > { %10765 = vmatmul.msk.f32.gmra.mxu0 %vm4597_vm9, %v15271_v43  ;;  %v5046_v2 = vpop.f32.mrf.mxu0  ;;  %v6299_v63 = vld [vmem:[#allocation2 + $0xef] sm:$0xff]  ;;  %v5204_v43 = vrot.slane %v15332_v12, 2 }
 0x3b7   : > { %10844 = vmatmul.msk.f32.gmra.mxu2 %vm2104_vm2, %v5542_v14  ;;  %6249 = vst.msk [vmem:[#allocation2 + $0xf8] sm:$0xff] %vm2104_vm2, %v6201_v52  ;;  %v5047_v42 = vadd.f32 %v5046_v2, %v15247_v47  ;;  %6571 = vrot.lane.b32.xlu2 %v6299_v63, %s11454_s13  ;;  %v19429_v52 = vld [vmem:[#allocation8_spill] sm:$0xff] }
 0x3b8   : > { %v5406_v0 = vpop.f32.mrf.mxu1  ;;  %v15501_v18 = vpop.f32.mrf.mxu2  ;;  %6422 = vrot.lane.b32.xlu0 %v6297_v21, %s11451_s8  ;;  %v19430_v2 = vmax.f32 %v19429_v52, 0.0  ;;  %v19432_v52 = vld [vmem:[#allocation53_spill] sm:$0xff] }
 0x3b9   : > { %19427 = vst [vmem:[#allocation21_spill] sm:$0xff] %v15501_v18  ;;  %v5495_v28 = vadd.f32 %v5403_v9, %v5047_v42 }
 0x3bb   : > { %10814 = vmatmul.msk.f32.gmra.mxu1 %vm4597_vm9, %v5203_v24  ;;  %10870 = vmatmul.msk.f32.gmra.mxu3 %vm2104_vm2, %v19426_v8  ;;  %v5543_v24 = vmax.f32 %v5495_v28, 0.0  ;;  %v5205_v8 = vsel %vm3295_vm5, %v5202_v53, %v5204_v43 }
 0x3bd   : > { %v6202_v54 = vmul.f32 %v19428_v16, %v5543_v24 }
 0x3be   : > { %10766 = vmatmul.msk.f32.gmra.mxu0 %vm4597_vm9, %v15282_v4  ;;  %v5049_v47 = vpop.f32.mrf.mxu0  ;;  %v6300_v21 = vld [vmem:[#allocation2 + $0xf7] sm:$0xff]  ;;  %v5206_v4 = vrot.slane %v15357_v44, 2 }
 0x3bf   : > { %10845 = vmatmul.msk.f32.gmra.mxu2 %vm2104_vm2, %v5543_v24  ;;  %6250 = vst.msk [vmem:[#allocation2 + $0x100] sm:$0xff] %vm2104_vm2, %v6202_v54  ;;  %v5050_v9 = vadd.f32 %v5049_v47, %v15275_v30  ;;  %6424 = vrot.lane.b32.xlu2 %v6298_v11, %s11451_s8  ;;  %v6774_v54 = vld [vmem:[%s18866_s3] sm:$0xff] }
 0x3c0   : > { %v5409_v14 = vpop.f32.mrf.mxu1  ;;  %v15519_v53 = vpop.f32.mrf.mxu2  ;;  %6573 = vrot.lane.b32.xlu1 %v6300_v21, %s11454_s13  ;;  %7294 = vmatpush.msra.mxu1 %v6774_v54 }
 0x3c1   : > { %19431 = vst [vmem:[#allocation3_spill] sm:$0xff] %v15519_v53  ;;  %v5496_v42 = vadd.f32 %v5406_v0, %v5050_v9  ;;  %v19433_v0 = vld [vmem:[#allocation9_spill] sm:$0xff] }
 0x3c2   : > { %v19434_v47 = vmax.f32 %v19433_v0, 0.0  ;;  %v19436_v0 = vld [vmem:[#allocation56_spill] sm:$0xff] }
 0x3c3   : > { %10815 = vmatmul.msk.f32.gmra.mxu1 %vm4597_vm9, %v5205_v8  ;;  %10871 = vmatmul.msk.f32.gmra.mxu3 %vm2104_vm2, %v19430_v2  ;;  %v5544_v24 = vmax.f32 %v5496_v42, 0.0  ;;  %v15523_v8 = vpop.f32.mrf.mxu3  ;;  %v5207_v2 = vsel %vm3295_vm5, %v5204_v43, %v5206_v4 }
 0x3c5   : > { %v6203_v18 = vmul.f32 %v19432_v52, %v5544_v24 }
 0x3c6   : > { %10767 = vmatmul.msk.f32.gmra.mxu0 %vm4597_vm9, %v15316_v25  ;;  %v5052_v30 = vpop.f32.mrf.mxu0  ;;  %v6301_v11 = vld [vmem:[#allocation2 + $0xff] sm:$0xff]  ;;  %v5208_v25 = vrot.slane %v15387_v3, 2 }
 0x3c7   : > { %10846 = vmatmul.msk.f32.gmra.mxu2 %vm2104_vm2, %v5544_v24  ;;  %6251 = vst.msk [vmem:[#allocation2 + $0x108] sm:$0xff] %vm2104_vm2, %v6203_v18  ;;  %v5053_v43 = vadd.f32 %v5052_v30, %v15297_v40  ;;  %6575 = vrot.lane.b32.xlu0 %v6301_v11, %s11454_s13  ;;  %v19437_v30 = vld [vmem:[#allocation11_spill] sm:$0xff] }
 0x3c8   : > { %v5412_v28 = vpop.f32.mrf.mxu1  ;;  %v15540_v9 = vpop.f32.mrf.mxu2  ;;  %6426 = vrot.lane.b32.xlu1 %v6299_v63, %s11451_s8  ;;  %v5209_v18 = vsel %vm3295_vm5, %v5206_v4, %v5208_v25  ;;  %v19438_v54 = vmax.f32 %v19437_v30, 0.0 }
 0x3c9   : > { %19435 = vst [vmem:[#allocation4_spill] sm:$0xff] %v15540_v9  ;;  %v5497_v42 = vadd.f32 %v5409_v14, %v5053_v43  ;;  %v5210_v43 = vrot.slane %v15409_v29, 2  ;;  %v6381_v29 = vpop.permute.xlu2 %6380 }
 0x3cb   : > { %10816 = vmatmul.msk.f32.gmra.mxu1 %vm4597_vm9, %v5207_v2  ;;  %10872 = vmatmul.msk.f32.gmra.mxu3 %vm2104_vm2, %v19434_v47  ;;  %v5545_v2 = vmax.f32 %v5497_v42, 0.0 }
 0x3cd   : > { %v6204_v47 = vmul.f32 %v19436_v0, %v5545_v2 }
 0x3ce   : > { %10768 = vmatmul.msk.f32.gmra.mxu0 %vm4597_vm9, %v15332_v12  ;;  %v5055_v40 = vpop.f32.mrf.mxu0  ;;  %v6302_v63 = vld [vmem:[#allocation2 + $0x107] sm:$0xff]  ;;  %v6777_v12 = vld [vmem:[%s18866_s3 + $0x18] sm:$0xff] }
 0x3cf   : > { %v15544_v53 = vpop.f32.mrf.mxu3  ;;  %10847 = vmatmul.msk.f32.gmra.mxu2 %vm2104_vm2, %v5545_v2  ;;  %6252 = vst.msk [vmem:[#allocation2 + $0x110] sm:$0xff] %vm2104_vm2, %v6204_v47  ;;  %v5056_v14 = vadd.f32 %v5055_v40, %v15320_v57  ;;  %6577 = vrot.lane.b32.xlu2 %v6302_v63, %s11454_s13  ;;  %v6379_v2 = vpop.permute.xlu1 %6378  ;;  %v19440_v47 = vld [vmem:[#allocation58_spill] sm:$0xff]  ;;  %v5211_v57 = vsel %vm3295_vm5, %v5208_v25, %v5210_v43 }
 0x3d0   : > { %v5415_v24 = vpop.f32.mrf.mxu1  ;;  %v15558_v4 = vpop.f32.mrf.mxu2  ;;  %6428 = vrot.lane.b32.xlu0 %v6300_v21, %s11451_s8  ;;  %7037 = vmatpush.msra.mxu0 %v6777_v12 }
 0x3d1   : > { %19439 = vst [vmem:[#allocation5_spill] sm:$0xff] %v15558_v4  ;;  %v5498_v42 = vadd.f32 %v5412_v28, %v5056_v14  ;;  %v19441_v28 = vld [vmem:[#allocation13_spill] sm:$0xff] }
 0x3d2   : > { %v19442_v14 = vmax.f32 %v19441_v28, 0.0 }
 0x3d3   : > { %10817 = vmatmul.msk.f32.gmra.mxu1 %vm4597_vm9, %v5209_v18  ;;  %10873 = vmatmul.msk.f32.gmra.mxu3 %vm2104_vm2, %v19438_v54  ;;  %v5546_v30 = vmax.f32 %v5498_v42, 0.0  ;;  %v6272_v42 = vld [vmem:[#allocation2 + $0x17] sm:$0xff] }
 0x3d5   : > { %v6205_v54 = vmul.f32 %v19440_v47, %v5546_v30 }
 0x3d6   : > { %10769 = vmatmul.msk.f32.gmra.mxu0 %vm4597_vm9, %v15357_v44  ;;  %v5058_v21 = vpop.f32.mrf.mxu0  ;;  %v6303_v12 = vld [vmem:[#allocation2 + $0x10f] sm:$0xff]  ;;  %v6273_v44 = vld [vmem:[#allocation2 + $0x1f] sm:$0xff] }
 0x3d7   : > { %10848 = vmatmul.msk.f32.gmra.mxu2 %vm2104_vm2, %v5546_v30  ;;  %v15570_v40 = vpop.f32.mrf.mxu3  ;;  %6253 = vst.msk [vmem:[#allocation2 + $0x118] sm:$0xff] %vm2104_vm2, %v6205_v54  ;;  %v5059_v25 = vadd.f32 %v5058_v21, %v15352_v23  ;;  %6430 = vrot.lane.b32.xlu2 %v6301_v11, %s11451_s8  ;;  %v6532_v4 = vpop.permute.xlu1 %6531  ;;  %v6677_v28 = vsel %vm2104_vm2, %v6273_v44, %v6381_v29  ;;  %v19444_v11 = vld [vmem:[#allocation59_spill] sm:$0xff] }
 0x3d8   : > { %v5418_v18 = vpop.f32.mrf.mxu1  ;;  %v15579_v43 = vpop.f32.mrf.mxu2  ;;  %6579 = vrot.lane.b32.xlu1 %v6303_v12, %s11454_s13  ;;  %v15588_v23 = vsel %vm4395_vm14, %v6677_v28, %v6532_v4 }
 0x3d9   : > { %19443 = vst [vmem:[#allocation6_spill] sm:$0xff] %v15579_v43  ;;  %v5499_v30 = vadd.f32 %v5415_v24, %v5059_v25  ;;  %v19445_v25 = vld [vmem:[#allocation15_spill] sm:$0xff] }
 0x3da   : > { %v19446_v44 = vmax.f32 %v19445_v25, 0.0 }
 0x3db   : > { %10818 = vmatmul.msk.f32.gmra.mxu1 %vm4597_vm9, %v5211_v57  ;;  %10874 = vmatmul.msk.f32.gmra.mxu3 %vm2104_vm2, %v19442_v14  ;;  %v6530_v57 = vpop.permute.xlu0 %6529  ;;  %v5547_v47 = vmax.f32 %v5499_v30, 0.0  ;;  %v6676_v14 = vsel %vm2104_vm2, %v6272_v42, %v6379_v2  ;;  %v6274_v42 = vld [vmem:[#allocation2 + $0x27] sm:$0xff]  ;;  %v6383_v30 = vpop.permute.xlu2 %6382 }
 0x3dc   : > { %v15585_v54 = vsel %vm4395_vm14, %v6676_v14, %v6530_v57 }
 0x3dd   : > { %v6206_v21 = vmul.f32 %v19444_v11, %v5547_v47  ;;  %v6829_v28 = vrot.slane %v15585_v54, 1 }
 0x3de   : > { %10770 = vmatmul.msk.f32.gmra.mxu0 %vm4597_vm9, %v15387_v3  ;;  %v5061_v29 = vpop.f32.mrf.mxu0  ;;  %v6304_v2 = vld [vmem:[#allocation2 + $0x117] sm:$0xff]  ;;  %v6830_v3 = vrot.slane %v15588_v23, 1 }
 0x3df   : > { %10849 = vmatmul.msk.f32.gmra.mxu2 %vm2104_vm2, %v5547_v47  ;;  %6254 = vst.msk [vmem:[#allocation2 + $0x120] sm:$0xff] %vm2104_vm2, %v6206_v21  ;;  %v5062_v4 = vadd.f32 %v5061_v29, %v15393_v49  ;;  %6581 = vrot.lane.b32.xlu0 %v6304_v2, %s11454_s13  ;;  %v6678_v21 = vsel %vm2104_vm2, %v6274_v42, %v6383_v30 }
 0x3e0   : > { %v5421_v9 = vpop.f32.mrf.mxu1  ;;  %v15604_v47 = vpop.f32.mrf.mxu2  ;;  %6432 = vrot.lane.b32.xlu1 %v6302_v63, %s11451_s8  ;;  %v6831_v49 = vsel %vm2673_vm4, %v6829_v28, %v6830_v3 }
 0x3e1   : > { %v15594_v24 = vpop.f32.mrf.mxu3  ;;  %19447 = vst [vmem:[#allocation8_spill] sm:$0xff] %v15604_v47  ;;  %v5500_v57 = vadd.f32 %v5418_v18, %v5062_v4  ;;  %v19448_v47 = vld [vmem:[#allocation61_spill] sm:$0xff]  ;;  %v6385_v4 = vpop.permute.xlu1 %6384 }
 0x3e3   : > { %10963 = vmatmul.msk.f32.vlgmr.msra.gmra.mxu1 %vm4597_vm9, %v15585_v54  ;;  %10875 = vmatmul.msk.f32.gmra.mxu3 %vm2104_vm2, %v19446_v44  ;;  %v6534_v14 = vpop.permute.xlu0 %6533  ;;  %v5548_v44 = vmax.f32 %v5500_v57, 0.0  ;;  %v19449_v57 = vld [vmem:[#allocation16_spill] sm:$0xff] }
 0x3e4   : > { %v15612_v29 = vsel %vm4395_vm14, %v6678_v21, %v6534_v14  ;;  %v19450_v11 = vmax.f32 %v19449_v57, 0.0  ;;  %v11387_v21 = vld [vmem:[#allocation2 + $0x2f] sm:$0xff] }
 0x3e5   : > { %v6207_v43 = vmul.f32 %v19448_v47, %v5548_v44  ;;  %v6832_v30 = vrot.slane %v15612_v29, 1  ;;  %v6536_v47 = vpop.permute.xlu2 %6535 }
 0x3e6   : > { %10915 = vmatmul.msk.f32.vlgmr.msra.gmra.mxu0 %vm4597_vm9, %v6831_v49  ;;  %v5064_v63 = vpop.f32.mrf.mxu0  ;;  %v6305_v18 = vld [vmem:[#allocation2 + $0x11f] sm:$0xff]  ;;  %v6679_v49 = vsel %vm2104_vm2, %v11387_v21, %v6385_v4 }
 0x3e7   : > { %10850 = vmatmul.msk.f32.gmra.mxu2 %vm2104_vm2, %v5548_v44  ;;  %6255 = vst.msk [vmem:[#allocation2 + $0x128] sm:$0xff] %vm2104_vm2, %v6207_v43  ;;  %v5065_v42 = vadd.f32 %v5064_v63, %v15416_v58  ;;  %6583 = vrot.lane.b32.xlu2 %v6305_v18, %s11454_s13  ;;  %v6833_v43 = vsel %vm2673_vm4, %v6830_v3, %v6832_v30  ;;  %v19452_v58 = vld [vmem:[#allocation63_spill] sm:$0xff]  ;;  %v19453_v4 = vld [vmem:[#allocation18_spill] sm:$0xff] }
 0x3e8   : > { %v5424_v25 = vpop.f32.mrf.mxu1  ;;  %6434 = vrot.lane.b32.xlu0 %v6303_v12, %s11451_s8  ;;  %v15636_v56 = vsel %vm4395_vm14, %v6679_v49, %v6536_v47 }
 0x3e9   : > { %v5501_v44 = vadd.f32 %v5421_v9, %v5065_v42  ;;  %v19454_v42 = vmax.f32 %v19453_v4, 0.0  ;;  %v6834_v47 = vrot.slane %v15636_v56, 1 }
 0x3ea   : > { %v15626_v28 = vpop.f32.mrf.mxu3  ;;  %v15629_v14 = vpop.f32.mrf.mxu2 }
 0x3eb   : > { %10964 = vmatmul.msk.f32.gmra.mxu1 %vm4597_vm9, %v15588_v23  ;;  %10876 = vmatmul.msk.f32.gmra.mxu3 %vm2104_vm2, %v19450_v11  ;;  %19451 = vst [vmem:[#allocation9_spill] sm:$0xff] %v15629_v14  ;;  %v5549_v11 = vmax.f32 %v5501_v44, 0.0  ;;  %v6387_v21 = vpop.permute.xlu0 %6386 }
 0x3ed   : > { %v6208_v63 = vmul.f32 %v19452_v58, %v5549_v11 }
 0x3ee   : > { %10916 = vmatmul.msk.f32.gmra.mxu0 %vm4597_vm9, %v6833_v43  ;;  %v5067_v9 = vpop.f32.mrf.mxu0  ;;  %v6306_v12 = vld [vmem:[#allocation2 + $0x127] sm:$0xff] }
 0x3ef   : > { %10851 = vmatmul.msk.f32.gmra.mxu2 %vm2104_vm2, %v5549_v11  ;;  %6256 = vst.msk [vmem:[#allocation2 + $0x130] sm:$0xff] %vm2104_vm2, %v6208_v63  ;;  %v5068_v3 = vadd.f32 %v5067_v9, %v15435_v60  ;;  %6436 = vrot.lane.b32.xlu2 %v6304_v2, %s11451_s8  ;;  %v6538_v11 = vpop.permute.xlu1 %6537  ;;  %v6835_v60 = vsel %vm2673_vm4, %v6832_v30, %v6834_v47  ;;  %v19456_v9 = vld [vmem:[#allocation66_spill] sm:$0xff] }
 0x3f0   : > { %v5427_v57 = vpop.f32.mrf.mxu1  ;;  %6585 = vrot.lane.b32.xlu1 %v6306_v12, %s11454_s13 }
 0x3f1   : > { %v5502_v49 = vadd.f32 %v5424_v25, %v5068_v3 }
 0x3f2   : > { %v15649_v44 = vpop.f32.mrf.mxu2  ;;  %v15651_v43 = vpop.f32.mrf.mxu3 }
 0x3f3   : > { %10965 = vmatmul.msk.f32.gmra.mxu1 %vm4597_vm9, %v15612_v29  ;;  %10877 = vmatmul.msk.f32.gmra.mxu3 %vm2104_vm2, %v19454_v42  ;;  %19455 = vst [vmem:[#allocation11_spill] sm:$0xff] %v15649_v44  ;;  %v5550_v14 = vmax.f32 %v5502_v49, 0.0  ;;  %v11388_v42 = vld [vmem:[#allocation2 + $0x37] sm:$0xff]  ;;  %v19457_v49 = vld [vmem:[#allocation20_spill] sm:$0xff] }
 0x3f4   : > { %v6680_v63 = vsel %vm2104_vm2, %v11388_v42, %v6387_v21  ;;  %v19458_v44 = vmax.f32 %v19457_v49, 0.0  ;;  %v6389_v42 = vpop.permute.xlu2 %6388 }
 0x3f5   : > { %v15656_v2 = vsel %vm4395_vm14, %v6680_v63, %v6538_v11  ;;  %v6209_v58 = vmul.f32 %v19456_v9, %v5550_v14 }
 0x3f6   : > { %10917 = vmatmul.msk.f32.gmra.mxu0 %vm4597_vm9, %v6835_v60  ;;  %v5070_v25 = vpop.f32.mrf.mxu0  ;;  %v6307_v3 = vld [vmem:[#allocation2 + $0x12f] sm:$0xff]  ;;  %v6836_v21 = vrot.slane %v15656_v2, 1 }
 0x3f7   : > { %10852 = vmatmul.msk.f32.gmra.mxu2 %vm2104_vm2, %v5550_v14  ;;  %6257 = vst.msk [vmem:[#allocation2 + $0x138] sm:$0xff] %vm2104_vm2, %v6209_v58  ;;  %v5071_v30 = vadd.f32 %v5070_v25, %v15458_v33  ;;  %6587 = vrot.lane.b32.xlu0 %v6307_v3, %s11454_s13  ;;  %v7440_v14 = vld [vmem:[%s18866_s3 + $0x30] sm:$0xff]  ;;  %v11389_v25 = vld [vmem:[#allocation2 + $0x3f] sm:$0xff] }
 0x3f8   : > { %v5430_v4 = vpop.f32.mrf.mxu1  ;;  %6438 = vrot.lane.b32.xlu1 %v6305_v18, %s11451_s8  ;;  %7651 = vmatpush.msra.mxu2 %v7440_v14  ;;  %v6681_v49 = vsel %vm2104_vm2, %v11389_v25, %v6389_v42  ;;  %v6837_v9 = vsel %vm2673_vm4, %v6834_v47, %v6836_v21  ;;  %v6391_v14 = vpop.permute.xlu1 %6390 }
 0x3f9   : > { %v5503_v63 = vadd.f32 %v5427_v57, %v5071_v30 }
 0x3fa   : > { %v15674_v11 = vpop.f32.mrf.mxu2 }
 0x3fb   : > { %10966 = vmatmul.msk.f32.gmra.mxu1 %vm4597_vm9, %v15636_v56  ;;  %10878 = vmatmul.msk.f32.gmra.mxu3 %vm2104_vm2, %v19458_v44  ;;  %19459 = vst [vmem:[#allocation13_spill] sm:$0xff] %v15674_v11  ;;  %v6540_v44 = vpop.permute.xlu0 %6539  ;;  %v5551_v33 = vmax.f32 %v5503_v63, 0.0  ;;  %v19461_v63 = vld [vmem:[#allocation22_spill] sm:$0xff] }
 0x3fc   : > { %v15681_v0 = vsel %vm4395_vm14, %v6681_v49, %v6540_v44  ;;  %v19462_v11 = vmax.f32 %v19461_v63, 0.0 }
 0x3fd   : > { %v6210_v18 = vmul.f32 %v19460_v35, %v5551_v33  ;;  %v6838_v42 = vrot.slane %v15681_v0, 1  ;;  %v6542_v35 = vpop.permute.xlu2 %6541 }
 0x3fe   : > { %v15676_v60 = vpop.f32.mrf.mxu3  ;;  %10918 = vmatmul.msk.f32.gmra.mxu0 %vm4597_vm9, %v6837_v9  ;;  %v5073_v57 = vpop.f32.mrf.mxu0  ;;  %v6308_v30 = vld [vmem:[#allocation2 + $0x137] sm:$0xff] }
 0x3ff   : > { %10853 = vmatmul.msk.f32.gmra.mxu2 %vm2104_vm2, %v5551_v33  ;;  %6258 = vst.msk [vmem:[#allocation2 + $0x140] sm:$0xff] %vm2104_vm2, %v6210_v18  ;;  %v5074_v47 = vadd.f32 %v5073_v57, %v15485_v46  ;;  %6589 = vrot.lane.b32.xlu2 %v6308_v30, %s11454_s13  ;;  %v11390_v33 = vld [vmem:[#allocation2 + $0x47] sm:$0xff]  ;;  %v6839_v18 = vsel %vm2673_vm4, %v6836_v21, %v6838_v42  ;;  %v19464_v46 = vld [vmem:[#allocation70_spill] sm:$0xff] }
 0x400   : > { %v5433_v58 = vpop.f32.mrf.mxu1  ;;  %6440 = vrot.lane.b32.xlu0 %v6306_v12, %s11451_s8  ;;  %v6682_v25 = vsel %vm2104_vm2, %v11390_v33, %v6391_v14  ;;  %v19465_v14 = vld [vmem:[#allocation24_spill] sm:$0xff] }
 0x401   : > { %v5504_v44 = vadd.f32 %v5430_v4, %v5074_v47  ;;  %v15705_v52 = vsel %vm4395_vm14, %v6682_v25, %v6542_v35  ;;  %v19466_v47 = vmax.f32 %v19465_v14, 0.0 }
 0x402   : > { %v15696_v9 = vpop.f32.mrf.mxu2  ;;  %v6840_v35 = vrot.slane %v15705_v52, 1 }
 0x403   : > { %10967 = vmatmul.msk.f32.gmra.mxu1 %vm4597_vm9, %v15656_v2  ;;  %10879 = vmatmul.msk.f32.gmra.mxu3 %vm2104_vm2, %v19462_v11  ;;  %19463 = vst [vmem:[#allocation15_spill] sm:$0xff] %v15696_v9  ;;  %v5552_v11 = vmax.f32 %v5504_v44, 0.0  ;;  %v6393_v33 = vpop.permute.xlu0 %6392 }
 0x405   : > { %v6211_v57 = vmul.f32 %v19464_v46, %v5552_v11 }
 0x406   : > { %v15699_v49 = vpop.f32.mrf.mxu3  ;;  %10919 = vmatmul.msk.f32.gmra.mxu0 %vm4597_vm9, %v6839_v18  ;;  %v5076_v12 = vpop.f32.mrf.mxu0  ;;  %v6309_v4 = vld [vmem:[#allocation2 + $0x13f] sm:$0xff] }
 0x407   : > { %10854 = vmatmul.msk.f32.gmra.mxu2 %vm2104_vm2, %v5552_v11  ;;  %6259 = vst.msk [vmem:[#allocation2 + $0x148] sm:$0xff] %vm2104_vm2, %v6211_v57  ;;  %v5077_v21 = vadd.f32 %v5076_v12, %v15505_v34  ;;  %6442 = vrot.lane.b32.xlu2 %v6307_v3, %s11451_s8  ;;  %v6544_v11 = vpop.permute.xlu1 %6543  ;;  %v6841_v34 = vsel %vm2673_vm4, %v6838_v42, %v6840_v35  ;;  %v19468_v12 = vld [vmem:[#allocation72_spill] sm:$0xff] }
 0x408   : > { %v5436_v63 = vpop.f32.mrf.mxu1  ;;  %6591 = vrot.lane.b32.xlu1 %v6309_v4, %s11454_s13 }
 0x409   : > { %v5505_v25 = vadd.f32 %v5433_v58, %v5077_v21 }
 0x40a   : > { %v15718_v44 = vpop.f32.mrf.mxu2 }
 0x40b   : > { %10968 = vmatmul.msk.f32.gmra.mxu1 %vm4597_vm9, %v15681_v0  ;;  %10880 = vmatmul.msk.f32.gmra.mxu3 %vm2104_vm2, %v19466_v47  ;;  %19467 = vst [vmem:[#allocation16_spill] sm:$0xff] %v15718_v44  ;;  %v5553_v9 = vmax.f32 %v5505_v25, 0.0  ;;  %v11391_v47 = vld [vmem:[#allocation2 + $0x4f] sm:$0xff]  ;;  %v19469_v25 = vld [vmem:[#allocation26_spill] sm:$0xff] }
 0x40c   : > { %v6683_v57 = vsel %vm2104_vm2, %v11391_v47, %v6393_v33  ;;  %v19470_v44 = vmax.f32 %v19469_v25, 0.0 }
 0x40d   : > { %v15725_v3 = vsel %vm4395_vm14, %v6683_v57, %v6544_v11  ;;  %v6212_v46 = vmul.f32 %v19468_v12, %v5553_v9  ;;  %v6395_v11 = vpop.permute.xlu2 %6394  ;;  %v6546_v57 = vpop.permute.xlu0 %6545 }
 0x40e   : > { %v15720_v18 = vpop.f32.mrf.mxu3  ;;  %10920 = vmatmul.msk.f32.gmra.mxu0 %vm4597_vm9, %v6841_v34  ;;  %v5079_v58 = vpop.f32.mrf.mxu0  ;;  %v6310_v21 = vld [vmem:[#allocation2 + $0x147] sm:$0xff]  ;;  %v6842_v33 = vrot.slane %v15725_v3, 1 }
 0x40f   : > { %10855 = vmatmul.msk.f32.gmra.mxu2 %vm2104_vm2, %v5553_v9  ;;  %6260 = vst.msk [vmem:[#allocation2 + $0x150] sm:$0xff] %vm2104_vm2, %v6212_v46  ;;  %v5080_v42 = vadd.f32 %v5079_v58, %v15523_v8  ;;  %6593 = vrot.lane.b32.xlu0 %v6310_v21, %s11454_s13 }
 0x410   : > { %v5439_v14 = vpop.f32.mrf.mxu1  ;;  %6444 = vrot.lane.b32.xlu1 %v6308_v30, %s11451_s8  ;;  %v6843_v8 = vsel %vm2673_vm4, %v6840_v35, %v6842_v33 }
 0x411   : > { %v5506_v47 = vadd.f32 %v5436_v63, %v5080_v42  ;;  %v6397_v42 = vpop.permute.xlu1 %6396 }
 0x412   : > { %v15740_v9 = vpop.f32.mrf.mxu2 }
 0x413   : > { %10969 = vmatmul.msk.f32.gmra.mxu1 %vm4597_vm9, %v15705_v52  ;;  %10881 = vmatmul.msk.f32.gmra.mxu3 %vm2104_vm2, %v19470_v44  ;;  %19471 = vst [vmem:[#allocation18_spill] sm:$0xff] %v15740_v9  ;;  %v5554_v12 = vmax.f32 %v5506_v47, 0.0  ;;  %v11392_v44 = vld [vmem:[#allocation2 + $0x57] sm:$0xff]  ;;  %v19473_v47 = vld [vmem:[#allocation28_spill] sm:$0xff] }
 0x414   : > { %v6684_v46 = vsel %vm2104_vm2, %v11392_v44, %v6395_v11  ;;  %v19474_v9 = vmax.f32 %v19473_v47, 0.0  ;;  %v11393_v44 = vld [vmem:[#allocation2 + $0x5f] sm:$0xff] }
 0x415   : > { %v15747_v58 = vsel %vm4395_vm14, %v6684_v46, %v6546_v57  ;;  %v6213_v16 = vmul.f32 %v19472_v45, %v5554_v12  ;;  %v6685_v46 = vsel %vm2104_vm2, %v11393_v44, %v6397_v42  ;;  %v6548_v45 = vpop.permute.xlu2 %6547  ;;  %v19477_v42 = vld [vmem:[#allocation30_spill] sm:$0xff]  ;;  %v6399_v44 = vpop.permute.xlu0 %6398 }
 0x416   : > { %v15742_v34 = vpop.f32.mrf.mxu3  ;;  %10921 = vmatmul.msk.f32.gmra.mxu0 %vm4597_vm9, %v6843_v8  ;;  %v5082_v30 = vpop.f32.mrf.mxu0  ;;  %v6311_v63 = vld [vmem:[#allocation2 + $0x14f] sm:$0xff]  ;;  %v15771_v55 = vsel %vm4395_vm14, %v6685_v46, %v6548_v45 }
 0x417   : > { %10856 = vmatmul.msk.f32.gmra.mxu2 %vm2104_vm2, %v5554_v12  ;;  %6261 = vst.msk [vmem:[#allocation2 + $0x158] sm:$0xff] %vm2104_vm2, %v6213_v16  ;;  %v5083_v35 = vadd.f32 %v5082_v30, %v15544_v53  ;;  %6595 = vrot.lane.b32.xlu2 %v6311_v63, %s11454_s13  ;;  %v6844_v12 = vrot.slane %v15747_v58, 1  ;;  %v19476_v53 = vld [vmem:[#allocation76_spill] sm:$0xff]  ;;  %v6846_v45 = vrot.slane %v15771_v55, 1 }
 0x418   : > { %v5442_v25 = vpop.f32.mrf.mxu1  ;;  %6446 = vrot.lane.b32.xlu0 %v6309_v4, %s11451_s8 }
 0x419   : > { %v5507_v57 = vadd.f32 %v5439_v14, %v5083_v35  ;;  %v6845_v16 = vsel %vm2673_vm4, %v6842_v33, %v6844_v12  ;;  %v19478_v35 = vmax.f32 %v19477_v42, 0.0 }
 0x41a   : > { %v15762_v11 = vpop.f32.mrf.mxu2 }
 0x41b   : > { %10970 = vmatmul.msk.f32.gmra.mxu1 %vm4597_vm9, %v15725_v3  ;;  %10882 = vmatmul.msk.f32.gmra.mxu3 %vm2104_vm2, %v19474_v9  ;;  %19475 = vst [vmem:[#allocation20_spill] sm:$0xff] %v15762_v11  ;;  %v5555_v9 = vmax.f32 %v5507_v57, 0.0 }
 0x41d   : > { %v6214_v30 = vmul.f32 %v19476_v53, %v5555_v9 }
 0x41e   : > { %v15765_v8 = vpop.f32.mrf.mxu3  ;;  %10922 = vmatmul.msk.f32.gmra.mxu0 %vm4597_vm9, %v6845_v16  ;;  %v5085_v4 = vpop.f32.mrf.mxu0  ;;  %v6312_v14 = vld [vmem:[#allocation2 + $0x157] sm:$0xff] }
 0x41f   : > { %10857 = vmatmul.msk.f32.gmra.mxu2 %vm2104_vm2, %v5555_v9  ;;  %6262 = vst.msk [vmem:[#allocation2 + $0x160] sm:$0xff] %vm2104_vm2, %v6214_v30  ;;  %v5086_v33 = vadd.f32 %v5085_v4, %v15570_v40  ;;  %6448 = vrot.lane.b32.xlu2 %v6310_v21, %s11451_s8  ;;  %v6550_v9 = vpop.permute.xlu1 %6549  ;;  %v6847_v40 = vsel %vm2673_vm4, %v6844_v12, %v6846_v45  ;;  %v19481_v4 = vld [vmem:[#allocation77_spill] sm:$0xff] }
 0x420   : > { %v5445_v47 = vpop.f32.mrf.mxu1  ;;  %6597 = vrot.lane.b32.xlu1 %v6312_v14, %s11454_s13 }
 0x421   : > { %v5508_v46 = vadd.f32 %v5442_v25, %v5086_v33 }
 0x422   : > { %v15784_v57 = vpop.f32.mrf.mxu2 }
 0x423   : > { %10971 = vmatmul.msk.f32.gmra.mxu1 %vm4597_vm9, %v15747_v58  ;;  %10883 = vmatmul.msk.f32.gmra.mxu3 %vm2104_vm2, %v19478_v35  ;;  %19479 = vst [vmem:[#allocation22_spill] sm:$0xff] %v15784_v57  ;;  %v5556_v11 = vmax.f32 %v5508_v46, 0.0  ;;  %v11394_v35 = vld [vmem:[#allocation2 + $0x67] sm:$0xff] }
 0x424   : > { %v6686_v30 = vsel %vm2104_vm2, %v11394_v35, %v6399_v44  ;;  %v19482_v46 = vld [vmem:[#allocation32_spill] sm:$0xff] }
 0x425   : > { %v15791_v21 = vsel %vm4395_vm14, %v6686_v30, %v6550_v9  ;;  %v6215_v53 = vmul.f32 %v19481_v4, %v5556_v11  ;;  %v19483_v57 = vmax.f32 %v19482_v46, 0.0  ;;  %v6401_v9 = vpop.permute.xlu2 %6400  ;;  %v6552_v30 = vpop.permute.xlu0 %6551 }
 0x426   : > { %v15786_v16 = vpop.f32.mrf.mxu3  ;;  %10923 = vmatmul.msk.f32.gmra.mxu0 %vm4597_vm9, %v6847_v40  ;;  %v5088_v25 = vpop.f32.mrf.mxu0  ;;  %v6313_v33 = vld [vmem:[#allocation2 + $0x15f] sm:$0xff]  ;;  %v6848_v44 = vrot.slane %v15791_v21, 1 }
 0x427   : > { %19480 = vst [vmem:[#allocation24_spill] sm:$0xff] %v15786_v16  ;;  %10858 = vmatmul.msk.f32.gmra.mxu2 %vm2104_vm2, %v5556_v11  ;;  %v5089_v12 = vadd.f32 %v5088_v25, %v15594_v24  ;;  %6599 = vrot.lane.b32.xlu0 %v6313_v33, %s11454_s13 }
 0x428   : > { %v5448_v42 = vpop.f32.mrf.mxu1  ;;  %6263 = vst.msk [vmem:[#allocation2 + $0x168] sm:$0xff] %vm2104_vm2, %v6215_v53  ;;  %6450 = vrot.lane.b32.xlu1 %v6311_v63, %s11451_s8  ;;  %v6849_v24 = vsel %vm2673_vm4, %v6846_v45, %v6848_v44 }
 0x429   : > { %v5509_v35 = vadd.f32 %v5445_v47, %v5089_v12  ;;  %v6403_v12 = vpop.permute.xlu1 %6402 }
 0x42a   : > { %v15806_v11 = vpop.f32.mrf.mxu2 }
 0x42b   : > { %10972 = vmatmul.msk.f32.gmra.mxu1 %vm4597_vm9, %v15771_v55  ;;  %10884 = vmatmul.msk.f32.gmra.mxu3 %vm2104_vm2, %v19483_v57  ;;  %19484 = vst [vmem:[#allocation26_spill] sm:$0xff] %v15806_v11  ;;  %v5557_v4 = vmax.f32 %v5509_v35, 0.0  ;;  %v11395_v57 = vld [vmem:[#allocation2 + $0x6f] sm:$0xff] }
 0x42c   : > { %v6687_v53 = vsel %vm2104_vm2, %v11395_v57, %v6401_v9  ;;  %v19487_v35 = vld [vmem:[#allocation33_spill] sm:$0xff] }
 0x42d   : > { %v15813_v25 = vsel %vm4395_vm14, %v6687_v53, %v6552_v30  ;;  %v6216_v19 = vmul.f32 %v19486_v10, %v5557_v4  ;;  %v19488_v11 = vmax.f32 %v19487_v35, 0.0  ;;  %v11396_v57 = vld [vmem:[#allocation2 + $0x77] sm:$0xff]  ;;  %v6554_v10 = vpop.permute.xlu2 %6553 }
 0x42e   : > { %v15808_v40 = vpop.f32.mrf.mxu3  ;;  %10924 = vmatmul.msk.f32.gmra.mxu0 %vm4597_vm9, %v6849_v24  ;;  %v5091_v63 = vpop.f32.mrf.mxu0  ;;  %v6688_v53 = vsel %vm2104_vm2, %v11396_v57, %v6403_v12  ;;  %v19492_v12 = vld [vmem:[#allocation36_spill] sm:$0xff] }
 0x42f   : > { %19485 = vst [vmem:[#allocation28_spill] sm:$0xff] %v15808_v40  ;;  %10859 = vmatmul.msk.f32.gmra.mxu2 %vm2104_vm2, %v5557_v4  ;;  %v6314_v47 = vld [vmem:[#allocation2 + $0x167] sm:$0xff]  ;;  %v5092_v45 = vadd.f32 %v5091_v63, %v15626_v28  ;;  %v6850_v4 = vrot.slane %v15813_v25, 1  ;;  %6452 = vrot.lane.b32.xlu0 %v6312_v14, %s11451_s8  ;;  %v15837_v15 = vsel %vm4395_vm14, %v6688_v53, %v6554_v10  ;;  %v6405_v57 = vpop.permute.xlu0 %6404 }
 0x430   : > { %v5451_v46 = vpop.f32.mrf.mxu1  ;;  %6264 = vst.msk [vmem:[#allocation2 + $0x170] sm:$0xff] %vm2104_vm2, %v6216_v19  ;;  %6601 = vrot.lane.b32.xlu2 %v6314_v47, %s11454_s13  ;;  %v19491_v28 = vld [vmem:[#allocation84_spill] sm:$0xff]  ;;  %v6852_v10 = vrot.slane %v15837_v15, 1 }
 0x431   : > { %v5510_v30 = vadd.f32 %v5448_v42, %v5092_v45  ;;  %v6851_v19 = vsel %vm2673_vm4, %v6848_v44, %v6850_v4  ;;  %v19493_v45 = vmax.f32 %v19492_v12, 0.0 }
 0x432   : > { %v15828_v9 = vpop.f32.mrf.mxu2 }
 0x433   : > { %10973 = vmatmul.msk.f32.gmra.mxu1 %vm4597_vm9, %v15791_v21  ;;  %10885 = vmatmul.msk.f32.gmra.mxu3 %vm2104_vm2, %v19488_v11  ;;  %19489 = vst [vmem:[#allocation30_spill] sm:$0xff] %v15828_v9  ;;  %v5558_v11 = vmax.f32 %v5510_v30, 0.0 }
 0x435   : > { %v6217_v63 = vmul.f32 %v19491_v28, %v5558_v11 }
 0x436   : > { %v15831_v24 = vpop.f32.mrf.mxu3  ;;  %10925 = vmatmul.msk.f32.gmra.mxu0 %vm4597_vm9, %v6851_v19  ;;  %v5094_v14 = vpop.f32.mrf.mxu0 }
 0x437   : > { %19490 = vst [vmem:[#allocation32_spill] sm:$0xff] %v15831_v24  ;;  %10860 = vmatmul.msk.f32.gmra.mxu2 %vm2104_vm2, %v5558_v11  ;;  %v6315_v42 = vld [vmem:[#allocation2 + $0x16f] sm:$0xff]  ;;  %v5095_v44 = vadd.f32 %v5094_v14, %v15651_v43  ;;  %v6556_v11 = vpop.permute.xlu1 %6555  ;;  %v6853_v43 = vsel %vm2673_vm4, %v6850_v4, %v6852_v10  ;;  %v19496_v14 = vld [vmem:[#allocation87_spill] sm:$0xff] }
 0x438   : > { %v5454_v35 = vpop.f32.mrf.mxu1  ;;  %6265 = vst.msk [vmem:[#allocation2 + $0x178] sm:$0xff] %vm2104_vm2, %v6217_v63  ;;  %6454 = vrot.lane.b32.xlu2 %v6313_v33, %s11451_s8  ;;  %6603 = vrot.lane.b32.xlu1 %v6315_v42, %s11454_s13 }
 0x439   : > { %v5511_v53 = vadd.f32 %v5451_v46, %v5095_v44 }
 0x43a   : > { %v15850_v30 = vpop.f32.mrf.mxu2 }
 0x43b   : > { %10974 = vmatmul.msk.f32.gmra.mxu1 %vm4597_vm9, %v15813_v25  ;;  %10886 = vmatmul.msk.f32.gmra.mxu3 %vm2104_vm2, %v19493_v45  ;;  %19494 = vst [vmem:[#allocation33_spill] sm:$0xff] %v15850_v30  ;;  %v5559_v9 = vmax.f32 %v5511_v53, 0.0  ;;  %v11397_v45 = vld [vmem:[#allocation2 + $0x7f] sm:$0xff] }
 0x43c   : > { %v6689_v63 = vsel %vm2104_vm2, %v11397_v45, %v6405_v57  ;;  %v19497_v53 = vld [vmem:[#allocation38_spill] sm:$0xff] }
 0x43d   : > { %v15857_v33 = vsel %vm4395_vm14, %v6689_v63, %v6556_v11  ;;  %v6218_v28 = vmul.f32 %v19496_v14, %v5559_v9  ;;  %v19498_v30 = vmax.f32 %v19497_v53, 0.0  ;;  %v6407_v11 = vpop.permute.xlu2 %6406  ;;  %v6558_v63 = vpop.permute.xlu0 %6557 }
 0x43e   : > { %v15852_v19 = vpop.f32.mrf.mxu3  ;;  %10926 = vmatmul.msk.f32.gmra.mxu0 %vm4597_vm9, %v6853_v43  ;;  %v5097_v46 = vpop.f32.mrf.mxu0  ;;  %v6854_v57 = vrot.slane %v15857_v33, 1 }
 0x43f   : > { %19495 = vst [vmem:[#allocation36_spill] sm:$0xff] %v15852_v19  ;;  %10861 = vmatmul.msk.f32.gmra.mxu2 %vm2104_vm2, %v5559_v9  ;;  %v6316_v44 = vld [vmem:[#allocation2 + $0x177] sm:$0xff]  ;;  %v5098_v4 = vadd.f32 %v5097_v46, %v15676_v60  ;;  %v19501_v19 = vld [vmem:[#allocation88_spill] sm:$0xff] }
 0x440   : > { %v5457_v12 = vpop.f32.mrf.mxu1  ;;  %6266 = vst.msk [vmem:[#allocation2 + $0x180] sm:$0xff] %vm2104_vm2, %v6218_v28  ;;  %6605 = vrot.lane.b32.xlu0 %v6316_v44, %s11454_s13  ;;  %6456 = vrot.lane.b32.xlu1 %v6314_v47, %s11451_s8  ;;  %v6855_v60 = vsel %vm2673_vm4, %v6852_v10, %v6854_v57 }
 0x441   : > { %v5512_v45 = vadd.f32 %v5454_v35, %v5098_v4  ;;  %v6409_v4 = vpop.permute.xlu1 %6408 }
 0x442   : > { %v15872_v9 = vpop.f32.mrf.mxu2 }
 0x443   : > { %10975 = vmatmul.msk.f32.gmra.mxu1 %vm4597_vm9, %v15837_v15  ;;  %10887 = vmatmul.msk.f32.gmra.mxu3 %vm2104_vm2, %v19498_v30  ;;  %19499 = vst [vmem:[#allocation38_spill] sm:$0xff] %v15872_v9  ;;  %v5560_v14 = vmax.f32 %v5512_v45, 0.0  ;;  %v11398_v30 = vld [vmem:[#allocation2 + $0x87] sm:$0xff] }
 0x444   : > { %v6690_v28 = vsel %vm2104_vm2, %v11398_v30, %v6407_v11  ;;  %v19502_v45 = vld [vmem:[#allocation39_spill] sm:$0xff]  ;;  %v11399_v30 = vld [vmem:[#allocation2 + $0x8f] sm:$0xff] }
 0x445   : > { %v15879_v46 = vsel %vm4395_vm14, %v6690_v28, %v6558_v63  ;;  %v6219_v24 = vmul.f32 %v19501_v19, %v5560_v14  ;;  %v19503_v9 = vmax.f32 %v19502_v45, 0.0  ;;  %v6691_v28 = vsel %vm2104_vm2, %v11399_v30, %v6409_v4  ;;  %v6560_v19 = vpop.permute.xlu2 %6559  ;;  %v19506_v4 = vld [vmem:[#allocation42_spill] sm:$0xff]  ;;  %v6411_v30 = vpop.permute.xlu0 %6410 }
 0x446   : > { %v15874_v43 = vpop.f32.mrf.mxu3  ;;  %10927 = vmatmul.msk.f32.gmra.mxu0 %vm4597_vm9, %v6855_v60  ;;  %v5100_v47 = vpop.f32.mrf.mxu0 }
 0x447   : > { %19500 = vst [vmem:[#allocation94_spill] sm:$0xff] %v15874_v43  ;;  %10862 = vmatmul.msk.f32.gmra.mxu2 %vm2104_vm2, %v5560_v14  ;;  %v6317_v35 = vld [vmem:[#allocation2 + $0x17f] sm:$0xff]  ;;  %v5101_v10 = vadd.f32 %v5100_v47, %v15699_v49  ;;  %v6856_v14 = vrot.slane %v15879_v46, 1  ;;  %v15903_v47 = vsel %vm4395_vm14, %v6691_v28, %v6560_v19 }
 0x448   : > { %v5460_v53 = vpop.f32.mrf.mxu1  ;;  %6267 = vst.msk [vmem:[#allocation2 + $0x188] sm:$0xff] %vm2104_vm2, %v6219_v24  ;;  %6607 = vrot.lane.b32.xlu2 %v6317_v35, %s11454_s13  ;;  %6458 = vrot.lane.b32.xlu0 %v6315_v42, %s11451_s8  ;;  %v6858_v19 = vrot.slane %v15903_v47, 1 }
 0x449   : > { %v5513_v63 = vadd.f32 %v5457_v12, %v5101_v10  ;;  %v6857_v24 = vsel %vm2673_vm4, %v6854_v57, %v6856_v14  ;;  %v19507_v10 = vmax.f32 %v19506_v4, 0.0 }
 0x44a   : > { %v15894_v11 = vpop.f32.mrf.mxu2 }
 0x44b   : > { %10976 = vmatmul.msk.f32.gmra.mxu1 %vm4597_vm9, %v15857_v33  ;;  %10888 = vmatmul.msk.f32.gmra.mxu3 %vm2104_vm2, %v19503_v9  ;;  %19504 = vst [vmem:[#allocation39_spill] sm:$0xff] %v15894_v11  ;;  %v5561_v9 = vmax.f32 %v5513_v63, 0.0 }
 0x44d   : > { %v6220_v49 = vmul.f32 %v14871_v50, %v5561_v9 }
 0x44e   : > { %v15897_v60 = vpop.f32.mrf.mxu3  ;;  %10928 = vmatmul.msk.f32.gmra.mxu0 %vm4597_vm9, %v6857_v24  ;;  %v5103_v42 = vpop.f32.mrf.mxu0 }
 0x44f   : > { %19505 = vst [vmem:[#allocation95_spill] sm:$0xff] %v15897_v60  ;;  %10863 = vmatmul.msk.f32.gmra.mxu2 %vm2104_vm2, %v5561_v9  ;;  %v6318_v12 = vld [vmem:[#allocation2 + $0x187] sm:$0xff]  ;;  %v5104_v57 = vadd.f32 %v5103_v42, %v15720_v18  ;;  %v6562_v9 = vpop.permute.xlu1 %6561  ;;  %v6859_v18 = vsel %vm2673_vm4, %v6856_v14, %v6858_v19 }
 0x450   : > { %v5463_v45 = vpop.f32.mrf.mxu1  ;;  %6268 = vst.msk [vmem:[#allocation2 + $0x190] sm:$0xff] %vm2104_vm2, %v6220_v49  ;;  %6460 = vrot.lane.b32.xlu2 %v6316_v44, %s11451_s8  ;;  %6609 = vrot.lane.b32.xlu1 %v6318_v12, %s11454_s13 }
 0x451   : > { %v5514_v28 = vadd.f32 %v5460_v53, %v5104_v57 }
 0x452   : > { %v15916_v63 = vpop.f32.mrf.mxu2 }
 0x453   : > { %10977 = vmatmul.msk.f32.gmra.mxu1 %vm4597_vm9, %v15879_v46  ;;  %10889 = vmatmul.msk.f32.gmra.mxu3 %vm2104_vm2, %v19507_v10  ;;  %19508 = vst [vmem:[#allocation42_spill] sm:$0xff] %v15916_v63  ;;  %v5562_v11 = vmax.f32 %v5514_v28, 0.0  ;;  %v11400_v10 = vld [vmem:[#allocation2 + $0x97] sm:$0xff]  ;;  %v19510_v28 = vld [vmem:[#allocation43_spill] sm:$0xff] }
 0x454   : > { %v6692_v49 = vsel %vm2104_vm2, %v11400_v10, %v6411_v30  ;;  %v19511_v63 = vmax.f32 %v19510_v28, 0.0 }
 0x455   : > { %v15923_v44 = vsel %vm4395_vm14, %v6692_v49, %v6562_v9  ;;  %v6221_v42 = vmul.f32 %v14922_v31, %v5562_v11  ;;  %v6413_v9 = vpop.permute.xlu2 %6412  ;;  %v6564_v49 = vpop.permute.xlu0 %6563 }
 0x456   : > { %v15918_v24 = vpop.f32.mrf.mxu3  ;;  %10929 = vmatmul.msk.f32.gmra.mxu0 %vm4597_vm9, %v6859_v18  ;;  %v5106_v53 = vpop.f32.mrf.mxu0  ;;  %v6860_v30 = vrot.slane %v15923_v44, 1 }
 0x457   : > { %19509 = vst [vmem:[#allocation96_spill] sm:$0xff] %v15918_v24  ;;  %10864 = vmatmul.msk.f32.gmra.mxu2 %vm2104_vm2, %v5562_v11  ;;  %v6319_v57 = vld [vmem:[#allocation2 + $0x18f] sm:$0xff]  ;;  %v5107_v14 = vadd.f32 %v5106_v53, %v15742_v34 }
 0x458   : > { %v5466_v4 = vpop.f32.mrf.mxu1  ;;  %6269 = vst.msk [vmem:[#allocation2 + $0x198] sm:$0xff] %vm2104_vm2, %v6221_v42  ;;  %6611 = vrot.lane.b32.xlu0 %v6319_v57, %s11454_s13  ;;  %6462 = vrot.lane.b32.xlu1 %v6317_v35, %s11451_s8  ;;  %v6861_v34 = vsel %vm2673_vm4, %v6858_v19, %v6860_v30 }
 0x459   : > { %v5515_v10 = vadd.f32 %v5463_v45, %v5107_v14  ;;  %v6415_v14 = vpop.permute.xlu1 %6414 }
 0x45a   : > { %v15938_v11 = vpop.f32.mrf.mxu2 }
 0x45b   : > { %10978 = vmatmul.msk.f32.gmra.mxu1 %vm4597_vm9, %v15903_v47  ;;  %10890 = vmatmul.msk.f32.gmra.mxu3 %vm2104_vm2, %v19511_v63  ;;  %19512 = vst [vmem:[#allocation43_spill] sm:$0xff] %v15938_v11  ;;  %v5563_v31 = vmax.f32 %v5515_v10, 0.0  ;;  %v11401_v63 = vld [vmem:[#allocation2 + $0x9f] sm:$0xff] }
 0x45c   : > { %v6693_v42 = vsel %vm2104_vm2, %v11401_v63, %v6413_v9  ;;  %v19514_v10 = vld [vmem:[#allocation46_spill] sm:$0xff]  ;;  %v11402_v63 = vld [vmem:[#allocation2 + $0xa7] sm:$0xff] }
 0x45d   : > { %v15945_v53 = vsel %vm4395_vm14, %v6693_v42, %v6564_v49  ;;  %v6222_v50 = vmul.f32 %v14965_v38, %v5563_v31  ;;  %v19515_v11 = vmax.f32 %v19514_v10, 0.0  ;;  %v6694_v42 = vsel %vm2104_vm2, %v11402_v63, %v6415_v14  ;;  %v6566_v38 = vpop.permute.xlu2 %6565  ;;  %v19518_v14 = vld [vmem:[#allocation47_spill] sm:$0xff] }
 0x45e   : > { %v15940_v18 = vpop.f32.mrf.mxu3  ;;  %10930 = vmatmul.msk.f32.gmra.mxu0 %vm4597_vm9, %v6861_v34  ;;  %v5109_v35 = vpop.f32.mrf.mxu0 }
 0x45f   : > { %19513 = vst [vmem:[#allocation97_spill] sm:$0xff] %v15940_v18  ;;  %10865 = vmatmul.msk.f32.gmra.mxu2 %vm2104_vm2, %v5563_v31  ;;  %v6321_v45 = vld [vmem:[#allocation2 + $0x197] sm:$0xff]  ;;  %v5110_v19 = vadd.f32 %v5109_v35, %v15765_v8  ;;  %v6862_v31 = vrot.slane %v15945_v53, 1 }
 0x460   : > { %v7296_v28 = vpop.f32.mrf.mxu1  ;;  %6270 = vst.msk [vmem:[#allocation2 + $0x1a0] sm:$0xff] %vm2104_vm2, %v6222_v50  ;;  %6464 = vrot.lane.b32.xlu0 %v6318_v12, %s11451_s8  ;;  %6613 = vrot.lane.b32.xlu2 %v6321_v45, %s11454_s13  ;;  %v15969_v12 = vsel %vm4395_vm14, %v6694_v42, %v6566_v38  ;;  %v7444_v38 = vrot.slane %v15588_v23, 2  ;;  %v6417_v42 = vpop.permute.xlu0 %6416 }
 0x461   : > { %v5516_v49 = vadd.f32 %v5466_v4, %v5110_v19  ;;  %v6863_v50 = vsel %vm2673_vm4, %v6860_v30, %v6862_v31  ;;  %v19519_v19 = vmax.f32 %v19518_v14, 0.0 }
 0x462   : > { %v15960_v9 = vpop.f32.mrf.mxu2 }
 0x463   : > { %10979 = vmatmul.msk.f32.gmra.mxu1 %vm4597_vm9, %v15923_v44  ;;  %10891 = vmatmul.msk.f32.gmra.mxu3 %vm2104_vm2, %v19515_v11  ;;  %19516 = vst [vmem:[#allocation46_spill] sm:$0xff] %v15960_v9  ;;  %v5564_v11 = vmax.f32 %v5516_v49, 0.0  ;;  %v6864_v49 = vrot.slane %v15969_v12, 1 }
 0x465   : > { %v6223_v8 = vmul.f32 %v15006_v51, %v5564_v11  ;;  %v6865_v23 = vsel %vm2673_vm4, %v6862_v31, %v6864_v49  ;;  %v19522_v51 = vld [vmem:[#allocation50_spill] sm:$0xff]  ;;  %v7446_v31 = vrot.slane %v15612_v29, 2 }
 0x466   : > { %v15963_v34 = vpop.f32.mrf.mxu3  ;;  %10931 = vmatmul.msk.f32.gmra.mxu0 %vm4597_vm9, %v6863_v50  ;;  %v7039_v4 = vpop.f32.mrf.mxu0 }
 0x467   : > { %19517 = vst [vmem:[#allocation98_spill] sm:$0xff] %v15963_v34  ;;  %10866 = vmatmul.msk.f32.gmra.mxu2 %vm2104_vm2, %v5564_v11  ;;  %v6322_v35 = vld [vmem:[#allocation2 + $0x19f] sm:$0xff]  ;;  %v15978_v30 = vadd.f32 %v7296_v28, %v7039_v4  ;;  %v7443_v11 = vrot.slane %v15585_v54, 2  ;;  %v6568_v50 = vpop.permute.xlu1 %6567 }
 0x468   : > { %v7299_v10 = vpop.f32.mrf.mxu1  ;;  %6271 = vst.msk [vmem:[#allocation2 + $0x1a8] sm:$0xff] %vm2104_vm2, %v6223_v8  ;;  %6615 = vrot.lane.b32.xlu1 %v6322_v35, %s11454_s13  ;;  %6466 = vrot.lane.b32.xlu2 %v6319_v57, %s11451_s8  ;;  %v11403_v8 = vld [vmem:[#allocation2 + $0xaf] sm:$0xff] }
 0x469   : > { %v6695_v28 = vsel %vm2104_vm2, %v11403_v8, %v6417_v42  ;;  %v7445_v4 = vsel %vm3295_vm5, %v7443_v11, %v7444_v38  ;;  %v6419_v8 = vpop.permute.xlu2 %6418 }
 0x46a   : > { %v15984_v63 = vpop.f32.mrf.mxu2  ;;  %v15993_v57 = vsel %vm4395_vm14, %v6695_v28, %v6568_v50  ;;  %v6570_v28 = vpop.permute.xlu0 %6569 }
 0x46b   : > { %10980 = vmatmul.msk.f32.gmra.mxu1 %vm4597_vm9, %v15945_v53  ;;  %10892 = vmatmul.msk.f32.gmra.mxu3 %vm2104_vm2, %v19519_v19  ;;  %19520 = vst [vmem:[#allocation47_spill] sm:$0xff] %v15984_v63  ;;  %v6866_v11 = vrot.slane %v15993_v57, 1 }
 0x46d   : > { %v6867_v29 = vsel %vm2673_vm4, %v6864_v49, %v6866_v11  ;;  %v9513_v49 = vld [vmem:[%s18867_s4 + $0x40] sm:$0xff] }
 0x46e   : > { %v15987_v14 = vpop.f32.mrf.mxu3  ;;  %10932 = vmatmul.msk.f32.gmra.mxu0 %vm4597_vm9, %v6865_v23  ;;  %v7042_v54 = vpop.f32.mrf.mxu0  ;;  %v6326_v23 = vld [vmem:[#allocation2 + $0x1b7] sm:$0xff]  ;;  %9720 = vmatpush.msrb.mxu2 %v9513_v49 }
 0x46f   : > { %19521 = vst [vmem:[#allocation99_spill] sm:$0xff] %v15987_v14  ;;  %11011 = vmatmul.msk.f32.vlgmr.msra.gmra.mxu2 %vm4597_vm9, %v7445_v4  ;;  %v6325_v63 = vld [vmem:[#allocation2 + $0x1af] sm:$0xff]  ;;  %v6323_v9 = vld [vmem:[#allocation2 + $0x1a7] sm:$0xff]  ;;  %v19523_v14 = vmax.f32 %v19522_v51, 0.0  ;;  %v16002_v42 = vadd.f32 %v7299_v10, %v7042_v54 }
 0x470   : > { %v7302_v19 = vpop.f32.mrf.mxu1  ;;  %6468 = vrot.lane.b32.xlu1 %v6321_v45, %s11451_s8  ;;  %6619 = vrot.lane.b32.xlu2 %v6325_v63, %s11454_s13  ;;  %v7447_v45 = vsel %vm3295_vm5, %v7444_v38, %v7446_v31  ;;  %v6324_v49 = vld [vmem:[#allocation2 + $0x1af] sm:$0x3] }
 0x471   : > { %6617 = vrot.lane.b32.xlu0 %v6323_v9, %s11454_s13 }
 0x472   : > { %v16009_v50 = vpop.f32.mrf.mxu2 }
 0x473   : > { %10981 = vmatmul.msk.f32.gmra.mxu1 %vm4597_vm9, %v15969_v12  ;;  %10893 = vmatmul.msk.f32.gmra.mxu3 %vm2104_vm2, %v19523_v14  ;;  %19524 = vst [vmem:[#allocation50_spill] sm:$0xff] %v16009_v50  ;;  %v11404_v14 = vld [vmem:[#allocation2 + $0xb7] sm:$0xff]  ;;  %v6421_v50 = vpop.permute.xlu1 %6420 }
 0x474   : > { %v6696_v10 = vsel %vm2104_vm2, %v11404_v14, %v6419_v8  ;;  %v7448_v8 = vrot.slane %v15636_v56, 2  ;;  %v8847_v56 = vld [vmem:[%s18867_s4 + $0x10] sm:$0xff] }
 0x475   : > { %v16017_v54 = vsel %vm4395_vm14, %v6696_v10, %v6570_v28  ;;  %9363 = vmatpush.msrb.mxu1 %v8847_v56  ;;  %v6423_v56 = vpop.permute.xlu0 %6422 }
 0x476   : > { %v16011_v4 = vpop.f32.mrf.mxu3  ;;  %10933 = vmatmul.msk.f32.gmra.mxu0 %vm4597_vm9, %v6867_v29  ;;  %v7045_v63 = vpop.f32.mrf.mxu0  ;;  %v6868_v28 = vrot.slane %v16017_v54, 1 }
 0x477   : > { %19525 = vst [vmem:[#allocation100_spill] sm:$0xff] %v16011_v4  ;;  %11012 = vmatmul.msk.f32.gmra.mxu2 %vm4597_vm9, %v7447_v45  ;;  %v19526_v4 = vld [vmem:[#allocation51_spill] sm:$0xff]  ;;  %v16026_v38 = vadd.f32 %v7302_v19, %v7045_v63  ;;  %v8850_v45 = vld [vmem:[%s18867_s4 + $0x28] sm:$0xff] }
 0x478   : > { %v7305_v51 = vpop.f32.mrf.mxu1  ;;  %v19527_v34 = vmax.f32 %v19526_v4, 0.0  ;;  %6621 = vrot.lane.b32.xlu1 %v6326_v23, %s11454_s13  ;;  %6472 = vrot.lane.b32.xlu2 %v6323_v9, %s11451_s8  ;;  %v6572_v9 = vpop.permute.xlu2 %6571  ;;  %v6869_v23 = vsel %vm2673_vm4, %v6866_v11, %v6868_v28  ;;  %v7450_v11 = vrot.slane %v15656_v2, 2 }
 0x479   : > { %6470 = vrot.lane.b32.xlu0 %v6322_v35, %s11451_s8  ;;  %v7449_v35 = vsel %vm3295_vm5, %v7446_v31, %v7448_v8  ;;  %9106 = vmatpush.msrb.mxu0 %v8850_v45 }
 0x47a   : > { %v16036_v14 = vpop.f32.mrf.mxu2 }
 0x47b   : > { %10982 = vmatmul.msk.f32.gmra.mxu1 %vm4597_vm9, %v15993_v57  ;;  %10894 = vmatmul.msk.f32.gmra.mxu3 %vm2104_vm2, %v19527_v34  ;;  %19528 = vst [vmem:[#allocation51_spill] sm:$0xff] %v16036_v14  ;;  %v11405_v34 = vld [vmem:[#allocation2 + $0xbf] sm:$0xff] }
 0x47c   : > { %v6697_v19 = vsel %vm2104_vm2, %v11405_v34, %v6421_v50  ;;  %v6327_v50 = vld [vmem:[#allocation2 + $0x1bf] sm:$0xff] }
 0x47d   : > { %v16051_v29 = vsel %vm4395_vm14, %v6697_v19, %v6572_v9  ;;  %v19530_v34 = vld [vmem:[#allocation54_spill] sm:$0xff]  ;;  %v6574_v9 = vpop.permute.xlu1 %6573 }
 0x47e   : > { %v16039_v4 = vpop.f32.mrf.mxu3  ;;  %10934 = vmatmul.msk.f32.gmra.mxu0 %vm4597_vm9, %v6869_v23  ;;  %v7048_v63 = vpop.f32.mrf.mxu0  ;;  %v19531_v14 = vmax.f32 %v19530_v34, 0.0  ;;  %v6870_v19 = vrot.slane %v16051_v29, 1  ;;  %v6328_v34 = vld [vmem:[#allocation2 + $0x1c7] sm:$0x3] }
 0x47f   : > { %19529 = vst [vmem:[#allocation101_spill] sm:$0xff] %v16039_v4  ;;  %11013 = vmatmul.msk.f32.gmra.mxu2 %vm4597_vm9, %v7449_v35  ;;  %v16059_v31 = vadd.f32 %v7305_v51, %v7048_v63  ;;  %v11406_v4 = vld [vmem:[#allocation2 + $0xc7] sm:$0xff] }
 0x480   : > { %v7308_v10 = vpop.f32.mrf.mxu1  ;;  %6474 = vrot.lane.b32.xlu1 %v6324_v49, %s11451_s8  ;;  %v6698_v51 = vsel %vm2104_vm2, %v11406_v4, %v6423_v56  ;;  %v6871_v63 = vsel %vm2673_vm4, %v6868_v28, %v6870_v19  ;;  %6625 = vrot.lane.b32.xlu2 %v6328_v34, %s11454_s13  ;;  %v19534_v49 = vld [vmem:[#allocation55_spill] sm:$0xff]  ;;  %v7452_v28 = vrot.slane %v15681_v0, 2  ;;  %v6576_v34 = vpop.permute.xlu0 %6575 }
 0x481   : > { %6623 = vrot.lane.b32.xlu0 %v6327_v50, %s11454_s13  ;;  %v16074_v2 = vsel %vm4395_vm14, %v6698_v51, %v6574_v9  ;;  %v6425_v9 = vpop.permute.xlu2 %6424 }
 0x482   : > { %v16065_v45 = vpop.f32.mrf.mxu2  ;;  %v6872_v4 = vrot.slane %v16074_v2, 1 }
 0x483   : > { %10983 = vmatmul.msk.f32.gmra.mxu1 %vm4597_vm9, %v16017_v54  ;;  %10895 = vmatmul.msk.f32.gmra.mxu3 %vm2104_vm2, %v19531_v14  ;;  %19532 = vst [vmem:[#allocation54_spill] sm:$0xff] %v16065_v45  ;;  %v7451_v14 = vsel %vm3295_vm5, %v7448_v8, %v7450_v11  ;;  %v19535_v45 = vmax.f32 %v19534_v49, 0.0  ;;  %v7453_v49 = vsel %vm3295_vm5, %v7450_v11, %v7452_v28  ;;  %v7454_v11 = vrot.slane %v15705_v52, 2 }
 0x485   : > { %v7455_v24 = vsel %vm3295_vm5, %v7452_v28, %v7454_v11  ;;  %v7456_v28 = vrot.slane %v15725_v3, 2 }
 0x486   : > { %v16067_v35 = vpop.f32.mrf.mxu3  ;;  %10935 = vmatmul.msk.f32.gmra.mxu0 %vm4597_vm9, %v6871_v63  ;;  %v7051_v50 = vpop.f32.mrf.mxu0  ;;  %v11407_v63 = vld [vmem:[#allocation2 + $0xcf] sm:$0xff] }
 0x487   : > { %19533 = vst [vmem:[#allocation102_spill] sm:$0xff] %v16067_v35  ;;  %11014 = vmatmul.msk.f32.gmra.mxu2 %vm4597_vm9, %v7451_v14  ;;  %v16083_v8 = vadd.f32 %v7308_v10, %v7051_v50  ;;  %v6699_v35 = vsel %vm2104_vm2, %v11407_v63, %v6425_v9  ;;  %v6427_v50 = vpop.permute.xlu1 %6426 }
 0x488   : > { %v7311_v23 = vpop.f32.mrf.mxu1  ;;  %v16095_v10 = vsel %vm4395_vm14, %v6699_v35, %v6576_v34  ;;  %v11408_v34 = vld [vmem:[#allocation2 + $0xd7] sm:$0xff] }
 0x489   : > { %v6700_v63 = vsel %vm2104_vm2, %v11408_v34, %v6427_v50  ;;  %v6578_v18 = vpop.permute.xlu2 %6577 }
 0x48a   : > { %v16087_v56 = vpop.f32.mrf.mxu2 }
 0x48b   : > { %10984 = vmatmul.msk.f32.gmra.mxu1 %vm4597_vm9, %v16051_v29  ;;  %10896 = vmatmul.msk.f32.gmra.mxu3 %vm2104_vm2, %v19535_v45  ;;  %19536 = vst [vmem:[#allocation55_spill] sm:$0xff] %v16087_v56  ;;  %v6873_v45 = vsel %vm2673_vm4, %v6870_v19, %v6872_v4  ;;  %v19538_v56 = vld [vmem:[#allocation57_spill] sm:$0xff]  ;;  %v6874_v19 = vrot.slane %v16095_v10, 1 }
 0x48e   : > { %v16089_v51 = vpop.f32.mrf.mxu3  ;;  %10936 = vmatmul.msk.f32.gmra.mxu0 %vm4597_vm9, %v6873_v45  ;;  %v7054_v0 = vpop.f32.mrf.mxu0 }
 0x48f   : > { %19537 = vst [vmem:[#allocation103_spill] sm:$0xff] %v16089_v51  ;;  %11015 = vmatmul.msk.f32.gmra.mxu2 %vm4597_vm9, %v7453_v49  ;;  %v19539_v51 = vmax.f32 %v19538_v56, 0.0  ;;  %v16104_v9 = vadd.f32 %v7311_v23, %v7054_v0  ;;  %v6875_v56 = vsel %vm2673_vm4, %v6872_v4, %v6874_v19  ;;  %v16117_v23 = vsel %vm4395_vm14, %v6700_v63, %v6578_v18  ;;  %v6429_v18 = vpop.permute.xlu0 %6428  ;;  %v6580_v34 = vpop.permute.xlu1 %6579 }
 0x490   : > { %v7314_v14 = vpop.f32.mrf.mxu1  ;;  %v6876_v4 = vrot.slane %v16117_v23, 1 }
 0x492   : > { %v16108_v35 = vpop.f32.mrf.mxu2 }
 0x493   : > { %10985 = vmatmul.msk.f32.gmra.mxu1 %vm4597_vm9, %v16074_v2  ;;  %10897 = vmatmul.msk.f32.gmra.mxu3 %vm2104_vm2, %v19539_v51  ;;  %19540 = vst [vmem:[#allocation57_spill] sm:$0xff] %v16108_v35  ;;  %v19542_v51 = vld [vmem:[#allocation60_spill] sm:$0xff]  ;;  %v11409_v35 = vld [vmem:[#allocation2 + $0xdf] sm:$0xff] }
 0x494   : > { %v19543_v0 = vmax.f32 %v19542_v51, 0.0  ;;  %v7457_v51 = vsel %vm3295_vm5, %v7454_v11, %v7456_v28  ;;  %v7458_v11 = vrot.slane %v15747_v58, 2 }
 0x496   : > { %v16111_v49 = vpop.f32.mrf.mxu3  ;;  %10937 = vmatmul.msk.f32.gmra.mxu0 %vm4597_vm9, %v6875_v56  ;;  %v7057_v52 = vpop.f32.mrf.mxu0 }
 0x497   : > { %19541 = vst [vmem:[#allocation104_spill] sm:$0xff] %v16111_v49  ;;  %11016 = vmatmul.msk.f32.gmra.mxu2 %vm4597_vm9, %v7455_v24  ;;  %v16125_v50 = vadd.f32 %v7314_v14, %v7057_v52  ;;  %v6701_v49 = vsel %vm2104_vm2, %v11409_v35, %v6429_v18  ;;  %v19546_v52 = vld [vmem:[#allocation62_spill] sm:$0xff]  ;;  %v6431_v18 = vpop.permute.xlu2 %6430 }
 0x498   : > { %v7317_v45 = vpop.f32.mrf.mxu1  ;;  %v16137_v14 = vsel %vm4395_vm14, %v6701_v49, %v6580_v34  ;;  %v6582_v34 = vpop.permute.xlu0 %6581 }
 0x49a   : > { %v16129_v24 = vpop.f32.mrf.mxu2 }
 0x49b   : > { %10986 = vmatmul.msk.f32.gmra.mxu1 %vm4597_vm9, %v16095_v10  ;;  %10898 = vmatmul.msk.f32.gmra.mxu3 %vm2104_vm2, %v19543_v0  ;;  %19544 = vst [vmem:[#allocation60_spill] sm:$0xff] %v16129_v24  ;;  %v6877_v0 = vsel %vm2673_vm4, %v6874_v19, %v6876_v4  ;;  %v19547_v24 = vmax.f32 %v19546_v52, 0.0  ;;  %v6878_v19 = vrot.slane %v16137_v14, 1  ;;  %v7459_v52 = vsel %vm3295_vm5, %v7456_v28, %v7458_v11 }
 0x49c   : > { %v7460_v28 = vrot.slane %v15771_v55, 2 }
 0x49e   : > { %v16131_v63 = vpop.f32.mrf.mxu3  ;;  %10938 = vmatmul.msk.f32.gmra.mxu0 %vm4597_vm9, %v6877_v0  ;;  %v7060_v3 = vpop.f32.mrf.mxu0  ;;  %v7461_v40 = vsel %vm3295_vm5, %v7458_v11, %v7460_v28  ;;  %v7462_v11 = vrot.slane %v15791_v21, 2 }
 0x49f   : > { %19545 = vst [vmem:[#allocation105_spill] sm:$0xff] %v16131_v63  ;;  %11017 = vmatmul.msk.f32.gmra.mxu2 %vm4597_vm9, %v7457_v51  ;;  %v16146_v35 = vadd.f32 %v7317_v45, %v7060_v3  ;;  %v11410_v63 = vld [vmem:[#allocation2 + $0xe7] sm:$0xff]  ;;  %v6433_v3 = vpop.permute.xlu1 %6432  ;;  %v6584_v43 = vpop.permute.xlu2 %6583 }
 0x4a0   : > { %v7320_v56 = vpop.f32.mrf.mxu1  ;;  %v6702_v60 = vsel %vm2104_vm2, %v11410_v63, %v6431_v18  ;;  %v11411_v18 = vld [vmem:[#allocation2 + $0xef] sm:$0xff] }
 0x4a1   : > { %v16158_v45 = vsel %vm4395_vm14, %v6702_v60, %v6582_v34  ;;  %v6703_v34 = vsel %vm2104_vm2, %v11411_v18, %v6433_v3 }
 0x4a2   : > { %v16150_v49 = vpop.f32.mrf.mxu2  ;;  %v6880_v60 = vrot.slane %v16158_v45, 1 }
 0x4a3   : > { %10987 = vmatmul.msk.f32.gmra.mxu1 %vm4597_vm9, %v16117_v23  ;;  %10899 = vmatmul.msk.f32.gmra.mxu3 %vm2104_vm2, %v19547_v24  ;;  %19548 = vst [vmem:[#allocation62_spill] sm:$0xff] %v16150_v49  ;;  %v6879_v24 = vsel %vm2673_vm4, %v6876_v4, %v6878_v19  ;;  %v19550_v49 = vld [vmem:[#allocation64_spill] sm:$0xff] }
 0x4a6   : > { %v16152_v51 = vpop.f32.mrf.mxu3  ;;  %10939 = vmatmul.msk.f32.gmra.mxu0 %vm4597_vm9, %v6879_v24  ;;  %v7063_v58 = vpop.f32.mrf.mxu0 }
 0x4a7   : > { %19549 = vst [vmem:[#allocation106_spill] sm:$0xff] %v16152_v51  ;;  %11018 = vmatmul.msk.f32.gmra.mxu2 %vm4597_vm9, %v7459_v52  ;;  %v19551_v51 = vmax.f32 %v19550_v49, 0.0  ;;  %v16167_v63 = vadd.f32 %v7320_v56, %v7063_v58  ;;  %v6881_v49 = vsel %vm2673_vm4, %v6878_v19, %v6880_v60  ;;  %v16180_v56 = vsel %vm4395_vm14, %v6703_v34, %v6584_v43  ;;  %v6435_v43 = vpop.permute.xlu0 %6434  ;;  %v6586_v18 = vpop.permute.xlu1 %6585 }
 0x4a8   : > { %v7323_v0 = vpop.f32.mrf.mxu1  ;;  %v6882_v19 = vrot.slane %v16180_v56, 1 }
 0x4aa   : > { %v16171_v4 = vpop.f32.mrf.mxu2 }
 0x4ab   : > { %10988 = vmatmul.msk.f32.gmra.mxu1 %vm4597_vm9, %v16137_v14  ;;  %10900 = vmatmul.msk.f32.gmra.mxu3 %vm2104_vm2, %v19551_v51  ;;  %19552 = vst [vmem:[#allocation64_spill] sm:$0xff] %v16171_v4  ;;  %v19554_v51 = vld [vmem:[#allocation65_spill] sm:$0xff] }
 0x4ac   : > { %v19555_v58 = vmax.f32 %v19554_v51, 0.0  ;;  %v11412_v4 = vld [vmem:[#allocation2 + $0xf7] sm:$0xff]  ;;  %v7463_v51 = vsel %vm3295_vm5, %v7460_v28, %v7462_v11  ;;  %v7464_v28 = vrot.slane %v15813_v25, 2 }
 0x4ae   : > { %v16174_v52 = vpop.f32.mrf.mxu3  ;;  %10940 = vmatmul.msk.f32.gmra.mxu0 %vm4597_vm9, %v6881_v49  ;;  %v7066_v55 = vpop.f32.mrf.mxu0 }
 0x4af   : > { %19553 = vst [vmem:[#allocation107_spill] sm:$0xff] %v16174_v52  ;;  %11019 = vmatmul.msk.f32.gmra.mxu2 %vm4597_vm9, %v7461_v40  ;;  %v16188_v3 = vadd.f32 %v7323_v0, %v7066_v55  ;;  %v6704_v52 = vsel %vm2104_vm2, %v11412_v4, %v6435_v43  ;;  %v19558_v55 = vld [vmem:[#allocation67_spill] sm:$0xff]  ;;  %v6437_v43 = vpop.permute.xlu2 %6436 }
 0x4b0   : > { %v7326_v24 = vpop.f32.mrf.mxu1  ;;  %v16200_v0 = vsel %vm4395_vm14, %v6704_v52, %v6586_v18  ;;  %v6588_v18 = vpop.permute.xlu0 %6587 }
 0x4b2   : > { %v16192_v40 = vpop.f32.mrf.mxu2 }
 0x4b3   : > { %10989 = vmatmul.msk.f32.gmra.mxu1 %vm4597_vm9, %v16158_v45  ;;  %10901 = vmatmul.msk.f32.gmra.mxu3 %vm2104_vm2, %v19555_v58  ;;  %19556 = vst [vmem:[#allocation65_spill] sm:$0xff] %v16192_v40  ;;  %v6883_v58 = vsel %vm2673_vm4, %v6880_v60, %v6882_v19  ;;  %v19559_v40 = vmax.f32 %v19558_v55, 0.0  ;;  %v6884_v60 = vrot.slane %v16200_v0, 1  ;;  %v7465_v55 = vsel %vm3295_vm5, %v7462_v11, %v7464_v28 }
 0x4b4   : > { %v7466_v11 = vrot.slane %v15837_v15, 2 }
 0x4b6   : > { %v16194_v34 = vpop.f32.mrf.mxu3  ;;  %10941 = vmatmul.msk.f32.gmra.mxu0 %vm4597_vm9, %v6883_v58  ;;  %v7069_v21 = vpop.f32.mrf.mxu0  ;;  %v7467_v62 = vsel %vm3295_vm5, %v7464_v28, %v7466_v11  ;;  %v7468_v28 = vrot.slane %v15857_v33, 2 }
 0x4b7   : > { %19557 = vst [vmem:[#allocation108_spill] sm:$0xff] %v16194_v34  ;;  %11020 = vmatmul.msk.f32.gmra.mxu2 %vm4597_vm9, %v7463_v51  ;;  %v16209_v4 = vadd.f32 %v7326_v24, %v7069_v21  ;;  %v11413_v34 = vld [vmem:[#allocation2 + $0xff] sm:$0xff]  ;;  %v6439_v21 = vpop.permute.xlu1 %6438  ;;  %v6590_v16 = vpop.permute.xlu2 %6589 }
 0x4b8   : > { %v7329_v49 = vpop.f32.mrf.mxu1  ;;  %v6705_v32 = vsel %vm2104_vm2, %v11413_v34, %v6437_v43  ;;  %v11414_v43 = vld [vmem:[#allocation2 + $0x107] sm:$0xff] }
 0x4b9   : > { %v16221_v24 = vsel %vm4395_vm14, %v6705_v32, %v6588_v18  ;;  %v6706_v18 = vsel %vm2104_vm2, %v11414_v43, %v6439_v21 }
 0x4ba   : > { %v16213_v52 = vpop.f32.mrf.mxu2  ;;  %v6886_v32 = vrot.slane %v16221_v24, 1 }
 0x4bb   : > { %10990 = vmatmul.msk.f32.gmra.mxu1 %vm4597_vm9, %v16180_v56  ;;  %10902 = vmatmul.msk.f32.gmra.mxu3 %vm2104_vm2, %v19559_v40  ;;  %19560 = vst [vmem:[#allocation67_spill] sm:$0xff] %v16213_v52  ;;  %v6885_v40 = vsel %vm2673_vm4, %v6882_v19, %v6884_v60  ;;  %v19562_v52 = vld [vmem:[#allocation69_spill] sm:$0xff] }
 0x4be   : > { %v16215_v51 = vpop.f32.mrf.mxu3  ;;  %10942 = vmatmul.msk.f32.gmra.mxu0 %vm4597_vm9, %v6885_v40  ;;  %v7072_v25 = vpop.f32.mrf.mxu0 }
 0x4bf   : > { %19561 = vst [vmem:[#allocation109_spill] sm:$0xff] %v16215_v51  ;;  %11021 = vmatmul.msk.f32.gmra.mxu2 %vm4597_vm9, %v7465_v55  ;;  %v19563_v51 = vmax.f32 %v19562_v52, 0.0  ;;  %v16230_v34 = vadd.f32 %v7329_v49, %v7072_v25  ;;  %v6887_v52 = vsel %vm2673_vm4, %v6884_v60, %v6886_v32  ;;  %v16243_v49 = vsel %vm4395_vm14, %v6706_v18, %v6590_v16  ;;  %v6441_v16 = vpop.permute.xlu0 %6440  ;;  %v6592_v43 = vpop.permute.xlu1 %6591 }
 0x4c0   : > { %v7332_v58 = vpop.f32.mrf.mxu1  ;;  %v6888_v60 = vrot.slane %v16243_v49, 1 }
 0x4c2   : > { %v16234_v19 = vpop.f32.mrf.mxu2 }
 0x4c3   : > { %10991 = vmatmul.msk.f32.gmra.mxu1 %vm4597_vm9, %v16200_v0  ;;  %10903 = vmatmul.msk.f32.gmra.mxu3 %vm2104_vm2, %v19563_v51  ;;  %19564 = vst [vmem:[#allocation69_spill] sm:$0xff] %v16234_v19  ;;  %v19566_v51 = vld [vmem:[#allocation71_spill] sm:$0xff]  ;;  %v11415_v19 = vld [vmem:[#allocation2 + $0x10f] sm:$0xff] }
 0x4c4   : > { %v19567_v25 = vmax.f32 %v19566_v51, 0.0  ;;  %v7469_v51 = vsel %vm3295_vm5, %v7466_v11, %v7468_v28  ;;  %v7470_v11 = vrot.slane %v15879_v46, 2 }
 0x4c6   : > { %v16237_v55 = vpop.f32.mrf.mxu3  ;;  %10943 = vmatmul.msk.f32.gmra.mxu0 %vm4597_vm9, %v6887_v52  ;;  %v7075_v15 = vpop.f32.mrf.mxu0 }
 0x4c7   : > { %19565 = vst [vmem:[#allocation110_spill] sm:$0xff] %v16237_v55  ;;  %11022 = vmatmul.msk.f32.gmra.mxu2 %vm4597_vm9, %v7467_v62  ;;  %v16251_v21 = vadd.f32 %v7332_v58, %v7075_v15  ;;  %v6707_v55 = vsel %vm2104_vm2, %v11415_v19, %v6441_v16  ;;  %v19570_v15 = vld [vmem:[#allocation73_spill] sm:$0xff]  ;;  %v6443_v16 = vpop.permute.xlu2 %6442 }
 0x4c8   : > { %v7335_v40 = vpop.f32.mrf.mxu1  ;;  %v16263_v58 = vsel %vm4395_vm14, %v6707_v55, %v6592_v43  ;;  %v6594_v43 = vpop.permute.xlu0 %6593 }
 0x4ca   : > { %v16255_v62 = vpop.f32.mrf.mxu2 }
 0x4cb   : > { %10992 = vmatmul.msk.f32.gmra.mxu1 %vm4597_vm9, %v16221_v24  ;;  %10904 = vmatmul.msk.f32.gmra.mxu3 %vm2104_vm2, %v19567_v25  ;;  %19568 = vst [vmem:[#allocation71_spill] sm:$0xff] %v16255_v62  ;;  %v6889_v25 = vsel %vm2673_vm4, %v6886_v32, %v6888_v60  ;;  %v19571_v62 = vmax.f32 %v19570_v15, 0.0  ;;  %v6890_v32 = vrot.slane %v16263_v58, 1  ;;  %v7471_v15 = vsel %vm3295_vm5, %v7468_v28, %v7470_v11 }
 0x4cc   : > { %v7472_v28 = vrot.slane %v15903_v47, 2 }
 0x4ce   : > { %v16257_v18 = vpop.f32.mrf.mxu3  ;;  %10944 = vmatmul.msk.f32.gmra.mxu0 %vm4597_vm9, %v6889_v25  ;;  %v7078_v33 = vpop.f32.mrf.mxu0 }
 0x4cf   : > { %19569 = vst [vmem:[#allocation111_spill] sm:$0xff] %v16257_v18  ;;  %11023 = vmatmul.msk.f32.gmra.mxu2 %vm4597_vm9, %v7469_v51  ;;  %v16272_v19 = vadd.f32 %v7335_v40, %v7078_v33  ;;  %v11416_v18 = vld [vmem:[#allocation2 + $0x117] sm:$0xff]  ;;  %v6445_v33 = vpop.permute.xlu1 %6444  ;;  %v6596_v17 = vpop.permute.xlu2 %6595 }
 0x4d0   : > { %v7338_v52 = vpop.f32.mrf.mxu1  ;;  %v6708_v6 = vsel %vm2104_vm2, %v11416_v18, %v6443_v16  ;;  %v11417_v16 = vld [vmem:[#allocation2 + $0x11f] sm:$0xff] }
 0x4d1   : > { %19572 = vst [vmem:[#allocation73_spill] sm:$0xff] %v16272_v19  ;;  %v16284_v40 = vsel %vm4395_vm14, %v6708_v6, %v6594_v43  ;;  %v6709_v43 = vsel %vm2104_vm2, %v11417_v16, %v6445_v33  ;;  %v7473_v19 = vsel %vm3295_vm5, %v7470_v11, %v7472_v28  ;;  %v7474_v11 = vrot.slane %v15923_v44, 2 }
 0x4d2   : > { %v16276_v55 = vpop.f32.mrf.mxu2  ;;  %v6892_v6 = vrot.slane %v16284_v40, 1 }
 0x4d3   : > { %10993 = vmatmul.msk.f32.gmra.mxu1 %vm4597_vm9, %v16243_v49  ;;  %10905 = vmatmul.msk.f32.gmra.mxu3 %vm2104_vm2, %v19571_v62  ;;  %19573 = vst [vmem:[#allocation112_spill] sm:$0xff] %v16276_v55  ;;  %v6891_v62 = vsel %vm2673_vm4, %v6888_v60, %v6890_v32  ;;  %v19575_v55 = vld [vmem:[#allocation75_spill] sm:$0xff] }
 0x4d6   : > { %v16278_v51 = vpop.f32.mrf.mxu3  ;;  %10945 = vmatmul.msk.f32.gmra.mxu0 %vm4597_vm9, %v6891_v62  ;;  %v7081_v46 = vpop.f32.mrf.mxu0 }
 0x4d7   : > { %19574 = vst [vmem:[#allocation113_spill] sm:$0xff] %v16278_v51  ;;  %11024 = vmatmul.msk.f32.gmra.mxu2 %vm4597_vm9, %v7471_v15  ;;  %v19576_v51 = vmax.f32 %v19575_v55, 0.0  ;;  %v16293_v18 = vadd.f32 %v7338_v52, %v7081_v46  ;;  %v6893_v55 = vsel %vm2673_vm4, %v6890_v32, %v6892_v6  ;;  %v16306_v52 = vsel %vm4395_vm14, %v6709_v43, %v6596_v17  ;;  %v6447_v17 = vpop.permute.xlu0 %6446  ;;  %v6598_v16 = vpop.permute.xlu1 %6597 }
 0x4d8   : > { %v7341_v25 = vpop.f32.mrf.mxu1  ;;  %v6894_v32 = vrot.slane %v16306_v52, 1 }
 0x4da   : > { %v16297_v60 = vpop.f32.mrf.mxu2 }
 0x4db   : > { %10994 = vmatmul.msk.f32.gmra.mxu1 %vm4597_vm9, %v16263_v58  ;;  %10906 = vmatmul.msk.f32.gmra.mxu3 %vm2104_vm2, %v19576_v51  ;;  %19577 = vst [vmem:[#allocation75_spill] sm:$0xff] %v16297_v60  ;;  %v19579_v51 = vld [vmem:[#allocation79_spill] sm:$0xff] }
 0x4dc   : > { %v19580_v46 = vmax.f32 %v19579_v51, 0.0  ;;  %v11418_v60 = vld [vmem:[#allocation2 + $0x127] sm:$0xff]  ;;  %v7475_v51 = vsel %vm3295_vm5, %v7472_v28, %v7474_v11  ;;  %v7476_v28 = vrot.slane %v15945_v53, 2 }
 0x4de   : > { %v16300_v15 = vpop.f32.mrf.mxu3  ;;  %10946 = vmatmul.msk.f32.gmra.mxu0 %vm4597_vm9, %v6893_v55  ;;  %v7084_v47 = vpop.f32.mrf.mxu0 }
 0x4df   : > { %19578 = vst [vmem:[#allocation114_spill] sm:$0xff] %v16300_v15  ;;  %11025 = vmatmul.msk.f32.gmra.mxu2 %vm4597_vm9, %v7473_v19  ;;  %v16314_v33 = vadd.f32 %v7341_v25, %v7084_v47  ;;  %v6710_v15 = vsel %vm2104_vm2, %v11418_v60, %v6447_v17  ;;  %v19584_v47 = vld [vmem:[#allocation80_spill] sm:$0xff]  ;;  %v6449_v17 = vpop.permute.xlu2 %6448 }
 0x4e0   : > { %v7344_v62 = vpop.f32.mrf.mxu1  ;;  %v16326_v25 = vsel %vm4395_vm14, %v6710_v15, %v6598_v16  ;;  %v6600_v16 = vpop.permute.xlu0 %6599 }
 0x4e1   : > { %19581 = vst [vmem:[#allocation79_spill] sm:$0xff] %v16314_v33 }
 0x4e2   : > { %v16318_v19 = vpop.f32.mrf.mxu2 }
 0x4e3   : > { %10995 = vmatmul.msk.f32.gmra.mxu1 %vm4597_vm9, %v16284_v40  ;;  %10907 = vmatmul.msk.f32.gmra.mxu3 %vm2104_vm2, %v19580_v46  ;;  %19582 = vst [vmem:[#allocation115_spill] sm:$0xff] %v16318_v19  ;;  %v6895_v46 = vsel %vm2673_vm4, %v6892_v6, %v6894_v32  ;;  %v19585_v19 = vmax.f32 %v19584_v47, 0.0  ;;  %v6896_v6 = vrot.slane %v16326_v25, 1  ;;  %v7477_v47 = vsel %vm3295_vm5, %v7474_v11, %v7476_v28 }
 0x4e4   : > { %v7478_v11 = vrot.slane %v15969_v12, 2 }
 0x4e6   : > { %v16320_v43 = vpop.f32.mrf.mxu3  ;;  %10947 = vmatmul.msk.f32.gmra.mxu0 %vm4597_vm9, %v6895_v46  ;;  %v7087_v44 = vpop.f32.mrf.mxu0  ;;  %v11419_v46 = vld [vmem:[#allocation2 + $0x12f] sm:$0xff] }
 0x4e7   : > { %19583 = vst [vmem:[#allocation116_spill] sm:$0xff] %v16320_v43  ;;  %11026 = vmatmul.msk.f32.gmra.mxu2 %vm4597_vm9, %v7475_v51  ;;  %v16335_v60 = vadd.f32 %v7344_v62, %v7087_v44  ;;  %v6711_v43 = vsel %vm2104_vm2, %v11419_v46, %v6449_v17  ;;  %v6451_v44 = vpop.permute.xlu1 %6450  ;;  %v11420_v46 = vld [vmem:[#allocation2 + $0x137] sm:$0xff] }
 0x4e8   : > { %v7347_v55 = vpop.f32.mrf.mxu1  ;;  %v16347_v62 = vsel %vm4395_vm14, %v6711_v43, %v6600_v16 }
 0x4e9   : > { %19586 = vst [vmem:[#allocation80_spill] sm:$0xff] %v16335_v60 }
 0x4ea   : > { %v16339_v15 = vpop.f32.mrf.mxu2 }
 0x4eb   : > { %10996 = vmatmul.msk.f32.gmra.mxu1 %vm4597_vm9, %v16306_v52  ;;  %10908 = vmatmul.msk.f32.gmra.mxu3 %vm2104_vm2, %v19585_v19  ;;  %19587 = vst [vmem:[#allocation117_spill] sm:$0xff] %v16339_v15  ;;  %v6897_v19 = vsel %vm2673_vm4, %v6894_v32, %v6896_v6  ;;  %v19589_v15 = vld [vmem:[#allocation85_spill] sm:$0xff]  ;;  %v6898_v32 = vrot.slane %v16347_v62, 1 }
 0x4ee   : > { %v16341_v51 = vpop.f32.mrf.mxu3  ;;  %10948 = vmatmul.msk.f32.gmra.mxu0 %vm4597_vm9, %v6897_v19  ;;  %v7090_v53 = vpop.f32.mrf.mxu0 }
 0x4ef   : > { %19588 = vst [vmem:[#allocation118_spill] sm:$0xff] %v16341_v51  ;;  %11027 = vmatmul.msk.f32.gmra.mxu2 %vm4597_vm9, %v7477_v47  ;;  %v19590_v51 = vmax.f32 %v19589_v15, 0.0  ;;  %v16356_v17 = vadd.f32 %v7347_v55, %v7090_v53  ;;  %v6712_v47 = vsel %vm2104_vm2, %v11420_v46, %v6451_v44  ;;  %v6602_v15 = vpop.permute.xlu2 %6601  ;;  %v6899_v55 = vsel %vm2673_vm4, %v6896_v6, %v6898_v32 }
 0x4f0   : > { %v7350_v33 = vpop.f32.mrf.mxu1  ;;  %v7480_v46 = vrot.slane %v15993_v57, 2  ;;  %v8846_v57 = vld [vmem:[%s18867_s4 + $0x8] sm:$0xff] }
 0x4f1   : > { %9364 = vmatpush.msrb.mxu1 %v8846_v57 }
 0x4f2   : > { %v7653_v43 = vpop.f32.mrf.mxu2 }
 0x4f3   : > { %10997 = vmatmul.msk.f32.gmra.mxu1 %vm4597_vm9, %v16326_v25  ;;  %10909 = vmatmul.msk.f32.gmra.mxu3 %vm2104_vm2, %v19590_v51  ;;  %v16361_v16 = vadd.f32 %v7653_v43, %v15978_v30  ;;  %v7479_v51 = vsel %vm3295_vm5, %v7476_v28, %v7478_v11  ;;  %v16374_v30 = vsel %vm4395_vm14, %v6712_v47, %v6602_v15  ;;  %v19592_v43 = vld [vmem:[#allocation86_spill] sm:$0xff] }
 0x4f4   : > { %v19593_v28 = vmax.f32 %v19592_v43, 0.0  ;;  %v6900_v47 = vrot.slane %v16374_v30, 1  ;;  %v6604_v43 = vpop.permute.xlu1 %6603 }
 0x4f5   : > { %v19064_v60 = vmax.f32 %v16361_v16, 0.0 }
 0x4f6   : > { %v16364_v19 = vpop.f32.mrf.mxu3  ;;  %10949 = vmatmul.msk.f32.gmra.mxu0 %vm4597_vm9, %v6899_v55  ;;  %v7093_v44 = vpop.f32.mrf.mxu0 }
 0x4f7   : > { %19591 = vst [vmem:[#allocation85_spill] sm:$0xff] %v16364_v19  ;;  %v8247_v12 = vmul.f32 %v12097_v59, %v19064_v60  ;;  %11028 = vmatmul.msk.f32.gmra.mxu2 %vm4597_vm9, %v7479_v51  ;;  %v16383_v6 = vadd.f32 %v7350_v33, %v7093_v44  ;;  %v9512_v59 = vld [vmem:[%s18867_s4 + $0x38] sm:$0xff]  ;;  %v6453_v51 = vpop.permute.xlu0 %6452  ;;  %v7481_v60 = vsel %vm3295_vm5, %v7478_v11, %v7480_v46 }
 0x4f8   : > { %v7353_v53 = vpop.f32.mrf.mxu1  ;;  %9721 = vmatpush.msrb.mxu2 %v9512_v59  ;;  %v11421_v44 = vld [vmem:[#allocation2 + $0x13f] sm:$0xff] }
 0x4f9   : > { %8295 = vst.msk [vmem:[#allocation2 + $0x30] sm:$0xff] %vm2104_vm2, %v8247_v12  ;;  %v8849_v12 = vld [vmem:[%s18867_s4 + $0x20] sm:$0xff]  ;;  %v6713_v59 = vsel %vm2104_vm2, %v11421_v44, %v6453_v51 }
 0x4fa   : > { %v7656_v15 = vpop.f32.mrf.mxu2  ;;  %9107 = vmatpush.msrb.mxu0 %v8849_v12 }
 0x4fb   : > { %10998 = vmatmul.msk.f32.gmra.mxu1 %vm4597_vm9, %v16347_v62  ;;  %10910 = vmatmul.msk.f32.gmra.mxu3 %vm2104_vm2, %v19593_v28  ;;  %v16391_v55 = vadd.f32 %v7656_v15, %v16002_v42  ;;  %v6901_v42 = vsel %vm2673_vm4, %v6898_v32, %v6900_v47  ;;  %v16406_v15 = vsel %vm4395_vm14, %v6713_v59, %v6604_v43  ;;  %v19595_v32 = vmax.f32 %v14807_v61, 0.0  ;;  %v6455_v61 = vpop.permute.xlu2 %6454 }
 0x4fc   : > { %v6902_v12 = vrot.slane %v16406_v15, 1 }
 0x4fd   : > { %v19065_v33 = vmax.f32 %v16391_v55, 0.0 }
 0x4fe   : > { %v16393_v28 = vpop.f32.mrf.mxu3  ;;  %10950 = vmatmul.msk.f32.gmra.mxu0 %vm4597_vm9, %v6901_v42  ;;  %v7096_v51 = vpop.f32.mrf.mxu0 }
 0x4ff   : > { %19594 = vst [vmem:[#allocation86_spill] sm:$0xff] %v16393_v28  ;;  %v8248_v28 = vmul.f32 %v12112_v27, %v19065_v33  ;;  %11029 = vmatmul.msk.f32.gmra.mxu2 %vm4597_vm9, %v7481_v60  ;;  %v16421_v43 = vadd.f32 %v7353_v53, %v7096_v51  ;;  %v9964_v27 = vld [vmem:[%s18868_s5 + $0x18] sm:$0xff]  ;;  %v7482_v60 = vrot.slane %v16017_v54, 2  ;;  %v6606_v53 = vpop.permute.xlu0 %6605  ;;  %v11422_v51 = vld [vmem:[#allocation2 + $0x147] sm:$0xff]  ;;  %v6903_v54 = vsel %vm2673_vm4, %v6900_v47, %v6902_v12 }
 0x500   : > { %v16415_v11 = vld [vmem:[#allocation2 + $0x2f] sm:$0xff]  ;;  %v7356_v57 = vpop.f32.mrf.mxu1  ;;  %10124 = vmatpush.msrb.mxu3 %v9964_v27  ;;  %v19597_v47 = vmax.f32 %v14852_v39, 0.0 }
 0x501   : > { %8296 = vst.msk [vmem:[#allocation2 + $0x38] sm:$0xff] %vm2104_vm2, %v8248_v28  ;;  %8449 = vrot.lane.b32.xlu0 %v16415_v11, %s11451_s8  ;;  %v7483_v33 = vsel %vm3295_vm5, %v7480_v46, %v7482_v60  ;;  %v6457_v46 = vpop.permute.xlu1 %6456 }
 0x502   : > { %v7659_v44 = vpop.f32.mrf.mxu2 }
 0x503   : > { %10999 = vmatmul.msk.f32.gmra.mxu1 %vm4597_vm9, %v16374_v30  ;;  %10911 = vmatmul.msk.f32.gmra.mxu3 %vm2104_vm2, %v19595_v32  ;;  %v16431_v59 = vadd.f32 %v7659_v44, %v16026_v38  ;;  %v6714_v32 = vsel %vm2104_vm2, %v11422_v51, %v6455_v61 }
 0x504   : > { %v16440_v19 = vsel %vm4395_vm14, %v6714_v32, %v6606_v53  ;;  %v11423_v32 = vld [vmem:[#allocation2 + $0x14f] sm:$0xff] }
 0x505   : > { %v19066_v42 = vmax.f32 %v16431_v59, 0.0  ;;  %v6715_v39 = vsel %vm2104_vm2, %v11423_v32, %v6457_v46 }
 0x506   : > { %v16433_v28 = vpop.f32.mrf.mxu3  ;;  %10951 = vmatmul.msk.f32.gmra.mxu0 %vm4597_vm9, %v6903_v54  ;;  %v7099_v27 = vpop.f32.mrf.mxu0 }
 0x507   : > { %19596 = vst [vmem:[#allocation119_spill] sm:$0xff] %v16433_v28  ;;  %v8249_v38 = vmul.f32 %v12188_v20, %v19066_v42  ;;  %11030 = vmatmul.msk.f32.gmra.mxu2 %vm4597_vm9, %v7483_v33  ;;  %v16455_v61 = vadd.f32 %v7356_v57, %v7099_v27  ;;  %v7484_v20 = vrot.slane %v16051_v29, 2  ;;  %v6904_v33 = vrot.slane %v16440_v19, 1 }
 0x508   : > { %v16449_v44 = vld [vmem:[#allocation2 + $0x37] sm:$0xff]  ;;  %v7359_v54 = vpop.f32.mrf.mxu1 }
 0x509   : > { %8297 = vst.msk [vmem:[#allocation2 + $0x40] sm:$0xff] %vm2104_vm2, %v8249_v38  ;;  %8451 = vrot.lane.b32.xlu1 %v16449_v44, %s11451_s8  ;;  %v6608_v38 = vpop.permute.xlu2 %6607  ;;  %v7485_v27 = vsel %vm3295_vm5, %v7482_v60, %v7484_v20  ;;  %v6905_v42 = vsel %vm2673_vm4, %v6902_v12, %v6904_v33  ;;  %v19599_v60 = vmax.f32 %v14917_v5, 0.0  ;;  %v7486_v12 = vrot.slane %v16074_v2, 2 }
 0x50a   : > { %v7662_v53 = vpop.f32.mrf.mxu2 }
 0x50b   : > { %11000 = vmatmul.msk.f32.gmra.mxu1 %vm4597_vm9, %v16406_v15  ;;  %10912 = vmatmul.msk.f32.gmra.mxu3 %vm2104_vm2, %v19597_v47  ;;  %v16462_v51 = vadd.f32 %v7662_v53, %v16059_v31  ;;  %v16475_v31 = vsel %vm4395_vm14, %v6715_v39, %v6608_v38  ;;  %v6459_v39 = vpop.permute.xlu0 %6458 }
 0x50d   : > { %v19067_v57 = vmax.f32 %v16462_v51, 0.0 }
 0x50e   : > { %v16465_v47 = vpop.f32.mrf.mxu3  ;;  %10952 = vmatmul.msk.f32.gmra.mxu0 %vm4597_vm9, %v6905_v42  ;;  %v7102_v46 = vpop.f32.mrf.mxu0  ;;  %v6906_v42 = vrot.slane %v16475_v31, 1 }
 0x50f   : > { %19598 = vst [vmem:[#allocation120_spill] sm:$0xff] %v16465_v47  ;;  %v8250_v29 = vmul.f32 %v12274_v7, %v19067_v57  ;;  %11031 = vmatmul.msk.f32.gmra.mxu2 %vm4597_vm9, %v7485_v27  ;;  %v16486_v7 = vadd.f32 %v7359_v54, %v7102_v46  ;;  %v6610_v27 = vpop.permute.xlu1 %6609  ;;  %v7487_v57 = vsel %vm3295_vm5, %v7484_v20, %v7486_v12  ;;  %v19601_v20 = vmax.f32 %v14989_v48, 0.0 }
 0x510   : > { %v16480_v53 = vld [vmem:[#allocation2 + $0x3f] sm:$0xff]  ;;  %v7362_v46 = vpop.f32.mrf.mxu1  ;;  %v6907_v2 = vsel %vm2673_vm4, %v6904_v33, %v6906_v42 }
 0x511   : > { %8298 = vst.msk [vmem:[#allocation2 + $0x48] sm:$0xff] %vm2104_vm2, %v8250_v29  ;;  %8453 = vrot.lane.b32.xlu1 %v16480_v53, %s11451_s8  ;;  %v11424_v29 = vld [vmem:[#allocation2 + $0x157] sm:$0xff] }
 0x512   : > { %v7665_v32 = vpop.f32.mrf.mxu2  ;;  %v6716_v54 = vsel %vm2104_vm2, %v11424_v29, %v6459_v39  ;;  %v6461_v29 = vpop.permute.xlu2 %6460 }
 0x513   : > { %11001 = vmatmul.msk.f32.gmra.mxu1 %vm4597_vm9, %v16440_v19  ;;  %10913 = vmatmul.msk.f32.gmra.mxu3 %vm2104_vm2, %v19599_v60  ;;  %v16493_v38 = vadd.f32 %v7665_v32, %v16083_v8  ;;  %v16502_v47 = vsel %vm4395_vm14, %v6716_v54, %v6610_v27 }
 0x515   : > { %v19068_v60 = vmax.f32 %v16493_v38, 0.0 }
 0x516   : > { %v16495_v5 = vpop.f32.mrf.mxu3  ;;  %10953 = vmatmul.msk.f32.gmra.mxu0 %vm4597_vm9, %v6907_v2  ;;  %v7105_v32 = vpop.f32.mrf.mxu0 }
 0x517   : > { %19600 = vst [vmem:[#allocation121_spill] sm:$0xff] %v16495_v5  ;;  %v8251_v8 = vmul.f32 %v12363_v36, %v19068_v60  ;;  %11032 = vmatmul.msk.f32.gmra.mxu2 %vm4597_vm9, %v7487_v57  ;;  %v16517_v33 = vadd.f32 %v7362_v46, %v7105_v32  ;;  %v7488_v36 = vrot.slane %v16095_v10, 2  ;;  %v6908_v57 = vrot.slane %v16502_v47, 1  ;;  %v6612_v2 = vpop.permute.xlu0 %6611 }
 0x518   : > { %v16511_v39 = vld [vmem:[#allocation2 + $0x47] sm:$0xff] }
 0x519   : > { %8299 = vst.msk [vmem:[#allocation2 + $0x50] sm:$0xff] %vm2104_vm2, %v8251_v8  ;;  %8600 = vrot.lane.b32.xlu2 %v16511_v39, %s11454_s13  ;;  %v11425_v8 = vld [vmem:[#allocation2 + $0x15f] sm:$0xff]  ;;  %v7489_v32 = vsel %vm3295_vm5, %v7486_v12, %v7488_v36  ;;  %v6909_v60 = vsel %vm2673_vm4, %v6906_v42, %v6908_v57  ;;  %v6463_v12 = vpop.permute.xlu1 %6462  ;;  %v19603_v42 = vmax.f32 %v16361_v16, 0.0 }
 0x51a   : > { %v7668_v27 = vpop.f32.mrf.mxu2  ;;  %v6717_v46 = vsel %vm2104_vm2, %v11425_v8, %v6461_v29 }
 0x51b   : > { %11002 = vmatmul.msk.f32.gmra.mxu1 %vm4597_vm9, %v16475_v31  ;;  %10914 = vmatmul.msk.f32.gmra.mxu3 %vm2104_vm2, %v19601_v20  ;;  %v16524_v54 = vadd.f32 %v7668_v27, %v16104_v9  ;;  %v16533_v10 = vsel %vm4395_vm14, %v6717_v46, %v6612_v2  ;;  %v7365_v27 = vpop.f32.mrf.mxu1 }
 0x51d   : > { %v19069_v20 = vmax.f32 %v16524_v54, 0.0 }
 0x51e   : > { %v16526_v48 = vpop.f32.mrf.mxu3  ;;  %10954 = vmatmul.msk.f32.gmra.mxu0 %vm4597_vm9, %v6909_v60  ;;  %v7108_v29 = vpop.f32.mrf.mxu0  ;;  %v6910_v60 = vrot.slane %v16533_v10, 1 }
 0x51f   : > { %19602 = vst [vmem:[#allocation122_spill] sm:$0xff] %v16526_v48  ;;  %v8252_v9 = vmul.f32 %v19386_v41, %v19069_v20  ;;  %11033 = vmatmul.msk.f32.gmra.mxu2 %vm4597_vm9, %v7489_v32  ;;  %v16548_v2 = vadd.f32 %v7365_v27, %v7108_v29  ;;  %v7490_v41 = vrot.slane %v16117_v23, 2  ;;  %v11426_v20 = vld [vmem:[#allocation2 + $0x167] sm:$0xff]  ;;  %v6614_v27 = vpop.permute.xlu2 %6613 }
 0x520   : > { %v16542_v8 = vld [vmem:[#allocation2 + $0x4f] sm:$0xff]  ;;  %v6718_v16 = vsel %vm2104_vm2, %v11426_v20, %v6463_v12 }
 0x521   : > { %8300 = vst.msk [vmem:[#allocation2 + $0x58] sm:$0xff] %vm2104_vm2, %v8252_v9  ;;  %8602 = vrot.lane.b32.xlu0 %v16542_v8, %s11454_s13  ;;  %v7491_v29 = vsel %vm3295_vm5, %v7488_v36, %v7490_v41  ;;  %v19605_v36 = vmax.f32 %v16391_v55, 0.0  ;;  %v6616_v55 = vpop.permute.xlu1 %6615 }
 0x522   : > { %v7671_v46 = vpop.f32.mrf.mxu2 }
 0x523   : > { %11003 = vmatmul.msk.f32.gmra.mxu1 %vm4597_vm9, %v16502_v47  ;;  %11059 = vmatmul.msk.f32.vlgmr.msra.gmra.mxu3 %vm2104_vm2, %v19603_v42  ;;  %v16555_v32 = vadd.f32 %v7671_v46, %v16125_v50  ;;  %v6911_v42 = vsel %vm2673_vm4, %v6908_v57, %v6910_v60  ;;  %v16568_v50 = vsel %vm4395_vm14, %v6718_v16, %v6614_v27  ;;  %v6465_v46 = vpop.permute.xlu0 %6464 }
 0x524   : > { %v6912_v57 = vrot.slane %v16568_v50, 1 }
 0x525   : > { %v19070_v9 = vmax.f32 %v16555_v32, 0.0 }
 0x526   : > { %v16558_v48 = vpop.f32.mrf.mxu3  ;;  %10955 = vmatmul.msk.f32.gmra.mxu0 %vm4597_vm9, %v6911_v42  ;;  %v11427_v42 = vld [vmem:[#allocation2 + $0x16f] sm:$0xff] }
 0x527   : > { %19604 = vst [vmem:[#allocation123_spill] sm:$0xff] %v16558_v48  ;;  %v8253_v23 = vmul.f32 %v19388_v37, %v19070_v9  ;;  %11034 = vmatmul.msk.f32.gmra.mxu2 %vm4597_vm9, %v7491_v29  ;;  %v7492_v37 = vrot.slane %v16137_v14, 2 }
 0x528   : > { %v16573_v20 = vld [vmem:[#allocation2 + $0x57] sm:$0xff] }
 0x529   : > { %8301 = vst.msk [vmem:[#allocation2 + $0x60] sm:$0xff] %vm2104_vm2, %v8253_v23  ;;  %8455 = vrot.lane.b32.xlu0 %v16511_v39, %s11451_s8  ;;  %8604 = vrot.lane.b32.xlu2 %v16573_v20, %s11454_s13  ;;  %v6719_v23 = vsel %vm2104_vm2, %v11427_v42, %v6465_v46  ;;  %v7493_v14 = vsel %vm3295_vm5, %v7490_v41, %v7492_v37  ;;  %v16606_v46 = vpop.f32.mrf.mxu1  ;;  %v19607_v41 = vmax.f32 %v16431_v59, 0.0  ;;  %v6467_v42 = vpop.permute.xlu2 %6466 }
 0x52a   : > { %v7674_v12 = vpop.f32.mrf.mxu2  ;;  %v16595_v9 = vsel %vm4395_vm14, %v6719_v23, %v6616_v55 }
 0x52b   : > { %11004 = vmatmul.msk.f32.gmra.mxu1 %vm4597_vm9, %v16533_v10  ;;  %11060 = vmatmul.msk.f32.gmra.mxu3 %vm2104_vm2, %v19605_v36  ;;  %v16586_v16 = vadd.f32 %v7674_v12, %v16146_v35  ;;  %v6913_v36 = vsel %vm2673_vm4, %v6910_v60, %v6912_v57  ;;  %v6914_v60 = vrot.slane %v16595_v9, 1  ;;  %v6618_v59 = vpop.permute.xlu0 %6617 }
 0x52d   : > { %v19071_v29 = vmax.f32 %v16586_v16, 0.0 }
 0x52e   : > { %v16588_v27 = vpop.f32.mrf.mxu3  ;;  %10956 = vmatmul.msk.f32.gmra.mxu0 %vm4597_vm9, %v6913_v36 }
 0x52f   : > { %19606 = vst [vmem:[#allocation124_spill] sm:$0xff] %v16588_v27  ;;  %v8254_v35 = vmul.f32 %v19390_v22, %v19071_v29  ;;  %11035 = vmatmul.msk.f32.gmra.mxu2 %vm4597_vm9, %v7493_v14  ;;  %v7494_v22 = vrot.slane %v16158_v45, 2  ;;  %v6915_v29 = vsel %vm2673_vm4, %v6912_v57, %v6914_v60 }
 0x530   : > { %v16604_v12 = vld [vmem:[#allocation2 + $0x5f] sm:$0xff] }
 0x531   : > { %8302 = vst.msk [vmem:[#allocation2 + $0x68] sm:$0xff] %vm2104_vm2, %v8254_v35  ;;  %8606 = vrot.lane.b32.xlu1 %v16604_v12, %s11454_s13  ;;  %8457 = vrot.lane.b32.xlu2 %v16542_v8, %s11451_s8  ;;  %v11428_v35 = vld [vmem:[#allocation2 + $0x177] sm:$0xff]  ;;  %v7495_v45 = vsel %vm3295_vm5, %v7492_v37, %v7494_v22  ;;  %v19610_v37 = vmax.f32 %v16462_v51, 0.0  ;;  %v11429_v51 = vld [vmem:[#allocation2 + $0x17f] sm:$0xff] }
 0x532   : > { %v7677_v55 = vpop.f32.mrf.mxu2 }
 0x533   : > { %11005 = vmatmul.msk.f32.gmra.mxu1 %vm4597_vm9, %v16568_v50  ;;  %11061 = vmatmul.msk.f32.gmra.mxu3 %vm2104_vm2, %v19607_v41  ;;  %v16619_v23 = vadd.f32 %v7677_v55, %v16167_v63  ;;  %v6720_v41 = vsel %vm2104_vm2, %v11428_v35, %v6467_v42  ;;  %v6469_v42 = vpop.permute.xlu1 %6468 }
 0x534   : > { %v16628_v27 = vsel %vm4395_vm14, %v6720_v41, %v6618_v59  ;;  %v16649_v59 = vpop.f32.mrf.mxu1  ;;  %v6721_v41 = vsel %vm2104_vm2, %v11429_v51, %v6469_v42  ;;  %v11430_v51 = vld [vmem:[#allocation2 + $0x187] sm:$0xff] }
 0x535   : > { %v19072_v36 = vmax.f32 %v16619_v23, 0.0  ;;  %v6916_v57 = vrot.slane %v16628_v27, 1 }
 0x536   : > { %v16621_v14 = vpop.f32.mrf.mxu3  ;;  %10957 = vmatmul.msk.f32.gmra.mxu0 %vm4597_vm9, %v6915_v29 }
 0x537   : > { %19608 = vst [vmem:[#allocation125_spill] sm:$0xff] %v16621_v14  ;;  %v8255_v63 = vmul.f32 %v19391_v1, %v19072_v36  ;;  %11036 = vmatmul.msk.f32.gmra.mxu2 %vm4597_vm9, %v7495_v45  ;;  %v7496_v1 = vrot.slane %v16180_v56, 2  ;;  %v6917_v14 = vsel %vm2673_vm4, %v6914_v60, %v6916_v57 }
 0x538   : > { %v16637_v55 = vld [vmem:[#allocation2 + $0x67] sm:$0xff] }
 0x539   : > { %19609 = vst [vmem:[#allocation126_spill] sm:$0xff] %v16637_v55  ;;  %8459 = vrot.lane.b32.xlu1 %v16573_v20, %s11451_s8  ;;  %8608 = vrot.lane.b32.xlu0 %v16637_v55, %s11454_s13  ;;  %v7497_v36 = vsel %vm3295_vm5, %v7494_v22, %v7496_v1  ;;  %v19613_v22 = vmax.f32 %v16493_v38, 0.0 }
 0x53a   : > { %8303 = vst.msk [vmem:[#allocation2 + $0x70] sm:$0xff] %vm2104_vm2, %v8255_v63  ;;  %v7680_v29 = vpop.f32.mrf.mxu2  ;;  %v16657_v63 = vpop.f32.mrf.mxu0 }
 0x53b   : > { %11006 = vmatmul.msk.f32.gmra.mxu1 %vm4597_vm9, %v16595_v9  ;;  %11062 = vmatmul.msk.f32.gmra.mxu3 %vm2104_vm2, %v19610_v37  ;;  %v16652_v35 = vadd.f32 %v7680_v29, %v16188_v3  ;;  %v6620_v37 = vpop.permute.xlu2 %6619  ;;  %v6471_v29 = vpop.permute.xlu0 %6470 }
 0x53c   : > { %v16667_v3 = vsel %vm4395_vm14, %v6721_v41, %v6620_v37  ;;  %v6722_v38 = vsel %vm2104_vm2, %v11430_v51, %v6471_v29  ;;  %v6622_v41 = vpop.permute.xlu1 %6621 }
 0x53d   : > { %v19073_v56 = vmax.f32 %v16652_v35, 0.0  ;;  %v6918_v60 = vrot.slane %v16667_v3, 1 }
 0x53e   : > { %v16655_v45 = vpop.f32.mrf.mxu3  ;;  %10958 = vmatmul.msk.f32.gmra.mxu0 %vm4597_vm9, %v6917_v14 }
 0x53f   : > { %19611 = vst [vmem:[#allocation127_spill] sm:$0xff] %v16655_v45  ;;  %v8256_v48 = vmul.f32 %v19392_v26, %v19073_v56  ;;  %11037 = vmatmul.msk.f32.gmra.mxu2 %vm4597_vm9, %v7497_v36  ;;  %v7498_v26 = vrot.slane %v16200_v0, 2  ;;  %v6919_v56 = vsel %vm2673_vm4, %v6916_v57, %v6918_v60  ;;  %v16696_v45 = vsel %vm4395_vm14, %v6722_v38, %v6622_v41 }
 0x540   : > { %v7500_v57 = vrot.slane %v16221_v24, 2  ;;  %v6920_v51 = vrot.slane %v16696_v45, 1 }
 0x541   : > { %v16672_v42 = vld [vmem:[#allocation2 + $0x6f] sm:$0xff]  ;;  %8304 = vst.msk [vmem:[#allocation2 + $0x78] sm:$0xff] %vm2104_vm2, %v8256_v48  ;;  %8461 = vrot.lane.b32.xlu0 %v16604_v12, %s11451_s8  ;;  %v16690_v48 = vpop.f32.mrf.mxu1  ;;  %v7499_v0 = vsel %vm3295_vm5, %v7496_v1, %v7498_v26  ;;  %v19616_v1 = vmax.f32 %v16524_v54, 0.0 }
 0x542   : > { %19612 = vst [vmem:[#allocation128_spill] sm:$0xff] %v16672_v42  ;;  %8610 = vrot.lane.b32.xlu2 %v16672_v42, %s11454_s13  ;;  %v7683_v14 = vpop.f32.mrf.mxu2  ;;  %v16698_v5 = vpop.f32.mrf.mxu0  ;;  %v7501_v24 = vsel %vm3295_vm5, %v7498_v26, %v7500_v57 }
 0x543   : > { %11007 = vmatmul.msk.f32.gmra.mxu1 %vm4597_vm9, %v16628_v27  ;;  %11063 = vmatmul.msk.f32.gmra.mxu3 %vm2104_vm2, %v19613_v22  ;;  %v16685_v36 = vadd.f32 %v7683_v14, %v16209_v4  ;;  %v19615_v4 = vld [vmem:[#allocation19_spill] sm:$0xff]  ;;  %v6473_v38 = vpop.permute.xlu2 %6472  ;;  %v6624_v54 = vpop.permute.xlu0 %6623 }
 0x544   : > { %v6475_v26 = vpop.permute.xlu1 %6474 }
 0x545   : > { %v19074_v22 = vmax.f32 %v16685_v36, 0.0 }
 0x546   : > { %v16688_v37 = vpop.f32.mrf.mxu3  ;;  %10959 = vmatmul.msk.f32.gmra.mxu0 %vm4597_vm9, %v6919_v56 }
 0x547   : > { %19614 = vst [vmem:[#allocation129_spill] sm:$0xff] %v16688_v37  ;;  %v8257_v29 = vmul.f32 %v19615_v4, %v19074_v22  ;;  %11038 = vmatmul.msk.f32.gmra.mxu2 %vm4597_vm9, %v7499_v0  ;;  %v6921_v22 = vsel %vm2673_vm4, %v6918_v60, %v6920_v51 }
 0x548   : > { %v16707_v14 = vld [vmem:[#allocation2 + $0x77] sm:$0xff] }
 0x549   : > { %8305 = vst.msk [vmem:[#allocation2 + $0x80] sm:$0xff] %vm2104_vm2, %v8257_v29  ;;  %8612 = vrot.lane.b32.xlu1 %v16707_v14, %s11454_s13  ;;  %v11431_v29 = vld [vmem:[#allocation2 + $0x18f] sm:$0xff]  ;;  %v16731_v28 = vpop.f32.mrf.mxu1 }
 0x54a   : > { %8463 = vrot.lane.b32.xlu2 %v16637_v55, %s11451_s8  ;;  %v7686_v56 = vpop.f32.mrf.mxu2  ;;  %v16742_v60 = vpop.f32.mrf.mxu0 }
 0x54b   : > { %11008 = vmatmul.msk.f32.gmra.mxu1 %vm4597_vm9, %v16667_v3  ;;  %11064 = vmatmul.msk.f32.gmra.mxu3 %vm2104_vm2, %v19616_v1  ;;  %v16720_v41 = vadd.f32 %v7686_v56, %v16230_v34  ;;  %v6723_v1 = vsel %vm2104_vm2, %v11431_v29, %v6473_v38  ;;  %v19619_v38 = vmax.f32 %v16555_v32, 0.0  ;;  %v6320_v29 = vld [vmem:[#allocation2 + $0x197] sm:$0x3] }
 0x54c   : > { %v16729_v37 = vsel %vm4395_vm14, %v6723_v1, %v6624_v54  ;;  %v6724_v32 = vsel %vm2104_vm2, %v6320_v29, %v6475_v26  ;;  %v19624_v29 = vld [vmem:[#allocation73_spill] sm:$0xff] }
 0x54d   : > { %v19075_v4 = vmax.f32 %v16720_v41, 0.0 }
 0x54e   : > { %v16722_v0 = vpop.f32.mrf.mxu3  ;;  %10960 = vmatmul.msk.f32.gmra.mxu0 %vm4597_vm9, %v6921_v22  ;;  %v6922_v22 = vrot.slane %v16729_v37, 1 }
 0x54f   : > { %19617 = vst [vmem:[#allocation19_spill] sm:$0xff] %v16722_v0  ;;  %v8258_v34 = vmul.f32 %v19395_v13, %v19075_v4  ;;  %11039 = vmatmul.msk.f32.gmra.mxu2 %vm4597_vm9, %v7501_v24  ;;  %v7502_v13 = vrot.slane %v16243_v49, 2  ;;  %v6626_v24 = vpop.permute.xlu2 %6625 }
 0x550   : > { %v16740_v56 = vld [vmem:[#allocation2 + $0x7f] sm:$0xff]  ;;  %v6923_v49 = vsel %vm2673_vm4, %v6920_v51, %v6922_v22  ;;  %v16764_v0 = vsel %vm4395_vm14, %v6724_v32, %v6626_v24 }
 0x551   : > { %19618 = vst [vmem:[#allocation130_spill] sm:$0xff] %v16740_v56  ;;  %8614 = vrot.lane.b32.xlu0 %v16740_v56, %s11454_s13  ;;  %8465 = vrot.lane.b32.xlu1 %v16672_v42, %s11451_s8  ;;  %v7503_v4 = vsel %vm3295_vm5, %v7500_v57, %v7502_v13  ;;  %v19621_v42 = vld [vmem:[#allocation23_spill] sm:$0xff]  ;;  %v16775_v26 = vpop.f32.mrf.mxu1  ;;  %v19623_v57 = vmax.f32 %v16586_v16, 0.0  ;;  %v6924_v51 = vrot.slane %v16764_v0, 1 }
 0x552   : > { %8306 = vst.msk [vmem:[#allocation2 + $0x88] sm:$0xff] %vm2104_vm2, %v8258_v34  ;;  %v7689_v54 = vpop.f32.mrf.mxu2 }
 0x553   : > { %11009 = vmatmul.msk.f32.gmra.mxu1 %vm4597_vm9, %v16696_v45  ;;  %11065 = vmatmul.msk.f32.gmra.mxu3 %vm2104_vm2, %v19619_v38  ;;  %v16755_v1 = vadd.f32 %v7689_v54, %v16251_v21  ;;  %v16787_v54 = vpop.f32.mrf.mxu0 }
 0x555   : > { %v19078_v34 = vmax.f32 %v16755_v1, 0.0 }
 0x556   : > { %v16758_v38 = vpop.f32.mrf.mxu3  ;;  %10961 = vmatmul.msk.f32.gmra.mxu0 %vm4597_vm9, %v6923_v49  ;;  %v6925_v49 = vsel %vm2673_vm4, %v6922_v22, %v6924_v51  ;;  %v7506_v22 = vrot.slane %v16284_v40, 2  ;;  %v19630_v40 = vld [vmem:[#allocation27_spill] sm:$0xff] }
 0x557   : > { %19620 = vst [vmem:[#allocation131_spill] sm:$0xff] %v16758_v38  ;;  %v8259_v55 = vmul.f32 %v19621_v42, %v19078_v34  ;;  %11040 = vmatmul.msk.f32.gmra.mxu2 %vm4597_vm9, %v7503_v4  ;;  %v7504_v42 = vrot.slane %v16263_v58, 2  ;;  %v19626_v58 = vld [vmem:[#allocation25_spill] sm:$0xff] }
 0x559   : > { %v16773_v21 = vld [vmem:[#allocation2 + $0x87] sm:$0xff]  ;;  %8307 = vst.msk [vmem:[#allocation2 + $0x90] sm:$0xff] %vm2104_vm2, %v8259_v55  ;;  %8467 = vrot.lane.b32.xlu0 %v16707_v14, %s11451_s8  ;;  %v7505_v24 = vsel %vm3295_vm5, %v7502_v13, %v7504_v42 }
 0x55a   : > { %19622 = vst [vmem:[#allocation23_spill] sm:$0xff] %v16773_v21  ;;  %8616 = vrot.lane.b32.xlu2 %v16773_v21, %s11454_s13  ;;  %v7692_v4 = vpop.f32.mrf.mxu2  ;;  %v8845_v13 = vld [vmem:[%s18867_s4] sm:$0xff] }
 0x55b   : > { %11010 = vmatmul.msk.f32.gmra.mxu1 %vm4597_vm9, %v16729_v37  ;;  %11066 = vmatmul.msk.f32.gmra.mxu3 %vm2104_vm2, %v19623_v57  ;;  %v16790_v32 = vadd.f32 %v7692_v4, %v19624_v29  ;;  %v19628_v4 = vmax.f32 %v16619_v23, 0.0  ;;  %v16816_v29 = vpop.f32.mrf.mxu1 }
 0x55c   : > { %9365 = vmatpush.msrb.mxu1 %v8845_v13 }
 0x55d   : > { %v19079_v55 = vmax.f32 %v16790_v32, 0.0 }
 0x55e   : > { %v16792_v16 = vpop.f32.mrf.mxu3  ;;  %10962 = vmatmul.msk.f32.gmra.mxu0 %vm4597_vm9, %v6925_v49  ;;  %v16823_v49 = vpop.f32.mrf.mxu0 }
 0x55f   : > { %19625 = vst [vmem:[#allocation73_spill] sm:$0xff] %v16792_v16  ;;  %v8260_v57 = vmul.f32 %v19626_v58, %v19079_v55  ;;  %11041 = vmatmul.msk.f32.gmra.mxu2 %vm4597_vm9, %v7505_v24  ;;  %v19632_v55 = vmax.f32 %v16652_v35, 0.0 }
 0x560   : > { %v16802_v34 = vld [vmem:[#allocation2 + $0x8f] sm:$0xff] }
 0x561   : > { %19627 = vst [vmem:[#allocation25_spill] sm:$0xff] %v16802_v34  ;;  %8618 = vrot.lane.b32.xlu1 %v16802_v34, %s11454_s13 }
 0x562   : > { %8308 = vst.msk [vmem:[#allocation2 + $0x98] sm:$0xff] %vm2104_vm2, %v8260_v57  ;;  %8469 = vrot.lane.b32.xlu2 %v16740_v56, %s11451_s8  ;;  %v7695_v51 = vpop.f32.mrf.mxu2  ;;  %v7507_v57 = vsel %vm3295_vm5, %v7504_v42, %v7506_v22 }
 0x563   : > { %11067 = vmatmul.msk.f32.gmra.mxu3 %vm2104_vm2, %v19628_v4  ;;  %v16819_v23 = vadd.f32 %v7695_v51, %v16293_v18  ;;  %v7508_v18 = vrot.slane %v16306_v52, 2  ;;  %v19633_v51 = vld [vmem:[#allocation79_spill] sm:$0xff]  ;;  %v19635_v52 = vld [vmem:[#allocation29_spill] sm:$0xff] }
 0x565   : > { %v19080_v58 = vmax.f32 %v16819_v23, 0.0 }
 0x566   : > { %v16821_v24 = vpop.f32.mrf.mxu3 }
 0x567   : > { %19629 = vst [vmem:[#allocation132_spill] sm:$0xff] %v16821_v24  ;;  %v8261_v4 = vmul.f32 %v19630_v40, %v19080_v58  ;;  %11042 = vmatmul.msk.f32.gmra.mxu2 %vm4597_vm9, %v7507_v57  ;;  %v16847_v58 = vpop.f32.mrf.mxu1 }
 0x569   : > { %v16831_v13 = vld [vmem:[#allocation2 + $0x97] sm:$0xff]  ;;  %8309 = vst.msk [vmem:[#allocation2 + $0xa0] sm:$0xff] %vm2104_vm2, %v8261_v4  ;;  %8471 = vrot.lane.b32.xlu1 %v16773_v21, %s11451_s8  ;;  %v16851_v4 = vpop.f32.mrf.mxu0 }
 0x56a   : > { %19631 = vst [vmem:[#allocation27_spill] sm:$0xff] %v16831_v13  ;;  %8620 = vrot.lane.b32.xlu0 %v16831_v13, %s11454_s13  ;;  %v7698_v42 = vpop.f32.mrf.mxu2 }
 0x56b   : > { %11068 = vmatmul.msk.f32.gmra.mxu3 %vm2104_vm2, %v19632_v55  ;;  %v16843_v40 = vadd.f32 %v7698_v42, %v19633_v51  ;;  %v7509_v55 = vsel %vm3295_vm5, %v7506_v22, %v7508_v18  ;;  %v19637_v42 = vmax.f32 %v16685_v36, 0.0  ;;  %v8343_v22 = vld [vmem:[#allocation2 + $0x17] sm:$0xff]  ;;  %v7510_v51 = vrot.slane %v16326_v25, 2 }
 0x56d   : > { %v19081_v35 = vmax.f32 %v16843_v40, 0.0  ;;  %v7511_v25 = vsel %vm3295_vm5, %v7508_v18, %v7510_v51  ;;  %v9511_v18 = vld [vmem:[%s18867_s4 + $0x30] sm:$0xff] }
 0x56e   : > { %v16845_v57 = vpop.f32.mrf.mxu3  ;;  %9722 = vmatpush.msrb.mxu2 %v9511_v18 }
 0x56f   : > { %19634 = vst [vmem:[#allocation79_spill] sm:$0xff] %v16845_v57  ;;  %v8262_v24 = vmul.f32 %v19635_v52, %v19081_v35  ;;  %11043 = vmatmul.msk.f32.gmra.mxu2 %vm4597_vm9, %v7509_v55  ;;  %v19638_v35 = vld [vmem:[#allocation80_spill] sm:$0xff] }
 0x570   : > { %v16857_v16 = vld [vmem:[#allocation2 + $0x9f] sm:$0xff] }
 0x571   : > { %19636 = vst [vmem:[#allocation29_spill] sm:$0xff] %v16857_v16  ;;  %8622 = vrot.lane.b32.xlu2 %v16857_v16, %s11454_s13 }
 0x572   : > { %8310 = vst.msk [vmem:[#allocation2 + $0xa8] sm:$0xff] %vm2104_vm2, %v8262_v24  ;;  %8473 = vrot.lane.b32.xlu0 %v16802_v34, %s11451_s8  ;;  %v7701_v52 = vpop.f32.mrf.mxu2  ;;  %v16881_v34 = vpop.f32.mrf.mxu1 }
 0x573   : > { %11069 = vmatmul.msk.f32.gmra.mxu3 %vm2104_vm2, %v19637_v42  ;;  %v16869_v55 = vadd.f32 %v7701_v52, %v19638_v35  ;;  %v8450_v57 = vpop.permute.xlu0 %8449  ;;  %v8601_v38 = vpop.permute.xlu2 %8600  ;;  %v19640_v35 = vld [vmem:[#allocation31_spill] sm:$0xff] }
 0x574   : > { %v8747_v42 = vsel %vm2104_vm2, %v8343_v22, %v8450_v57  ;;  %v16889_v57 = vpop.f32.mrf.mxu0  ;;  %v7512_v22 = vrot.slane %v16347_v62, 2  ;;  %v19644_v62 = vld [vmem:[#allocation34_spill] sm:$0xff] }
 0x575   : > { %v19084_v24 = vmax.f32 %v16869_v55, 0.0  ;;  %v16876_v21 = vsel %vm4395_vm14, %v8747_v42, %v8601_v38  ;;  %v19642_v38 = vmax.f32 %v16720_v41, 0.0 }
 0x576   : > { %v16871_v36 = vpop.f32.mrf.mxu3  ;;  %11155 = vmatmul.msk.f32.vlgmr.msrb.gmra.mxu1 %vm4597_vm9, %v16876_v21 }
 0x577   : > { %19639 = vst [vmem:[#allocation80_spill] sm:$0xff] %v16871_v36  ;;  %v8263_v52 = vmul.f32 %v19640_v35, %v19084_v24  ;;  %11044 = vmatmul.msk.f32.gmra.mxu2 %vm4597_vm9, %v7511_v25 }
 0x579   : > { %v16887_v36 = vld [vmem:[#allocation2 + $0xa7] sm:$0xff]  ;;  %8311 = vst.msk [vmem:[#allocation2 + $0xb0] sm:$0xff] %vm2104_vm2, %v8263_v52  ;;  %8475 = vrot.lane.b32.xlu2 %v16831_v13, %s11451_s8  ;;  %v8848_v52 = vld [vmem:[%s18867_s4 + $0x18] sm:$0xff] }
 0x57a   : > { %19641 = vst [vmem:[#allocation31_spill] sm:$0xff] %v16887_v36  ;;  %8624 = vrot.lane.b32.xlu1 %v16887_v36, %s11454_s13  ;;  %v7704_v42 = vpop.f32.mrf.mxu2  ;;  %9108 = vmatpush.msrb.mxu0 %v8848_v52 }
 0x57b   : > { %11070 = vmatmul.msk.f32.gmra.mxu3 %vm2104_vm2, %v19642_v38  ;;  %v16904_v41 = vadd.f32 %v7704_v42, %v16356_v17  ;;  %v7513_v38 = vsel %vm3295_vm5, %v7510_v51, %v7512_v22  ;;  %v16919_v17 = vpop.f32.mrf.mxu1  ;;  %v19647_v42 = vmax.f32 %v16755_v1, 0.0  ;;  %v7514_v51 = vrot.slane %v16374_v30, 2 }
 0x57c   : > { %19646 = vst [vmem:[#allocation134_spill] sm:$0xff] %v16919_v17  ;;  %v19659_v17 = vmax.f32 %v16843_v40, 0.0 }
 0x57d   : > { %v19085_v35 = vmax.f32 %v16904_v41, 0.0 }
 0x57e   : > { %v16906_v25 = vpop.f32.mrf.mxu3 }
 0x57f   : > { %19643 = vst [vmem:[#allocation133_spill] sm:$0xff] %v16906_v25  ;;  %v8264_v24 = vmul.f32 %v19644_v62, %v19085_v35  ;;  %11045 = vmatmul.msk.f32.gmra.mxu2 %vm4597_vm9, %v7513_v38  ;;  %v16930_v38 = vpop.f32.mrf.mxu0 }
 0x580   : > { %v16917_v18 = vld [vmem:[#allocation2 + $0xaf] sm:$0xff] }
 0x581   : > { %19645 = vst [vmem:[#allocation34_spill] sm:$0xff] %v16917_v18  ;;  %8626 = vrot.lane.b32.xlu0 %v16917_v18, %s11454_s13 }
 0x582   : > { %8312 = vst.msk [vmem:[#allocation2 + $0xb8] sm:$0xff] %vm2104_vm2, %v8264_v24  ;;  %8477 = vrot.lane.b32.xlu1 %v16857_v16, %s11451_s8  ;;  %v7707_v52 = vpop.f32.mrf.mxu2  ;;  %v7515_v24 = vsel %vm3295_vm5, %v7512_v22, %v7514_v51  ;;  %v19651_v16 = vmax.f32 %v16790_v32, 0.0  ;;  %v8452_v22 = vpop.permute.xlu1 %8451 }
 0x583   : > { %11071 = vmatmul.msk.f32.gmra.mxu3 %vm2104_vm2, %v19647_v42  ;;  %v16933_v62 = vadd.f32 %v7707_v52, %v16383_v6  ;;  %v19649_v42 = vld [vmem:[#allocation35_spill] sm:$0xff]  ;;  %v7516_v6 = vrot.slane %v16406_v15, 2  ;;  %v19654_v15 = vld [vmem:[#allocation37_spill] sm:$0xff] }
 0x585   : > { %v19087_v1 = vmax.f32 %v16933_v62, 0.0 }
 0x586   : > { %v16935_v35 = vpop.f32.mrf.mxu3 }
 0x587   : > { %19648 = vst [vmem:[#allocation135_spill] sm:$0xff] %v16935_v35  ;;  %v8265_v25 = vmul.f32 %v19649_v42, %v19087_v1  ;;  %11046 = vmatmul.msk.f32.gmra.mxu2 %vm4597_vm9, %v7515_v24  ;;  %v16954_v42 = vpop.f32.mrf.mxu1  ;;  %v7517_v1 = vsel %vm3295_vm5, %v7514_v51, %v7516_v6 }
 0x588   : > { %19652 = vst [vmem:[#allocation136_spill] sm:$0xff] %v16954_v42  ;;  %v19655_v42 = vmax.f32 %v16819_v23, 0.0 }
 0x589   : > { %v16943_v30 = vld [vmem:[#allocation2 + $0xb7] sm:$0xff]  ;;  %8313 = vst.msk [vmem:[#allocation2 + $0xc0] sm:$0xff] %vm2104_vm2, %v8265_v25  ;;  %8479 = vrot.lane.b32.xlu0 %v16887_v36, %s11451_s8  ;;  %v8344_v36 = vld [vmem:[#allocation2 + $0x1f] sm:$0xff] }
 0x58a   : > { %19650 = vst [vmem:[#allocation35_spill] sm:$0xff] %v16943_v30  ;;  %8628 = vrot.lane.b32.xlu2 %v16943_v30, %s11454_s13  ;;  %v7710_v52 = vpop.f32.mrf.mxu2  ;;  %v8454_v23 = vpop.permute.xlu1 %8453 }
 0x58b   : > { %11072 = vmatmul.msk.f32.gmra.mxu3 %vm2104_vm2, %v19651_v16  ;;  %v16957_v24 = vadd.f32 %v7710_v52, %v16421_v43  ;;  %v16961_v16 = vpop.f32.mrf.mxu0  ;;  %v7518_v43 = vrot.slane %v16440_v19, 2  ;;  %v8748_v52 = vsel %vm2104_vm2, %v8344_v36, %v8452_v22  ;;  %v8900_v19 = vrot.slane %v16876_v21, 1  ;;  %v8605_v22 = vpop.permute.xlu2 %8604 }
 0x58d   : > { %v19090_v25 = vmax.f32 %v16957_v24, 0.0 }
 0x58e   : > { %v16959_v32 = vpop.f32.mrf.mxu3 }
 0x58f   : > { %19653 = vst [vmem:[#allocation137_spill] sm:$0xff] %v16959_v32  ;;  %v8266_v35 = vmul.f32 %v19654_v15, %v19090_v25  ;;  %11047 = vmatmul.msk.f32.gmra.mxu2 %vm4597_vm9, %v7517_v1  ;;  %v8345_v25 = vld [vmem:[#allocation2 + $0x27] sm:$0xff] }
 0x590   : > { %v8364_v13 = vld [vmem:[#allocation2 + $0xbf] sm:$0xff] }
 0x591   : > { %8314 = vst.msk [vmem:[#allocation2 + $0xc8] sm:$0xff] %vm2104_vm2, %v8266_v35  ;;  %8630 = vrot.lane.b32.xlu1 %v8364_v13, %s11454_s13 }
 0x592   : > { %8481 = vrot.lane.b32.xlu2 %v16917_v18, %s11451_s8  ;;  %v7713_v51 = vpop.f32.mrf.mxu2 }
 0x593   : > { %11073 = vmatmul.msk.f32.gmra.mxu3 %vm2104_vm2, %v19655_v42  ;;  %v16979_v1 = vadd.f32 %v7713_v51, %v16455_v61  ;;  %v8603_v15 = vpop.permute.xlu0 %8602  ;;  %v16986_v42 = vpop.f32.mrf.mxu1  ;;  %v7519_v61 = vsel %vm3295_vm5, %v7516_v6, %v7518_v43  ;;  %v8749_v51 = vsel %vm2104_vm2, %v8345_v25, %v8454_v23  ;;  %v7520_v6 = vrot.slane %v16475_v31, 2 }
 0x594   : > { %v16984_v35 = vsel %vm4395_vm14, %v8748_v52, %v8603_v15  ;;  %19657 = vst [vmem:[#allocation138_spill] sm:$0xff] %v16986_v42  ;;  %v16994_v36 = vpop.f32.mrf.mxu0  ;;  %v19658_v52 = vld [vmem:[#allocation40_spill] sm:$0xff]  ;;  %v17012_v23 = vsel %vm4395_vm14, %v8749_v51, %v8605_v22  ;;  %v19661_v22 = vld [vmem:[#allocation41_spill] sm:$0xff] }
 0x595   : > { %v19093_v18 = vmax.f32 %v16979_v1, 0.0  ;;  %v8901_v56 = vrot.slane %v16984_v35, 1  ;;  %11156 = vmatmul.msk.f32.gmra.mxu1 %vm4597_vm9, %v16984_v35  ;;  %v7521_v31 = vsel %vm3295_vm5, %v7518_v43, %v7520_v6  ;;  %v7522_v43 = vrot.slane %v16502_v47, 2 }
 0x596   : > { %v16981_v32 = vpop.f32.mrf.mxu3 }
 0x597   : > { %19656 = vst [vmem:[#allocation37_spill] sm:$0xff] %v16981_v32  ;;  %v8267_v15 = vmul.f32 %v19658_v52, %v19093_v18  ;;  %11048 = vmatmul.msk.f32.gmra.mxu2 %vm4597_vm9, %v7519_v61  ;;  %v8902_v32 = vsel %vm2673_vm4, %v8900_v19, %v8901_v56  ;;  %v19662_v18 = vmax.f32 %v16869_v55, 0.0 }
 0x598   : > { %11107 = vmatmul.msk.f32.vlgmr.msrb.gmra.mxu0 %vm4597_vm9, %v8902_v32  ;;  %v8365_v42 = vld [vmem:[#allocation2 + $0xc7] sm:$0xff] }
 0x599   : > { %8315 = vst.msk [vmem:[#allocation2 + $0xd0] sm:$0xff] %vm2104_vm2, %v8267_v15  ;;  %8483 = vrot.lane.b32.xlu1 %v16943_v30, %s11451_s8  ;;  %8632 = vrot.lane.b32.xlu0 %v8365_v42, %s11454_s13 }
 0x59a   : > { %v7716_v25 = vpop.f32.mrf.mxu2 }
 0x59b   : > { %11074 = vmatmul.msk.f32.gmra.mxu3 %vm2104_vm2, %v19659_v17  ;;  %v17015_v32 = vadd.f32 %v7716_v25, %v16486_v7  ;;  %v8903_v17 = vrot.slane %v17012_v23, 1  ;;  %v17024_v61 = vpop.f32.mrf.mxu1  ;;  %v8456_v52 = vpop.permute.xlu0 %8455 }
 0x59c   : > { %v17034_v25 = vpop.f32.mrf.mxu0 }
 0x59d   : > { %v19094_v40 = vmax.f32 %v17015_v32, 0.0  ;;  %11157 = vmatmul.msk.f32.gmra.mxu1 %vm4597_vm9, %v17012_v23  ;;  %v8904_v7 = vsel %vm2673_vm4, %v8901_v56, %v8903_v17 }
 0x59e   : > { %v17017_v19 = vpop.f32.mrf.mxu3 }
 0x59f   : > { %19660 = vst [vmem:[#allocation40_spill] sm:$0xff] %v17017_v19  ;;  %v8268_v51 = vmul.f32 %v19661_v22, %v19094_v40  ;;  %11049 = vmatmul.msk.f32.gmra.mxu2 %vm4597_vm9, %v7521_v31  ;;  %v19663_v31 = vld [vmem:[#allocation78_spill] sm:$0xff]  ;;  %v19664_v22 = vld [vmem:[#allocation24_spill] sm:$0xff]  ;;  %v8750_v40 = vsel %vm2104_vm2, %v16415_v11, %v8456_v52  ;;  %v8458_v52 = vpop.permute.xlu2 %8457 }
 0x5a0   : > { %11108 = vmatmul.msk.f32.gmra.mxu0 %vm4597_vm9, %v8904_v7  ;;  %v17032_v15 = vld [vmem:[#allocation2 + $0xcf] sm:$0xff]  ;;  %v6033_v7 = vadd.f32 %v19664_v22, %v19663_v31  ;;  %v7523_v31 = vsel %vm3295_vm5, %v7520_v6, %v7522_v43  ;;  %v19667_v22 = vmax.f32 %v16904_v41, 0.0  ;;  %v7524_v6 = vrot.slane %v16533_v10, 2 }
 0x5a1   : > { %8316 = vst.msk [vmem:[#allocation2 + $0xd8] sm:$0xff] %vm2104_vm2, %v8268_v51  ;;  %8634 = vrot.lane.b32.xlu2 %v17032_v15, %s11454_s13  ;;  %8485 = vrot.lane.b32.xlu0 %v8364_v13, %s11451_s8  ;;  %v19666_v11 = vld [vmem:[#allocation44_spill] sm:$0xff] }
 0x5a2   : > { %v7719_v56 = vpop.f32.mrf.mxu2 }
 0x5a3   : > { %11075 = vmatmul.msk.f32.gmra.mxu3 %vm2104_vm2, %v19662_v18  ;;  %v17049_v55 = vadd.f32 %v7719_v56, %v16517_v33  ;;  %v8607_v18 = vpop.permute.xlu1 %8606  ;;  %v17067_v56 = vpop.f32.mrf.mxu1 }
 0x5a4   : > { %v17052_v51 = vsel %vm4395_vm14, %v8750_v40, %v8607_v18  ;;  %v19669_v18 = vld [vmem:[#allocation28_spill] sm:$0xff] }
 0x5a5   : > { %v19096_v47 = vmax.f32 %v17049_v55, 0.0  ;;  %v8905_v13 = vrot.slane %v17052_v51, 1  ;;  %11158 = vmatmul.msk.f32.gmra.mxu1 %vm4597_vm9, %v17052_v51 }
 0x5a6   : > { %v8055_v19 = vpop.f32.mrf.mxu3 }
 0x5a7   : > { %v17054_v30 = vadd.f32 %v8055_v19, %v6033_v7  ;;  %v8269_v33 = vmul.f32 %v19666_v11, %v19096_v47  ;;  %11050 = vmatmul.msk.f32.gmra.mxu2 %vm4597_vm9, %v7523_v31  ;;  %v8906_v40 = vsel %vm2673_vm4, %v8903_v17, %v8905_v13  ;;  %v19668_v17 = vld [vmem:[#allocation7_spill] sm:$0xff]  ;;  %v17078_v11 = vpop.f32.mrf.mxu0 }
 0x5a8   : > { %11109 = vmatmul.msk.f32.gmra.mxu0 %vm4597_vm9, %v8906_v40  ;;  %v8367_v19 = vld [vmem:[#allocation2 + $0xd7] sm:$0xff]  ;;  %v6036_v31 = vadd.f32 %v19669_v18, %v19668_v17 }
 0x5a9   : > { %19665 = vst [vmem:[#allocation41_spill] sm:$0xff] %v17054_v30  ;;  %8487 = vrot.lane.b32.xlu2 %v8365_v42, %s11451_s8  ;;  %8636 = vrot.lane.b32.xlu1 %v8367_v19, %s11454_s13 }
 0x5aa   : > { %8317 = vst.msk [vmem:[#allocation2 + $0xe0] sm:$0xff] %vm2104_vm2, %v8269_v33  ;;  %v7722_v7 = vpop.f32.mrf.mxu2 }
 0x5ab   : > { %11076 = vmatmul.msk.f32.gmra.mxu3 %vm2104_vm2, %v19667_v22  ;;  %v17081_v40 = vadd.f32 %v7722_v7, %v16548_v2  ;;  %v8460_v41 = vpop.permute.xlu1 %8459  ;;  %v8751_v22 = vsel %vm2104_vm2, %v16449_v44, %v8458_v52  ;;  %v8609_v47 = vpop.permute.xlu0 %8608  ;;  %v7525_v2 = vsel %vm3295_vm5, %v7522_v43, %v7524_v6  ;;  %v19671_v44 = vld [vmem:[#allocation45_spill] sm:$0xff] }
 0x5ac   : > { %v17089_v30 = vsel %vm4395_vm14, %v8751_v22, %v8609_v47  ;;  %v8752_v18 = vsel %vm2104_vm2, %v16480_v53, %v8460_v41  ;;  %v8611_v7 = vpop.permute.xlu2 %8610  ;;  %v7369_v22 = vadd.f32 %v16606_v46, %v16657_v63  ;;  %v19672_v53 = vmax.f32 %v16933_v62, 0.0  ;;  %v19673_v46 = vld [vmem:[#allocation81_spill] sm:$0xff]  ;;  %v19674_v63 = vld [vmem:[#allocation32_spill] sm:$0xff] }
 0x5ad   : > { %v19098_v10 = vmax.f32 %v17081_v40, 0.0  ;;  %v8907_v17 = vrot.slane %v17089_v30, 1  ;;  %11159 = vmatmul.msk.f32.gmra.mxu1 %vm4597_vm9, %v17089_v30  ;;  %v17110_v43 = vsel %vm4395_vm14, %v8752_v18, %v8611_v7  ;;  %v7526_v41 = vrot.slane %v16568_v50, 2 }
 0x5ae   : > { %v8058_v33 = vpop.f32.mrf.mxu3  ;;  %v6039_v62 = vadd.f32 %v19674_v63, %v19673_v46  ;;  %v7372_v63 = vadd.f32 %v16649_v59, %v16698_v5 }
 0x5af   : > { %v17085_v42 = vadd.f32 %v8058_v33, %v6036_v31  ;;  %v8270_v52 = vmul.f32 %v19671_v44, %v19098_v10  ;;  %11051 = vmatmul.msk.f32.gmra.mxu2 %vm4597_vm9, %v7525_v2  ;;  %v8908_v47 = vsel %vm2673_vm4, %v8905_v13, %v8907_v17  ;;  %v17118_v33 = vpop.f32.mrf.mxu1  ;;  %v17123_v18 = vpop.f32.mrf.mxu0 }
 0x5b0   : > { %11110 = vmatmul.msk.f32.gmra.mxu0 %vm4597_vm9, %v8908_v47  ;;  %v7527_v47 = vsel %vm3295_vm5, %v7524_v6, %v7526_v41  ;;  %v7528_v6 = vrot.slane %v16595_v9, 2 }
 0x5b1   : > { %19670 = vst [vmem:[#allocation78_spill] sm:$0xff] %v17085_v42  ;;  %v8368_v31 = vld [vmem:[#allocation2 + $0xdf] sm:$0xff]  ;;  %8489 = vrot.lane.b32.xlu1 %v17032_v15, %s11451_s8 }
 0x5b2   : > { %8318 = vst.msk [vmem:[#allocation2 + $0xe8] sm:$0xff] %vm2104_vm2, %v8270_v52  ;;  %8638 = vrot.lane.b32.xlu0 %v8368_v31, %s11454_s13  ;;  %v7725_v13 = vpop.f32.mrf.mxu2  ;;  %v8909_v52 = vrot.slane %v17110_v43, 1 }
 0x5b3   : > { %11077 = vmatmul.msk.f32.gmra.mxu3 %vm2104_vm2, %v19672_v53  ;;  %v17120_v2 = vadd.f32 %v7725_v13, %v7369_v22  ;;  %v19676_v53 = vld [vmem:[#allocation48_spill] sm:$0xff] }
 0x5b4   : > { %v8910_v22 = vsel %vm2673_vm4, %v8907_v17, %v8909_v52 }
 0x5b5   : > { %v19097_v50 = vmax.f32 %v17120_v2, 0.0  ;;  %11160 = vmatmul.msk.f32.gmra.mxu1 %vm4597_vm9, %v17110_v43 }
 0x5b6   : > { %v8061_v44 = vpop.f32.mrf.mxu3 }
 0x5b7   : > { %v17125_v7 = vadd.f32 %v8061_v44, %v6039_v62  ;;  %v8271_v46 = vmul.f32 %v19676_v53, %v19097_v50  ;;  %11052 = vmatmul.msk.f32.gmra.mxu2 %vm4597_vm9, %v7527_v47  ;;  %v19677_v62 = vmax.f32 %v16957_v24, 0.0  ;;  %v8462_v44 = vpop.permute.xlu0 %8461  ;;  %v19678_v47 = vld [vmem:[#allocation10_spill] sm:$0xff]  ;;  %v19679_v53 = vld [vmem:[#allocation36_spill] sm:$0xff] }
 0x5b8   : > { %11111 = vmatmul.msk.f32.gmra.mxu0 %vm4597_vm9, %v8910_v22  ;;  %v6042_v50 = vadd.f32 %v19679_v53, %v19678_v47  ;;  %v8753_v24 = vsel %vm2104_vm2, %v16511_v39, %v8462_v44  ;;  %v19681_v39 = vld [vmem:[#allocation49_spill] sm:$0xff] }
 0x5b9   : > { %19675 = vst [vmem:[#allocation24_spill] sm:$0xff] %v17125_v7  ;;  %v8369_v13 = vld [vmem:[#allocation2 + $0xe7] sm:$0xff] }
 0x5ba   : > { %8319 = vst.msk [vmem:[#allocation2 + $0xf0] sm:$0xff] %vm2104_vm2, %v8271_v46  ;;  %8491 = vrot.lane.b32.xlu0 %v8367_v19, %s11451_s8  ;;  %8640 = vrot.lane.b32.xlu2 %v8369_v13, %s11454_s13  ;;  %v7728_v17 = vpop.f32.mrf.mxu2 }
 0x5bb   : > { %11078 = vmatmul.msk.f32.gmra.mxu3 %vm2104_vm2, %v19677_v62  ;;  %v17148_v5 = vadd.f32 %v7728_v17, %v7372_v63  ;;  %v8613_v46 = vpop.permute.xlu1 %8612  ;;  %v17152_v62 = vpop.f32.mrf.mxu1  ;;  %v7529_v63 = vsel %vm3295_vm5, %v7526_v41, %v7528_v6  ;;  %v7530_v41 = vrot.slane %v16628_v27, 2 }
 0x5bc   : > { %v17158_v19 = vsel %vm4395_vm14, %v8753_v24, %v8613_v46  ;;  %v17164_v17 = vpop.f32.mrf.mxu0  ;;  %v19682_v24 = vmax.f32 %v16979_v1, 0.0 }
 0x5bd   : > { %v19099_v9 = vmax.f32 %v17148_v5, 0.0  ;;  %v8911_v10 = vrot.slane %v17158_v19, 1  ;;  %11161 = vmatmul.msk.f32.gmra.mxu1 %vm4597_vm9, %v17158_v19 }
 0x5be   : > { %v8064_v59 = vpop.f32.mrf.mxu3 }
 0x5bf   : > { %v17154_v22 = vadd.f32 %v8064_v59, %v6042_v50  ;;  %v8272_v44 = vmul.f32 %v19681_v39, %v19099_v9  ;;  %11053 = vmatmul.msk.f32.gmra.mxu2 %vm4597_vm9, %v7529_v63  ;;  %v8464_v50 = vpop.permute.xlu2 %8463  ;;  %v8912_v47 = vsel %vm2673_vm4, %v8909_v52, %v8911_v10  ;;  %v7375_v59 = vadd.f32 %v16690_v48, %v16742_v60  ;;  %v19683_v52 = vld [vmem:[#allocation83_spill] sm:$0xff]  ;;  %v19684_v63 = vld [vmem:[#allocation94_spill] sm:$0xff] }
 0x5c0   : > { %11112 = vmatmul.msk.f32.gmra.mxu0 %vm4597_vm9, %v8912_v47  ;;  %v6045_v39 = vadd.f32 %v19684_v63, %v19683_v52  ;;  %v8754_v48 = vsel %vm2104_vm2, %v16542_v8, %v8464_v50  ;;  %v7531_v8 = vsel %vm3295_vm5, %v7528_v6, %v7530_v41 }
 0x5c1   : > { %19680 = vst [vmem:[#allocation44_spill] sm:$0xff] %v17154_v22  ;;  %v8370_v53 = vld [vmem:[#allocation2 + $0xef] sm:$0xff] }
 0x5c2   : > { %8320 = vst.msk [vmem:[#allocation2 + $0xf8] sm:$0xff] %vm2104_vm2, %v8272_v44  ;;  %8493 = vrot.lane.b32.xlu2 %v8368_v31, %s11451_s8  ;;  %8642 = vrot.lane.b32.xlu1 %v8370_v53, %s11454_s13  ;;  %v7731_v46 = vpop.f32.mrf.mxu2 }
 0x5c3   : > { %11079 = vmatmul.msk.f32.gmra.mxu3 %vm2104_vm2, %v19682_v24  ;;  %v17185_v60 = vadd.f32 %v7731_v46, %v7375_v59  ;;  %v8615_v1 = vpop.permute.xlu0 %8614  ;;  %v8466_v47 = vpop.permute.xlu1 %8465  ;;  %v19686_v59 = vld [vmem:[#allocation52_spill] sm:$0xff] }
 0x5c4   : > { %v17188_v44 = vsel %vm4395_vm14, %v8754_v48, %v8615_v1  ;;  %v8755_v52 = vsel %vm2104_vm2, %v16573_v20, %v8466_v47  ;;  %v17199_v50 = vpop.f32.mrf.mxu1  ;;  %v7378_v20 = vadd.f32 %v16731_v28, %v16787_v54  ;;  %v17208_v1 = vpop.f32.mrf.mxu0  ;;  %v19688_v54 = vld [vmem:[#allocation12_spill] sm:$0xff]  ;;  %v19689_v47 = vld [vmem:[#allocation95_spill] sm:$0xff] }
 0x5c5   : > { %v19102_v31 = vmax.f32 %v17185_v60, 0.0  ;;  %v8913_v9 = vrot.slane %v17188_v44, 1  ;;  %11162 = vmatmul.msk.f32.gmra.mxu1 %vm4597_vm9, %v17188_v44 }
 0x5c6   : > { %v8067_v24 = vpop.f32.mrf.mxu3 }
 0x5c7   : > { %v17190_v27 = vadd.f32 %v8067_v24, %v6045_v39  ;;  %v8273_v46 = vmul.f32 %v19686_v59, %v19102_v31  ;;  %11054 = vmatmul.msk.f32.gmra.mxu2 %vm4597_vm9, %v7531_v8  ;;  %v8914_v63 = vsel %vm2673_vm4, %v8911_v10, %v8913_v9  ;;  %v8617_v39 = vpop.permute.xlu2 %8616  ;;  %v19687_v24 = vmax.f32 %v17015_v32, 0.0 }
 0x5c8   : > { %11113 = vmatmul.msk.f32.gmra.mxu0 %vm4597_vm9, %v8914_v63  ;;  %v17216_v6 = vsel %vm4395_vm14, %v8755_v52, %v8617_v39  ;;  %v7532_v10 = vrot.slane %v16667_v3, 2  ;;  %v6048_v8 = vadd.f32 %v19689_v47, %v19688_v54  ;;  %v7381_v54 = vadd.f32 %v16775_v26, %v16823_v49  ;;  %v19694_v26 = vld [vmem:[#allocation96_spill] sm:$0xff] }
 0x5c9   : > { %19685 = vst [vmem:[#allocation7_spill] sm:$0xff] %v17190_v27  ;;  %v8371_v48 = vld [vmem:[#allocation2 + $0xf7] sm:$0xff] }
 0x5ca   : > { %8321 = vst.msk [vmem:[#allocation2 + $0x100] sm:$0xff] %vm2104_vm2, %v8273_v46  ;;  %8495 = vrot.lane.b32.xlu1 %v8369_v13, %s11451_s8  ;;  %8644 = vrot.lane.b32.xlu0 %v8371_v48, %s11454_s13  ;;  %v7734_v28 = vpop.f32.mrf.mxu2  ;;  %v8915_v46 = vrot.slane %v17216_v6, 1  ;;  %v7533_v3 = vsel %vm3295_vm5, %v7530_v41, %v7532_v10  ;;  %v19691_v13 = vld [vmem:[#allocation53_spill] sm:$0xff]  ;;  %v7534_v41 = vrot.slane %v16696_v45, 2 }
 0x5cb   : > { %11080 = vmatmul.msk.f32.gmra.mxu3 %vm2104_vm2, %v19687_v24  ;;  %v17223_v32 = vadd.f32 %v7734_v28, %v7378_v20  ;;  %v8468_v39 = vpop.permute.xlu0 %8467 }
 0x5cc   : > { %v8916_v20 = vsel %vm2673_vm4, %v8913_v9, %v8915_v46  ;;  %v17241_v47 = vpop.f32.mrf.mxu1 }
 0x5cd   : > { %v19100_v52 = vmax.f32 %v17223_v32, 0.0  ;;  %11163 = vmatmul.msk.f32.gmra.mxu1 %vm4597_vm9, %v17216_v6 }
 0x5ce   : > { %v8070_v59 = vpop.f32.mrf.mxu3 }
 0x5cf   : > { %v17226_v24 = vadd.f32 %v8070_v59, %v6048_v8  ;;  %v8274_v63 = vmul.f32 %v19691_v13, %v19100_v52  ;;  %11055 = vmatmul.msk.f32.gmra.mxu2 %vm4597_vm9, %v7533_v3  ;;  %v19692_v8 = vmax.f32 %v17049_v55, 0.0  ;;  %v19693_v59 = vld [vmem:[#allocation14_spill] sm:$0xff]  ;;  %v17254_v3 = vpop.f32.mrf.mxu0  ;;  %v8756_v55 = vsel %vm2104_vm2, %v16604_v12, %v8468_v39  ;;  %v19696_v12 = vld [vmem:[#allocation56_spill] sm:$0xff] }
 0x5d0   : > { %11114 = vmatmul.msk.f32.gmra.mxu0 %vm4597_vm9, %v8916_v20  ;;  %v6051_v49 = vadd.f32 %v19694_v26, %v19693_v59  ;;  %v7535_v59 = vsel %vm3295_vm5, %v7532_v10, %v7534_v41  ;;  %v7536_v10 = vrot.slane %v16729_v37, 2 }
 0x5d1   : > { %19690 = vst [vmem:[#allocation28_spill] sm:$0xff] %v17226_v24  ;;  %v17237_v28 = vld [vmem:[#allocation2 + $0xff] sm:$0xff] }
 0x5d2   : > { %8322 = vst.msk [vmem:[#allocation2 + $0x108] sm:$0xff] %vm2104_vm2, %v8274_v63  ;;  %8497 = vrot.lane.b32.xlu0 %v8370_v53, %s11451_s8  ;;  %8646 = vrot.lane.b32.xlu2 %v17237_v28, %s11454_s13  ;;  %v7737_v9 = vpop.f32.mrf.mxu2 }
 0x5d3   : > { %11081 = vmatmul.msk.f32.gmra.mxu3 %vm2104_vm2, %v19692_v8  ;;  %v17258_v13 = vadd.f32 %v7737_v9, %v7381_v54  ;;  %v8619_v63 = vpop.permute.xlu1 %8618  ;;  %v8470_v9 = vpop.permute.xlu2 %8469 }
 0x5d4   : > { %v17261_v45 = vsel %vm4395_vm14, %v8756_v55, %v8619_v63  ;;  %v19697_v55 = vmax.f32 %v17081_v40, 0.0  ;;  %v19698_v63 = vld [vmem:[#allocation17_spill] sm:$0xff] }
 0x5d5   : > { %v19101_v8 = vmax.f32 %v17258_v13, 0.0  ;;  %v8917_v52 = vrot.slane %v17261_v45, 1  ;;  %11164 = vmatmul.msk.f32.gmra.mxu1 %vm4597_vm9, %v17261_v45 }
 0x5d6   : > { %v8073_v20 = vpop.f32.mrf.mxu3 }
 0x5d7   : > { %v17263_v53 = vadd.f32 %v8073_v20, %v6051_v49  ;;  %v8275_v39 = vmul.f32 %v19696_v12, %v19101_v8  ;;  %11056 = vmatmul.msk.f32.gmra.mxu2 %vm4597_vm9, %v7535_v59  ;;  %v8918_v54 = vsel %vm2673_vm4, %v8915_v46, %v8917_v52  ;;  %v7384_v49 = vadd.f32 %v16816_v29, %v16851_v4  ;;  %v19699_v20 = vld [vmem:[#allocation97_spill] sm:$0xff]  ;;  %v17291_v4 = vpop.f32.mrf.mxu1  ;;  %v17298_v8 = vpop.f32.mrf.mxu0 }
 0x5d8   : > { %11115 = vmatmul.msk.f32.gmra.mxu0 %vm4597_vm9, %v8918_v54  ;;  %v6054_v59 = vadd.f32 %v19699_v20, %v19698_v63  ;;  %v9515_v29 = vrot.slane %v16984_v35, 2 }
 0x5d9   : > { %19695 = vst [vmem:[#allocation45_spill] sm:$0xff] %v17263_v53  ;;  %v17275_v26 = vld [vmem:[#allocation2 + $0x107] sm:$0xff] }
 0x5da   : > { %8323 = vst.msk [vmem:[#allocation2 + $0x110] sm:$0xff] %vm2104_vm2, %v8275_v39  ;;  %8499 = vrot.lane.b32.xlu2 %v8371_v48, %s11451_s8  ;;  %8648 = vrot.lane.b32.xlu1 %v17275_v26, %s11454_s13  ;;  %v7740_v46 = vpop.f32.mrf.mxu2  ;;  %v19700_v39 = vld [vmem:[#allocation126_spill] sm:$0xff]  ;;  %v9514_v48 = vrot.slane %v16876_v21, 2 }
 0x5db   : > { %11082 = vmatmul.msk.f32.gmra.mxu3 %vm2104_vm2, %v19697_v55  ;;  %v17293_v40 = vadd.f32 %v7740_v46, %v7384_v49  ;;  %v8472_v12 = vpop.permute.xlu1 %8471  ;;  %v8757_v54 = vsel %vm2104_vm2, %v19700_v39, %v8470_v9  ;;  %v19702_v46 = vld [vmem:[#allocation128_spill] sm:$0xff]  ;;  %v7537_v9 = vsel %vm3295_vm5, %v7534_v41, %v7536_v10  ;;  %v19703_v21 = vld [vmem:[#allocation58_spill] sm:$0xff] }
 0x5dc   : > { %v8621_v55 = vpop.permute.xlu0 %8620  ;;  %v8758_v20 = vsel %vm2104_vm2, %v19702_v46, %v8472_v12  ;;  %v9516_v39 = vsel %vm3295_vm5, %v9514_v48, %v9515_v29  ;;  %v7387_v12 = vadd.f32 %v16847_v58, %v16889_v57  ;;  %v19704_v46 = vmax.f32 %v17120_v2, 0.0  ;;  %v19705_v58 = vld [vmem:[#allocation89_spill] sm:$0xff]  ;;  %v19706_v57 = vld [vmem:[#allocation98_spill] sm:$0xff] }
 0x5dd   : > { %v19105_v63 = vmax.f32 %v17293_v40, 0.0  ;;  %v17304_v35 = vsel %vm4395_vm14, %v8757_v54, %v8621_v55  ;;  %v8623_v54 = vpop.permute.xlu2 %8622  ;;  %v7538_v48 = vrot.slane %v16764_v0, 2  ;;  %v6057_v2 = vadd.f32 %v19706_v57, %v19705_v58 }
 0x5de   : > { %v8076_v37 = vpop.f32.mrf.mxu3  ;;  %v8919_v49 = vrot.slane %v17304_v35, 1  ;;  %11165 = vmatmul.msk.f32.gmra.mxu1 %vm4597_vm9, %v17304_v35  ;;  %v17326_v41 = vsel %vm4395_vm14, %v8758_v20, %v8623_v54 }
 0x5df   : > { %v17300_v31 = vadd.f32 %v8076_v37, %v6054_v59  ;;  %v8276_v59 = vmul.f32 %v19703_v21, %v19105_v63  ;;  %11057 = vmatmul.msk.f32.gmra.mxu2 %vm4597_vm9, %v7537_v9  ;;  %v9517_v9 = vrot.slane %v17012_v23, 2  ;;  %v17347_v58 = vpop.f32.mrf.mxu0  ;;  %v19708_v23 = vld [vmem:[#allocation59_spill] sm:$0xff] }
 0x5e0   : > { %v8920_v37 = vsel %vm2673_vm4, %v8917_v52, %v8919_v49 }
 0x5e1   : > { %19701 = vst [vmem:[#allocation81_spill] sm:$0xff] %v17300_v31  ;;  %v8374_v55 = vld [vmem:[#allocation2 + $0x10f] sm:$0xff]  ;;  %11116 = vmatmul.msk.f32.gmra.mxu0 %vm4597_vm9, %v8920_v37  ;;  %v8921_v37 = vrot.slane %v17326_v41, 1  ;;  %v9518_v54 = vsel %vm3295_vm5, %v9515_v29, %v9517_v9  ;;  %v7390_v29 = vadd.f32 %v16881_v34, %v16930_v38  ;;  %v19711_v34 = vld [vmem:[#allocation99_spill] sm:$0xff] }
 0x5e2   : > { %8324 = vst.msk [vmem:[#allocation2 + $0x118] sm:$0xff] %vm2104_vm2, %v8276_v59  ;;  %8501 = vrot.lane.b32.xlu1 %v17237_v28, %s11451_s8  ;;  %8650 = vrot.lane.b32.xlu0 %v8374_v55, %s11454_s13  ;;  %v7743_v52 = vpop.f32.mrf.mxu2  ;;  %v17342_v28 = vpop.f32.mrf.mxu1 }
 0x5e3   : > { %11083 = vmatmul.msk.f32.gmra.mxu3 %vm2104_vm2, %v19704_v46  ;;  %v17335_v21 = vadd.f32 %v7743_v52, %v7387_v12  ;;  %v7539_v46 = vsel %vm3295_vm5, %v7536_v10, %v7538_v48  ;;  %v8922_v52 = vsel %vm2673_vm4, %v8919_v49, %v8921_v37  ;;  %v19710_v48 = vld [vmem:[#allocation21_spill] sm:$0xff] }
 0x5e4   : > { %v8474_v10 = vpop.permute.xlu0 %8473  ;;  %v6060_v38 = vadd.f32 %v19711_v34, %v19710_v48 }
 0x5e5   : > { %v19103_v0 = vmax.f32 %v17335_v21, 0.0 }
 0x5e6   : > { %v8079_v59 = vpop.f32.mrf.mxu3  ;;  %11166 = vmatmul.msk.f32.gmra.mxu1 %vm4597_vm9, %v17326_v41 }
 0x5e7   : > { %v17338_v20 = vadd.f32 %v8079_v59, %v6057_v2  ;;  %v8277_v12 = vmul.f32 %v19708_v23, %v19103_v0  ;;  %11058 = vmatmul.msk.f32.gmra.mxu2 %vm4597_vm9, %v7539_v46  ;;  %v9519_v2 = vrot.slane %v17052_v51, 2  ;;  %v19709_v59 = vmax.f32 %v17148_v5, 0.0 }
 0x5e8   : > { %v8759_v46 = vsel %vm2104_vm2, %v16707_v14, %v8474_v10  ;;  %v8476_v10 = vpop.permute.xlu2 %8475 }
 0x5e9   : > { %19707 = vst [vmem:[#allocation32_spill] sm:$0xff] %v17338_v20  ;;  %v17354_v57 = vld [vmem:[#allocation2 + $0x117] sm:$0xff]  ;;  %11117 = vmatmul.msk.f32.gmra.mxu0 %vm4597_vm9, %v8922_v52  ;;  %v19720_v20 = vld [vmem:[#allocation23_spill] sm:$0xff] }
 0x5ea   : > { %8325 = vst.msk [vmem:[#allocation2 + $0x120] sm:$0xff] %vm2104_vm2, %v8277_v12  ;;  %8503 = vrot.lane.b32.xlu0 %v17275_v26, %s11451_s8  ;;  %8652 = vrot.lane.b32.xlu2 %v17354_v57, %s11454_s13  ;;  %v7746_v49 = vpop.f32.mrf.mxu2  ;;  %v17388_v14 = vpop.f32.mrf.mxu1 }
 0x5eb   : > { %11084 = vmatmul.msk.f32.gmra.mxu3 %vm2104_vm2, %v19709_v59  ;;  %v17370_v51 = vadd.f32 %v7746_v49, %v7390_v29  ;;  %v9520_v59 = vsel %vm3295_vm5, %v9517_v9, %v9519_v2  ;;  %v19713_v29 = vld [vmem:[#allocation61_spill] sm:$0xff]  ;;  %v19714_v9 = vld [vmem:[#allocation134_spill] sm:$0xff] }
 0x5ec   : > { %v8625_v23 = vpop.permute.xlu1 %8624 }
 0x5ed   : > { %v19104_v52 = vmax.f32 %v17370_v51, 0.0  ;;  %v17378_v26 = vsel %vm4395_vm14, %v8759_v46, %v8625_v23  ;;  %v19715_v46 = vmax.f32 %v17185_v60, 0.0  ;;  %v19716_v23 = vld [vmem:[#allocation3_spill] sm:$0xff] }
 0x5ee   : > { %v8082_v5 = vpop.f32.mrf.mxu3  ;;  %v8923_v0 = vrot.slane %v17378_v26, 1  ;;  %11167 = vmatmul.msk.f32.gmra.mxu1 %vm4597_vm9, %v17378_v26 }
 0x5ef   : > { %v17374_v12 = vadd.f32 %v8082_v5, %v6060_v38  ;;  %v8278_v49 = vmul.f32 %v19713_v29, %v19104_v52  ;;  %11203 = vmatmul.msk.f32.vlgmr.msrb.gmra.mxu2 %vm4597_vm9, %v9516_v39  ;;  %v7393_v38 = vadd.f32 %v19714_v9, %v16961_v16  ;;  %v17395_v5 = vpop.f32.mrf.mxu0  ;;  %v9521_v39 = vrot.slane %v17089_v30, 2  ;;  %v19717_v16 = vld [vmem:[#allocation100_spill] sm:$0xff]  ;;  %v19718_v9 = vld [vmem:[#allocation130_spill] sm:$0xff] }
 0x5f0   : > { %v8924_v48 = vsel %vm2673_vm4, %v8921_v37, %v8923_v0  ;;  %v6063_v29 = vadd.f32 %v19717_v16, %v19716_v23  ;;  %v8760_v60 = vsel %vm2104_vm2, %v19718_v9, %v8476_v10 }
 0x5f1   : > { %19712 = vst [vmem:[#allocation48_spill] sm:$0xff] %v17374_v12  ;;  %v17391_v34 = vld [vmem:[#allocation2 + $0x11f] sm:$0xff]  ;;  %11118 = vmatmul.msk.f32.gmra.mxu0 %vm4597_vm9, %v8924_v48  ;;  %v9522_v10 = vsel %vm3295_vm5, %v9519_v2, %v9521_v39 }
 0x5f2   : > { %8326 = vst.msk [vmem:[#allocation2 + $0x128] sm:$0xff] %vm2104_vm2, %v8278_v49  ;;  %8505 = vrot.lane.b32.xlu2 %v8374_v55, %s11451_s8  ;;  %8654 = vrot.lane.b32.xlu1 %v17391_v34, %s11454_s13  ;;  %v7749_v37 = vpop.f32.mrf.mxu2 }
 0x5f3   : > { %11085 = vmatmul.msk.f32.gmra.mxu3 %vm2104_vm2, %v19715_v46  ;;  %v17410_v52 = vadd.f32 %v7749_v37, %v7393_v38  ;;  %v8627_v46 = vpop.permute.xlu0 %8626  ;;  %v19721_v38 = vld [vmem:[#allocation63_spill] sm:$0xff] }
 0x5f4   : > { %v17413_v48 = vsel %vm4395_vm14, %v8760_v60, %v8627_v46  ;;  %v8478_v30 = vpop.permute.xlu1 %8477  ;;  %v19722_v60 = vld [vmem:[#allocation136_spill] sm:$0xff] }
 0x5f5   : > { %v19106_v55 = vmax.f32 %v17410_v52, 0.0  ;;  %v8925_v12 = vrot.slane %v17413_v48, 1  ;;  %v8761_v23 = vsel %vm2104_vm2, %v19720_v20, %v8478_v30  ;;  %v7396_v46 = vadd.f32 %v19722_v60, %v16994_v36 }
 0x5f6   : > { %v8085_v49 = vpop.f32.mrf.mxu3  ;;  %11168 = vmatmul.msk.f32.gmra.mxu1 %vm4597_vm9, %v17413_v48  ;;  %v9523_v20 = vrot.slane %v17110_v43, 2  ;;  %v19724_v43 = vld [vmem:[#allocation4_spill] sm:$0xff] }
 0x5f7   : > { %v17415_v63 = vadd.f32 %v8085_v49, %v6063_v29  ;;  %v8279_v37 = vmul.f32 %v19721_v38, %v19106_v55  ;;  %11204 = vmatmul.msk.f32.gmra.mxu2 %vm4597_vm9, %v9518_v54  ;;  %v8926_v16 = vsel %vm2673_vm4, %v8923_v0, %v8925_v12  ;;  %v8629_v29 = vpop.permute.xlu2 %8628  ;;  %v19723_v49 = vmax.f32 %v17223_v32, 0.0  ;;  %v17442_v0 = vpop.f32.mrf.mxu1  ;;  %v19725_v32 = vld [vmem:[#allocation101_spill] sm:$0xff] }
 0x5f8   : > { %v17440_v54 = vsel %vm4395_vm14, %v8761_v23, %v8629_v29  ;;  %v6066_v2 = vadd.f32 %v19725_v32, %v19724_v43  ;;  %v17450_v30 = vpop.f32.mrf.mxu0  ;;  %v9524_v60 = vsel %vm3295_vm5, %v9521_v39, %v9523_v20  ;;  %v19729_v55 = vmax.f32 %v17258_v13, 0.0 }
 0x5f9   : > { %19719 = vst [vmem:[#allocation10_spill] sm:$0xff] %v17415_v63  ;;  %v17429_v9 = vld [vmem:[#allocation2 + $0x127] sm:$0xff]  ;;  %11119 = vmatmul.msk.f32.gmra.mxu0 %vm4597_vm9, %v8926_v16  ;;  %v8927_v23 = vrot.slane %v17440_v54, 1  ;;  %v9525_v39 = vrot.slane %v17158_v19, 2 }
 0x5fa   : > { %8327 = vst.msk [vmem:[#allocation2 + $0x130] sm:$0xff] %vm2104_vm2, %v8279_v37  ;;  %8507 = vrot.lane.b32.xlu1 %v17354_v57, %s11451_s8  ;;  %8656 = vrot.lane.b32.xlu0 %v17429_v9, %s11454_s13  ;;  %v7752_v36 = vpop.f32.mrf.mxu2 }
 0x5fb   : > { %11086 = vmatmul.msk.f32.gmra.mxu3 %vm2104_vm2, %v19723_v49  ;;  %v17452_v38 = vadd.f32 %v7752_v36, %v7396_v46  ;;  %v19727_v49 = vld [vmem:[#allocation66_spill] sm:$0xff]  ;;  %v8480_v46 = vpop.permute.xlu0 %8479  ;;  %v8928_v36 = vsel %vm2673_vm4, %v8925_v12, %v8927_v23 }
 0x5fd   : > { %v19107_v29 = vmax.f32 %v17452_v38, 0.0 }
 0x5fe   : > { %v8088_v37 = vpop.f32.mrf.mxu3  ;;  %11169 = vmatmul.msk.f32.gmra.mxu1 %vm4597_vm9, %v17440_v54 }
 0x5ff   : > { %v17455_v16 = vadd.f32 %v8088_v37, %v6066_v2  ;;  %v8280_v43 = vmul.f32 %v19727_v49, %v19107_v29  ;;  %11205 = vmatmul.msk.f32.gmra.mxu2 %vm4597_vm9, %v9520_v59  ;;  %v19728_v2 = vld [vmem:[#allocation138_spill] sm:$0xff]  ;;  %v19730_v59 = vld [vmem:[#allocation5_spill] sm:$0xff]  ;;  %v17486_v29 = vpop.f32.mrf.mxu1 }
 0x600   : > { %v7399_v37 = vadd.f32 %v19728_v2, %v17034_v25  ;;  %v19731_v49 = vld [vmem:[#allocation102_spill] sm:$0xff]  ;;  %v19732_v2 = vld [vmem:[#allocation25_spill] sm:$0xff] }
 0x601   : > { %19726 = vst [vmem:[#allocation36_spill] sm:$0xff] %v17455_v16  ;;  %v17466_v32 = vld [vmem:[#allocation2 + $0x12f] sm:$0xff]  ;;  %11120 = vmatmul.msk.f32.gmra.mxu0 %vm4597_vm9, %v8928_v36  ;;  %v6069_v25 = vadd.f32 %v19731_v49, %v19730_v59  ;;  %v8762_v13 = vsel %vm2104_vm2, %v19732_v2, %v8480_v46  ;;  %v17491_v16 = vpop.f32.mrf.mxu0  ;;  %v9526_v46 = vsel %vm3295_vm5, %v9523_v20, %v9525_v39  ;;  %v8482_v2 = vpop.permute.xlu2 %8481  ;;  %v19736_v20 = vld [vmem:[#allocation6_spill] sm:$0xff] }
 0x602   : > { %8328 = vst.msk [vmem:[#allocation2 + $0x138] sm:$0xff] %vm2104_vm2, %v8280_v43  ;;  %8509 = vrot.lane.b32.xlu0 %v17391_v34, %s11451_s8  ;;  %8658 = vrot.lane.b32.xlu2 %v17466_v32, %s11454_s13  ;;  %v7755_v12 = vpop.f32.mrf.mxu2 }
 0x603   : > { %11087 = vmatmul.msk.f32.gmra.mxu3 %vm2104_vm2, %v19729_v55  ;;  %v17484_v55 = vadd.f32 %v7755_v12, %v7399_v37  ;;  %v8631_v43 = vpop.permute.xlu1 %8630  ;;  %v19734_v37 = vld [vmem:[#allocation68_spill] sm:$0xff] }
 0x604   : > { %v17489_v19 = vsel %vm4395_vm14, %v8762_v13, %v8631_v43  ;;  %v7402_v13 = vadd.f32 %v17024_v61, %v17078_v11  ;;  %v19735_v43 = vmax.f32 %v17293_v40, 0.0  ;;  %v9527_v61 = vrot.slane %v17188_v44, 2  ;;  %v19740_v44 = vld [vmem:[#allocation29_spill] sm:$0xff] }
 0x605   : > { %v19108_v31 = vmax.f32 %v17484_v55, 0.0  ;;  %v8929_v59 = vrot.slane %v17489_v19, 1 }
 0x606   : > { %v8091_v36 = vpop.f32.mrf.mxu3  ;;  %11170 = vmatmul.msk.f32.gmra.mxu1 %vm4597_vm9, %v17489_v19 }
 0x607   : > { %v17493_v63 = vadd.f32 %v8091_v36, %v6069_v25  ;;  %v8281_v12 = vmul.f32 %v19734_v37, %v19108_v31  ;;  %11206 = vmatmul.msk.f32.gmra.mxu2 %vm4597_vm9, %v9522_v10  ;;  %v8930_v49 = vsel %vm2673_vm4, %v8927_v23, %v8929_v59  ;;  %v19737_v23 = vld [vmem:[#allocation103_spill] sm:$0xff]  ;;  %v17531_v24 = vpop.f32.mrf.mxu1 }
 0x608   : > { %v6072_v36 = vadd.f32 %v19737_v23, %v19736_v20  ;;  %v19738_v37 = vld [vmem:[#allocation27_spill] sm:$0xff] }
 0x609   : > { %19733 = vst [vmem:[#allocation49_spill] sm:$0xff] %v17493_v63  ;;  %v17505_v25 = vld [vmem:[#allocation2 + $0x137] sm:$0xff]  ;;  %11121 = vmatmul.msk.f32.gmra.mxu0 %vm4597_vm9, %v8930_v49 }
 0x60a   : > { %8329 = vst.msk [vmem:[#allocation2 + $0x140] sm:$0xff] %vm2104_vm2, %v8281_v12  ;;  %8511 = vrot.lane.b32.xlu2 %v17429_v9, %s11451_s8  ;;  %8660 = vrot.lane.b32.xlu1 %v17505_v25, %s11454_s13  ;;  %v7758_v10 = vpop.f32.mrf.mxu2  ;;  %v8763_v12 = vsel %vm2104_vm2, %v19738_v37, %v8482_v2  ;;  %v17538_v2 = vpop.f32.mrf.mxu0 }
 0x60b   : > { %11088 = vmatmul.msk.f32.gmra.mxu3 %vm2104_vm2, %v19735_v43  ;;  %v17521_v11 = vadd.f32 %v7758_v10, %v7402_v13  ;;  %v8484_v40 = vpop.permute.xlu1 %8483  ;;  %v8633_v49 = vpop.permute.xlu0 %8632  ;;  %v19741_v10 = vld [vmem:[#allocation70_spill] sm:$0xff] }
 0x60c   : > { %v17529_v53 = vsel %vm4395_vm14, %v8763_v12, %v8633_v49  ;;  %v8764_v13 = vsel %vm2104_vm2, %v19740_v44, %v8484_v40  ;;  %v8635_v37 = vpop.permute.xlu2 %8634  ;;  %v7405_v40 = vadd.f32 %v17067_v56, %v17123_v18  ;;  %v9529_v49 = vrot.slane %v17216_v6, 2  ;;  %v19743_v18 = vld [vmem:[#allocation8_spill] sm:$0xff] }
 0x60d   : > { %v19110_v63 = vmax.f32 %v17521_v11, 0.0  ;;  %v8931_v20 = vrot.slane %v17529_v53, 1  ;;  %v19742_v44 = vmax.f32 %v17335_v21, 0.0  ;;  %v19744_v6 = vld [vmem:[#allocation104_spill] sm:$0xff] }
 0x60e   : > { %v8094_v43 = vpop.f32.mrf.mxu3  ;;  %11171 = vmatmul.msk.f32.gmra.mxu1 %vm4597_vm9, %v17529_v53 }
 0x60f   : > { %v17525_v31 = vadd.f32 %v8094_v43, %v6072_v36  ;;  %v8282_v23 = vmul.f32 %v19741_v10, %v19110_v63  ;;  %11207 = vmatmul.msk.f32.gmra.mxu2 %vm4597_vm9, %v9524_v60  ;;  %v9528_v36 = vsel %vm3295_vm5, %v9525_v39, %v9527_v61  ;;  %v8932_v12 = vsel %vm2673_vm4, %v8929_v59, %v8931_v20 }
 0x610   : > { %v17557_v60 = vsel %vm4395_vm14, %v8764_v13, %v8635_v37  ;;  %v6075_v39 = vadd.f32 %v19744_v6, %v19743_v18  ;;  %v9530_v37 = vsel %vm3295_vm5, %v9527_v61, %v9529_v49  ;;  %v7408_v6 = vadd.f32 %v17118_v33, %v17164_v17  ;;  %v19748_v17 = vld [vmem:[#allocation9_spill] sm:$0xff] }
 0x611   : > { %19739 = vst [vmem:[#allocation83_spill] sm:$0xff] %v17525_v31  ;;  %v17546_v43 = vld [vmem:[#allocation2 + $0x13f] sm:$0xff]  ;;  %11122 = vmatmul.msk.f32.gmra.mxu0 %vm4597_vm9, %v8932_v12  ;;  %v8933_v10 = vrot.slane %v17557_v60, 1  ;;  %v19746_v12 = vld [vmem:[#allocation72_spill] sm:$0xff]  ;;  %v9531_v61 = vrot.slane %v17261_v45, 2  ;;  %v19749_v45 = vld [vmem:[#allocation105_spill] sm:$0xff] }
 0x612   : > { %8330 = vst.msk [vmem:[#allocation2 + $0x148] sm:$0xff] %vm2104_vm2, %v8282_v23  ;;  %8513 = vrot.lane.b32.xlu1 %v17466_v32, %s11451_s8  ;;  %8662 = vrot.lane.b32.xlu0 %v17546_v43, %s11454_s13  ;;  %v7761_v56 = vpop.f32.mrf.mxu2 }
 0x613   : > { %11089 = vmatmul.msk.f32.gmra.mxu3 %vm2104_vm2, %v19742_v44  ;;  %v17565_v21 = vadd.f32 %v7761_v56, %v7405_v40  ;;  %v17578_v40 = vpop.f32.mrf.mxu1  ;;  %v8934_v56 = vsel %vm2673_vm4, %v8931_v20, %v8933_v10  ;;  %v6078_v20 = vadd.f32 %v19749_v45, %v19748_v17  ;;  %v9532_v31 = vsel %vm3295_vm5, %v9529_v49, %v9531_v61 }
 0x614   : > { %v7411_v45 = vadd.f32 %v17152_v62, %v17208_v1  ;;  %v9533_v49 = vrot.slane %v17304_v35, 2  ;;  %v19754_v62 = vld [vmem:[#allocation11_spill] sm:$0xff]  ;;  %v19755_v1 = vld [vmem:[#allocation106_spill] sm:$0xff] }
 0x615   : > { %v19109_v13 = vmax.f32 %v17565_v21, 0.0  ;;  %v6081_v35 = vadd.f32 %v19755_v1, %v19754_v62  ;;  %v19758_v1 = vld [vmem:[#allocation35_spill] sm:$0xff] }
 0x616   : > { %v8097_v59 = vpop.f32.mrf.mxu3  ;;  %11172 = vmatmul.msk.f32.gmra.mxu1 %vm4597_vm9, %v17557_v60  ;;  %v9534_v22 = vsel %vm3295_vm5, %v9531_v61, %v9533_v49  ;;  %v7414_v61 = vadd.f32 %v17199_v50, %v17254_v3  ;;  %v19761_v50 = vld [vmem:[#allocation13_spill] sm:$0xff]  ;;  %v19762_v3 = vld [vmem:[#allocation107_spill] sm:$0xff] }
 0x617   : > { %v17568_v23 = vadd.f32 %v8097_v59, %v6075_v39  ;;  %v8283_v44 = vmul.f32 %v19746_v12, %v19109_v13  ;;  %11208 = vmatmul.msk.f32.gmra.mxu2 %vm4597_vm9, %v9526_v46  ;;  %v17586_v39 = vpop.f32.mrf.mxu0  ;;  %v19747_v59 = vmax.f32 %v17370_v51, 0.0  ;;  %v8486_v46 = vpop.permute.xlu0 %8485  ;;  %v19750_v13 = vld [vmem:[#allocation31_spill] sm:$0xff] }
 0x619   : > { %19745 = vst [vmem:[#allocation94_spill] sm:$0xff] %v17568_v23  ;;  %v17581_v18 = vld [vmem:[#allocation2 + $0x147] sm:$0xff]  ;;  %11123 = vmatmul.msk.f32.gmra.mxu0 %vm4597_vm9, %v8934_v56 }
 0x61a   : > { %8331 = vst.msk [vmem:[#allocation2 + $0x150] sm:$0xff] %vm2104_vm2, %v8283_v44  ;;  %8515 = vrot.lane.b32.xlu0 %v17505_v25, %s11451_s8  ;;  %8664 = vrot.lane.b32.xlu2 %v17581_v18, %s11454_s13  ;;  %v7764_v33 = vpop.f32.mrf.mxu2 }
 0x61b   : > { %11090 = vmatmul.msk.f32.gmra.mxu3 %vm2104_vm2, %v19747_v59  ;;  %v17599_v12 = vadd.f32 %v7764_v33, %v7408_v6  ;;  %v8765_v59 = vsel %vm2104_vm2, %v19750_v13, %v8486_v46  ;;  %v8637_v44 = vpop.permute.xlu1 %8636  ;;  %v19752_v6 = vld [vmem:[#allocation74_spill] sm:$0xff]  ;;  %v8488_v13 = vpop.permute.xlu2 %8487 }
 0x61c   : > { %v17607_v23 = vsel %vm4395_vm14, %v8765_v59, %v8637_v44 }
 0x61d   : > { %v19111_v56 = vmax.f32 %v17599_v12, 0.0  ;;  %v8935_v27 = vrot.slane %v17607_v23, 1 }
 0x61e   : > { %v8100_v51 = vpop.f32.mrf.mxu3  ;;  %11173 = vmatmul.msk.f32.gmra.mxu1 %vm4597_vm9, %v17607_v23 }
 0x61f   : > { %v17603_v63 = vadd.f32 %v8100_v51, %v6078_v20  ;;  %v8284_v33 = vmul.f32 %v19752_v6, %v19111_v56  ;;  %11209 = vmatmul.msk.f32.gmra.mxu2 %vm4597_vm9, %v9528_v36  ;;  %v8936_v46 = vsel %vm2673_vm4, %v8933_v10, %v8935_v27  ;;  %v17623_v20 = vpop.f32.mrf.mxu1  ;;  %v19753_v51 = vmax.f32 %v17410_v52, 0.0  ;;  %v17636_v10 = vpop.f32.mrf.mxu0  ;;  %v19756_v52 = vld [vmem:[#allocation34_spill] sm:$0xff] }
 0x620   : > { %v8766_v44 = vsel %vm2104_vm2, %v19756_v52, %v8488_v13  ;;  %v19759_v13 = vld [vmem:[#allocation76_spill] sm:$0xff] }
 0x621   : > { %19751 = vst [vmem:[#allocation52_spill] sm:$0xff] %v17603_v63  ;;  %v17618_v17 = vld [vmem:[#allocation2 + $0x14f] sm:$0xff]  ;;  %11124 = vmatmul.msk.f32.gmra.mxu0 %vm4597_vm9, %v8936_v46 }
 0x622   : > { %8332 = vst.msk [vmem:[#allocation2 + $0x158] sm:$0xff] %vm2104_vm2, %v8284_v33  ;;  %8517 = vrot.lane.b32.xlu2 %v17546_v43, %s11451_s8  ;;  %8666 = vrot.lane.b32.xlu1 %v17618_v17, %s11454_s13  ;;  %v7767_v36 = vpop.f32.mrf.mxu2 }
 0x623   : > { %11091 = vmatmul.msk.f32.gmra.mxu3 %vm2104_vm2, %v19753_v51  ;;  %v17638_v59 = vadd.f32 %v7767_v36, %v7411_v45  ;;  %v8490_v63 = vpop.permute.xlu1 %8489 }
 0x624   : > { %v8639_v33 = vpop.permute.xlu0 %8638  ;;  %v8767_v45 = vsel %vm2104_vm2, %v19758_v1, %v8490_v63 }
 0x625   : > { %v19113_v51 = vmax.f32 %v17638_v59, 0.0  ;;  %v17646_v56 = vsel %vm4395_vm14, %v8766_v44, %v8639_v33  ;;  %v19760_v33 = vmax.f32 %v17452_v38, 0.0 }
 0x626   : > { %v8103_v6 = vpop.f32.mrf.mxu3  ;;  %v8937_v62 = vrot.slane %v17646_v56, 1  ;;  %11174 = vmatmul.msk.f32.gmra.mxu1 %vm4597_vm9, %v17646_v56 }
 0x627   : > { %v17642_v46 = vadd.f32 %v8103_v6, %v6081_v35  ;;  %v8285_v36 = vmul.f32 %v19759_v13, %v19113_v51  ;;  %11210 = vmatmul.msk.f32.gmra.mxu2 %vm4597_vm9, %v9530_v37  ;;  %v8641_v35 = vpop.permute.xlu2 %8640  ;;  %v9535_v6 = vrot.slane %v17326_v41, 2  ;;  %v17664_v63 = vpop.f32.mrf.mxu1  ;;  %v6084_v41 = vadd.f32 %v19762_v3, %v19761_v50 }
 0x628   : > { %v8938_v52 = vsel %vm2673_vm4, %v8935_v27, %v8937_v62  ;;  %v17672_v37 = vsel %vm4395_vm14, %v8767_v45, %v8641_v35  ;;  %v17680_v38 = vpop.f32.mrf.mxu0  ;;  %v7417_v3 = vadd.f32 %v17241_v47, %v17298_v8  ;;  %v19767_v47 = vld [vmem:[#allocation108_spill] sm:$0xff] }
 0x629   : > { %19757 = vst [vmem:[#allocation12_spill] sm:$0xff] %v17642_v46  ;;  %v17659_v44 = vld [vmem:[#allocation2 + $0x157] sm:$0xff]  ;;  %11125 = vmatmul.msk.f32.gmra.mxu0 %vm4597_vm9, %v8938_v52  ;;  %v9536_v35 = vsel %vm3295_vm5, %v9533_v49, %v9535_v6  ;;  %v19765_v49 = vmax.f32 %v17484_v55, 0.0 }
 0x62a   : > { %8333 = vst.msk [vmem:[#allocation2 + $0x160] sm:$0xff] %vm2104_vm2, %v8285_v36  ;;  %8519 = vrot.lane.b32.xlu1 %v17581_v18, %s11451_s8  ;;  %8668 = vrot.lane.b32.xlu0 %v17659_v44, %s11454_s13  ;;  %v7770_v27 = vpop.f32.mrf.mxu2  ;;  %v8939_v36 = vrot.slane %v17672_v37, 1 }
 0x62b   : > { %11092 = vmatmul.msk.f32.gmra.mxu3 %vm2104_vm2, %v19760_v33  ;;  %v17682_v1 = vadd.f32 %v7770_v27, %v7414_v61  ;;  %v19764_v33 = vld [vmem:[#allocation77_spill] sm:$0xff] }
 0x62c   : > { %v8940_v61 = vsel %vm2673_vm4, %v8937_v62, %v8939_v36  ;;  %v19766_v62 = vld [vmem:[#allocation15_spill] sm:$0xff] }
 0x62d   : > { %v19112_v45 = vmax.f32 %v17682_v1, 0.0  ;;  %v6087_v8 = vadd.f32 %v19767_v47, %v19766_v62 }
 0x62e   : > { %v8106_v13 = vpop.f32.mrf.mxu3  ;;  %11175 = vmatmul.msk.f32.gmra.mxu1 %vm4597_vm9, %v17672_v37 }
 0x62f   : > { %v17685_v52 = vadd.f32 %v8106_v13, %v6084_v41  ;;  %v8286_v50 = vmul.f32 %v19764_v33, %v19112_v45  ;;  %11211 = vmatmul.msk.f32.gmra.mxu2 %vm4597_vm9, %v9532_v31  ;;  %v9537_v41 = vrot.slane %v17378_v26, 2  ;;  %v8492_v13 = vpop.permute.xlu0 %8491  ;;  %v17712_v26 = vpop.f32.mrf.mxu1 }
 0x631   : > { %19763 = vst [vmem:[#allocation95_spill] sm:$0xff] %v17685_v52  ;;  %v17696_v27 = vld [vmem:[#allocation2 + $0x15f] sm:$0xff]  ;;  %11126 = vmatmul.msk.f32.gmra.mxu0 %vm4597_vm9, %v8940_v61  ;;  %v17717_v61 = vpop.f32.mrf.mxu0  ;;  %v9538_v62 = vsel %vm3295_vm5, %v9535_v6, %v9537_v41  ;;  %v9539_v6 = vrot.slane %v17413_v48, 2  ;;  %v11433_v48 = vld [vmem:[#allocation2 + $0xc7] sm:$0xff] }
 0x632   : > { %8334 = vst.msk [vmem:[#allocation2 + $0x168] sm:$0xff] %vm2104_vm2, %v8286_v50  ;;  %8521 = vrot.lane.b32.xlu0 %v17618_v17, %s11451_s8  ;;  %8670 = vrot.lane.b32.xlu2 %v17696_v27, %s11454_s13  ;;  %v7773_v31 = vpop.f32.mrf.mxu2 }
 0x633   : > { %11093 = vmatmul.msk.f32.gmra.mxu3 %vm2104_vm2, %v19765_v49  ;;  %v17714_v55 = vadd.f32 %v7773_v31, %v7417_v3  ;;  %v11432_v49 = vld [vmem:[#allocation2 + $0xbf] sm:$0xff]  ;;  %v8494_v31 = vpop.permute.xlu2 %8493  ;;  %v9540_v42 = vsel %vm3295_vm5, %v9537_v41, %v9539_v6 }
 0x634   : > { %v8768_v50 = vsel %vm2104_vm2, %v11432_v49, %v8492_v13  ;;  %v8643_v45 = vpop.permute.xlu1 %8642  ;;  %v19769_v3 = vld [vmem:[#allocation82_spill] sm:$0xff]  ;;  %v19770_v49 = vmax.f32 %v17521_v11, 0.0  ;;  %v8769_v11 = vsel %vm2104_vm2, %v11433_v48, %v8494_v31 }
 0x635   : > { %v19114_v52 = vmax.f32 %v17714_v55, 0.0  ;;  %v17723_v46 = vsel %vm4395_vm14, %v8768_v50, %v8643_v45  ;;  %v7420_v45 = vadd.f32 %v17291_v4, %v17347_v58  ;;  %v19772_v50 = vld [vmem:[#allocation109_spill] sm:$0xff] }
 0x636   : > { %v8109_v33 = vpop.f32.mrf.mxu3  ;;  %v8941_v47 = vrot.slane %v17723_v46, 1  ;;  %11176 = vmatmul.msk.f32.gmra.mxu1 %vm4597_vm9, %v17723_v46 }
 0x637   : > { %v17719_v51 = vadd.f32 %v8109_v33, %v6087_v8  ;;  %v8287_v13 = vmul.f32 %v19769_v3, %v19114_v52  ;;  %11212 = vmatmul.msk.f32.gmra.mxu2 %vm4597_vm9, %v9534_v22 }
 0x638   : > { %v8942_v8 = vsel %vm2673_vm4, %v8939_v36, %v8941_v47  ;;  %v19771_v36 = vld [vmem:[#allocation16_spill] sm:$0xff] }
 0x639   : > { %19768 = vst [vmem:[#allocation53_spill] sm:$0xff] %v17719_v51  ;;  %v17734_v33 = vld [vmem:[#allocation2 + $0x167] sm:$0xff]  ;;  %11127 = vmatmul.msk.f32.gmra.mxu0 %vm4597_vm9, %v8942_v8  ;;  %v6090_v4 = vadd.f32 %v19772_v50, %v19771_v36  ;;  %v17767_v31 = vpop.f32.mrf.mxu0 }
 0x63a   : > { %8335 = vst.msk [vmem:[#allocation2 + $0x170] sm:$0xff] %vm2104_vm2, %v8287_v13  ;;  %8523 = vrot.lane.b32.xlu2 %v17659_v44, %s11451_s8  ;;  %8672 = vrot.lane.b32.xlu1 %v17734_v33, %s11454_s13  ;;  %v7776_v22 = vpop.f32.mrf.mxu2  ;;  %v17753_v13 = vpop.f32.mrf.mxu1  ;;  %v19774_v36 = vld [vmem:[#allocation84_spill] sm:$0xff] }
 0x63b   : > { %11094 = vmatmul.msk.f32.gmra.mxu3 %vm2104_vm2, %v19770_v49  ;;  %v17750_v58 = vadd.f32 %v7776_v22, %v7420_v45 }
 0x63c   : > { %v8645_v49 = vpop.permute.xlu0 %8644  ;;  %v8496_v7 = vpop.permute.xlu1 %8495 }
 0x63d   : > { %v19116_v52 = vmax.f32 %v17750_v58, 0.0  ;;  %v17759_v51 = vsel %vm4395_vm14, %v8769_v11, %v8645_v49  ;;  %v8770_v22 = vsel %vm2104_vm2, %v17032_v15, %v8496_v7  ;;  %v7423_v11 = vadd.f32 %v17342_v28, %v17395_v5  ;;  %v19777_v5 = vld [vmem:[#allocation18_spill] sm:$0xff] }
 0x63e   : > { %v8112_v3 = vpop.f32.mrf.mxu3  ;;  %v8943_v45 = vrot.slane %v17759_v51, 1  ;;  %11177 = vmatmul.msk.f32.gmra.mxu1 %vm4597_vm9, %v17759_v51  ;;  %v9541_v15 = vrot.slane %v17440_v54, 2  ;;  %v19776_v7 = vmax.f32 %v17565_v21, 0.0  ;;  %v19778_v54 = vld [vmem:[#allocation110_spill] sm:$0xff] }
 0x63f   : > { %v17755_v8 = vadd.f32 %v8112_v3, %v6090_v4  ;;  %v8288_v50 = vmul.f32 %v19774_v36, %v19116_v52  ;;  %11213 = vmatmul.msk.f32.gmra.mxu2 %vm4597_vm9, %v9536_v35  ;;  %v8647_v4 = vpop.permute.xlu2 %8646 }
 0x640   : > { %v8944_v48 = vsel %vm2673_vm4, %v8941_v47, %v8943_v45  ;;  %v17785_v35 = vsel %vm4395_vm14, %v8770_v22, %v8647_v4  ;;  %v6093_v47 = vadd.f32 %v19778_v54, %v19777_v5  ;;  %v7426_v5 = vadd.f32 %v17388_v14, %v17450_v30  ;;  %v19783_v30 = vld [vmem:[#allocation20_spill] sm:$0xff] }
 0x641   : > { %19773 = vst [vmem:[#allocation14_spill] sm:$0xff] %v17755_v8  ;;  %v17774_v41 = vld [vmem:[#allocation2 + $0x16f] sm:$0xff]  ;;  %11128 = vmatmul.msk.f32.gmra.mxu0 %vm4597_vm9, %v8944_v48  ;;  %v8945_v49 = vrot.slane %v17785_v35, 1  ;;  %v19780_v48 = vld [vmem:[#allocation87_spill] sm:$0xff]  ;;  %v17814_v54 = vpop.f32.mrf.mxu0 }
 0x642   : > { %19775 = vst [vmem:[#allocation96_spill] sm:$0xff] %v17774_v41  ;;  %8525 = vrot.lane.b32.xlu1 %v17696_v27, %s11451_s8  ;;  %8674 = vrot.lane.b32.xlu0 %v17774_v41, %s11454_s13  ;;  %v7779_v28 = vpop.f32.mrf.mxu2  ;;  %v17802_v4 = vpop.f32.mrf.mxu1 }
 0x643   : > { %11095 = vmatmul.msk.f32.gmra.mxu3 %vm2104_vm2, %v19776_v7  ;;  %8336 = vst.msk [vmem:[#allocation2 + $0x178] sm:$0xff] %vm2104_vm2, %v8288_v50  ;;  %v17793_v21 = vadd.f32 %v7779_v28, %v7423_v11  ;;  %v9542_v50 = vsel %vm3295_vm5, %v9539_v6, %v9541_v15  ;;  %v8946_v11 = vsel %vm2673_vm4, %v8943_v45, %v8945_v49  ;;  %v9543_v6 = vrot.slane %v17489_v19, 2  ;;  %v19784_v19 = vld [vmem:[#allocation111_spill] sm:$0xff] }
 0x645   : > { %v19115_v22 = vmax.f32 %v17793_v21, 0.0 }
 0x646   : > { %v8115_v3 = vpop.f32.mrf.mxu3  ;;  %11178 = vmatmul.msk.f32.gmra.mxu1 %vm4597_vm9, %v17785_v35 }
 0x647   : > { %v17796_v36 = vadd.f32 %v8115_v3, %v6093_v47  ;;  %v8289_v7 = vmul.f32 %v19780_v48, %v19115_v22  ;;  %11214 = vmatmul.msk.f32.gmra.mxu2 %vm4597_vm9, %v9538_v62  ;;  %v19782_v47 = vmax.f32 %v17599_v12, 0.0  ;;  %v8498_v3 = vpop.permute.xlu0 %8497  ;;  %v6096_v62 = vadd.f32 %v19784_v19, %v19783_v30  ;;  %v11434_v48 = vld [vmem:[#allocation2 + $0xd7] sm:$0xff] }
 0x649   : > { %19779 = vst [vmem:[#allocation56_spill] sm:$0xff] %v17796_v36  ;;  %11129 = vmatmul.msk.f32.gmra.mxu0 %vm4597_vm9, %v8946_v11  ;;  %v9544_v36 = vsel %vm3295_vm5, %v9541_v15, %v9543_v6  ;;  %v9545_v15 = vrot.slane %v17529_v53, 2 }
 0x64a   : > { %v17809_v28 = vld [vmem:[#allocation2 + $0x177] sm:$0xff]  ;;  %8337 = vst.msk [vmem:[#allocation2 + $0x180] sm:$0xff] %vm2104_vm2, %v8289_v7  ;;  %8527 = vrot.lane.b32.xlu0 %v17734_v33, %s11451_s8  ;;  %v7782_v14 = vpop.f32.mrf.mxu2 }
 0x64b   : > { %19781 = vst [vmem:[#allocation17_spill] sm:$0xff] %v17809_v28  ;;  %11096 = vmatmul.msk.f32.gmra.mxu3 %vm2104_vm2, %v19782_v47  ;;  %8676 = vrot.lane.b32.xlu2 %v17809_v28, %s11454_s13  ;;  %v17827_v45 = vadd.f32 %v7782_v14, %v7426_v5  ;;  %v8771_v47 = vsel %vm2104_vm2, %v11434_v48, %v8498_v3  ;;  %v19786_v5 = vld [vmem:[#allocation88_spill] sm:$0xff]  ;;  %v8500_v3 = vpop.permute.xlu2 %8499  ;;  %v19788_v48 = vmax.f32 %v17638_v59, 0.0  ;;  %v11435_v59 = vld [vmem:[#allocation2 + $0xdf] sm:$0xff] }
 0x64c   : > { %v8649_v7 = vpop.permute.xlu1 %8648 }
 0x64d   : > { %v19117_v11 = vmax.f32 %v17827_v45, 0.0  ;;  %v17834_v52 = vsel %vm4395_vm14, %v8771_v47, %v8649_v7  ;;  %v8772_v7 = vsel %vm2104_vm2, %v11435_v59, %v8500_v3  ;;  %v19792_v3 = vld [vmem:[#allocation90_spill] sm:$0xff] }
 0x64e   : > { %v8118_v12 = vpop.f32.mrf.mxu3  ;;  %v8947_v8 = vrot.slane %v17834_v52, 1  ;;  %11179 = vmatmul.msk.f32.gmra.mxu1 %vm4597_vm9, %v17834_v52 }
 0x64f   : > { %v17830_v22 = vadd.f32 %v8118_v12, %v6096_v62  ;;  %v8290_v14 = vmul.f32 %v19786_v5, %v19117_v11  ;;  %11215 = vmatmul.msk.f32.gmra.mxu2 %vm4597_vm9, %v9540_v42  ;;  %v7429_v62 = vadd.f32 %v17442_v0, %v17491_v16  ;;  %v17850_v12 = vpop.f32.mrf.mxu1  ;;  %v19789_v0 = vld [vmem:[#allocation22_spill] sm:$0xff]  ;;  %v19790_v16 = vld [vmem:[#allocation113_spill] sm:$0xff] }
 0x650   : > { %v8948_v30 = vsel %vm2673_vm4, %v8945_v49, %v8947_v8  ;;  %v6099_v53 = vadd.f32 %v19790_v16, %v19789_v0  ;;  %v17863_v49 = vpop.f32.mrf.mxu0  ;;  %v11436_v16 = vld [vmem:[#allocation2 + $0xe7] sm:$0xff] }
 0x651   : > { %19785 = vst [vmem:[#allocation97_spill] sm:$0xff] %v17830_v22  ;;  %v17845_v19 = vld [vmem:[#allocation2 + $0x17f] sm:$0xff]  ;;  %11130 = vmatmul.msk.f32.gmra.mxu0 %vm4597_vm9, %v8948_v30 }
 0x652   : > { %19787 = vst [vmem:[#allocation126_spill] sm:$0xff] %v17845_v19  ;;  %8678 = vrot.lane.b32.xlu1 %v17845_v19, %s11454_s13  ;;  %v7785_v42 = vpop.f32.mrf.mxu2 }
 0x653   : > { %11097 = vmatmul.msk.f32.gmra.mxu3 %vm2104_vm2, %v19788_v48  ;;  %8338 = vst.msk [vmem:[#allocation2 + $0x188] sm:$0xff] %vm2104_vm2, %v8290_v14  ;;  %8529 = vrot.lane.b32.xlu2 %v17774_v41, %s11451_s8  ;;  %v17865_v47 = vadd.f32 %v7785_v42, %v7429_v62  ;;  %v9546_v41 = vsel %vm3295_vm5, %v9543_v6, %v9545_v15 }
 0x654   : > { %v8651_v14 = vpop.permute.xlu0 %8650  ;;  %v8502_v22 = vpop.permute.xlu1 %8501  ;;  %v7432_v6 = vadd.f32 %v17486_v29, %v17538_v2  ;;  %v19795_v2 = vld [vmem:[#allocation26_spill] sm:$0xff] }
 0x655   : > { %v19120_v48 = vmax.f32 %v17865_v47, 0.0  ;;  %v17872_v11 = vsel %vm4395_vm14, %v8772_v7, %v8651_v14  ;;  %v8773_v62 = vsel %vm2104_vm2, %v11436_v16, %v8502_v22  ;;  %v19794_v22 = vmax.f32 %v17682_v1, 0.0 }
 0x656   : > { %v8121_v5 = vpop.f32.mrf.mxu3  ;;  %v8949_v0 = vrot.slane %v17872_v11, 1  ;;  %11180 = vmatmul.msk.f32.gmra.mxu1 %vm4597_vm9, %v17872_v11 }
 0x657   : > { %v17868_v30 = vadd.f32 %v8121_v5, %v6099_v53  ;;  %v8291_v42 = vmul.f32 %v19792_v3, %v19120_v48  ;;  %11216 = vmatmul.msk.f32.gmra.mxu2 %vm4597_vm9, %v9542_v50  ;;  %v8653_v53 = vpop.permute.xlu2 %8652  ;;  %v9547_v5 = vrot.slane %v17557_v60, 2  ;;  %v19796_v60 = vld [vmem:[#allocation114_spill] sm:$0xff]  ;;  %v17903_v1 = vpop.f32.mrf.mxu1 }
 0x658   : > { %v8950_v59 = vsel %vm2673_vm4, %v8947_v8, %v8949_v0  ;;  %v17895_v50 = vsel %vm4395_vm14, %v8773_v62, %v8653_v53  ;;  %v6102_v8 = vadd.f32 %v19796_v60, %v19795_v2  ;;  %v7435_v60 = vadd.f32 %v17531_v24, %v17586_v39  ;;  %v19802_v24 = vld [vmem:[#allocation116_spill] sm:$0xff] }
 0x659   : > { %19791 = vst [vmem:[#allocation128_spill] sm:$0xff] %v17868_v30  ;;  %11131 = vmatmul.msk.f32.gmra.mxu0 %vm4597_vm9, %v8950_v59  ;;  %v8951_v3 = vrot.slane %v17895_v50, 1  ;;  %v9548_v59 = vsel %vm3295_vm5, %v9545_v15, %v9547_v5  ;;  %v19800_v15 = vmax.f32 %v17714_v55, 0.0 }
 0x65a   : > { %v17884_v7 = vld [vmem:[#allocation2 + $0x187] sm:$0xff]  ;;  %8339 = vst.msk [vmem:[#allocation2 + $0x190] sm:$0xff] %vm2104_vm2, %v8291_v42  ;;  %8531 = vrot.lane.b32.xlu1 %v17809_v28, %s11451_s8  ;;  %v7788_v29 = vpop.f32.mrf.mxu2  ;;  %v17908_v42 = vpop.f32.mrf.mxu0 }
 0x65b   : > { %19793 = vst [vmem:[#allocation58_spill] sm:$0xff] %v17884_v7  ;;  %11098 = vmatmul.msk.f32.gmra.mxu3 %vm2104_vm2, %v19794_v22  ;;  %8680 = vrot.lane.b32.xlu0 %v17884_v7, %s11454_s13  ;;  %v17905_v14 = vadd.f32 %v7788_v29, %v7432_v6  ;;  %v19798_v22 = vld [vmem:[#allocation91_spill] sm:$0xff]  ;;  %v8952_v6 = vsel %vm2673_vm4, %v8949_v0, %v8951_v3  ;;  %v19801_v0 = vld [vmem:[#allocation30_spill] sm:$0xff] }
 0x65c   : > { %v6105_v39 = vadd.f32 %v19802_v24, %v19801_v0 }
 0x65d   : > { %v19119_v53 = vmax.f32 %v17905_v14, 0.0 }
 0x65e   : > { %v8124_v16 = vpop.f32.mrf.mxu3  ;;  %11181 = vmatmul.msk.f32.gmra.mxu1 %vm4597_vm9, %v17895_v50 }
 0x65f   : > { %v17910_v62 = vadd.f32 %v8124_v16, %v6102_v8  ;;  %v8292_v2 = vmul.f32 %v19798_v22, %v19119_v53  ;;  %11217 = vmatmul.msk.f32.gmra.mxu2 %vm4597_vm9, %v9544_v36  ;;  %v9549_v8 = vrot.slane %v17607_v23, 2  ;;  %v8504_v16 = vpop.permute.xlu0 %8503  ;;  %v11437_v22 = vld [vmem:[#allocation2 + $0xef] sm:$0xff]  ;;  %v17940_v53 = vpop.f32.mrf.mxu1 }
 0x660   : > { %v8506_v24 = vpop.permute.xlu2 %8505 }
 0x661   : > { %19797 = vst [vmem:[#allocation89_spill] sm:$0xff] %v17910_v62  ;;  %v17921_v29 = vld [vmem:[#allocation2 + $0x18f] sm:$0xff]  ;;  %11132 = vmatmul.msk.f32.gmra.mxu0 %vm4597_vm9, %v8952_v6  ;;  %v9550_v30 = vsel %vm3295_vm5, %v9547_v5, %v9549_v8  ;;  %v7438_v5 = vadd.f32 %v17578_v40, %v17636_v10 }
 0x662   : > { %19799 = vst [vmem:[#allocation98_spill] sm:$0xff] %v17921_v29  ;;  %8682 = vrot.lane.b32.xlu2 %v17921_v29, %s11454_s13  ;;  %v7791_v36 = vpop.f32.mrf.mxu2 }
 0x663   : > { %11099 = vmatmul.msk.f32.gmra.mxu3 %vm2104_vm2, %v19800_v15  ;;  %8340 = vst.msk [vmem:[#allocation2 + $0x198] sm:$0xff] %vm2104_vm2, %v8292_v2  ;;  %8533 = vrot.lane.b32.xlu0 %v17845_v19, %s11451_s8  ;;  %v17937_v23 = vadd.f32 %v7791_v36, %v7435_v60  ;;  %v8774_v15 = vsel %vm2104_vm2, %v11437_v22, %v8504_v16  ;;  %v17952_v60 = vpop.f32.mrf.mxu0  ;;  %v19804_v16 = vld [vmem:[#allocation92_spill] sm:$0xff]  ;;  %v9551_v22 = vrot.slane %v17646_v56, 2  ;;  %v11438_v56 = vld [vmem:[#allocation2 + $0xf7] sm:$0xff] }
 0x664   : > { %v8655_v2 = vpop.permute.xlu1 %8654  ;;  %v8775_v10 = vsel %vm2104_vm2, %v11438_v56, %v8506_v24 }
 0x665   : > { %v19121_v48 = vmax.f32 %v17937_v23, 0.0  ;;  %v17946_v62 = vsel %vm4395_vm14, %v8774_v15, %v8655_v2  ;;  %v19805_v15 = vmax.f32 %v17750_v58, 0.0  ;;  %v19807_v2 = vld [vmem:[#allocation118_spill] sm:$0xff] }
 0x666   : > { %v8127_v55 = vpop.f32.mrf.mxu3  ;;  %v8953_v0 = vrot.slane %v17946_v62, 1  ;;  %11182 = vmatmul.msk.f32.gmra.mxu1 %vm4597_vm9, %v17946_v62 }
 0x667   : > { %v17942_v6 = vadd.f32 %v8127_v55, %v6105_v39  ;;  %v8293_v36 = vmul.f32 %v19804_v16, %v19121_v48  ;;  %11218 = vmatmul.msk.f32.gmra.mxu2 %vm4597_vm9, %v9546_v41  ;;  %v17986_v24 = vpop.f32.mrf.mxu1 }
 0x668   : > { %v8954_v39 = vsel %vm2673_vm4, %v8951_v3, %v8953_v0  ;;  %v19806_v3 = vld [vmem:[#allocation33_spill] sm:$0xff] }
 0x669   : > { %19803 = vst [vmem:[#allocation59_spill] sm:$0xff] %v17942_v6  ;;  %11133 = vmatmul.msk.f32.gmra.mxu0 %vm4597_vm9, %v8954_v39  ;;  %v6108_v16 = vadd.f32 %v19807_v2, %v19806_v3  ;;  %v11439_v3 = vld [vmem:[#allocation2 + $0xff] sm:$0xff] }
 0x66a   : > { %v8392_v55 = vld [vmem:[#allocation2 + $0x197] sm:$0xff]  ;;  %8341 = vst.msk [vmem:[#allocation2 + $0x1a0] sm:$0xff] %vm2104_vm2, %v8293_v36  ;;  %8535 = vrot.lane.b32.xlu2 %v17884_v7, %s11451_s8  ;;  %v7794_v41 = vpop.f32.mrf.mxu2  ;;  %v9552_v7 = vsel %vm3295_vm5, %v9549_v8, %v9551_v22 }
 0x66b   : > { %11100 = vmatmul.msk.f32.gmra.mxu3 %vm2104_vm2, %v19805_v15  ;;  %8684 = vrot.lane.b32.xlu1 %v8392_v55, %s11454_s13  ;;  %v17972_v40 = vadd.f32 %v7794_v41, %v7438_v5  ;;  %v19809_v41 = vld [vmem:[#allocation93_spill] sm:$0xff] }
 0x66c   : > { %v8657_v15 = vpop.permute.xlu0 %8656  ;;  %v8508_v6 = vpop.permute.xlu1 %8507 }
 0x66d   : > { %v19124_v36 = vmax.f32 %v17972_v40, 0.0  ;;  %v17979_v39 = vsel %vm4395_vm14, %v8775_v10, %v8657_v15  ;;  %v8776_v5 = vsel %vm2104_vm2, %v11439_v3, %v8508_v6  ;;  %v9553_v10 = vrot.slane %v17672_v37, 2  ;;  %v19811_v37 = vld [vmem:[#allocation38_spill] sm:$0xff] }
 0x66e   : > { %v8130_v58 = vpop.f32.mrf.mxu3  ;;  %v8955_v19 = vrot.slane %v17979_v39, 1  ;;  %11183 = vmatmul.msk.f32.gmra.mxu1 %vm4597_vm9, %v17979_v39  ;;  %v19810_v6 = vmax.f32 %v17793_v21, 0.0 }
 0x66f   : > { %v17975_v48 = vadd.f32 %v8130_v58, %v6108_v16  ;;  %v8294_v2 = vmul.f32 %v19809_v41, %v19124_v36  ;;  %11219 = vmatmul.msk.f32.gmra.mxu2 %vm4597_vm9, %v9548_v59  ;;  %v8659_v16 = vpop.permute.xlu2 %8658  ;;  %v17994_v58 = vpop.f32.mrf.mxu0  ;;  %v9555_v36 = vrot.slane %v17723_v46, 2 }
 0x670   : > { %v8956_v56 = vsel %vm2673_vm4, %v8953_v0, %v8955_v19  ;;  %v18002_v15 = vsel %vm4395_vm14, %v8776_v5, %v8659_v16  ;;  %v19812_v0 = vld [vmem:[#allocation85_spill] sm:$0xff] }
 0x671   : > { %19808 = vst [vmem:[#allocation21_spill] sm:$0xff] %v17975_v48  ;;  %v8393_v8 = vld [vmem:[#allocation2 + $0x19f] sm:$0xff]  ;;  %11134 = vmatmul.msk.f32.gmra.mxu0 %vm4597_vm9, %v8956_v56  ;;  %v6111_v3 = vadd.f32 %v19812_v0, %v19811_v37  ;;  %v8957_v41 = vrot.slane %v18002_v15, 1  ;;  %v18020_v48 = vpop.f32.mrf.mxu1  ;;  %v19814_v37 = vmax.f32 %v17827_v45, 0.0  ;;  %v11440_v45 = vld [vmem:[#allocation2 + $0x107] sm:$0xff] }
 0x672   : > { %8342 = vst.msk [vmem:[#allocation2 + $0x1a8] sm:$0xff] %vm2104_vm2, %v8294_v2  ;;  %8686 = vrot.lane.b32.xlu0 %v8393_v8, %s11454_s13  ;;  %v18007_v59 = vpop.f32.mrf.mxu2  ;;  %v9554_v2 = vsel %vm3295_vm5, %v9551_v22, %v9553_v10  ;;  %v19816_v22 = vld [vmem:[#allocation86_spill] sm:$0xff] }
 0x673   : > { %11101 = vmatmul.msk.f32.gmra.mxu3 %vm2104_vm2, %v19810_v6  ;;  %8537 = vrot.lane.b32.xlu1 %v17921_v29, %s11451_s8  ;;  %v8958_v5 = vsel %vm2673_vm4, %v8955_v19, %v8957_v41  ;;  %v19815_v19 = vld [vmem:[#allocation39_spill] sm:$0xff] }
 0x674   : > { %v8510_v0 = vpop.permute.xlu0 %8509 }
 0x676   : > { %v8133_v21 = vpop.f32.mrf.mxu3  ;;  %11184 = vmatmul.msk.f32.gmra.mxu1 %vm4597_vm9, %v18002_v15 }
 0x677   : > { %v18012_v6 = vadd.f32 %v8133_v21, %v6111_v3  ;;  %11220 = vmatmul.msk.f32.gmra.mxu2 %vm4597_vm9, %v9550_v30  ;;  %v6114_v3 = vadd.f32 %v19816_v22, %v19815_v19  ;;  %v18032_v21 = vpop.f32.mrf.mxu0  ;;  %v8397_v19 = vld [vmem:[#allocation2 + $0x1b7] sm:$0xff]  ;;  %v8512_v22 = vpop.permute.xlu2 %8511 }
 0x679   : > { %19813 = vst [vmem:[#allocation99_spill] sm:$0xff] %v18012_v6  ;;  %v8396_v16 = vld [vmem:[#allocation2 + $0x1af] sm:$0xff]  ;;  %v8394_v56 = vld [vmem:[#allocation2 + $0x1a7] sm:$0xff]  ;;  %11135 = vmatmul.msk.f32.gmra.mxu0 %vm4597_vm9, %v8958_v5  ;;  %v9556_v5 = vsel %vm3295_vm5, %v9553_v10, %v9555_v36 }
 0x67a   : > { %8539 = vrot.lane.b32.xlu0 %v8392_v55, %s11451_s8  ;;  %v18028_v30 = vpop.f32.mrf.mxu2  ;;  %8688 = vrot.lane.b32.xlu2 %v8394_v56, %s11454_s13 }
 0x67b   : > { %11102 = vmatmul.msk.f32.gmra.mxu3 %vm2104_vm2, %v19814_v37  ;;  %8690 = vrot.lane.b32.xlu1 %v8396_v16, %s11454_s13  ;;  %v8777_v37 = vsel %vm2104_vm2, %v11440_v45, %v8510_v0  ;;  %v9557_v0 = vrot.slane %v17759_v51, 2  ;;  %v18058_v45 = vpop.f32.mrf.mxu1  ;;  %v11441_v51 = vld [vmem:[#allocation2 + $0x10f] sm:$0xff] }
 0x67c   : > { %v8661_v6 = vpop.permute.xlu1 %8660 }
 0x67d   : > { %v18039_v55 = vsel %vm4395_vm14, %v8777_v37, %v8661_v6  ;;  %v19819_v6 = vld [vmem:[#allocation42_spill] sm:$0xff] }
 0x67e   : > { %v8136_v46 = vpop.f32.mrf.mxu3  ;;  %v8959_v16 = vrot.slane %v18039_v55, 1  ;;  %11185 = vmatmul.msk.f32.gmra.mxu1 %vm4597_vm9, %v18039_v55 }
 0x67f   : > { %v18036_v29 = vadd.f32 %v8136_v46, %v6114_v3  ;;  %11221 = vmatmul.msk.f32.gmra.mxu2 %vm4597_vm9, %v9552_v7  ;;  %v19818_v3 = vmax.f32 %v17865_v47, 0.0  ;;  %v19820_v7 = vld [vmem:[#allocation119_spill] sm:$0xff]  ;;  %v8778_v47 = vsel %vm2104_vm2, %v11441_v51, %v8512_v22 }
 0x680   : > { %v8960_v28 = vsel %vm2673_vm4, %v8957_v41, %v8959_v16  ;;  %v6117_v46 = vadd.f32 %v19820_v7, %v19819_v6  ;;  %v8399_v22 = vld [vmem:[#allocation2 + $0x1c7] sm:$0x3]  ;;  %v8665_v7 = vpop.permute.xlu2 %8664  ;;  %v8398_v51 = vld [vmem:[#allocation2 + $0x1bf] sm:$0xff] }
 0x681   : > { %19817 = vst [vmem:[#allocation61_spill] sm:$0xff] %v18036_v29  ;;  %11136 = vmatmul.msk.f32.gmra.mxu0 %vm4597_vm9, %v8960_v28  ;;  %v9558_v29 = vsel %vm3295_vm5, %v9555_v36, %v9557_v0  ;;  %v8395_v36 = vld [vmem:[#allocation2 + $0x1af] sm:$0x3] }
 0x682   : > { %8692 = vrot.lane.b32.xlu0 %v8397_v19, %s11454_s13  ;;  %v18054_v10 = vpop.f32.mrf.mxu2  ;;  %8541 = vrot.lane.b32.xlu2 %v8393_v8, %s11451_s8 }
 0x683   : > { %11103 = vmatmul.msk.f32.gmra.mxu3 %vm2104_vm2, %v19818_v3  ;;  %8543 = vrot.lane.b32.xlu1 %v8394_v56, %s11451_s8  ;;  %v18062_v3 = vpop.f32.mrf.mxu0 }
 0x684   : > { %v8663_v37 = vpop.permute.xlu0 %8662  ;;  %v8514_v19 = vpop.permute.xlu1 %8513 }
 0x685   : > { %v18067_v56 = vsel %vm4395_vm14, %v8778_v47, %v8663_v37  ;;  %v8779_v8 = vsel %vm2104_vm2, %v17354_v57, %v8514_v19  ;;  %v9559_v47 = vrot.slane %v17785_v35, 2  ;;  %v19824_v37 = vld [vmem:[#allocation120_spill] sm:$0xff] }
 0x686   : > { %v8139_v41 = vpop.f32.mrf.mxu3  ;;  %v8961_v6 = vrot.slane %v18067_v56, 1  ;;  %11186 = vmatmul.msk.f32.gmra.mxu1 %vm4597_vm9, %v18067_v56  ;;  %v18083_v57 = vsel %vm4395_vm14, %v8779_v8, %v8665_v7 }
 0x687   : > { %v18064_v28 = vadd.f32 %v8139_v41, %v6117_v46  ;;  %11222 = vmatmul.msk.f32.gmra.mxu2 %vm4597_vm9, %v9554_v2  ;;  %v19822_v41 = vmax.f32 %v17905_v14, 0.0  ;;  %v8963_v14 = vrot.slane %v18083_v57, 1  ;;  %v9560_v8 = vsel %vm3295_vm5, %v9557_v0, %v9559_v47  ;;  %v19827_v0 = vld [vmem:[#allocation46_spill] sm:$0xff] }
 0x688   : > { %v8962_v46 = vsel %vm2673_vm4, %v8959_v16, %v8961_v6  ;;  %v19823_v16 = vld [vmem:[#allocation43_spill] sm:$0xff] }
 0x689   : > { %19821 = vst [vmem:[#allocation134_spill] sm:$0xff] %v18064_v28  ;;  %11137 = vmatmul.msk.f32.gmra.mxu0 %vm4597_vm9, %v8962_v46  ;;  %v6120_v19 = vadd.f32 %v19824_v37, %v19823_v16  ;;  %v8964_v7 = vsel %vm2673_vm4, %v8961_v6, %v8963_v14 }
 0x68a   : > { %8545 = vrot.lane.b32.xlu0 %v8395_v36, %s11451_s8  ;;  %v18087_v2 = vpop.f32.mrf.mxu2  ;;  %8694 = vrot.lane.b32.xlu2 %v8398_v51, %s11454_s13  ;;  %v9561_v51 = vrot.slane %v17834_v52, 2  ;;  %v19826_v36 = vmax.f32 %v17937_v23, 0.0  ;;  %s11302_s8 = smul.u32 384, %s19906_s25 }
 0x68b   : > { %11104 = vmatmul.msk.f32.gmra.mxu3 %vm2104_vm2, %v19822_v41  ;;  %8696 = vrot.lane.b32.xlu1 %v8399_v22, %s11454_s13  ;;  %v18093_v41 = vpop.f32.mrf.mxu1  ;;  %v18100_v22 = vpop.f32.mrf.mxu0 }
 0x68c   : > { %v8516_v16 = vpop.permute.xlu0 %8515  ;;  %v9562_v23 = vsel %vm3295_vm5, %v9559_v47, %v9561_v51  ;;  %v19831_v47 = vmax.f32 %v17972_v40, 0.0  ;;  %s18566_s11 = scalar_lea.vmem %s18870_s7, %s11302_s8 }
 0x68e   : > { %v8142_v35 = vpop.f32.mrf.mxu3  ;;  %11187 = vmatmul.msk.f32.gmra.mxu1 %vm4597_vm9, %v18083_v57 }
 0x68f   : > { %v18095_v46 = vadd.f32 %v8142_v35, %v6120_v19  ;;  %11223 = vmatmul.msk.f32.gmra.mxu2 %vm4597_vm9, %v9556_v5  ;;  %v19828_v19 = vld [vmem:[#allocation121_spill] sm:$0xff]  ;;  %v8780_v5 = vsel %vm2104_vm2, %v17391_v34, %v8516_v16 }
 0x690   : > { %v6123_v35 = vadd.f32 %v19828_v19, %v19827_v0  ;;  %v8518_v0 = vpop.permute.xlu2 %8517 }
 0x691   : > { %19825 = vst [vmem:[#allocation3_spill] sm:$0xff] %v18095_v46  ;;  %11138 = vmatmul.msk.f32.gmra.mxu0 %vm4597_vm9, %v8964_v7 }
 0x692   : > { %v18109_v37 = vpop.f32.mrf.mxu2 }
 0x693   : > { %11105 = vmatmul.msk.f32.gmra.mxu3 %vm2104_vm2, %v19826_v36  ;;  %v18124_v7 = vpop.f32.mrf.mxu1  ;;  %v18131_v16 = vpop.f32.mrf.mxu0 }
 0x694   : > { %v8667_v28 = vpop.permute.xlu1 %8666  ;;  %19830 = vst [vmem:[#allocation130_spill] sm:$0xff] %v18124_v7 }
 0x695   : > { %v18118_v52 = vsel %vm4395_vm14, %v8780_v5, %v8667_v28  ;;  %v9563_v28 = vrot.slane %v17872_v11, 2 }
 0x696   : > { %v8145_v46 = vpop.f32.mrf.mxu3  ;;  %v8965_v36 = vrot.slane %v18118_v52, 1  ;;  %11188 = vmatmul.msk.f32.gmra.mxu1 %vm4597_vm9, %v18118_v52 }
 0x697   : > { %v18115_v6 = vadd.f32 %v8145_v46, %v6123_v35  ;;  %11224 = vmatmul.msk.f32.gmra.mxu2 %vm4597_vm9, %v9558_v29  ;;  %v9368_v46 = vadd.f32 %v17623_v20, %v17680_v38  ;;  %v19832_v35 = vld [vmem:[#allocation47_spill] sm:$0xff]  ;;  %v19833_v29 = vld [vmem:[#allocation122_spill] sm:$0xff]  ;;  %v8781_v20 = vsel %vm2104_vm2, %v17429_v9, %v8518_v0 }
 0x698   : > { %v8966_v34 = vsel %vm2673_vm4, %v8963_v14, %v8965_v36  ;;  %v6126_v5 = vadd.f32 %v19833_v29, %v19832_v35  ;;  %v8671_v9 = vpop.permute.xlu2 %8670  ;;  %v9565_v29 = vrot.slane %v17895_v50, 2 }
 0x699   : > { %19829 = vst [vmem:[#allocation100_spill] sm:$0xff] %v18115_v6  ;;  %11139 = vmatmul.msk.f32.gmra.mxu0 %vm4597_vm9, %v8966_v34  ;;  %v9868_v14 = vadd.f32 %v18007_v59, %v9368_v46  ;;  %v9564_v34 = vsel %vm3295_vm5, %v9561_v51, %v9563_v28  ;;  %v9371_v46 = vadd.f32 %v17664_v63, %v17717_v61 }
 0x69a   : > { %v18137_v19 = vpop.f32.mrf.mxu2 }
 0x69b   : > { %11106 = vmatmul.msk.f32.gmra.mxu3 %vm2104_vm2, %v19831_v47  ;;  %v9916_v59 = vmax.f32 %v9868_v14, 0.0  ;;  %v18160_v51 = vpop.f32.mrf.mxu1  ;;  %v19835_v14 = vld [vmem:[#allocation123_spill] sm:$0xff]  ;;  %v9869_v63 = vadd.f32 %v18028_v30, %v9371_v46  ;;  %v9567_v30 = vrot.slane %v17946_v62, 2  ;;  %v19837_v46 = vld [vmem:[#allocation124_spill] sm:$0xff] }
 0x69c   : > { %v8669_v11 = vpop.permute.xlu0 %8668  ;;  %v8520_v47 = vpop.permute.xlu1 %8519 }
 0x69d   : > { %v18147_v40 = vsel %vm4395_vm14, %v8781_v20, %v8669_v11  ;;  %v8782_v35 = vsel %vm2104_vm2, %v17466_v32, %v8520_v47  ;;  %v9566_v11 = vsel %vm3295_vm5, %v9563_v28, %v9565_v29  ;;  %v9917_v47 = vmax.f32 %v9869_v63, 0.0  ;;  %v19836_v28 = vld [vmem:[#allocation51_spill] sm:$0xff] }
 0x69e   : > { %v8148_v38 = vpop.f32.mrf.mxu3  ;;  %v8967_v7 = vrot.slane %v18147_v40, 1  ;;  %11189 = vmatmul.msk.f32.gmra.mxu1 %vm4597_vm9, %v18147_v40  ;;  %v18165_v32 = vsel %vm4395_vm14, %v8782_v35, %v8671_v9 }
 0x69f   : > { %v18144_v6 = vadd.f32 %v8148_v38, %v6126_v5  ;;  %11225 = vmatmul.msk.f32.gmra.mxu2 %vm4597_vm9, %v9560_v8  ;;  %v19834_v8 = vld [vmem:[#allocation50_spill] sm:$0xff]  ;;  %v8969_v50 = vrot.slane %v18165_v32, 1 }
 0x6a0   : > { %v8968_v0 = vsel %vm2673_vm4, %v8965_v36, %v8967_v7  ;;  %v6129_v20 = vadd.f32 %v19835_v14, %v19834_v8  ;;  %v18171_v36 = vpop.f32.mrf.mxu0  ;;  %v6132_v8 = vadd.f32 %v19837_v46, %v19836_v28  ;;  %v19838_v28 = vld [vmem:[#allocation54_spill] sm:$0xff]  ;;  %v19839_v46 = vld [vmem:[#allocation125_spill] sm:$0xff] }
 0x6a1   : > { %11140 = vmatmul.msk.f32.gmra.mxu0 %vm4597_vm9, %v8968_v0  ;;  %v8970_v35 = vsel %vm2673_vm4, %v8967_v7, %v8969_v50 }
 0x6a2   : > { %v18167_v5 = vpop.f32.mrf.mxu2 }
 0x6a3   : > { %11251 = vmatmul.msk.f32.vlgmr.msrb.gmra.mxu3 %vm2104_vm2, %v9916_v59  ;;  %v9374_v59 = vadd.f32 %v17712_v26, %v17767_v31  ;;  %v18191_v14 = vpop.f32.mrf.mxu1 }
 0x6a4   : > { %v8522_v9 = vpop.permute.xlu0 %8521 }
 0x6a5   : > { %v8783_v26 = vsel %vm2104_vm2, %v17505_v25, %v8522_v9  ;;  %v9569_v9 = vrot.slane %v17979_v39, 2 }
 0x6a6   : > { %v8151_v61 = vpop.f32.mrf.mxu3  ;;  %11190 = vmatmul.msk.f32.gmra.mxu1 %vm4597_vm9, %v18165_v32 }
 0x6a7   : > { %v18175_v38 = vadd.f32 %v8151_v61, %v6129_v20  ;;  %11226 = vmatmul.msk.f32.gmra.mxu2 %vm4597_vm9, %v9562_v23  ;;  %v9870_v23 = vadd.f32 %v18054_v10, %v9374_v59  ;;  %v9568_v61 = vsel %vm3295_vm5, %v9565_v29, %v9567_v30  ;;  %v9377_v59 = vadd.f32 %v17753_v13, %v17814_v54 }
 0x6a8   : > { %v18196_v62 = vpop.f32.mrf.mxu0  ;;  %v9570_v39 = vsel %vm3295_vm5, %v9567_v30, %v9569_v9  ;;  %v9380_v30 = vadd.f32 %v17802_v4, %v17863_v49 }
 0x6a9   : > { %11141 = vmatmul.msk.f32.gmra.mxu0 %vm4597_vm9, %v8970_v35  ;;  %v9918_v10 = vmax.f32 %v9870_v23, 0.0  ;;  %v8524_v35 = vpop.permute.xlu2 %8523  ;;  %v9871_v23 = vadd.f32 %v18087_v2, %v9377_v59 }
 0x6aa   : > { %v18187_v0 = vpop.f32.mrf.mxu2 }
 0x6ab   : > { %11252 = vmatmul.msk.f32.gmra.mxu3 %vm2104_vm2, %v9917_v47 }
 0x6ac   : > { %v8673_v31 = vpop.permute.xlu1 %8672 }
 0x6ad   : > { %v18201_v63 = vsel %vm4395_vm14, %v8783_v26, %v8673_v31  ;;  %v18227_v31 = vpop.f32.mrf.mxu1 }
 0x6ae   : > { %v8154_v7 = vpop.f32.mrf.mxu3  ;;  %v8971_v47 = vrot.slane %v18201_v63, 1  ;;  %11191 = vmatmul.msk.f32.gmra.mxu1 %vm4597_vm9, %v18201_v63 }
 0x6af   : > { %v18198_v20 = vadd.f32 %v8154_v7, %v6132_v8  ;;  %11227 = vmatmul.msk.f32.gmra.mxu2 %vm4597_vm9, %v9564_v34  ;;  %v6135_v8 = vadd.f32 %v19839_v46, %v19838_v28  ;;  %v8784_v34 = vsel %vm2104_vm2, %v17546_v43, %v8524_v35  ;;  %v9919_v35 = vmax.f32 %v9871_v23, 0.0  ;;  %v19841_v23 = vld [vmem:[#allocation127_spill] sm:$0xff] }
 0x6b0   : > { %v8972_v25 = vsel %vm2673_vm4, %v8969_v50, %v8971_v47  ;;  %v18234_v43 = vpop.f32.mrf.mxu0  ;;  %v9571_v28 = vrot.slane %v18002_v15, 2 }
 0x6b1   : > { %11142 = vmatmul.msk.f32.gmra.mxu0 %vm4597_vm9, %v8972_v25  ;;  %v8677_v25 = vpop.permute.xlu2 %8676 }
 0x6b2   : > { %v18214_v29 = vpop.f32.mrf.mxu2  ;;  %v9572_v49 = vsel %vm3295_vm5, %v9569_v9, %v9571_v28 }
 0x6b3   : > { %11253 = vmatmul.msk.f32.gmra.mxu3 %vm2104_vm2, %v9918_v10 }
 0x6b4   : > { %v8675_v7 = vpop.permute.xlu0 %8674  ;;  %v8526_v54 = vpop.permute.xlu1 %8525 }
 0x6b5   : > { %v18224_v13 = vsel %vm4395_vm14, %v8784_v34, %v8675_v7  ;;  %v8785_v2 = vsel %vm2104_vm2, %v17581_v18, %v8526_v54  ;;  %v9872_v34 = vadd.f32 %v18109_v37, %v9380_v30  ;;  %v18258_v7 = vpop.f32.mrf.mxu1  ;;  %v9383_v37 = vadd.f32 %v17850_v12, %v17908_v42 }
 0x6b6   : > { %v8157_v50 = vpop.f32.mrf.mxu3  ;;  %v8973_v10 = vrot.slane %v18224_v13, 1  ;;  %11192 = vmatmul.msk.f32.gmra.mxu1 %vm4597_vm9, %v18224_v13  ;;  %v18244_v18 = vsel %vm4395_vm14, %v8785_v2, %v8677_v25  ;;  %v9573_v2 = vrot.slane %v18039_v55, 2 }
 0x6b7   : > { %v18221_v26 = vadd.f32 %v8157_v50, %v6135_v8  ;;  %11228 = vmatmul.msk.f32.gmra.mxu2 %vm4597_vm9, %v9566_v11  ;;  %v19840_v8 = vld [vmem:[#allocation55_spill] sm:$0xff]  ;;  %v8975_v50 = vrot.slane %v18244_v18, 1  ;;  %v9920_v15 = vmax.f32 %v9872_v34, 0.0 }
 0x6b8   : > { %v8974_v59 = vsel %vm2673_vm4, %v8971_v47, %v8973_v10  ;;  %v6138_v11 = vadd.f32 %v19841_v23, %v19840_v8  ;;  %v9873_v8 = vadd.f32 %v18137_v19, %v9383_v37 }
 0x6b9   : > { %11143 = vmatmul.msk.f32.gmra.mxu0 %vm4597_vm9, %v8974_v59  ;;  %v8976_v54 = vsel %vm2673_vm4, %v8973_v10, %v8975_v50  ;;  %v19842_v59 = vld [vmem:[#allocation57_spill] sm:$0xff]  ;;  %v8530_v19 = vpop.permute.xlu2 %8529 }
 0x6ba   : > { %v18246_v46 = vpop.f32.mrf.mxu2 }
 0x6bb   : > { %11254 = vmatmul.msk.f32.gmra.mxu3 %vm2104_vm2, %v9919_v35  ;;  %v18264_v35 = vpop.f32.mrf.mxu0 }
 0x6bc   : > { %v8528_v9 = vpop.permute.xlu0 %8527 }
 0x6bd   : > { %v8786_v12 = vsel %vm2104_vm2, %v17618_v17, %v8528_v9  ;;  %v9386_v17 = vadd.f32 %v17903_v1, %v17952_v60  ;;  %v19844_v9 = vld [vmem:[#allocation60_spill] sm:$0xff]  ;;  %v8787_v1 = vsel %vm2104_vm2, %v17659_v44, %v8530_v19 }
 0x6be   : > { %v8160_v47 = vpop.f32.mrf.mxu3  ;;  %11193 = vmatmul.msk.f32.gmra.mxu1 %vm4597_vm9, %v18244_v18 }
 0x6bf   : > { %v18252_v4 = vadd.f32 %v8160_v47, %v6138_v11  ;;  %11229 = vmatmul.msk.f32.gmra.mxu2 %vm4597_vm9, %v9568_v61  ;;  %v19843_v61 = vld [vmem:[#allocation129_spill] sm:$0xff]  ;;  %v9574_v11 = vsel %vm3295_vm5, %v9571_v28, %v9573_v2  ;;  %v9921_v47 = vmax.f32 %v9873_v8, 0.0  ;;  %v18291_v28 = vpop.f32.mrf.mxu1 }
 0x6c0   : > { %v6141_v30 = vadd.f32 %v19843_v61, %v19842_v59  ;;  %v19845_v59 = vld [vmem:[#allocation19_spill] sm:$0xff] }
 0x6c1   : > { %11144 = vmatmul.msk.f32.gmra.mxu0 %vm4597_vm9, %v8976_v54  ;;  %v9575_v54 = vrot.slane %v18067_v56, 2  ;;  %v6144_v61 = vadd.f32 %v19845_v59, %v19844_v9  ;;  %v8683_v44 = vpop.permute.xlu2 %8682  ;;  %v19846_v9 = vld [vmem:[#allocation62_spill] sm:$0xff]  ;;  %v19847_v59 = vld [vmem:[#allocation131_spill] sm:$0xff] }
 0x6c2   : > { %v18268_v25 = vpop.f32.mrf.mxu2 }
 0x6c3   : > { %11255 = vmatmul.msk.f32.gmra.mxu3 %vm2104_vm2, %v9920_v15 }
 0x6c4   : > { %v8679_v42 = vpop.permute.xlu1 %8678 }
 0x6c5   : > { %v18278_v23 = vsel %vm4395_vm14, %v8786_v12, %v8679_v42  ;;  %v9576_v12 = vsel %vm3295_vm5, %v9573_v2, %v9575_v54 }
 0x6c6   : > { %v8163_v10 = vpop.f32.mrf.mxu3  ;;  %v8977_v34 = vrot.slane %v18278_v23, 1  ;;  %11194 = vmatmul.msk.f32.gmra.mxu1 %vm4597_vm9, %v18278_v23 }
 0x6c7   : > { %v18275_v55 = vadd.f32 %v8163_v10, %v6141_v30  ;;  %11230 = vmatmul.msk.f32.gmra.mxu2 %vm4597_vm9, %v9570_v39  ;;  %v18297_v39 = vpop.f32.mrf.mxu0 }
 0x6c8   : > { %v8978_v15 = vsel %vm2673_vm4, %v8975_v50, %v8977_v34  ;;  %v9874_v50 = vadd.f32 %v18167_v5, %v9386_v17  ;;  %v9577_v17 = vrot.slane %v18083_v57, 2 }
 0x6c9   : > { %11145 = vmatmul.msk.f32.gmra.mxu0 %vm4597_vm9, %v8978_v15  ;;  %v9389_v15 = vadd.f32 %v17940_v53, %v17994_v58 }
 0x6ca   : > { %v18293_v37 = vpop.f32.mrf.mxu2  ;;  %v9922_v5 = vmax.f32 %v9874_v50, 0.0 }
 0x6cb   : > { %11256 = vmatmul.msk.f32.gmra.mxu3 %vm2104_vm2, %v9921_v47 }
 0x6cc   : > { %v8532_v10 = vpop.permute.xlu1 %8531 }
 0x6cd   : > { %v8681_v56 = vpop.permute.xlu0 %8680  ;;  %v8788_v47 = vsel %vm2104_vm2, %v17696_v27, %v8532_v10  ;;  %v9579_v10 = vrot.slane %v18118_v52, 2 }
 0x6ce   : > { %v8166_v60 = vpop.f32.mrf.mxu3  ;;  %v18305_v8 = vsel %vm4395_vm14, %v8787_v1, %v8681_v56  ;;  %v18321_v27 = vsel %vm4395_vm14, %v8788_v47, %v8683_v44  ;;  %v9578_v1 = vsel %vm3295_vm5, %v9575_v54, %v9577_v17  ;;  %v19848_v54 = vld [vmem:[#allocation64_spill] sm:$0xff]  ;;  %v19849_v44 = vld [vmem:[#allocation73_spill] sm:$0xff] }
 0x6cf   : > { %v18302_v30 = vadd.f32 %v8166_v60, %v6144_v61  ;;  %v8979_v42 = vrot.slane %v18305_v8, 1  ;;  %11195 = vmatmul.msk.f32.gmra.mxu1 %vm4597_vm9, %v18305_v8  ;;  %11231 = vmatmul.msk.f32.gmra.mxu2 %vm4597_vm9, %v9572_v49  ;;  %v6147_v49 = vadd.f32 %v19847_v59, %v19846_v9  ;;  %v9875_v61 = vadd.f32 %v18187_v0, %v9389_v15  ;;  %v18331_v58 = vpop.f32.mrf.mxu0 }
 0x6d0   : > { %v8981_v53 = vrot.slane %v18321_v27, 1  ;;  %v9392_v0 = vadd.f32 %v17986_v24, %v18032_v21  ;;  %v9580_v52 = vsel %vm3295_vm5, %v9577_v17, %v9579_v10  ;;  %v9581_v17 = vrot.slane %v18147_v40, 2 }
 0x6d1   : > { %v8980_v19 = vsel %vm2673_vm4, %v8977_v34, %v8979_v42  ;;  %v18328_v34 = vpop.f32.mrf.mxu1  ;;  %v9923_v60 = vmax.f32 %v9875_v61, 0.0 }
 0x6d2   : > { %11146 = vmatmul.msk.f32.gmra.mxu0 %vm4597_vm9, %v8980_v19  ;;  %v18323_v2 = vpop.f32.mrf.mxu2  ;;  %v8982_v56 = vsel %vm2673_vm4, %v8979_v42, %v8981_v53  ;;  %v6150_v19 = vadd.f32 %v19849_v44, %v19848_v54  ;;  %v9876_v15 = vadd.f32 %v18214_v29, %v9392_v0  ;;  %v19850_v0 = vld [vmem:[#allocation65_spill] sm:$0xff]  ;;  %v9582_v40 = vsel %vm3295_vm5, %v9579_v10, %v9581_v17 }
 0x6d3   : > { %11257 = vmatmul.msk.f32.gmra.mxu3 %vm2104_vm2, %v9922_v5  ;;  %v9583_v10 = vrot.slane %v18165_v32, 2 }
 0x6d4   : > { %v9924_v61 = vmax.f32 %v9876_v15, 0.0 }
 0x6d5   : > { %v8534_v47 = vpop.permute.xlu0 %8533 }
 0x6d6   : > { %v8169_v50 = vpop.f32.mrf.mxu3  ;;  %v8789_v42 = vsel %vm2104_vm2, %v17734_v33, %v8534_v47  ;;  %v8536_v33 = vpop.permute.xlu2 %8535  ;;  %v19851_v47 = vld [vmem:[#allocation132_spill] sm:$0xff] }
 0x6d7   : > { %v18333_v57 = vadd.f32 %v8169_v50, %v6147_v49  ;;  %11196 = vmatmul.msk.f32.gmra.mxu1 %vm4597_vm9, %v18321_v27  ;;  %11232 = vmatmul.msk.f32.gmra.mxu2 %vm4597_vm9, %v9574_v11  ;;  %v18363_v29 = vpop.f32.mrf.mxu0  ;;  %v6153_v54 = vadd.f32 %v19851_v47, %v19850_v0  ;;  %v9398_v0 = vadd.f32 %v18058_v45, %v18100_v22 }
 0x6d9   : > { %v18358_v59 = vpop.f32.mrf.mxu1 }
 0x6da   : > { %11147 = vmatmul.msk.f32.gmra.mxu0 %vm4597_vm9, %v8982_v56  ;;  %v18345_v5 = vpop.f32.mrf.mxu2 }
 0x6db   : > { %11258 = vmatmul.msk.f32.gmra.mxu3 %vm2104_vm2, %v9923_v60  ;;  %v9395_v60 = vadd.f32 %v18020_v48, %v18062_v3 }
 0x6dd   : > { %v8685_v9 = vpop.permute.xlu1 %8684  ;;  %v9877_v44 = vadd.f32 %v18246_v46, %v9395_v60 }
 0x6de   : > { %v8172_v11 = vpop.f32.mrf.mxu3  ;;  %v18355_v21 = vsel %vm4395_vm14, %v8789_v42, %v8685_v9  ;;  %v19853_v9 = vld [vmem:[#allocation17_spill] sm:$0xff] }
 0x6df   : > { %v18352_v24 = vadd.f32 %v8172_v11, %v6150_v19  ;;  %v8983_v49 = vrot.slane %v18355_v21, 1  ;;  %11197 = vmatmul.msk.f32.gmra.mxu1 %vm4597_vm9, %v18355_v21  ;;  %11233 = vmatmul.msk.f32.gmra.mxu2 %vm4597_vm9, %v9576_v12  ;;  %v19852_v12 = vld [vmem:[#allocation96_spill] sm:$0xff]  ;;  %v9925_v46 = vmax.f32 %v9877_v44, 0.0  ;;  %v18397_v47 = vpop.f32.mrf.mxu0  ;;  %v19854_v44 = vld [vmem:[#allocation67_spill] sm:$0xff] }
 0x6e0   : > { %v8790_v19 = vsel %vm2104_vm2, %v19852_v12, %v8536_v33  ;;  %v19855_v12 = vld [vmem:[#allocation79_spill] sm:$0xff] }
 0x6e1   : > { %v8984_v50 = vsel %vm2673_vm4, %v8981_v53, %v8983_v49  ;;  %v18391_v33 = vpop.f32.mrf.mxu1 }
 0x6e2   : > { %11148 = vmatmul.msk.f32.gmra.mxu0 %vm4597_vm9, %v8984_v50  ;;  %v18372_v56 = vpop.f32.mrf.mxu2  ;;  %v8689_v50 = vpop.permute.xlu2 %8688 }
 0x6e3   : > { %11259 = vmatmul.msk.f32.gmra.mxu3 %vm2104_vm2, %v9924_v61 }
 0x6e4   : > { %v8687_v15 = vpop.permute.xlu0 %8686 }
 0x6e5   : > { %v18382_v48 = vsel %vm4395_vm14, %v8790_v19, %v8687_v15  ;;  %v8538_v3 = vpop.permute.xlu1 %8537  ;;  %v6156_v19 = vadd.f32 %v19855_v12, %v19854_v44  ;;  %v9584_v15 = vsel %vm3295_vm5, %v9581_v17, %v9583_v10  ;;  %v19857_v12 = vld [vmem:[#allocation69_spill] sm:$0xff] }
 0x6e6   : > { %v8175_v53 = vpop.f32.mrf.mxu3  ;;  %v8985_v42 = vrot.slane %v18382_v48, 1  ;;  %v8791_v61 = vsel %vm2104_vm2, %v19853_v9, %v8538_v3  ;;  %v19856_v3 = vld [vmem:[#allocation126_spill] sm:$0xff] }
 0x6e7   : > { %v18379_v11 = vadd.f32 %v8175_v53, %v6153_v54  ;;  %11198 = vmatmul.msk.f32.gmra.mxu1 %vm4597_vm9, %v18382_v48  ;;  %11234 = vmatmul.msk.f32.gmra.mxu2 %vm4597_vm9, %v9578_v1  ;;  %v18402_v54 = vsel %vm4395_vm14, %v8791_v61, %v8689_v50  ;;  %v9401_v50 = vadd.f32 %v18093_v41, %v18131_v16 }
 0x6e8   : > { %v8986_v60 = vsel %vm2673_vm4, %v8983_v49, %v8985_v42  ;;  %v9878_v49 = vadd.f32 %v18268_v25, %v9398_v0  ;;  %v8987_v22 = vrot.slane %v18402_v54, 1 }
 0x6e9   : > { %v18427_v0 = vpop.f32.mrf.mxu1  ;;  %v9879_v41 = vadd.f32 %v18293_v37, %v9401_v50 }
 0x6ea   : > { %11149 = vmatmul.msk.f32.gmra.mxu0 %vm4597_vm9, %v8986_v60  ;;  %v18404_v1 = vpop.f32.mrf.mxu2  ;;  %v8988_v25 = vsel %vm2673_vm4, %v8985_v42, %v8987_v22  ;;  %v9585_v60 = vrot.slane %v18201_v63, 2  ;;  %v18433_v42 = vpop.f32.mrf.mxu0 }
 0x6eb   : > { %11260 = vmatmul.msk.f32.gmra.mxu3 %vm2104_vm2, %v9925_v46  ;;  %v9926_v46 = vmax.f32 %v9878_v49, 0.0  ;;  %v8542_v49 = vpop.permute.xlu2 %8541 }
 0x6ec   : > { %v8540_v45 = vpop.permute.xlu0 %8539 }
 0x6ed   : > { %v8792_v9 = vsel %vm2104_vm2, %v19856_v3, %v8540_v45  ;;  %v8691_v61 = vpop.permute.xlu1 %8690  ;;  %v9586_v45 = vsel %vm3295_vm5, %v9583_v10, %v9585_v60 }
 0x6ee   : > { %v8178_v53 = vpop.f32.mrf.mxu3  ;;  %v18424_v17 = vsel %vm4395_vm14, %v8792_v9, %v8691_v61  ;;  %v9927_v9 = vmax.f32 %v9879_v41, 0.0  ;;  %v19859_v61 = vld [vmem:[#allocation58_spill] sm:$0xff] }
 0x6ef   : > { %v18410_v32 = vadd.f32 %v8178_v53, %v6156_v19  ;;  %11199 = vmatmul.msk.f32.gmra.mxu1 %vm4597_vm9, %v18402_v54  ;;  %11235 = vmatmul.msk.f32.gmra.mxu2 %vm4597_vm9, %v9580_v52  ;;  %v19858_v52 = vld [vmem:[#allocation80_spill] sm:$0xff]  ;;  %v8989_v63 = vrot.slane %v18424_v17, 1 }
 0x6f0   : > { %v6159_v19 = vadd.f32 %v19858_v52, %v19857_v12  ;;  %v9587_v12 = vrot.slane %v18224_v13, 2 }
 0x6f1   : > { %v8990_v37 = vsel %vm2673_vm4, %v8987_v22, %v8989_v63 }
 0x6f2   : > { %11150 = vmatmul.msk.f32.gmra.mxu0 %vm4597_vm9, %v8988_v25  ;;  %v18429_v44 = vpop.f32.mrf.mxu2  ;;  %v19860_v25 = vld [vmem:[#allocation130_spill] sm:$0xff] }
 0x6f3   : > { %11261 = vmatmul.msk.f32.gmra.mxu3 %vm2104_vm2, %v9926_v46  ;;  %v8793_v46 = vsel %vm2104_vm2, %v19859_v61, %v8542_v49  ;;  %v9404_v50 = vadd.f32 %v19860_v25, %v18171_v36  ;;  %v18459_v49 = vpop.f32.mrf.mxu1  ;;  %v18462_v61 = vpop.f32.mrf.mxu0 }
 0x6f4   : > { %v8693_v3 = vpop.permute.xlu0 %8692 }
 0x6f5   : > { %v18451_v10 = vsel %vm4395_vm14, %v8793_v46, %v8693_v3  ;;  %v8544_v22 = vpop.permute.xlu1 %8543  ;;  %v9589_v3 = vrot.slane %v18244_v18, 2  ;;  %v9588_v46 = vsel %vm3295_vm5, %v9585_v60, %v9587_v12 }
 0x6f6   : > { %v8181_v16 = vpop.f32.mrf.mxu3  ;;  %v8991_v13 = vrot.slane %v18451_v10, 1 }
 0x6f7   : > { %v18437_v53 = vadd.f32 %v8181_v16, %v6159_v19  ;;  %11200 = vmatmul.msk.f32.gmra.mxu1 %vm4597_vm9, %v18424_v17  ;;  %11236 = vmatmul.msk.f32.gmra.mxu2 %vm4597_vm9, %v9582_v40  ;;  %v19861_v40 = vld [vmem:[#allocation71_spill] sm:$0xff]  ;;  %v19862_v19 = vld [vmem:[#allocation133_spill] sm:$0xff]  ;;  %v9880_v16 = vadd.f32 %v18323_v2, %v9404_v50  ;;  %v9590_v60 = vsel %vm3295_vm5, %v9587_v12, %v9589_v3 }
 0x6f8   : > { %v6162_v41 = vadd.f32 %v19862_v19, %v19861_v40  ;;  %v8695_v40 = vpop.permute.xlu2 %8694  ;;  %v8992_v50 = vsel %vm2673_vm4, %v8989_v63, %v8991_v13  ;;  %v9407_v19 = vadd.f32 %v18160_v51, %v18196_v62  ;;  %v9591_v62 = vrot.slane %v18278_v23, 2 }
 0x6f9   : > { %v9928_v2 = vmax.f32 %v9880_v16, 0.0  ;;  %v19865_v16 = vld [vmem:[#allocation135_spill] sm:$0xff]  ;;  %v9410_v23 = vadd.f32 %v18191_v14, %v18234_v43  ;;  %v9593_v14 = vrot.slane %v18305_v8, 2 }
 0x6fa   : > { %11151 = vmatmul.msk.f32.gmra.mxu0 %vm4597_vm9, %v8990_v37  ;;  %v18454_v52 = vpop.f32.mrf.mxu2  ;;  %v19863_v37 = vld [vmem:[#allocation98_spill] sm:$0xff]  ;;  %v19869_v8 = vld [vmem:[#allocation115_spill] sm:$0xff] }
 0x6fb   : > { %11262 = vmatmul.msk.f32.gmra.mxu3 %vm2104_vm2, %v9927_v9  ;;  %v8794_v25 = vsel %vm2104_vm2, %v19863_v37, %v8544_v22  ;;  %v19864_v22 = vld [vmem:[#allocation112_spill] sm:$0xff] }
 0x6fc   : > { %v18477_v18 = vsel %vm4395_vm14, %v8794_v25, %v8695_v40  ;;  %v8546_v63 = vpop.permute.xlu0 %8545  ;;  %v8391_v40 = vld [vmem:[#allocation2 + $0x197] sm:$0x3] }
 0x6fd   : > { %v8993_v37 = vrot.slane %v18477_v18, 1  ;;  %v8795_v12 = vsel %vm2104_vm2, %v8391_v40, %v8546_v63 }
 0x6fe   : > { %v8184_v36 = vpop.f32.mrf.mxu3 }
 0x6ff   : > { %v18465_v9 = vadd.f32 %v8184_v36, %v6162_v41  ;;  %11201 = vmatmul.msk.f32.gmra.mxu1 %vm4597_vm9, %v18451_v10  ;;  %11237 = vmatmul.msk.f32.gmra.mxu2 %vm4597_vm9, %v9584_v15  ;;  %v6165_v36 = vadd.f32 %v19865_v16, %v19864_v22  ;;  %v9881_v15 = vadd.f32 %v18345_v5, %v9407_v19  ;;  %v18496_v22 = vpop.f32.mrf.mxu0 }
 0x700   : > { %v8994_v19 = vsel %vm2673_vm4, %v8991_v13, %v8993_v37 }
 0x701   : > { %v9929_v5 = vmax.f32 %v9881_v15, 0.0  ;;  %v19868_v15 = vld [vmem:[#allocation137_spill] sm:$0xff] }
 0x702   : > { %11152 = vmatmul.msk.f32.gmra.mxu0 %vm4597_vm9, %v8992_v50  ;;  %v18482_v41 = vpop.f32.mrf.mxu2  ;;  %v8697_v50 = vpop.permute.xlu1 %8696 }
 0x703   : > { %11263 = vmatmul.msk.f32.gmra.mxu3 %vm2104_vm2, %v9928_v2  ;;  %v18491_v2 = vpop.f32.mrf.mxu1  ;;  %v18504_v16 = vsel %vm4395_vm14, %v8795_v12, %v8697_v50 }
 0x704   : > { %v8995_v13 = vrot.slane %v18504_v16, 1 }
 0x706   : > { %v8187_v51 = vpop.f32.mrf.mxu3  ;;  %v8996_v50 = vsel %vm2673_vm4, %v8993_v37, %v8995_v13  ;;  %v9595_v37 = vrot.slane %v18321_v27, 2 }
 0x707   : > { %v18489_v25 = vadd.f32 %v8187_v51, %v6165_v36  ;;  %11202 = vmatmul.msk.f32.gmra.mxu1 %vm4597_vm9, %v18477_v18  ;;  %11238 = vmatmul.msk.f32.gmra.mxu2 %vm4597_vm9, %v9586_v45  ;;  %v9592_v36 = vsel %vm3295_vm5, %v9589_v3, %v9591_v62  ;;  %v19867_v51 = vld [vmem:[#allocation75_spill] sm:$0xff]  ;;  %v9882_v45 = vadd.f32 %v18372_v56, %v9410_v23 }
 0x708   : > { %v6168_v40 = vadd.f32 %v19868_v15, %v19867_v51  ;;  %v9413_v3 = vadd.f32 %v18227_v31, %v18264_v35  ;;  %v9594_v56 = vsel %vm3295_vm5, %v9591_v62, %v9593_v14  ;;  %v9416_v35 = vadd.f32 %v18258_v7, %v18297_v39 }
 0x709   : > { %19866 = vst [vmem:[#allocation23_spill] sm:$0xff] %v18489_v25  ;;  %v9930_v12 = vmax.f32 %v9882_v45, 0.0  ;;  %v9596_v62 = vsel %vm3295_vm5, %v9593_v14, %v9595_v37  ;;  %v19871_v45 = vld [vmem:[#allocation117_spill] sm:$0xff]  ;;  %v9419_v7 = vadd.f32 %v18291_v28, %v18331_v58 }
 0x70a   : > { %11153 = vmatmul.msk.f32.gmra.mxu0 %vm4597_vm9, %v8994_v19  ;;  %v18508_v63 = vpop.f32.mrf.mxu2  ;;  %v9884_v27 = vadd.f32 %v18429_v44, %v9416_v35 }
 0x70b   : > { %11264 = vmatmul.msk.f32.gmra.mxu3 %vm2104_vm2, %v9929_v5  ;;  %v18521_v5 = vpop.f32.mrf.mxu0  ;;  %v9885_v44 = vadd.f32 %v18454_v52, %v9419_v7  ;;  %v19875_v7 = vld [vmem:[#allocation24_spill] sm:$0xff] }
 0x70d   : > { %v9933_v28 = vmax.f32 %v9885_v44, 0.0 }
 0x70e   : > { %v8190_v25 = vpop.f32.mrf.mxu3 }
 0x70f   : > { %v18515_v43 = vadd.f32 %v8190_v25, %v6168_v40  ;;  %11239 = vmatmul.msk.f32.gmra.mxu2 %vm4597_vm9, %v9588_v46  ;;  %v19870_v25 = vld [vmem:[#allocation37_spill] sm:$0xff]  ;;  %v9883_v46 = vadd.f32 %v18404_v1, %v9413_v3  ;;  %v19872_v1 = vld [vmem:[#allocation40_spill] sm:$0xff] }
 0x710   : > { %v6171_v23 = vadd.f32 %v19870_v25, %v19869_v8  ;;  %v6174_v13 = vadd.f32 %v19872_v1, %v19871_v45  ;;  %v19873_v25 = vld [vmem:[#allocation41_spill] sm:$0xff]  ;;  %v19874_v45 = vld [vmem:[#allocation78_spill] sm:$0xff] }
 0x711   : > { %v9931_v31 = vmax.f32 %v9883_v46, 0.0  ;;  %v9422_v46 = vadd.f32 %v18328_v34, %v18363_v29  ;;  %v9425_v29 = vadd.f32 %v18358_v59, %v18397_v47 }
 0x712   : > { %11154 = vmatmul.msk.f32.gmra.mxu0 %vm4597_vm9, %v8996_v50  ;;  %v18526_v19 = vpop.f32.mrf.mxu2  ;;  %v9597_v50 = vrot.slane %v18355_v21, 2  ;;  %v18559_v21 = vld [vmem:[%s18869_s6] ss:$0 sm:$0xff] }
 0x713   : > { %11265 = vmatmul.msk.f32.gmra.mxu3 %vm2104_vm2, %v9930_v12  ;;  %v18570_v52 = vpop.f32.mrf.mxu0 }
 0x714   : > { %v9598_v39 = vsel %vm3295_vm5, %v9595_v37, %v9597_v50 }
 0x716   : > { %v8193_v51 = vpop.f32.mrf.mxu3 }
 0x717   : > { %v18532_v15 = vadd.f32 %v8193_v51, %v6171_v23  ;;  %11240 = vmatmul.msk.f32.gmra.mxu2 %vm4597_vm9, %v9590_v60  ;;  %v9932_v60 = vmax.f32 %v9884_v27, 0.0 }
 0x71a   : > { %v18539_v40 = vpop.f32.mrf.mxu2 }
 0x71b   : > { %11266 = vmatmul.msk.f32.gmra.mxu3 %vm2104_vm2, %v9931_v31  ;;  %v9886_v31 = vadd.f32 %v18482_v41, %v9422_v46  ;;  %v18593_v27 = vpop.f32.mrf.mxu0 }
 0x71e   : > { %v8196_v12 = vpop.f32.mrf.mxu3 }
 0x71f   : > { %v18545_v3 = vadd.f32 %v8196_v12, %v6174_v13  ;;  %11241 = vmatmul.msk.f32.gmra.mxu2 %vm4597_vm9, %v9592_v36  ;;  %v9599_v36 = vrot.slane %v18382_v48, 2  ;;  %v18574_v48 = vpop.f32.mrf.mxu1  ;;  %v9934_v13 = vmax.f32 %v9886_v31, 0.0  ;;  %v9431_v31 = vadd.f32 %v18427_v0, %v18462_v61 }
 0x720   : > { %v9434_v61 = vadd.f32 %v18459_v49, %v18496_v22  ;;  %v9437_v22 = vadd.f32 %v18491_v2, %v18521_v5  ;;  %v9440_v2 = vadd.f32 %v18574_v48, %v18570_v52 }
 0x721   : > { %v9600_v51 = vsel %vm3295_vm5, %v9597_v50, %v9599_v36  ;;  %v9887_v50 = vadd.f32 %v18508_v63, %v9425_v29 }
 0x722   : > { %v18553_v14 = vpop.f32.mrf.mxu2 }
 0x723   : > { %11267 = vmatmul.msk.f32.gmra.mxu3 %vm2104_vm2, %v9932_v60  ;;  %v9935_v59 = vmax.f32 %v9887_v50, 0.0  ;;  %v9890_v50 = vadd.f32 %v18553_v14, %v9434_v61 }
 0x726   : > { %v10126_v8 = vpop.f32.mrf.mxu3 }
 0x727   : > { %v10270_v23 = vadd.f32 %v10126_v8, %v19873_v25  ;;  %11242 = vmatmul.msk.f32.gmra.mxu2 %vm4597_vm9, %v9594_v56  ;;  %v9601_v56 = vrot.slane %v18402_v54, 2  ;;  %v18597_v12 = vpop.f32.mrf.mxu1  ;;  %v9428_v8 = vadd.f32 %v18391_v33, %v18433_v42  ;;  %v18613_v25 = vpop.f32.mrf.mxu0 }
 0x728   : > { %v9443_v52 = vadd.f32 %v18597_v12, %v18593_v27 }
 0x729   : > { %v10322_v58 = vadd.f32 %v18559_v21, %v10270_v23  ;;  %v9602_v41 = vsel %vm3295_vm5, %v9599_v36, %v9601_v56 }
 0x72a   : > { %v18580_v37 = vpop.f32.mrf.mxu2 }
 0x72b   : > { %10370 = vst.msk [vmem:[%s18566_s11] sm:$0xff] %vm2104_vm2, %v10322_v58  ;;  %11268 = vmatmul.msk.f32.gmra.mxu3 %vm2104_vm2, %v9933_v28  ;;  %v19876_v58 = vld [vmem:[#allocation44_spill] sm:$0xff] }
 0x72e   : > { %v10129_v35 = vpop.f32.mrf.mxu3 }
 0x72f   : > { %v10271_v1 = vadd.f32 %v10129_v35, %v19874_v45  ;;  %11243 = vmatmul.msk.f32.gmra.mxu2 %vm4597_vm9, %v9596_v62  ;;  %v9603_v62 = vrot.slane %v18424_v17, 2  ;;  %v9888_v17 = vadd.f32 %v18526_v19, %v9428_v8  ;;  %v18615_v28 = vpop.f32.mrf.mxu1  ;;  %v9607_v45 = vrot.slane %v18477_v18, 2 }
 0x730   : > { %v9891_v8 = vadd.f32 %v18580_v37, %v9437_v22  ;;  %v9446_v27 = vadd.f32 %v18615_v28, %v18613_v25 }
 0x731   : > { %v10323_v34 = vadd.f32 %v18559_v21, %v10271_v1  ;;  %v9604_v63 = vsel %vm3295_vm5, %v9601_v56, %v9603_v62  ;;  %v9936_v33 = vmax.f32 %v9888_v17, 0.0  ;;  %v19877_v1 = vld [vmem:[#allocation7_spill] sm:$0xff] }
 0x732   : > { %v18595_v54 = vpop.f32.mrf.mxu2 }
 0x733   : > { %10371 = vst.msk [vmem:[%s18566_s11 + $0x8] sm:$0xff] %vm2104_vm2, %v10323_v34  ;;  %11269 = vmatmul.msk.f32.gmra.mxu3 %vm2104_vm2, %v9934_v13  ;;  %v18630_v34 = vpop.f32.mrf.mxu0  ;;  %v9892_v37 = vadd.f32 %v18595_v54, %v9440_v2  ;;  %v19884_v2 = vld [vmem:[#allocation36_spill] sm:$0xff] }
 0x736   : > { %v10132_v60 = vpop.f32.mrf.mxu3 }
 0x737   : > { %v10272_v44 = vadd.f32 %v10132_v60, %v19875_v7  ;;  %11244 = vmatmul.msk.f32.gmra.mxu2 %vm4597_vm9, %v9598_v39  ;;  %v9605_v39 = vrot.slane %v18451_v10, 2  ;;  %v9889_v10 = vadd.f32 %v18539_v40, %v9431_v31  ;;  %v19878_v7 = vld [vmem:[#allocation28_spill] sm:$0xff]  ;;  %v19880_v31 = vld [vmem:[#allocation81_spill] sm:$0xff] }
 0x739   : > { %v10324_v47 = vadd.f32 %v18559_v21, %v10272_v44  ;;  %v9606_v19 = vsel %vm3295_vm5, %v9603_v62, %v9605_v39  ;;  %v9937_v29 = vmax.f32 %v9889_v10, 0.0  ;;  %v9608_v18 = vsel %vm3295_vm5, %v9605_v39, %v9607_v45 }
 0x73a   : > { %v18610_v36 = vpop.f32.mrf.mxu2  ;;  %v9609_v62 = vrot.slane %v18504_v16, 2 }
 0x73b   : > { %10372 = vst.msk [vmem:[%s18566_s11 + $0x10] sm:$0xff] %vm2104_vm2, %v10324_v47  ;;  %11270 = vmatmul.msk.f32.gmra.mxu3 %vm2104_vm2, %v9935_v59  ;;  %v9938_v59 = vmax.f32 %v9890_v50, 0.0  ;;  %v9194_v49 = vpop.f32.mrf.mxu0  ;;  %v9893_v48 = vadd.f32 %v18610_v36, %v9443_v52  ;;  %v19885_v52 = vld [vmem:[#allocation49_spill] sm:$0xff] }
 0x73c   : > { %v9610_v14 = vsel %vm3295_vm5, %v9607_v45, %v9609_v62 }
 0x73d   : > { %v9941_v61 = vmax.f32 %v9893_v48, 0.0 }
 0x73e   : > { %v10135_v23 = vpop.f32.mrf.mxu3 }
 0x73f   : > { %v10273_v46 = vadd.f32 %v10135_v23, %v19876_v58  ;;  %11245 = vmatmul.msk.f32.gmra.mxu2 %vm4597_vm9, %v9600_v51  ;;  %v18632_v51 = vpop.f32.mrf.mxu1  ;;  %v19879_v23 = vld [vmem:[#allocation45_spill] sm:$0xff]  ;;  %v9939_v58 = vmax.f32 %v9891_v8, 0.0 }
 0x740   : > { %v9449_v22 = vadd.f32 %v18632_v51, %v18630_v34 }
 0x741   : > { %v10325_v42 = vadd.f32 %v18559_v21, %v10273_v46 }
 0x742   : > { %v9802_v35 = vpop.f32.mrf.mxu2 }
 0x743   : > { %10373 = vst.msk [vmem:[%s18566_s11 + $0x18] sm:$0xff] %vm2104_vm2, %v10325_v42  ;;  %11271 = vmatmul.msk.f32.gmra.mxu3 %vm2104_vm2, %v9936_v33  ;;  %v9197_v5 = vpop.f32.mrf.mxu0  ;;  %v9894_v12 = vadd.f32 %v9802_v35, %v9446_v27  ;;  %v19883_v35 = vld [vmem:[#allocation10_spill] sm:$0xff] }
 0x746   : > { %v10138_v56 = vpop.f32.mrf.mxu3 }
 0x747   : > { %v10274_v13 = vadd.f32 %v10138_v56, %v19877_v1  ;;  %11246 = vmatmul.msk.f32.gmra.mxu2 %vm4597_vm9, %v9602_v41  ;;  %v9451_v47 = vpop.f32.mrf.mxu1  ;;  %v9940_v56 = vmax.f32 %v9892_v37, 0.0 }
 0x749   : > { %v10326_v0 = vadd.f32 %v18559_v21, %v10274_v13  ;;  %v19881_v13 = vld [vmem:[#allocation32_spill] sm:$0xff] }
 0x74a   : > { %v9805_v40 = vpop.f32.mrf.mxu2 }
 0x74b   : > { %10374 = vst.msk [vmem:[%s18566_s11 + $0x20] sm:$0xff] %vm2104_vm2, %v10326_v0  ;;  %11272 = vmatmul.msk.f32.gmra.mxu3 %vm2104_vm2, %v9937_v29  ;;  %v9200_v54 = vpop.f32.mrf.mxu0  ;;  %v9895_v25 = vadd.f32 %v9805_v40, %v9449_v22 }
 0x74d   : > { %v9943_v8 = vmax.f32 %v9895_v25, 0.0 }
 0x74e   : > { %v10141_v60 = vpop.f32.mrf.mxu3 }
 0x74f   : > { %v10275_v44 = vadd.f32 %v10141_v60, %v19878_v7  ;;  %11247 = vmatmul.msk.f32.gmra.mxu2 %vm4597_vm9, %v9604_v63  ;;  %v9454_v46 = vpop.f32.mrf.mxu1 }
 0x751   : > { %v10327_v41 = vadd.f32 %v18559_v21, %v10275_v44  ;;  %v9942_v44 = vmax.f32 %v9894_v12, 0.0 }
 0x752   : > { %v9808_v16 = vpop.f32.mrf.mxu2 }
 0x753   : > { %10375 = vst.msk [vmem:[%s18566_s11 + $0x28] sm:$0xff] %vm2104_vm2, %v10327_v41  ;;  %11273 = vmatmul.msk.f32.gmra.mxu3 %vm2104_vm2, %v9938_v59  ;;  %v9203_v62 = vpop.f32.mrf.mxu0 }
 0x756   : > { %v10144_v17 = vpop.f32.mrf.mxu3 }
 0x757   : > { %v10276_v39 = vadd.f32 %v10144_v17, %v19879_v23  ;;  %11248 = vmatmul.msk.f32.gmra.mxu2 %vm4597_vm9, %v9606_v19  ;;  %v9457_v1 = vpop.f32.mrf.mxu1 }
 0x759   : > { %v10328_v63 = vadd.f32 %v18559_v21, %v10276_v39  ;;  %v9452_v39 = vadd.f32 %v9451_v47, %v9194_v49 }
 0x75a   : > { %v9811_v42 = vpop.f32.mrf.mxu2 }
 0x75b   : > { %10376 = vst.msk [vmem:[%s18566_s11 + $0x30] sm:$0xff] %vm2104_vm2, %v10328_v63  ;;  %11274 = vmatmul.msk.f32.gmra.mxu3 %vm2104_vm2, %v9939_v58  ;;  %v9206_v23 = vpop.f32.mrf.mxu0  ;;  %v9896_v51 = vadd.f32 %v9808_v16, %v9452_v39 }
 0x75d   : > { %v9944_v37 = vmax.f32 %v9896_v51, 0.0 }
 0x75e   : > { %v10147_v33 = vpop.f32.mrf.mxu3 }
 0x75f   : > { %v10277_v10 = vadd.f32 %v10147_v33, %v19880_v31  ;;  %11249 = vmatmul.msk.f32.gmra.mxu2 %vm4597_vm9, %v9608_v18  ;;  %v19882_v18 = vld [vmem:[#allocation48_spill] sm:$0xff]  ;;  %v9460_v7 = vpop.f32.mrf.mxu1  ;;  %v9455_v31 = vadd.f32 %v9454_v46, %v9197_v5 }
 0x761   : > { %v10329_v45 = vadd.f32 %v18559_v21, %v10277_v10  ;;  %v9897_v10 = vadd.f32 %v9811_v42, %v9455_v31 }
 0x762   : > { %v9814_v0 = vpop.f32.mrf.mxu2 }
 0x763   : > { %10377 = vst.msk [vmem:[%s18566_s11 + $0x38] sm:$0xff] %vm2104_vm2, %v10329_v45  ;;  %11275 = vmatmul.msk.f32.gmra.mxu3 %vm2104_vm2, %v9940_v56  ;;  %v9209_v49 = vpop.f32.mrf.mxu0  ;;  %v9945_v48 = vmax.f32 %v9897_v10, 0.0 }
 0x766   : > { %v10150_v19 = vpop.f32.mrf.mxu3 }
 0x767   : > { %v10278_v29 = vadd.f32 %v10150_v19, %v19881_v13  ;;  %11250 = vmatmul.msk.f32.gmra.mxu2 %vm4597_vm9, %v9610_v14  ;;  %v9463_v58 = vpop.f32.mrf.mxu1  ;;  %v9458_v13 = vadd.f32 %v9457_v1, %v9200_v54 }
 0x769   : > { %v10330_v50 = vadd.f32 %v18559_v21, %v10278_v29  ;;  %v9898_v5 = vadd.f32 %v9814_v0, %v9458_v13 }
 0x76a   : > { %v9817_v41 = vpop.f32.mrf.mxu2 }
 0x76b   : > { %10378 = vst.msk [vmem:[%s18566_s11 + $0x40] sm:$0xff] %vm2104_vm2, %v10330_v50  ;;  %11276 = vmatmul.msk.f32.gmra.mxu3 %vm2104_vm2, %v9941_v61  ;;  %v9212_v46 = vpop.f32.mrf.mxu0  ;;  %v19886_v50 = vld [vmem:[#allocation83_spill] sm:$0xff]  ;;  %v9946_v12 = vmax.f32 %v9898_v5, 0.0 }
 0x76e   : > { %v10153_v36 = vpop.f32.mrf.mxu3 }
 0x76f   : > { %v10279_v60 = vadd.f32 %v10153_v36, %v19882_v18  ;;  %v9466_v47 = vpop.f32.mrf.mxu1  ;;  %v9461_v18 = vadd.f32 %v9460_v7, %v9203_v62 }
 0x770   : > { %v9467_v51 = vadd.f32 %v9466_v47, %v9209_v49 }
 0x771   : > { %v10331_v59 = vadd.f32 %v18559_v21, %v10279_v60  ;;  %v9899_v54 = vadd.f32 %v9817_v41, %v9461_v18  ;;  %v19887_v60 = vld [vmem:[#allocation94_spill] sm:$0xff] }
 0x772   : > { %v9820_v34 = vpop.f32.mrf.mxu2 }
 0x773   : > { %10379 = vst.msk [vmem:[%s18566_s11 + $0x48] sm:$0xff] %vm2104_vm2, %v10331_v59  ;;  %11277 = vmatmul.msk.f32.gmra.mxu3 %vm2104_vm2, %v9942_v44  ;;  %v9215_v0 = vpop.f32.mrf.mxu0  ;;  %v9947_v22 = vmax.f32 %v9899_v54, 0.0 }
 0x776   : > { %v10156_v28 = vpop.f32.mrf.mxu3 }
 0x777   : > { %v10280_v14 = vadd.f32 %v10156_v28, %v19883_v35  ;;  %v9469_v61 = vpop.f32.mrf.mxu1  ;;  %v9464_v35 = vadd.f32 %v9463_v58, %v9206_v23 }
 0x778   : > { %v9470_v31 = vadd.f32 %v9469_v61, %v9212_v46 }
 0x779   : > { %v10332_v17 = vadd.f32 %v18559_v21, %v10280_v14  ;;  %v9900_v62 = vadd.f32 %v9820_v34, %v9464_v35  ;;  %v19888_v14 = vld [vmem:[#allocation52_spill] sm:$0xff] }
 0x77a   : > { %v9823_v45 = vpop.f32.mrf.mxu2 }
 0x77b   : > { %10380 = vst.msk [vmem:[%s18566_s11 + $0x50] sm:$0xff] %vm2104_vm2, %v10332_v17  ;;  %11278 = vmatmul.msk.f32.gmra.mxu3 %vm2104_vm2, %v9943_v8  ;;  %v9948_v8 = vmax.f32 %v9900_v62, 0.0  ;;  %v9218_v39 = vpop.f32.mrf.mxu0  ;;  %v9901_v58 = vadd.f32 %v9823_v45, %v9467_v51 }
 0x77e   : > { %v10159_v63 = vpop.f32.mrf.mxu3 }
 0x77f   : > { %v10281_v40 = vadd.f32 %v10159_v63, %v19884_v2  ;;  %v9472_v59 = vpop.f32.mrf.mxu1 }
 0x780   : > { %v9473_v13 = vadd.f32 %v9472_v59, %v9215_v0 }
 0x781   : > { %v10333_v33 = vadd.f32 %v18559_v21, %v10281_v40  ;;  %v19889_v40 = vld [vmem:[#allocation12_spill] sm:$0xff] }
 0x782   : > { %v9826_v42 = vpop.f32.mrf.mxu2 }
 0x783   : > { %10381 = vst.msk [vmem:[%s18566_s11 + $0x58] sm:$0xff] %vm2104_vm2, %v10333_v33  ;;  %11279 = vmatmul.msk.f32.gmra.mxu3 %vm2104_vm2, %v9944_v37  ;;  %v9949_v37 = vmax.f32 %v9901_v58, 0.0  ;;  %v9221_v49 = vpop.f32.mrf.mxu0  ;;  %v9902_v10 = vadd.f32 %v9826_v42, %v9470_v31 }
 0x786   : > { %v10162_v56 = vpop.f32.mrf.mxu3 }
 0x787   : > { %v10282_v16 = vadd.f32 %v10162_v56, %v19885_v52  ;;  %v9475_v63 = vpop.f32.mrf.mxu1 }
 0x788   : > { %v9476_v18 = vadd.f32 %v9475_v63, %v9218_v39 }
 0x789   : > { %v10334_v19 = vadd.f32 %v18559_v21, %v10282_v16  ;;  %v19890_v16 = vld [vmem:[#allocation95_spill] sm:$0xff] }
 0x78a   : > { %v9829_v28 = vpop.f32.mrf.mxu2 }
 0x78b   : > { %10382 = vst.msk [vmem:[%s18566_s11 + $0x60] sm:$0xff] %vm2104_vm2, %v10334_v19  ;;  %11280 = vmatmul.msk.f32.gmra.mxu3 %vm2104_vm2, %v9945_v48  ;;  %v9950_v48 = vmax.f32 %v9902_v10, 0.0  ;;  %v9903_v5 = vadd.f32 %v9829_v28, %v9473_v13  ;;  %v9224_v46 = vpop.f32.mrf.mxu0 }
 0x78e   : > { %v10165_v29 = vpop.f32.mrf.mxu3 }
 0x78f   : > { %v10283_v27 = vadd.f32 %v10165_v29, %v19886_v50  ;;  %v9478_v47 = vpop.f32.mrf.mxu1  ;;  %v19891_v50 = vld [vmem:[#allocation53_spill] sm:$0xff] }
 0x790   : > { %v9479_v35 = vadd.f32 %v9478_v47, %v9221_v49 }
 0x791   : > { %v10335_v36 = vadd.f32 %v18559_v21, %v10283_v27 }
 0x792   : > { %v9832_v23 = vpop.f32.mrf.mxu2 }
 0x793   : > { %10383 = vst.msk [vmem:[%s18566_s11 + $0x68] sm:$0xff] %vm2104_vm2, %v10335_v36  ;;  %11281 = vmatmul.msk.f32.gmra.mxu3 %vm2104_vm2, %v9946_v12  ;;  %v9951_v12 = vmax.f32 %v9903_v5, 0.0  ;;  %v9904_v54 = vadd.f32 %v9832_v23, %v9476_v18  ;;  %v9227_v0 = vpop.f32.mrf.mxu0 }
 0x796   : > { %v10168_v1 = vpop.f32.mrf.mxu3 }
 0x797   : > { %v10284_v44 = vadd.f32 %v10168_v1, %v19887_v60  ;;  %v9481_v61 = vpop.f32.mrf.mxu1  ;;  %v19892_v60 = vld [vmem:[#allocation14_spill] sm:$0xff] }
 0x798   : > { %v9482_v51 = vadd.f32 %v9481_v61, %v9224_v46 }
 0x799   : > { %v10336_v25 = vadd.f32 %v18559_v21, %v10284_v44 }
 0x79a   : > { %v9835_v56 = vpop.f32.mrf.mxu2 }
 0x79b   : > { %10384 = vst.msk [vmem:[%s18566_s11 + $0x70] sm:$0xff] %vm2104_vm2, %v10336_v25  ;;  %11282 = vmatmul.msk.f32.gmra.mxu3 %vm2104_vm2, %v9947_v22  ;;  %v9952_v22 = vmax.f32 %v9904_v54, 0.0  ;;  %v9905_v62 = vadd.f32 %v9835_v56, %v9479_v35  ;;  %v9230_v39 = vpop.f32.mrf.mxu0 }
 0x79e   : > { %v10171_v7 = vpop.f32.mrf.mxu3 }
 0x79f   : > { %v10285_v41 = vadd.f32 %v10171_v7, %v19888_v14  ;;  %v9484_v59 = vpop.f32.mrf.mxu1  ;;  %v19893_v14 = vld [vmem:[#allocation56_spill] sm:$0xff] }
 0x7a0   : > { %v9485_v31 = vadd.f32 %v9484_v59, %v9227_v0 }
 0x7a1   : > { %v10337_v17 = vadd.f32 %v18559_v21, %v10285_v41 }
 0x7a2   : > { %v9838_v42 = vpop.f32.mrf.mxu2 }
 0x7a3   : > { %10385 = vst.msk [vmem:[%s18566_s11 + $0x78] sm:$0xff] %vm2104_vm2, %v10337_v17  ;;  %11283 = vmatmul.msk.f32.gmra.mxu3 %vm2104_vm2, %v9948_v8  ;;  %v9953_v8 = vmax.f32 %v9905_v62, 0.0  ;;  %v9906_v58 = vadd.f32 %v9838_v42, %v9482_v51  ;;  %v9233_v49 = vpop.f32.mrf.mxu0 }
 0x7a6   : > { %v10174_v2 = vpop.f32.mrf.mxu3 }
 0x7a7   : > { %v10286_v34 = vadd.f32 %v10174_v2, %v19889_v40  ;;  %v9487_v63 = vpop.f32.mrf.mxu1  ;;  %v19894_v40 = vld [vmem:[#allocation97_spill] sm:$0xff] }
 0x7a8   : > { %v9488_v13 = vadd.f32 %v9487_v63, %v9230_v39 }
 0x7a9   : > { %v10338_v33 = vadd.f32 %v18559_v21, %v10286_v34 }
 0x7aa   : > { %v9841_v28 = vpop.f32.mrf.mxu2 }
 0x7ab   : > { %10386 = vst.msk [vmem:[%s18566_s11 + $0x80] sm:$0xff] %vm2104_vm2, %v10338_v33  ;;  %11284 = vmatmul.msk.f32.gmra.mxu3 %vm2104_vm2, %v9949_v37  ;;  %v9954_v37 = vmax.f32 %v9906_v58, 0.0  ;;  %v9907_v10 = vadd.f32 %v9841_v28, %v9485_v31  ;;  %v9236_v46 = vpop.f32.mrf.mxu0 }
 0x7ae   : > { %v10177_v52 = vpop.f32.mrf.mxu3 }
 0x7af   : > { %v10287_v45 = vadd.f32 %v10177_v52, %v19890_v16  ;;  %v9490_v47 = vpop.f32.mrf.mxu1  ;;  %v19895_v16 = vld [vmem:[#allocation128_spill] sm:$0xff] }
 0x7b0   : > { %v9491_v18 = vadd.f32 %v9490_v47, %v9233_v49 }
 0x7b1   : > { %v10339_v19 = vadd.f32 %v18559_v21, %v10287_v45 }
 0x7b2   : > { %v9844_v23 = vpop.f32.mrf.mxu2 }
 0x7b3   : > { %10387 = vst.msk [vmem:[%s18566_s11 + $0x88] sm:$0xff] %vm2104_vm2, %v10339_v19  ;;  %11285 = vmatmul.msk.f32.gmra.mxu3 %vm2104_vm2, %v9950_v48  ;;  %v9955_v48 = vmax.f32 %v9907_v10, 0.0  ;;  %v9908_v5 = vadd.f32 %v9844_v23, %v9488_v13  ;;  %v9239_v0 = vpop.f32.mrf.mxu0 }
 0x7b6   : > { %v10180_v29 = vpop.f32.mrf.mxu3 }
 0x7b7   : > { %v10288_v27 = vadd.f32 %v10180_v29, %v19891_v50  ;;  %v9493_v61 = vpop.f32.mrf.mxu1  ;;  %v19896_v50 = vld [vmem:[#allocation89_spill] sm:$0xff] }
 0x7b8   : > { %v9494_v35 = vadd.f32 %v9493_v61, %v9236_v46  ;;  %v19901_v61 = vld [vmem:[#allocation134_spill] sm:$0xff] }
 0x7b9   : > { %v10340_v36 = vadd.f32 %v18559_v21, %v10288_v27 }
 0x7ba   : > { %v9847_v56 = vpop.f32.mrf.mxu2 }
 0x7bb   : > { %10388 = vst.msk [vmem:[%s18566_s11 + $0x90] sm:$0xff] %vm2104_vm2, %v10340_v36  ;;  %11286 = vmatmul.msk.f32.gmra.mxu3 %vm2104_vm2, %v9951_v12  ;;  %v9956_v12 = vmax.f32 %v9908_v5, 0.0  ;;  %v9909_v54 = vadd.f32 %v9847_v56, %v9491_v18  ;;  %v9242_v39 = vpop.f32.mrf.mxu0 }
 0x7be   : > { %v10183_v1 = vpop.f32.mrf.mxu3 }
 0x7bf   : > { %v10289_v44 = vadd.f32 %v10183_v1, %v19892_v60  ;;  %v19897_v60 = vld [vmem:[#allocation59_spill] sm:$0xff]  ;;  %v9496_v59 = vpop.f32.mrf.mxu1 }
 0x7c0   : > { %v9497_v63 = vadd.f32 %v9496_v59, %v9239_v0 }
 0x7c1   : > { %v10341_v25 = vadd.f32 %v18559_v21, %v10289_v44 }
 0x7c2   : > { %v9850_v42 = vpop.f32.mrf.mxu2 }
 0x7c3   : > { %10389 = vst.msk [vmem:[%s18566_s11 + $0x98] sm:$0xff] %vm2104_vm2, %v10341_v25  ;;  %11287 = vmatmul.msk.f32.gmra.mxu3 %vm2104_vm2, %v9952_v22  ;;  %v9957_v22 = vmax.f32 %v9909_v54, 0.0  ;;  %v9910_v62 = vadd.f32 %v9850_v42, %v9494_v35  ;;  %v9245_v49 = vpop.f32.mrf.mxu0 }
 0x7c6   : > { %v10186_v7 = vpop.f32.mrf.mxu3 }
 0x7c7   : > { %v10290_v41 = vadd.f32 %v10186_v7, %v19893_v14  ;;  %v19898_v14 = vld [vmem:[#allocation21_spill] sm:$0xff]  ;;  %v9499_v51 = vpop.f32.mrf.mxu1 }
 0x7c8   : > { %v9500_v31 = vadd.f32 %v9499_v51, %v9242_v39 }
 0x7c9   : > { %v10342_v17 = vadd.f32 %v18559_v21, %v10290_v41 }
 0x7ca   : > { %v9853_v28 = vpop.f32.mrf.mxu2 }
 0x7cb   : > { %10390 = vst.msk [vmem:[%s18566_s11 + $0xa0] sm:$0xff] %vm2104_vm2, %v10342_v17  ;;  %11288 = vmatmul.msk.f32.gmra.mxu3 %vm2104_vm2, %v9953_v8  ;;  %v9958_v8 = vmax.f32 %v9910_v62, 0.0  ;;  %v9911_v58 = vadd.f32 %v9853_v28, %v9497_v63  ;;  %v9248_v46 = vpop.f32.mrf.mxu0 }
 0x7ce   : > { %v10189_v2 = vpop.f32.mrf.mxu3 }
 0x7cf   : > { %v10291_v34 = vadd.f32 %v10189_v2, %v19894_v40  ;;  %v19899_v40 = vld [vmem:[#allocation99_spill] sm:$0xff]  ;;  %v9502_v47 = vpop.f32.mrf.mxu1 }
 0x7d0   : > { %v9503_v13 = vadd.f32 %v9502_v47, %v9245_v49 }
 0x7d1   : > { %v10343_v33 = vadd.f32 %v18559_v21, %v10291_v34 }
 0x7d2   : > { %v9856_v23 = vpop.f32.mrf.mxu2 }
 0x7d3   : > { %10391 = vst.msk [vmem:[%s18566_s11 + $0xa8] sm:$0xff] %vm2104_vm2, %v10343_v33  ;;  %11289 = vmatmul.msk.f32.gmra.mxu3 %vm2104_vm2, %v9954_v37  ;;  %v9959_v37 = vmax.f32 %v9911_v58, 0.0  ;;  %v9912_v10 = vadd.f32 %v9856_v23, %v9500_v31  ;;  %v9251_v0 = vpop.f32.mrf.mxu0 }
 0x7d6   : > { %v10192_v52 = vpop.f32.mrf.mxu3 }
 0x7d7   : > { %v10292_v45 = vadd.f32 %v10192_v52, %v19895_v16  ;;  %v19900_v16 = vld [vmem:[#allocation61_spill] sm:$0xff] }
 0x7d9   : > { %v10344_v19 = vadd.f32 %v18559_v21, %v10292_v45 }
 0x7da   : > { %v9859_v56 = vpop.f32.mrf.mxu2 }
 0x7db   : > { %10392 = vst.msk [vmem:[%s18566_s11 + $0xb0] sm:$0xff] %vm2104_vm2, %v10344_v19  ;;  %11290 = vmatmul.msk.f32.gmra.mxu3 %vm2104_vm2, %v9955_v48  ;;  %v9960_v48 = vmax.f32 %v9912_v10, 0.0  ;;  %v9913_v5 = vadd.f32 %v9859_v56, %v9503_v13 }
 0x7de   : > { %v10195_v29 = vpop.f32.mrf.mxu3 }
 0x7df   : > { %v10293_v27 = vadd.f32 %v10195_v29, %v19896_v50 }
 0x7e1   : > { %v10345_v36 = vadd.f32 %v18559_v21, %v10293_v27  ;;  %v9505_v27 = vpop.f32.mrf.mxu1 }
 0x7e2   : > { %v9862_v42 = vpop.f32.mrf.mxu2  ;;  %v9506_v18 = vadd.f32 %v9505_v27, %v9248_v46 }
 0x7e3   : > { %10393 = vst.msk [vmem:[%s18566_s11 + $0xb8] sm:$0xff] %vm2104_vm2, %v10345_v36  ;;  %11291 = vmatmul.msk.f32.gmra.mxu3 %vm2104_vm2, %v9956_v12  ;;  %v9961_v12 = vmax.f32 %v9913_v5, 0.0 }
 0x7e4   : > { %v9914_v54 = vadd.f32 %v9862_v42, %v9506_v18 }
 0x7e6   : > { %v10198_v1 = vpop.f32.mrf.mxu3  ;;  %v9962_v59 = vmax.f32 %v9914_v54, 0.0 }
 0x7e7   : > { %v10294_v44 = vadd.f32 %v10198_v1, %v19897_v60  ;;  %v19902_v60 = vld [vmem:[#allocation3_spill] sm:$0xff] }
 0x7e9   : > { %v10346_v25 = vadd.f32 %v18559_v21, %v10294_v44 }
 0x7ea   : > { %v9865_v28 = vpop.f32.mrf.mxu2 }
 0x7eb   : > { %10394 = vst.msk [vmem:[%s18566_s11 + $0xc0] sm:$0xff] %vm2104_vm2, %v10346_v25  ;;  %11292 = vmatmul.msk.f32.gmra.mxu3 %vm2104_vm2, %v9957_v22  ;;  %v9508_v25 = vpop.f32.mrf.mxu1 }
 0x7ec   : > { %v9509_v35 = vadd.f32 %v9508_v25, %v9251_v0 }
 0x7ee   : > { %v10201_v7 = vpop.f32.mrf.mxu3  ;;  %v9915_v62 = vadd.f32 %v9865_v28, %v9509_v35 }
 0x7ef   : > { %v10295_v41 = vadd.f32 %v10201_v7, %v19898_v14  ;;  %v19903_v14 = vld [vmem:[#allocation100_spill] sm:$0xff] }
 0x7f1   : > { %v10347_v17 = vadd.f32 %v18559_v21, %v10295_v41 }
 0x7f3   : > { %10395 = vst.msk [vmem:[%s18566_s11 + $0xc8] sm:$0xff] %vm2104_vm2, %v10347_v17  ;;  %11293 = vmatmul.msk.f32.gmra.mxu3 %vm2104_vm2, %v9958_v8  ;;  %v9963_v8 = vmax.f32 %v9915_v62, 0.0 }
 0x7f6   : > { %v10204_v2 = vpop.f32.mrf.mxu3 }
 0x7f7   : > { %v10296_v34 = vadd.f32 %v10204_v2, %v19899_v40 }
 0x7f9   : > { %v10348_v33 = vadd.f32 %v18559_v21, %v10296_v34 }
 0x7fb   : > { %10396 = vst.msk [vmem:[%s18566_s11 + $0xd0] sm:$0xff] %vm2104_vm2, %v10348_v33  ;;  %11294 = vmatmul.msk.f32.gmra.mxu3 %vm2104_vm2, %v9959_v37 }
 0x7fe   : > { %v10207_v52 = vpop.f32.mrf.mxu3 }
 0x7ff   : > { %v10297_v45 = vadd.f32 %v10207_v52, %v19900_v16 }
 0x801   : > { %v10349_v19 = vadd.f32 %v18559_v21, %v10297_v45 }
 0x803   : > { %10397 = vst.msk [vmem:[%s18566_s11 + $0xd8] sm:$0xff] %vm2104_vm2, %v10349_v19  ;;  %11295 = vmatmul.msk.f32.gmra.mxu3 %vm2104_vm2, %v9960_v48 }
 0x806   : > { %v10210_v29 = vpop.f32.mrf.mxu3 }
 0x807   : > { %v10298_v50 = vadd.f32 %v10210_v29, %v19901_v61 }
 0x809   : > { %v10350_v36 = vadd.f32 %v18559_v21, %v10298_v50 }
 0x80b   : > { %10398 = vst.msk [vmem:[%s18566_s11 + $0xe0] sm:$0xff] %vm2104_vm2, %v10350_v36  ;;  %11296 = vmatmul.msk.f32.gmra.mxu3 %vm2104_vm2, %v9961_v12  ;;  %v19904_v36 = vld [vmem:[#allocation23_spill] sm:$0xff] }
 0x80e   : > { %v10213_v1 = vpop.f32.mrf.mxu3 }
 0x80f   : > { %v10299_v44 = vadd.f32 %v10213_v1, %v19902_v60 }
 0x811   : > { %v10351_v22 = vadd.f32 %v18559_v21, %v10299_v44 }
 0x813   : > { %10399 = vst.msk [vmem:[%s18566_s11 + $0xe8] sm:$0xff] %vm2104_vm2, %v10351_v22  ;;  %11297 = vmatmul.msk.f32.gmra.mxu3 %vm2104_vm2, %v9962_v59 }
 0x816   : > { %v10216_v7 = vpop.f32.mrf.mxu3 }
 0x817   : > { %v10300_v41 = vadd.f32 %v10216_v7, %v19903_v14 }
 0x819   : > { %v10352_v17 = vadd.f32 %v18559_v21, %v10300_v41 }
 0x81b   : > { %10400 = vst.msk [vmem:[%s18566_s11 + $0xf0] sm:$0xff] %vm2104_vm2, %v10352_v17  ;;  %11298 = vmatmul.msk.f32.gmra.mxu3 %vm2104_vm2, %v9963_v8 }
 0x81e   : > { %v10219_v39 = vpop.f32.mrf.mxu3 }
 0x81f   : > { %v10301_v51 = vadd.f32 %v10219_v39, %v18144_v6 }
 0x821   : > { %v10353_v63 = vadd.f32 %v18559_v21, %v10301_v51 }
 0x823   : > { %10401 = vst.msk [vmem:[%s18566_s11 + $0xf8] sm:$0xff] %vm2104_vm2, %v10353_v63 }
 0x826   : > { %v10222_v23 = vpop.f32.mrf.mxu3 }
 0x827   : > { %v10302_v58 = vadd.f32 %v10222_v23, %v18175_v38 }
 0x829   : > { %v10354_v2 = vadd.f32 %v18559_v21, %v10302_v58 }
 0x82b   : > { %10402 = vst.msk [vmem:[%s18566_s11 + $0x100] sm:$0xff] %vm2104_vm2, %v10354_v2 }
 0x82e   : > { %v10225_v40 = vpop.f32.mrf.mxu3 }
 0x82f   : > { %v10303_v34 = vadd.f32 %v10225_v40, %v18198_v20 }
 0x831   : > { %v10355_v37 = vadd.f32 %v18559_v21, %v10303_v34 }
 0x833   : > { %10403 = vst.msk [vmem:[%s18566_s11 + $0x108] sm:$0xff] %vm2104_vm2, %v10355_v37 }
 0x836   : > { %v10228_v6 = vpop.f32.mrf.mxu3 }
 0x837   : > { %v10304_v33 = vadd.f32 %v10228_v6, %v18221_v26 }
 0x839   : > { %v10356_v31 = vadd.f32 %v18559_v21, %v10304_v33 }
 0x83b   : > { %10404 = vst.msk [vmem:[%s18566_s11 + $0x110] sm:$0xff] %vm2104_vm2, %v10356_v31 }
 0x83e   : > { %v10231_v38 = vpop.f32.mrf.mxu3 }
 0x83f   : > { %v10305_v49 = vadd.f32 %v10231_v38, %v18252_v4 }
 0x841   : > { %v10357_v47 = vadd.f32 %v18559_v21, %v10305_v49 }
 0x843   : > { %10405 = vst.msk [vmem:[%s18566_s11 + $0x118] sm:$0xff] %vm2104_vm2, %v10357_v47 }
 0x846   : > { %v10234_v20 = vpop.f32.mrf.mxu3 }
 0x847   : > { %v10306_v10 = vadd.f32 %v10234_v20, %v18275_v55 }
 0x849   : > { %v10358_v56 = vadd.f32 %v18559_v21, %v10306_v10 }
 0x84b   : > { %10406 = vst.msk [vmem:[%s18566_s11 + $0x120] sm:$0xff] %vm2104_vm2, %v10358_v56 }
 0x84e   : > { %v10237_v26 = vpop.f32.mrf.mxu3 }
 0x84f   : > { %v10307_v52 = vadd.f32 %v10237_v26, %v18302_v30 }
 0x851   : > { %v10359_v16 = vadd.f32 %v18559_v21, %v10307_v52 }
 0x853   : > { %10407 = vst.msk [vmem:[%s18566_s11 + $0x128] sm:$0xff] %vm2104_vm2, %v10359_v16 }
 0x856   : > { %v10240_v4 = vpop.f32.mrf.mxu3 }
 0x857   : > { %v10308_v45 = vadd.f32 %v10240_v4, %v18333_v57 }
 0x859   : > { %v10360_v48 = vadd.f32 %v18559_v21, %v10308_v45 }
 0x85b   : > { %10408 = vst.msk [vmem:[%s18566_s11 + $0x130] sm:$0xff] %vm2104_vm2, %v10360_v48 }
 0x85e   : > { %v10243_v55 = vpop.f32.mrf.mxu3 }
 0x85f   : > { %v10309_v19 = vadd.f32 %v10243_v55, %v18352_v24 }
 0x861   : > { %v10361_v13 = vadd.f32 %v18559_v21, %v10309_v19 }
 0x863   : > { %10409 = vst.msk [vmem:[%s18566_s11 + $0x138] sm:$0xff] %vm2104_vm2, %v10361_v13 }
 0x866   : > { %v10246_v30 = vpop.f32.mrf.mxu3 }
 0x867   : > { %v10310_v5 = vadd.f32 %v10246_v30, %v18379_v11 }
 0x869   : > { %v10362_v46 = vadd.f32 %v18559_v21, %v10310_v5 }
 0x86b   : > { %10410 = vst.msk [vmem:[%s18566_s11 + $0x140] sm:$0xff] %vm2104_vm2, %v10362_v46 }
 0x86e   : > { %v10249_v57 = vpop.f32.mrf.mxu3 }
 0x86f   : > { %v10311_v29 = vadd.f32 %v10249_v57, %v18410_v32 }
 0x871   : > { %v10363_v61 = vadd.f32 %v18559_v21, %v10311_v29 }
 0x873   : > { %10411 = vst.msk [vmem:[%s18566_s11 + $0x148] sm:$0xff] %vm2104_vm2, %v10363_v61 }
 0x876   : > { %v10252_v24 = vpop.f32.mrf.mxu3 }
 0x877   : > { %v10312_v50 = vadd.f32 %v10252_v24, %v18437_v53 }
 0x879   : > { %v10364_v27 = vadd.f32 %v18559_v21, %v10312_v50 }
 0x87b   : > { %10412 = vst.msk [vmem:[%s18566_s11 + $0x150] sm:$0xff] %vm2104_vm2, %v10364_v27 }
 0x87e   : > { %v10255_v11 = vpop.f32.mrf.mxu3 }
 0x87f   : > { %v10313_v42 = vadd.f32 %v10255_v11, %v18465_v9 }
 0x881   : > { %v10365_v12 = vadd.f32 %v18559_v21, %v10313_v42 }
 0x883   : > { %10413 = vst.msk [vmem:[%s18566_s11 + $0x158] sm:$0xff] %vm2104_vm2, %v10365_v12 }
 0x886   : > { %v10258_v32 = vpop.f32.mrf.mxu3 }
 0x887   : > { %v10314_v18 = vadd.f32 %v10258_v32, %v19904_v36 }
 0x889   : > { %v10366_v54 = vadd.f32 %v18559_v21, %v10314_v18 }
 0x88b   : > { %10414 = vst.msk [vmem:[%s18566_s11 + $0x160] sm:$0xff] %vm2104_vm2, %v10366_v54 }
 0x88e   : > { %v10261_v53 = vpop.f32.mrf.mxu3 }
 0x88f   : > { %v10315_v1 = vadd.f32 %v10261_v53, %v18515_v43 }
 0x891   : > { %v10367_v60 = vadd.f32 %v18559_v21, %v10315_v1 }
 0x893   : > { %10415 = vst.msk [vmem:[%s18566_s11 + $0x168] sm:$0xff] %vm2104_vm2, %v10367_v60 }
 0x896   : > { %v10264_v9 = vpop.f32.mrf.mxu3 }
 0x897   : > { %v10316_v44 = vadd.f32 %v10264_v9, %v18532_v15 }
 0x899   : > { %v10368_v0 = vadd.f32 %v18559_v21, %v10316_v44 }
 0x89b   : > { %10416 = vst.msk [vmem:[%s18566_s11 + $0x170] sm:$0xff] %vm2104_vm2, %v10368_v0 }
 0x89e   : > { %v10267_v59 = vpop.f32.mrf.mxu3 }
 0x89f   : > { %v10317_v22 = vadd.f32 %v10267_v59, %v18545_v3 }
 0x8a1   : > { %v10369_v25 = vadd.f32 %v18559_v21, %v10317_v22 }
 0x8a3   : > { %10417 = vst.msk [vmem:[%s18566_s11 + $0x178] sm:$0xff] %vm2104_vm2, %v10369_v25 }
 0x8a4 PF: > { %s17_s24 = sadd.s32 1, %s11448_s24  }
 0x8a5   : > { %p14_p4 = scmp.ge.s32.totalorder %s17_s24, 4  }
 0x8a7   :  { %16 = sbr.rel (!%p14_p4) target bundleno = 1 (0x1), region = 78 }

</bundles_post_ra>
